<compile_context>
chip_gen: v7x
topology: tpu7x:2x2x1
jax: 0.10.0
libtpu: 0.0.40
codegen_flags: <defaults>
</compile_context>

<pallas_src>
import numpy as np

import jax
import jax.numpy as jnp
from jax.experimental import pallas as pl
from jax.experimental.pallas import tpu as pltpu

CPAD = 8          # every channel dim padded to 8 (one sublane tile)
WCOLS = 80        # 72 weight cols (9 taps x 8 padded in-chans) + bias col + zero pad
BIAS_COL = 72


# ----------------------------------------------------------------------------
# Parameter init (deterministic, synthetic) — mirrors the assumed PyTorch defs.
# ----------------------------------------------------------------------------

def init_conv(key, cin, cout, k=3):
    kw, kb = jax.random.split(key)
    fan_in = float(cin * k * k)
    w = jax.random.normal(kw, (cout, cin, k, k), jnp.float32) / jnp.sqrt(fan_in)
    b = jax.random.normal(kb, (cout,), jnp.float32) * 0.01
    return {'w': w, 'b': b}


def init_conv_admm(key, n_convs, cin, cout):
    # TODO(synk): common.ConvADMM assumed to be n_convs 3x3 convs with ReLU
    #             between them (no activation after the last conv).
    ks = jax.random.split(key, n_convs)
    layers, c = [], cin
    for i in range(n_convs):
        layers.append(init_conv(ks[i], c, cout))
        c = cout
    return layers


def init_edsr(key, n_resblocks, n_colors, n_feats):
    # TODO(synk): EDSR assumed without MeanShift/upsampler (scale=1 denoiser):
    #             head conv, n_resblocks residual blocks (conv-relu-conv + skip),
    #             body-tail conv with global skip, tail conv back to n_colors.
    ks = jax.random.split(key, 3 + 2 * n_resblocks)
    return {
        'head': init_conv(ks[0], n_colors, n_feats),
        'body': [(init_conv(ks[1 + 2 * i], n_feats, n_feats),
                  init_conv(ks[2 + 2 * i], n_feats, n_feats))
                 for i in range(n_resblocks)],
        'body_tail': init_conv(ks[1 + 2 * n_resblocks], n_feats, n_feats),
        'tail': init_conv(ks[2 + 2 * n_resblocks], n_feats, n_colors),
    }


def init_mosaic(key, n_channels=4):
    # TODO(synk): Mosaic2DBase assumed to hold a learnable (C, 2, 2) pattern,
    #             softmax-normalized over channels, tiled to the image size,
    #             and applied as a channel-weighted reduction of the input.
    return {'pattern': jax.random.normal(key, (n_channels, 2, 2), jnp.float32)}


def init_admmn(key, n_resblocks, n_admmblocks, in_channels, n_feats, n_convs):
    keys = jax.random.split(key, 6 + n_admmblocks)
    params = {
        'rho': jnp.array([0.01], jnp.float32),
        'mosaic': init_mosaic(keys[0], 4),
        'net1': init_conv_admm(keys[1], n_convs, 1, in_channels),
        'net2': init_conv_admm(keys[2], n_convs, in_channels, in_channels),
        'net3': init_conv_admm(keys[3], n_convs, 1, in_channels),
        'denoiser': init_edsr(keys[4], n_resblocks, in_channels, n_feats),
        'admm_blocks': [],
    }
    for i in range(n_admmblocks):
        bk = jax.random.split(keys[5 + i], 3)
        params['admm_blocks'].append({
            'rho': jnp.array([0.01], jnp.float32),
            'denoiser': init_edsr(bk[0], n_resblocks, in_channels, n_feats),
            'net1': init_conv_admm(bk[1], n_convs, in_channels, in_channels),
            'net2': init_conv_admm(bk[2], n_convs, 1, in_channels),
        })
    return params


# ----------------------------------------------------------------------------
# Host-side packing helpers.
# ----------------------------------------------------------------------------

def _pack_entry(lyr):
    """One conv as an (8, WCOLS) row-block of the consolidated weight slab.

    cin > 1 : col [t*8 + ci] holds weight(tap t, in-channel ci), padded chans 0.
    cin == 1: col [t]        holds weight(tap t) (VPU K=9 path).
    col BIAS_COL holds the bias; remaining cols are zero (K padded to 80).
    """
    w, b = lyr['w'], lyr['b']                       # (cout, cin, 3, 3), (cout,)
    cout, cin = int(w.shape[0]), int(w.shape[1])
    wt = jnp.transpose(w, (2, 3, 0, 1)).reshape(9, cout, cin)      # [t, co, ci]
    if cin == 1:
        core = jnp.pad(jnp.transpose(wt[:, :, 0], (1, 0)),
                       ((0, 0), (0, BIAS_COL - 9)))                # (cout, 72)
    else:
        blk = jnp.pad(wt, ((0, 0), (0, 0), (0, CPAD - cin)))       # (9, cout, 8)
        core = jnp.transpose(blk, (1, 0, 2)).reshape(cout, BIAS_COL)
    ent = jnp.concatenate(
        [core, b.reshape(cout, 1),
         jnp.zeros((cout, WCOLS - BIAS_COL - 1), jnp.float32)], axis=1)
    return jnp.pad(ent, ((0, CPAD - cout), (0, 0)))                # (8, WCOLS)


def _tap_masks(H, W):
    """(9, H*W) f32 validity masks emulating zero padding for a 3x3 conv."""
    hh = np.arange(H)[:, None]
    ww = np.arange(W)[None, :]
    m = np.zeros((9, H * W), np.float32)
    for t in range(9):
        dy, dx = t // 3 - 1, t % 3 - 1
        valid = ((hh + dy >= 0) & (hh + dy < H) &
                 (ww + dx >= 0) & (ww + dx < W))
        m[t] = valid.reshape(-1).astype(np.float32)
    return m


# ----------------------------------------------------------------------------
# Fused forward: one pallas_call, single invocation (batch folded onto lanes).
# ----------------------------------------------------------------------------

def admmn_forward(params, y_in):
    B, Cimg, H, W = y_in.shape
    assert H % 2 == 0 and W % 2 == 0, "2x2 mosaic pattern requires even H, W"
    HW = H * W
    N = B * HW                                   # folded lane axis
    Cf = int(params['denoiser']['tail']['w'].shape[0])   # model in_channels

    # ---- consolidated parameter slab + static execution plan ----------------
    entries = []

    def add_conv(lyr):
        idx = len(entries)
        entries.append(_pack_entry(lyr))
        return (idx, int(lyr['w'].shape[1]) == 1)     # (slab block idx, cin==1)

    def add_conv_admm(layers):
        return [add_conv(l) for l in layers]

    def add_edsr(ep):
        return {'head': add_conv(ep['head']),
                'body': [(add_conv(c1), add_conv(c2)) for c1, c2 in ep['body']],
                'body_tail': add_conv(ep['body_tail']),
                'tail': add_conv(ep['tail'])}

    plan = {
        'net1': add_conv_admm(params['net1']),
        'net2': add_conv_admm(params['net2']),
        'net3': add_conv_admm(params['net3']),
        'denoiser': add_edsr(params['denoiser']),
        'admm_blocks': [{'net1': add_conv_admm(bp['net1']),
                         'net2': add_conv_admm(bp['net2']),
                         'denoiser': add_edsr(bp['denoiser'])}
                        for bp in params['admm_blocks']],
    }
    wslab = jnp.concatenate(entries, axis=0)               # (n_conv*8, WCOLS)
    n_conv = len(entries)

    # ---- per-pixel constants slab: tap masks + tiled mosaic weights ---------
    masks_b = np.tile(_tap_masks(H, W), (1, B))            # (9, N), per-batch tiled
    w_soft = jax.nn.softmax(params['mosaic']['pattern'], axis=0)   # (Cimg, 2, 2)
    w_full = jnp.tile(w_soft, (1, H // 2, W // 2))                  # (Cimg, H, W)
    wm = jnp.tile(w_full.reshape(Cimg, HW), (1, B))                 # (Cimg, N)
    aux = jnp.concatenate([jnp.asarray(masks_b), wm], axis=0)       # (9+Cimg, N)

    # ---- all rho scalars in one SMEM vector ----------------------------------
    rhos = jnp.concatenate([params['rho']] +
                           [bp['rho'] for bp in params['admm_blocks']])

    # ---- batch folded onto the lane axis: lane b*HW + p <-> (batch b, pix p) -
    y2 = jnp.transpose(y_in.reshape(B, Cimg, HW), (1, 0, 2)).reshape(Cimg, N)

    def kernel(y_ref, wslab_ref, aux_ref, rhos_ref, out_ref, col_ref):
        # col_ref: (WCOLS, N) im2col scratch. Row 72 = ones (folds the bias into
        # the matmul); rows 73..79 = 0 (K padding). Rows 0..71 are rewritten by
        # every MXU-path conv before its dot.
        col_ref[BIAS_COL:BIAS_COL + 1, :] = jnp.ones((1, N), jnp.float32)
        col_ref[BIAS_COL + 1:WCOLS, :] = jnp.zeros((WCOLS - BIAS_COL - 1, N),
                                                   jnp.float32)

        def taps(x):
            # 9 views of x: out[:, n] = x[:, n + dy*W + dx], zero outside the
            # image (the mask also kills any roll across the batch seam).
            views = []
            for t in range(9):
                dy, dx = t // 3 - 1, t % 3 - 1
                delta = dy * W + dx
                if delta == 0:
                    views.append(x)
                else:
                    views.append(pltpu.roll(x, (-delta) % N, 1)
                                 * aux_ref[t:t + 1, :])
            return views

        def conv_mxu(x, idx, relu):
            # x: (8, N) channel-padded -> one (8, 80) @ (80, N) MXU dot
            for t, xs in enumerate(taps(x)):
                col_ref[t * CPAD:(t + 1) * CPAD, :] = xs
            wb = wslab_ref[idx * CPAD:(idx + 1) * CPAD, :]         # (8, WCOLS)
            y = jnp.dot(wb, col_ref[...], preferred_element_type=jnp.float32)
            return jnp.maximum(y, 0.0) if relu else y

        def conv_c1(x1, idx, relu):
            # x1: (1, N); K=9 stays on the VPU (outer-product accumulate).
            r0 = idx * CPAD
            acc = None
            for t, xs in enumerate(taps(x1)):
                c = wslab_ref[r0:r0 + CPAD, t:t + 1] * xs          # (8,1)*(1,N)
                acc = c if acc is None else acc + c
            y = acc + wslab_ref[r0:r0 + CPAD, BIAS_COL:BIAS_COL + 1]
            return jnp.maximum(y, 0.0) if relu else y

        def conv(x, spec, relu):
            idx, cin1 = spec
            return conv_c1(x, idx, relu) if cin1 else conv_mxu(x, idx, relu)

        def conv_admm(x, specs):
            n = len(specs)
            for i, s in enumerate(specs):
                x = conv(x, s, relu=(i < n - 1))
            return x

        def edsr(ep, x):
            h = conv(x, ep['head'], relu=False)
            res = h
            for c1, c2 in ep['body']:
                tmp = conv(res, c1, relu=True)
                tmp = conv(tmp, c2, relu=False)
                res = res + tmp
            res = conv(res, ep['body_tail'], relu=False)
            res = res + h
            return conv(res, ep['tail'], relu=False)

        # --- mosaic: channel-weighted reduction to a 1-channel image ----------
        y4 = y_ref[...]                                            # (Cimg, N)
        ym = jnp.sum(y4 * aux_ref[9:9 + Cimg, :], axis=0, keepdims=True)

        # --- ADMM network, all activations VMEM-resident -----------------------
        rho = rhos_ref[0]
        v = conv_admm(ym, plan['net1'])
        x = conv_admm(conv_admm(ym, plan['net3']) + rho * v, plan['net2'])
        v = edsr(plan['denoiser'], x)
        u = v - x
        for bi, bp in enumerate(plan['admm_blocks']):
            brho = rhos_ref[1 + bi]
            xb = conv_admm(conv_admm(ym, bp['net2']) + brho * (v + u),
                           bp['net1'])
            vb = edsr(bp['denoiser'], xb - u)
            u = u - xb + vb
            v = vb

        # merged output: rows 0..7 = channel-padded v, row 8 = mosaic image
        out_ref[0:CPAD, :] = v
        out_ref[CPAD:CPAD + 1, :] = ym

    flops = 2 * n_conv * CPAD * WCOLS * N
    bytes_accessed = 4 * int(y2.size + wslab.size + aux.size + rhos.size
                             + (CPAD + 1) * N)

    out = pl.pallas_call(
        kernel,
        out_shape=jax.ShapeDtypeStruct((CPAD + 1, N), jnp.float32),
        in_specs=[pl.BlockSpec(memory_space=pltpu.MemorySpace.VMEM),   # image
                  pl.BlockSpec(memory_space=pltpu.MemorySpace.VMEM),   # weight slab
                  pl.BlockSpec(memory_space=pltpu.MemorySpace.VMEM),   # masks+mosaic w
                  pl.BlockSpec(memory_space=pltpu.MemorySpace.SMEM)],  # rho scalars
        out_specs=pl.BlockSpec(memory_space=pltpu.MemorySpace.VMEM),
        scratch_shapes=[pltpu.VMEM((WCOLS, N), jnp.float32)],          # im2col
        cost_estimate=pl.CostEstimate(flops=int(flops), transcendentals=0,
                                      bytes_accessed=bytes_accessed),
    )(y2, wslab, aux, rhos)

    # host-side unfold of the lane-packed batch
    v = jnp.transpose(out[:Cf].reshape(Cf, B, HW), (1, 0, 2)).reshape(B, Cf, H, W)
    mosaic = jnp.transpose(out[CPAD:CPAD + 1].reshape(1, B, HW),
                           (1, 0, 2)).reshape(B, 1, H, W)
    return v, w_full, mosaic


# ----------------------------------------------------------------------------
# main
# ----------------------------------------------------------------------------

if __name__ == "__main__":
    key = jax.random.PRNGKey(0)
    kp, kx = jax.random.split(key)
    params = init_admmn(kp, n_resblocks=1, n_admmblocks=1,
                        in_channels=4, n_feats=8, n_convs=2)
    y = jax.random.normal(kx, (2, 4, 16, 16), jnp.float32)

    fwd = jax.jit(admmn_forward)
    v, w, mosaic = fwd(params, y)
    jax.block_until_ready((v, w, mosaic))

    assert v.shape == (2, 4, 16, 16)
    assert w.shape == (4, 16, 16)
    assert mosaic.shape == (2, 1, 16, 16)
    assert bool(jnp.all(jnp.isfinite(v)))
    print("KERNEL_OK")
</pallas_src>

<mosaic_0001>
module attributes {stable_mosaic.version = 11 : i64} {
  func.func @kernel(%arg0: memref<4x512xf32, #tpu.memory_space<vmem>>, %arg1: memref<160x80xf32, #tpu.memory_space<vmem>>, %arg2: memref<13x512xf32, #tpu.memory_space<vmem>>, %arg3: memref<2xf32, #tpu.memory_space<smem>>, %arg4: memref<9x512xf32, #tpu.memory_space<vmem>>, %arg5: memref<80x512xf32, #tpu.memory_space<vmem>>) attributes {dimension_semantics = [], scalar_prefetch = 0 : i64, scratch_operands = 1 : i64, tpu.core_type = #tpu.core_type<tc>} {
    %cst = arith.constant 1.000000e+00 : f32
    %0 = vector.broadcast %cst : f32 to vector<1x512xf32>
    %c72 = arith.constant 72 : index
    %c0 = arith.constant 0 : index
    %1 = vector.load %arg5[%c72, %c0] : memref<80x512xf32, #tpu.memory_space<vmem>>, vector<1x512xf32>
    tpu.vector_store %arg5[%c72, %c0], %0 {strides = array<i32>} : memref<80x512xf32, #tpu.memory_space<vmem>>, vector<1x512xf32>,
    %cst_0 = arith.constant 0.000000e+00 : f32
    %2 = vector.broadcast %cst_0 : f32 to vector<7x512xf32>
    %c73 = arith.constant 73 : index
    %c0_1 = arith.constant 0 : index
    %3 = vector.load %arg5[%c73, %c0_1] : memref<80x512xf32, #tpu.memory_space<vmem>>, vector<7x512xf32>
    tpu.vector_store %arg5[%c73, %c0_1], %2 {strides = array<i32>} : memref<80x512xf32, #tpu.memory_space<vmem>>, vector<7x512xf32>,
    %c0_2 = arith.constant 0 : index
    %c0_3 = arith.constant 0 : index
    %4 = vector.load %arg0[%c0_2, %c0_3] : memref<4x512xf32, #tpu.memory_space<vmem>>, vector<4x512xf32>
    %c9 = arith.constant 9 : index
    %c0_4 = arith.constant 0 : index
    %5 = vector.load %arg2[%c9, %c0_4] : memref<13x512xf32, #tpu.memory_space<vmem>>, vector<4x512xf32>
    %6 = arith.mulf %4, %5 : vector<4x512xf32>
    %cst_5 = arith.constant dense<0.000000e+00> : vector<512xf32>
    %7 = vector.multi_reduction <add>, %6, %cst_5 [0] : vector<4x512xf32> to vector<512xf32>
    %8 = vector.shape_cast %7 : vector<512xf32> to vector<1x512xf32>
    %c0_6 = arith.constant 0 : index
    %9 = memref.load %arg3[%c0_6] : memref<2xf32, #tpu.memory_space<smem>>
    %c17_i32 = arith.constant 17 : i32
    %10 = tpu.dynamic_rotate %8 by %c17_i32 dim 1 : vector<1x512xf32>, i32 -> vector<1x512xf32>
    %c0_7 = arith.constant 0 : index
    %c0_8 = arith.constant 0 : index
    %11 = vector.load %arg2[%c0_7, %c0_8] : memref<13x512xf32, #tpu.memory_space<vmem>>, vector<1x512xf32>
    %12 = arith.mulf %10, %11 : vector<1x512xf32>
    %c16_i32 = arith.constant 16 : i32
    %13 = tpu.dynamic_rotate %8 by %c16_i32 dim 1 : vector<1x512xf32>, i32 -> vector<1x512xf32>
    %c1 = arith.constant 1 : index
    %c0_9 = arith.constant 0 : index
    %14 = vector.load %arg2[%c1, %c0_9] : memref<13x512xf32, #tpu.memory_space<vmem>>, vector<1x512xf32>
    %15 = arith.mulf %13, %14 : vector<1x512xf32>
    %c15_i32 = arith.constant 15 : i32
    %16 = tpu.dynamic_rotate %8 by %c15_i32 dim 1 : vector<1x512xf32>, i32 -> vector<1x512xf32>
    %c2 = arith.constant 2 : index
    %c0_10 = arith.constant 0 : index
    %17 = vector.load %arg2[%c2, %c0_10] : memref<13x512xf32, #tpu.memory_space<vmem>>, vector<1x512xf32>
    %18 = arith.mulf %16, %17 : vector<1x512xf32>
    %c1_i32 = arith.constant 1 : i32
    %19 = tpu.dynamic_rotate %8 by %c1_i32 dim 1 : vector<1x512xf32>, i32 -> vector<1x512xf32>
    %c3 = arith.constant 3 : index
    %c0_11 = arith.constant 0 : index
    %20 = vector.load %arg2[%c3, %c0_11] : memref<13x512xf32, #tpu.memory_space<vmem>>, vector<1x512xf32>
    %21 = arith.mulf %19, %20 : vector<1x512xf32>
    %c511_i32 = arith.constant 511 : i32
    %22 = tpu.dynamic_rotate %8 by %c511_i32 dim 1 : vector<1x512xf32>, i32 -> vector<1x512xf32>
    %c5 = arith.constant 5 : index
    %c0_12 = arith.constant 0 : index
    %23 = vector.load %arg2[%c5, %c0_12] : memref<13x512xf32, #tpu.memory_space<vmem>>, vector<1x512xf32>
    %24 = arith.mulf %22, %23 : vector<1x512xf32>
    %c497_i32 = arith.constant 497 : i32
    %25 = tpu.dynamic_rotate %8 by %c497_i32 dim 1 : vector<1x512xf32>, i32 -> vector<1x512xf32>
    %c6 = arith.constant 6 : index
    %c0_13 = arith.constant 0 : index
    %26 = vector.load %arg2[%c6, %c0_13] : memref<13x512xf32, #tpu.memory_space<vmem>>, vector<1x512xf32>
    %27 = arith.mulf %25, %26 : vector<1x512xf32>
    %c496_i32 = arith.constant 496 : i32
    %28 = tpu.dynamic_rotate %8 by %c496_i32 dim 1 : vector<1x512xf32>, i32 -> vector<1x512xf32>
    %c7 = arith.constant 7 : index
    %c0_14 = arith.constant 0 : index
    %29 = vector.load %arg2[%c7, %c0_14] : memref<13x512xf32, #tpu.memory_space<vmem>>, vector<1x512xf32>
    %30 = arith.mulf %28, %29 : vector<1x512xf32>
    %c495_i32 = arith.constant 495 : i32
    %31 = tpu.dynamic_rotate %8 by %c495_i32 dim 1 : vector<1x512xf32>, i32 -> vector<1x512xf32>
    %c8 = arith.constant 8 : index
    %c0_15 = arith.constant 0 : index
    %32 = vector.load %arg2[%c8, %c0_15] : memref<13x512xf32, #tpu.memory_space<vmem>>, vector<1x512xf32>
    %33 = arith.mulf %31, %32 : vector<1x512xf32>
    %c0_16 = arith.constant 0 : index
    %c0_17 = arith.constant 0 : index
    %34 = vector.load %arg1[%c0_16, %c0_17] : memref<160x80xf32, #tpu.memory_space<vmem>>, vector<8x1xf32>
    %35 = vector.broadcast %34 : vector<8x1xf32> to vector<8x512xf32>
    %36 = vector.broadcast %12 : vector<1x512xf32> to vector<8x512xf32>
    %37 = arith.mulf %35, %36 : vector<8x512xf32>
    %c0_18 = arith.constant 0 : index
    %c1_19 = arith.constant 1 : index
    %38 = vector.load %arg1[%c0_18, %c1_19] : memref<160x80xf32, #tpu.memory_space<vmem>>, vector<8x1xf32>
    %39 = vector.broadcast %38 : vector<8x1xf32> to vector<8x512xf32>
    %40 = vector.broadcast %15 : vector<1x512xf32> to vector<8x512xf32>
    %41 = arith.mulf %39, %40 : vector<8x512xf32>
    %42 = arith.addf %37, %41 : vector<8x512xf32>
    %c0_20 = arith.constant 0 : index
    %c2_21 = arith.constant 2 : index
    %43 = vector.load %arg1[%c0_20, %c2_21] : memref<160x80xf32, #tpu.memory_space<vmem>>, vector<8x1xf32>
    %44 = vector.broadcast %43 : vector<8x1xf32> to vector<8x512xf32>
    %45 = vector.broadcast %18 : vector<1x512xf32> to vector<8x512xf32>
    %46 = arith.mulf %44, %45 : vector<8x512xf32>
    %47 = arith.addf %42, %46 : vector<8x512xf32>
    %c0_22 = arith.constant 0 : index
    %c3_23 = arith.constant 3 : index
    %48 = vector.load %arg1[%c0_22, %c3_23] : memref<160x80xf32, #tpu.memory_space<vmem>>, vector<8x1xf32>
    %49 = vector.broadcast %48 : vector<8x1xf32> to vector<8x512xf32>
    %50 = vector.broadcast %21 : vector<1x512xf32> to vector<8x512xf32>
    %51 = arith.mulf %49, %50 : vector<8x512xf32>
    %52 = arith.addf %47, %51 : vector<8x512xf32>
    %c0_24 = arith.constant 0 : index
    %c4 = arith.constant 4 : index
    %53 = vector.load %arg1[%c0_24, %c4] : memref<160x80xf32, #tpu.memory_space<vmem>>, vector<8x1xf32>
    %54 = vector.broadcast %53 : vector<8x1xf32> to vector<8x512xf32>
    %55 = vector.broadcast %8 : vector<1x512xf32> to vector<8x512xf32>
    %56 = arith.mulf %54, %55 : vector<8x512xf32>
    %57 = arith.addf %52, %56 : vector<8x512xf32>
    %c0_25 = arith.constant 0 : index
    %c5_26 = arith.constant 5 : index
    %58 = vector.load %arg1[%c0_25, %c5_26] : memref<160x80xf32, #tpu.memory_space<vmem>>, vector<8x1xf32>
    %59 = vector.broadcast %58 : vector<8x1xf32> to vector<8x512xf32>
    %60 = vector.broadcast %24 : vector<1x512xf32> to vector<8x512xf32>
    %61 = arith.mulf %59, %60 : vector<8x512xf32>
    %62 = arith.addf %57, %61 : vector<8x512xf32>
    %c0_27 = arith.constant 0 : index
    %c6_28 = arith.constant 6 : index
    %63 = vector.load %arg1[%c0_27, %c6_28] : memref<160x80xf32, #tpu.memory_space<vmem>>, vector<8x1xf32>
    %64 = vector.broadcast %63 : vector<8x1xf32> to vector<8x512xf32>
    %65 = vector.broadcast %27 : vector<1x512xf32> to vector<8x512xf32>
    %66 = arith.mulf %64, %65 : vector<8x512xf32>
    %67 = arith.addf %62, %66 : vector<8x512xf32>
    %c0_29 = arith.constant 0 : index
    %c7_30 = arith.constant 7 : index
    %68 = vector.load %arg1[%c0_29, %c7_30] : memref<160x80xf32, #tpu.memory_space<vmem>>, vector<8x1xf32>
    %69 = vector.broadcast %68 : vector<8x1xf32> to vector<8x512xf32>
    %70 = vector.broadcast %30 : vector<1x512xf32> to vector<8x512xf32>
    %71 = arith.mulf %69, %70 : vector<8x512xf32>
    %72 = arith.addf %67, %71 : vector<8x512xf32>
    %c0_31 = arith.constant 0 : index
    %c8_32 = arith.constant 8 : index
    %73 = vector.load %arg1[%c0_31, %c8_32] : memref<160x80xf32, #tpu.memory_space<vmem>>, vector<8x1xf32>
    %74 = vector.broadcast %73 : vector<8x1xf32> to vector<8x512xf32>
    %75 = vector.broadcast %33 : vector<1x512xf32> to vector<8x512xf32>
    %76 = arith.mulf %74, %75 : vector<8x512xf32>
    %77 = arith.addf %72, %76 : vector<8x512xf32>
    %c0_33 = arith.constant 0 : index
    %c72_34 = arith.constant 72 : index
    %78 = vector.load %arg1[%c0_33, %c72_34] : memref<160x80xf32, #tpu.memory_space<vmem>>, vector<8x1xf32>
    %79 = vector.broadcast %78 : vector<8x1xf32> to vector<8x512xf32>
    %80 = arith.addf %77, %79 : vector<8x512xf32>
    %cst_35 = arith.constant 0.000000e+00 : f32
    %81 = vector.broadcast %cst_35 : f32 to vector<8x512xf32>
    %82 = arith.maximumf %80, %81 : vector<8x512xf32>
    %c17_i32_36 = arith.constant 17 : i32
    %83 = tpu.dynamic_rotate %82 by %c17_i32_36 dim 1 : vector<8x512xf32>, i32 -> vector<8x512xf32>
    %c0_37 = arith.constant 0 : index
    %c0_38 = arith.constant 0 : index
    %84 = vector.load %arg2[%c0_37, %c0_38] : memref<13x512xf32, #tpu.memory_space<vmem>>, vector<1x512xf32>
    %85 = vector.broadcast %84 : vector<1x512xf32> to vector<8x512xf32>
    %86 = arith.mulf %83, %85 : vector<8x512xf32>
    %c16_i32_39 = arith.constant 16 : i32
    %87 = tpu.dynamic_rotate %82 by %c16_i32_39 dim 1 : vector<8x512xf32>, i32 -> vector<8x512xf32>
    %c1_40 = arith.constant 1 : index
    %c0_41 = arith.constant 0 : index
    %88 = vector.load %arg2[%c1_40, %c0_41] : memref<13x512xf32, #tpu.memory_space<vmem>>, vector<1x512xf32>
    %89 = vector.broadcast %88 : vector<1x512xf32> to vector<8x512xf32>
    %90 = arith.mulf %87, %89 : vector<8x512xf32>
    %c15_i32_42 = arith.constant 15 : i32
    %91 = tpu.dynamic_rotate %82 by %c15_i32_42 dim 1 : vector<8x512xf32>, i32 -> vector<8x512xf32>
    %c2_43 = arith.constant 2 : index
    %c0_44 = arith.constant 0 : index
    %92 = vector.load %arg2[%c2_43, %c0_44] : memref<13x512xf32, #tpu.memory_space<vmem>>, vector<1x512xf32>
    %93 = vector.broadcast %92 : vector<1x512xf32> to vector<8x512xf32>
    %94 = arith.mulf %91, %93 : vector<8x512xf32>
    %c1_i32_45 = arith.constant 1 : i32
    %95 = tpu.dynamic_rotate %82 by %c1_i32_45 dim 1 : vector<8x512xf32>, i32 -> vector<8x512xf32>
    %c3_46 = arith.constant 3 : index
    %c0_47 = arith.constant 0 : index
    %96 = vector.load %arg2[%c3_46, %c0_47] : memref<13x512xf32, #tpu.memory_space<vmem>>, vector<1x512xf32>
    %97 = vector.broadcast %96 : vector<1x512xf32> to vector<8x512xf32>
    %98 = arith.mulf %95, %97 : vector<8x512xf32>
    %c511_i32_48 = arith.constant 511 : i32
    %99 = tpu.dynamic_rotate %82 by %c511_i32_48 dim 1 : vector<8x512xf32>, i32 -> vector<8x512xf32>
    %c5_49 = arith.constant 5 : index
    %c0_50 = arith.constant 0 : index
    %100 = vector.load %arg2[%c5_49, %c0_50] : memref<13x512xf32, #tpu.memory_space<vmem>>, vector<1x512xf32>
    %101 = vector.broadcast %100 : vector<1x512xf32> to vector<8x512xf32>
    %102 = arith.mulf %99, %101 : vector<8x512xf32>
    %c497_i32_51 = arith.constant 497 : i32
    %103 = tpu.dynamic_rotate %82 by %c497_i32_51 dim 1 : vector<8x512xf32>, i32 -> vector<8x512xf32>
    %c6_52 = arith.constant 6 : index
    %c0_53 = arith.constant 0 : index
    %104 = vector.load %arg2[%c6_52, %c0_53] : memref<13x512xf32, #tpu.memory_space<vmem>>, vector<1x512xf32>
    %105 = vector.broadcast %104 : vector<1x512xf32> to vector<8x512xf32>
    %106 = arith.mulf %103, %105 : vector<8x512xf32>
    %c496_i32_54 = arith.constant 496 : i32
    %107 = tpu.dynamic_rotate %82 by %c496_i32_54 dim 1 : vector<8x512xf32>, i32 -> vector<8x512xf32>
    %c7_55 = arith.constant 7 : index
    %c0_56 = arith.constant 0 : index
    %108 = vector.load %arg2[%c7_55, %c0_56] : memref<13x512xf32, #tpu.memory_space<vmem>>, vector<1x512xf32>
    %109 = vector.broadcast %108 : vector<1x512xf32> to vector<8x512xf32>
    %110 = arith.mulf %107, %109 : vector<8x512xf32>
    %c495_i32_57 = arith.constant 495 : i32
    %111 = tpu.dynamic_rotate %82 by %c495_i32_57 dim 1 : vector<8x512xf32>, i32 -> vector<8x512xf32>
    %c8_58 = arith.constant 8 : index
    %c0_59 = arith.constant 0 : index
    %112 = vector.load %arg2[%c8_58, %c0_59] : memref<13x512xf32, #tpu.memory_space<vmem>>, vector<1x512xf32>
    %113 = vector.broadcast %112 : vector<1x512xf32> to vector<8x512xf32>
    %114 = arith.mulf %111, %113 : vector<8x512xf32>
    %c0_60 = arith.constant 0 : index
    %c0_61 = arith.constant 0 : index
    %115 = vector.load %arg5[%c0_60, %c0_61] : memref<80x512xf32, #tpu.memory_space<vmem>>, vector<8x512xf32>
    tpu.vector_store %arg5[%c0_60, %c0_61], %86 {strides = array<i32>} : memref<80x512xf32, #tpu.memory_space<vmem>>, vector<8x512xf32>,
    %c8_62 = arith.constant 8 : index
    %c0_63 = arith.constant 0 : index
    %116 = vector.load %arg5[%c8_62, %c0_63] : memref<80x512xf32, #tpu.memory_space<vmem>>, vector<8x512xf32>
    tpu.vector_store %arg5[%c8_62, %c0_63], %90 {strides = array<i32>} : memref<80x512xf32, #tpu.memory_space<vmem>>, vector<8x512xf32>,
    %c16 = arith.constant 16 : index
    %c0_64 = arith.constant 0 : index
    %117 = vector.load %arg5[%c16, %c0_64] : memref<80x512xf32, #tpu.memory_space<vmem>>, vector<8x512xf32>
    tpu.vector_store %arg5[%c16, %c0_64], %94 {strides = array<i32>} : memref<80x512xf32, #tpu.memory_space<vmem>>, vector<8x512xf32>,
    %c24 = arith.constant 24 : index
    %c0_65 = arith.constant 0 : index
    %118 = vector.load %arg5[%c24, %c0_65] : memref<80x512xf32, #tpu.memory_space<vmem>>, vector<8x512xf32>
    tpu.vector_store %arg5[%c24, %c0_65], %98 {strides = array<i32>} : memref<80x512xf32, #tpu.memory_space<vmem>>, vector<8x512xf32>,
    %c32 = arith.constant 32 : index
    %c0_66 = arith.constant 0 : index
    %119 = vector.load %arg5[%c32, %c0_66] : memref<80x512xf32, #tpu.memory_space<vmem>>, vector<8x512xf32>
    tpu.vector_store %arg5[%c32, %c0_66], %82 {strides = array<i32>} : memref<80x512xf32, #tpu.memory_space<vmem>>, vector<8x512xf32>,
    %c40 = arith.constant 40 : index
    %c0_67 = arith.constant 0 : index
    %120 = vector.load %arg5[%c40, %c0_67] : memref<80x512xf32, #tpu.memory_space<vmem>>, vector<8x512xf32>
    tpu.vector_store %arg5[%c40, %c0_67], %102 {strides = array<i32>} : memref<80x512xf32, #tpu.memory_space<vmem>>, vector<8x512xf32>,
    %c48 = arith.constant 48 : index
    %c0_68 = arith.constant 0 : index
    %121 = vector.load %arg5[%c48, %c0_68] : memref<80x512xf32, #tpu.memory_space<vmem>>, vector<8x512xf32>
    tpu.vector_store %arg5[%c48, %c0_68], %106 {strides = array<i32>} : memref<80x512xf32, #tpu.memory_space<vmem>>, vector<8x512xf32>,
    %c56 = arith.constant 56 : index
    %c0_69 = arith.constant 0 : index
    %122 = vector.load %arg5[%c56, %c0_69] : memref<80x512xf32, #tpu.memory_space<vmem>>, vector<8x512xf32>
    tpu.vector_store %arg5[%c56, %c0_69], %110 {strides = array<i32>} : memref<80x512xf32, #tpu.memory_space<vmem>>, vector<8x512xf32>,
    %c64 = arith.constant 64 : index
    %c0_70 = arith.constant 0 : index
    %123 = vector.load %arg5[%c64, %c0_70] : memref<80x512xf32, #tpu.memory_space<vmem>>, vector<8x512xf32>
    tpu.vector_store %arg5[%c64, %c0_70], %114 {strides = array<i32>} : memref<80x512xf32, #tpu.memory_space<vmem>>, vector<8x512xf32>,
    %c8_71 = arith.constant 8 : index
    %c0_72 = arith.constant 0 : index
    %124 = vector.load %arg1[%c8_71, %c0_72] : memref<160x80xf32, #tpu.memory_space<vmem>>, vector<8x80xf32>
    %c0_73 = arith.constant 0 : index
    %c0_74 = arith.constant 0 : index
    %125 = vector.load %arg5[%c0_73, %c0_74] : memref<80x512xf32, #tpu.memory_space<vmem>>, vector<80x512xf32>
    %cst_75 = arith.constant dense<0.000000e+00> : vector<8x512xf32>
    %126 = tpu.matmul %124, %125, %cst_75 {dimension_numbers = #tpu.dot_dimension_numbers<[1], [0], [0], [1], [0, 0, 1, 1], [], []>} : vector<8x80xf32>, vector<80x512xf32>, vector<8x512xf32> -> vector<8x512xf32>
    %c17_i32_76 = arith.constant 17 : i32
    %127 = tpu.dynamic_rotate %8 by %c17_i32_76 dim 1 : vector<1x512xf32>, i32 -> vector<1x512xf32>
    %c0_77 = arith.constant 0 : index
    %c0_78 = arith.constant 0 : index
    %128 = vector.load %arg2[%c0_77, %c0_78] : memref<13x512xf32, #tpu.memory_space<vmem>>, vector<1x512xf32>
    %129 = arith.mulf %127, %128 : vector<1x512xf32>
    %c16_i32_79 = arith.constant 16 : i32
    %130 = tpu.dynamic_rotate %8 by %c16_i32_79 dim 1 : vector<1x512xf32>, i32 -> vector<1x512xf32>
    %c1_80 = arith.constant 1 : index
    %c0_81 = arith.constant 0 : index
    %131 = vector.load %arg2[%c1_80, %c0_81] : memref<13x512xf32, #tpu.memory_space<vmem>>, vector<1x512xf32>
    %132 = arith.mulf %130, %131 : vector<1x512xf32>
    %c15_i32_82 = arith.constant 15 : i32
    %133 = tpu.dynamic_rotate %8 by %c15_i32_82 dim 1 : vector<1x512xf32>, i32 -> vector<1x512xf32>
    %c2_83 = arith.constant 2 : index
    %c0_84 = arith.constant 0 : index
    %134 = vector.load %arg2[%c2_83, %c0_84] : memref<13x512xf32, #tpu.memory_space<vmem>>, vector<1x512xf32>
    %135 = arith.mulf %133, %134 : vector<1x512xf32>
    %c1_i32_85 = arith.constant 1 : i32
    %136 = tpu.dynamic_rotate %8 by %c1_i32_85 dim 1 : vector<1x512xf32>, i32 -> vector<1x512xf32>
    %c3_86 = arith.constant 3 : index
    %c0_87 = arith.constant 0 : index
    %137 = vector.load %arg2[%c3_86, %c0_87] : memref<13x512xf32, #tpu.memory_space<vmem>>, vector<1x512xf32>
    %138 = arith.mulf %136, %137 : vector<1x512xf32>
    %c511_i32_88 = arith.constant 511 : i32
    %139 = tpu.dynamic_rotate %8 by %c511_i32_88 dim 1 : vector<1x512xf32>, i32 -> vector<1x512xf32>
    %c5_89 = arith.constant 5 : index
    %c0_90 = arith.constant 0 : index
    %140 = vector.load %arg2[%c5_89, %c0_90] : memref<13x512xf32, #tpu.memory_space<vmem>>, vector<1x512xf32>
    %141 = arith.mulf %139, %140 : vector<1x512xf32>
    %c497_i32_91 = arith.constant 497 : i32
    %142 = tpu.dynamic_rotate %8 by %c497_i32_91 dim 1 : vector<1x512xf32>, i32 -> vector<1x512xf32>
    %c6_92 = arith.constant 6 : index
    %c0_93 = arith.constant 0 : index
    %143 = vector.load %arg2[%c6_92, %c0_93] : memref<13x512xf32, #tpu.memory_space<vmem>>, vector<1x512xf32>
    %144 = arith.mulf %142, %143 : vector<1x512xf32>
    %c496_i32_94 = arith.constant 496 : i32
    %145 = tpu.dynamic_rotate %8 by %c496_i32_94 dim 1 : vector<1x512xf32>, i32 -> vector<1x512xf32>
    %c7_95 = arith.constant 7 : index
    %c0_96 = arith.constant 0 : index
    %146 = vector.load %arg2[%c7_95, %c0_96] : memref<13x512xf32, #tpu.memory_space<vmem>>, vector<1x512xf32>
    %147 = arith.mulf %145, %146 : vector<1x512xf32>
    %c495_i32_97 = arith.constant 495 : i32
    %148 = tpu.dynamic_rotate %8 by %c495_i32_97 dim 1 : vector<1x512xf32>, i32 -> vector<1x512xf32>
    %c8_98 = arith.constant 8 : index
    %c0_99 = arith.constant 0 : index
    %149 = vector.load %arg2[%c8_98, %c0_99] : memref<13x512xf32, #tpu.memory_space<vmem>>, vector<1x512xf32>
    %150 = arith.mulf %148, %149 : vector<1x512xf32>
    %c32_100 = arith.constant 32 : index
    %c0_101 = arith.constant 0 : index
    %151 = vector.load %arg1[%c32_100, %c0_101] : memref<160x80xf32, #tpu.memory_space<vmem>>, vector<8x1xf32>
    %152 = vector.broadcast %151 : vector<8x1xf32> to vector<8x512xf32>
    %153 = vector.broadcast %129 : vector<1x512xf32> to vector<8x512xf32>
    %154 = arith.mulf %152, %153 : vector<8x512xf32>
    %c32_102 = arith.constant 32 : index
    %c1_103 = arith.constant 1 : index
    %155 = vector.load %arg1[%c32_102, %c1_103] : memref<160x80xf32, #tpu.memory_space<vmem>>, vector<8x1xf32>
    %156 = vector.broadcast %155 : vector<8x1xf32> to vector<8x512xf32>
    %157 = vector.broadcast %132 : vector<1x512xf32> to vector<8x512xf32>
    %158 = arith.mulf %156, %157 : vector<8x512xf32>
    %159 = arith.addf %154, %158 : vector<8x512xf32>
    %c32_104 = arith.constant 32 : index
    %c2_105 = arith.constant 2 : index
    %160 = vector.load %arg1[%c32_104, %c2_105] : memref<160x80xf32, #tpu.memory_space<vmem>>, vector<8x1xf32>
    %161 = vector.broadcast %160 : vector<8x1xf32> to vector<8x512xf32>
    %162 = vector.broadcast %135 : vector<1x512xf32> to vector<8x512xf32>
    %163 = arith.mulf %161, %162 : vector<8x512xf32>
    %164 = arith.addf %159, %163 : vector<8x512xf32>
    %c32_106 = arith.constant 32 : index
    %c3_107 = arith.constant 3 : index
    %165 = vector.load %arg1[%c32_106, %c3_107] : memref<160x80xf32, #tpu.memory_space<vmem>>, vector<8x1xf32>
    %166 = vector.broadcast %165 : vector<8x1xf32> to vector<8x512xf32>
    %167 = vector.broadcast %138 : vector<1x512xf32> to vector<8x512xf32>
    %168 = arith.mulf %166, %167 : vector<8x512xf32>
    %169 = arith.addf %164, %168 : vector<8x512xf32>
    %c32_108 = arith.constant 32 : index
    %c4_109 = arith.constant 4 : index
    %170 = vector.load %arg1[%c32_108, %c4_109] : memref<160x80xf32, #tpu.memory_space<vmem>>, vector<8x1xf32>
    %171 = vector.broadcast %170 : vector<8x1xf32> to vector<8x512xf32>
    %172 = vector.broadcast %8 : vector<1x512xf32> to vector<8x512xf32>
    %173 = arith.mulf %171, %172 : vector<8x512xf32>
    %174 = arith.addf %169, %173 : vector<8x512xf32>
    %c32_110 = arith.constant 32 : index
    %c5_111 = arith.constant 5 : index
    %175 = vector.load %arg1[%c32_110, %c5_111] : memref<160x80xf32, #tpu.memory_space<vmem>>, vector<8x1xf32>
    %176 = vector.broadcast %175 : vector<8x1xf32> to vector<8x512xf32>
    %177 = vector.broadcast %141 : vector<1x512xf32> to vector<8x512xf32>
    %178 = arith.mulf %176, %177 : vector<8x512xf32>
    %179 = arith.addf %174, %178 : vector<8x512xf32>
    %c32_112 = arith.constant 32 : index
    %c6_113 = arith.constant 6 : index
    %180 = vector.load %arg1[%c32_112, %c6_113] : memref<160x80xf32, #tpu.memory_space<vmem>>, vector<8x1xf32>
    %181 = vector.broadcast %180 : vector<8x1xf32> to vector<8x512xf32>
    %182 = vector.broadcast %144 : vector<1x512xf32> to vector<8x512xf32>
    %183 = arith.mulf %181, %182 : vector<8x512xf32>
    %184 = arith.addf %179, %183 : vector<8x512xf32>
    %c32_114 = arith.constant 32 : index
    %c7_115 = arith.constant 7 : index
    %185 = vector.load %arg1[%c32_114, %c7_115] : memref<160x80xf32, #tpu.memory_space<vmem>>, vector<8x1xf32>
    %186 = vector.broadcast %185 : vector<8x1xf32> to vector<8x512xf32>
    %187 = vector.broadcast %147 : vector<1x512xf32> to vector<8x512xf32>
    %188 = arith.mulf %186, %187 : vector<8x512xf32>
    %189 = arith.addf %184, %188 : vector<8x512xf32>
    %c32_116 = arith.constant 32 : index
    %c8_117 = arith.constant 8 : index
    %190 = vector.load %arg1[%c32_116, %c8_117] : memref<160x80xf32, #tpu.memory_space<vmem>>, vector<8x1xf32>
    %191 = vector.broadcast %190 : vector<8x1xf32> to vector<8x512xf32>
    %192 = vector.broadcast %150 : vector<1x512xf32> to vector<8x512xf32>
    %193 = arith.mulf %191, %192 : vector<8x512xf32>
    %194 = arith.addf %189, %193 : vector<8x512xf32>
    %c32_118 = arith.constant 32 : index
    %c72_119 = arith.constant 72 : index
    %195 = vector.load %arg1[%c32_118, %c72_119] : memref<160x80xf32, #tpu.memory_space<vmem>>, vector<8x1xf32>
    %196 = vector.broadcast %195 : vector<8x1xf32> to vector<8x512xf32>
    %197 = arith.addf %194, %196 : vector<8x512xf32>
    %cst_120 = arith.constant 0.000000e+00 : f32
    %198 = vector.broadcast %cst_120 : f32 to vector<8x512xf32>
    %199 = arith.maximumf %197, %198 : vector<8x512xf32>
    %c17_i32_121 = arith.constant 17 : i32
    %200 = tpu.dynamic_rotate %199 by %c17_i32_121 dim 1 : vector<8x512xf32>, i32 -> vector<8x512xf32>
    %c0_122 = arith.constant 0 : index
    %c0_123 = arith.constant 0 : index
    %201 = vector.load %arg2[%c0_122, %c0_123] : memref<13x512xf32, #tpu.memory_space<vmem>>, vector<1x512xf32>
    %202 = vector.broadcast %201 : vector<1x512xf32> to vector<8x512xf32>
    %203 = arith.mulf %200, %202 : vector<8x512xf32>
    %c16_i32_124 = arith.constant 16 : i32
    %204 = tpu.dynamic_rotate %199 by %c16_i32_124 dim 1 : vector<8x512xf32>, i32 -> vector<8x512xf32>
    %c1_125 = arith.constant 1 : index
    %c0_126 = arith.constant 0 : index
    %205 = vector.load %arg2[%c1_125, %c0_126] : memref<13x512xf32, #tpu.memory_space<vmem>>, vector<1x512xf32>
    %206 = vector.broadcast %205 : vector<1x512xf32> to vector<8x512xf32>
    %207 = arith.mulf %204, %206 : vector<8x512xf32>
    %c15_i32_127 = arith.constant 15 : i32
    %208 = tpu.dynamic_rotate %199 by %c15_i32_127 dim 1 : vector<8x512xf32>, i32 -> vector<8x512xf32>
    %c2_128 = arith.constant 2 : index
    %c0_129 = arith.constant 0 : index
    %209 = vector.load %arg2[%c2_128, %c0_129] : memref<13x512xf32, #tpu.memory_space<vmem>>, vector<1x512xf32>
    %210 = vector.broadcast %209 : vector<1x512xf32> to vector<8x512xf32>
    %211 = arith.mulf %208, %210 : vector<8x512xf32>
    %c1_i32_130 = arith.constant 1 : i32
    %212 = tpu.dynamic_rotate %199 by %c1_i32_130 dim 1 : vector<8x512xf32>, i32 -> vector<8x512xf32>
    %c3_131 = arith.constant 3 : index
    %c0_132 = arith.constant 0 : index
    %213 = vector.load %arg2[%c3_131, %c0_132] : memref<13x512xf32, #tpu.memory_space<vmem>>, vector<1x512xf32>
    %214 = vector.broadcast %213 : vector<1x512xf32> to vector<8x512xf32>
    %215 = arith.mulf %212, %214 : vector<8x512xf32>
    %c511_i32_133 = arith.constant 511 : i32
    %216 = tpu.dynamic_rotate %199 by %c511_i32_133 dim 1 : vector<8x512xf32>, i32 -> vector<8x512xf32>
    %c5_134 = arith.constant 5 : index
    %c0_135 = arith.constant 0 : index
    %217 = vector.load %arg2[%c5_134, %c0_135] : memref<13x512xf32, #tpu.memory_space<vmem>>, vector<1x512xf32>
    %218 = vector.broadcast %217 : vector<1x512xf32> to vector<8x512xf32>
    %219 = arith.mulf %216, %218 : vector<8x512xf32>
    %c497_i32_136 = arith.constant 497 : i32
    %220 = tpu.dynamic_rotate %199 by %c497_i32_136 dim 1 : vector<8x512xf32>, i32 -> vector<8x512xf32>
    %c6_137 = arith.constant 6 : index
    %c0_138 = arith.constant 0 : index
    %221 = vector.load %arg2[%c6_137, %c0_138] : memref<13x512xf32, #tpu.memory_space<vmem>>, vector<1x512xf32>
    %222 = vector.broadcast %221 : vector<1x512xf32> to vector<8x512xf32>
    %223 = arith.mulf %220, %222 : vector<8x512xf32>
    %c496_i32_139 = arith.constant 496 : i32
    %224 = tpu.dynamic_rotate %199 by %c496_i32_139 dim 1 : vector<8x512xf32>, i32 -> vector<8x512xf32>
    %c7_140 = arith.constant 7 : index
    %c0_141 = arith.constant 0 : index
    %225 = vector.load %arg2[%c7_140, %c0_141] : memref<13x512xf32, #tpu.memory_space<vmem>>, vector<1x512xf32>
    %226 = vector.broadcast %225 : vector<1x512xf32> to vector<8x512xf32>
    %227 = arith.mulf %224, %226 : vector<8x512xf32>
    %c495_i32_142 = arith.constant 495 : i32
    %228 = tpu.dynamic_rotate %199 by %c495_i32_142 dim 1 : vector<8x512xf32>, i32 -> vector<8x512xf32>
    %c8_143 = arith.constant 8 : index
    %c0_144 = arith.constant 0 : index
    %229 = vector.load %arg2[%c8_143, %c0_144] : memref<13x512xf32, #tpu.memory_space<vmem>>, vector<1x512xf32>
    %230 = vector.broadcast %229 : vector<1x512xf32> to vector<8x512xf32>
    %231 = arith.mulf %228, %230 : vector<8x512xf32>
    %c0_145 = arith.constant 0 : index
    %c0_146 = arith.constant 0 : index
    %232 = vector.load %arg5[%c0_145, %c0_146] : memref<80x512xf32, #tpu.memory_space<vmem>>, vector<8x512xf32>
    tpu.vector_store %arg5[%c0_145, %c0_146], %203 {strides = array<i32>} : memref<80x512xf32, #tpu.memory_space<vmem>>, vector<8x512xf32>,
    %c8_147 = arith.constant 8 : index
    %c0_148 = arith.constant 0 : index
    %233 = vector.load %arg5[%c8_147, %c0_148] : memref<80x512xf32, #tpu.memory_space<vmem>>, vector<8x512xf32>
    tpu.vector_store %arg5[%c8_147, %c0_148], %207 {strides = array<i32>} : memref<80x512xf32, #tpu.memory_space<vmem>>, vector<8x512xf32>,
    %c16_149 = arith.constant 16 : index
    %c0_150 = arith.constant 0 : index
    %234 = vector.load %arg5[%c16_149, %c0_150] : memref<80x512xf32, #tpu.memory_space<vmem>>, vector<8x512xf32>
    tpu.vector_store %arg5[%c16_149, %c0_150], %211 {strides = array<i32>} : memref<80x512xf32, #tpu.memory_space<vmem>>, vector<8x512xf32>,
    %c24_151 = arith.constant 24 : index
    %c0_152 = arith.constant 0 : index
    %235 = vector.load %arg5[%c24_151, %c0_152] : memref<80x512xf32, #tpu.memory_space<vmem>>, vector<8x512xf32>
    tpu.vector_store %arg5[%c24_151, %c0_152], %215 {strides = array<i32>} : memref<80x512xf32, #tpu.memory_space<vmem>>, vector<8x512xf32>,
    %c32_153 = arith.constant 32 : index
    %c0_154 = arith.constant 0 : index
    %236 = vector.load %arg5[%c32_153, %c0_154] : memref<80x512xf32, #tpu.memory_space<vmem>>, vector<8x512xf32>
    tpu.vector_store %arg5[%c32_153, %c0_154], %199 {strides = array<i32>} : memref<80x512xf32, #tpu.memory_space<vmem>>, vector<8x512xf32>,
    %c40_155 = arith.constant 40 : index
    %c0_156 = arith.constant 0 : index
    %237 = vector.load %arg5[%c40_155, %c0_156] : memref<80x512xf32, #tpu.memory_space<vmem>>, vector<8x512xf32>
    tpu.vector_store %arg5[%c40_155, %c0_156], %219 {strides = array<i32>} : memref<80x512xf32, #tpu.memory_space<vmem>>, vector<8x512xf32>,
    %c48_157 = arith.constant 48 : index
    %c0_158 = arith.constant 0 : index
    %238 = vector.load %arg5[%c48_157, %c0_158] : memref<80x512xf32, #tpu.memory_space<vmem>>, vector<8x512xf32>
    tpu.vector_store %arg5[%c48_157, %c0_158], %223 {strides = array<i32>} : memref<80x512xf32, #tpu.memory_space<vmem>>, vector<8x512xf32>,
    %c56_159 = arith.constant 56 : index
    %c0_160 = arith.constant 0 : index
    %239 = vector.load %arg5[%c56_159, %c0_160] : memref<80x512xf32, #tpu.memory_space<vmem>>, vector<8x512xf32>
    tpu.vector_store %arg5[%c56_159, %c0_160], %227 {strides = array<i32>} : memref<80x512xf32, #tpu.memory_space<vmem>>, vector<8x512xf32>,
    %c64_161 = arith.constant 64 : index
    %c0_162 = arith.constant 0 : index
    %240 = vector.load %arg5[%c64_161, %c0_162] : memref<80x512xf32, #tpu.memory_space<vmem>>, vector<8x512xf32>
    tpu.vector_store %arg5[%c64_161, %c0_162], %231 {strides = array<i32>} : memref<80x512xf32, #tpu.memory_space<vmem>>, vector<8x512xf32>,
    %c40_163 = arith.constant 40 : index
    %c0_164 = arith.constant 0 : index
    %241 = vector.load %arg1[%c40_163, %c0_164] : memref<160x80xf32, #tpu.memory_space<vmem>>, vector<8x80xf32>
    %c0_165 = arith.constant 0 : index
    %c0_166 = arith.constant 0 : index
    %242 = vector.load %arg5[%c0_165, %c0_166] : memref<80x512xf32, #tpu.memory_space<vmem>>, vector<80x512xf32>
    %cst_167 = arith.constant dense<0.000000e+00> : vector<8x512xf32>
    %243 = tpu.matmul %241, %242, %cst_167 {dimension_numbers = #tpu.dot_dimension_numbers<[1], [0], [0], [1], [0, 0, 1, 1], [], []>} : vector<8x80xf32>, vector<80x512xf32>, vector<8x512xf32> -> vector<8x512xf32>
    %244 = vector.broadcast %9 : f32 to vector<8x512xf32>
    %245 = arith.mulf %244, %126 : vector<8x512xf32>
    %246 = arith.addf %243, %245 : vector<8x512xf32>
    %c17_i32_168 = arith.constant 17 : i32
    %247 = tpu.dynamic_rotate %246 by %c17_i32_168 dim 1 : vector<8x512xf32>, i32 -> vector<8x512xf32>
    %c0_169 = arith.constant 0 : index
    %c0_170 = arith.constant 0 : index
    %248 = vector.load %arg2[%c0_169, %c0_170] : memref<13x512xf32, #tpu.memory_space<vmem>>, vector<1x512xf32>
    %249 = vector.broadcast %248 : vector<1x512xf32> to vector<8x512xf32>
    %250 = arith.mulf %247, %249 : vector<8x512xf32>
    %c16_i32_171 = arith.constant 16 : i32
    %251 = tpu.dynamic_rotate %246 by %c16_i32_171 dim 1 : vector<8x512xf32>, i32 -> vector<8x512xf32>
    %c1_172 = arith.constant 1 : index
    %c0_173 = arith.constant 0 : index
    %252 = vector.load %arg2[%c1_172, %c0_173] : memref<13x512xf32, #tpu.memory_space<vmem>>, vector<1x512xf32>
    %253 = vector.broadcast %252 : vector<1x512xf32> to vector<8x512xf32>
    %254 = arith.mulf %251, %253 : vector<8x512xf32>
    %c15_i32_174 = arith.constant 15 : i32
    %255 = tpu.dynamic_rotate %246 by %c15_i32_174 dim 1 : vector<8x512xf32>, i32 -> vector<8x512xf32>
    %c2_175 = arith.constant 2 : index
    %c0_176 = arith.constant 0 : index
    %256 = vector.load %arg2[%c2_175, %c0_176] : memref<13x512xf32, #tpu.memory_space<vmem>>, vector<1x512xf32>
    %257 = vector.broadcast %256 : vector<1x512xf32> to vector<8x512xf32>
    %258 = arith.mulf %255, %257 : vector<8x512xf32>
    %c1_i32_177 = arith.constant 1 : i32
    %259 = tpu.dynamic_rotate %246 by %c1_i32_177 dim 1 : vector<8x512xf32>, i32 -> vector<8x512xf32>
    %c3_178 = arith.constant 3 : index
    %c0_179 = arith.constant 0 : index
    %260 = vector.load %arg2[%c3_178, %c0_179] : memref<13x512xf32, #tpu.memory_space<vmem>>, vector<1x512xf32>
    %261 = vector.broadcast %260 : vector<1x512xf32> to vector<8x512xf32>
    %262 = arith.mulf %259, %261 : vector<8x512xf32>
    %c511_i32_180 = arith.constant 511 : i32
    %263 = tpu.dynamic_rotate %246 by %c511_i32_180 dim 1 : vector<8x512xf32>, i32 -> vector<8x512xf32>
    %c5_181 = arith.constant 5 : index
    %c0_182 = arith.constant 0 : index
    %264 = vector.load %arg2[%c5_181, %c0_182] : memref<13x512xf32, #tpu.memory_space<vmem>>, vector<1x512xf32>
    %265 = vector.broadcast %264 : vector<1x512xf32> to vector<8x512xf32>
    %266 = arith.mulf %263, %265 : vector<8x512xf32>
    %c497_i32_183 = arith.constant 497 : i32
    %267 = tpu.dynamic_rotate %246 by %c497_i32_183 dim 1 : vector<8x512xf32>, i32 -> vector<8x512xf32>
    %c6_184 = arith.constant 6 : index
    %c0_185 = arith.constant 0 : index
    %268 = vector.load %arg2[%c6_184, %c0_185] : memref<13x512xf32, #tpu.memory_space<vmem>>, vector<1x512xf32>
    %269 = vector.broadcast %268 : vector<1x512xf32> to vector<8x512xf32>
    %270 = arith.mulf %267, %269 : vector<8x512xf32>
    %c496_i32_186 = arith.constant 496 : i32
    %271 = tpu.dynamic_rotate %246 by %c496_i32_186 dim 1 : vector<8x512xf32>, i32 -> vector<8x512xf32>
    %c7_187 = arith.constant 7 : index
    %c0_188 = arith.constant 0 : index
    %272 = vector.load %arg2[%c7_187, %c0_188] : memref<13x512xf32, #tpu.memory_space<vmem>>, vector<1x512xf32>
    %273 = vector.broadcast %272 : vector<1x512xf32> to vector<8x512xf32>
    %274 = arith.mulf %271, %273 : vector<8x512xf32>
    %c495_i32_189 = arith.constant 495 : i32
    %275 = tpu.dynamic_rotate %246 by %c495_i32_189 dim 1 : vector<8x512xf32>, i32 -> vector<8x512xf32>
    %c8_190 = arith.constant 8 : index
    %c0_191 = arith.constant 0 : index
    %276 = vector.load %arg2[%c8_190, %c0_191] : memref<13x512xf32, #tpu.memory_space<vmem>>, vector<1x512xf32>
    %277 = vector.broadcast %276 : vector<1x512xf32> to vector<8x512xf32>
    %278 = arith.mulf %275, %277 : vector<8x512xf32>
    %c0_192 = arith.constant 0 : index
    %c0_193 = arith.constant 0 : index
    %279 = vector.load %arg5[%c0_192, %c0_193] : memref<80x512xf32, #tpu.memory_space<vmem>>, vector<8x512xf32>
    tpu.vector_store %arg5[%c0_192, %c0_193], %250 {strides = array<i32>} : memref<80x512xf32, #tpu.memory_space<vmem>>, vector<8x512xf32>,
    %c8_194 = arith.constant 8 : index
    %c0_195 = arith.constant 0 : index
    %280 = vector.load %arg5[%c8_194, %c0_195] : memref<80x512xf32, #tpu.memory_space<vmem>>, vector<8x512xf32>
    tpu.vector_store %arg5[%c8_194, %c0_195], %254 {strides = array<i32>} : memref<80x512xf32, #tpu.memory_space<vmem>>, vector<8x512xf32>,
    %c16_196 = arith.constant 16 : index
    %c0_197 = arith.constant 0 : index
    %281 = vector.load %arg5[%c16_196, %c0_197] : memref<80x512xf32, #tpu.memory_space<vmem>>, vector<8x512xf32>
    tpu.vector_store %arg5[%c16_196, %c0_197], %258 {strides = array<i32>} : memref<80x512xf32, #tpu.memory_space<vmem>>, vector<8x512xf32>,
    %c24_198 = arith.constant 24 : index
    %c0_199 = arith.constant 0 : index
    %282 = vector.load %arg5[%c24_198, %c0_199] : memref<80x512xf32, #tpu.memory_space<vmem>>, vector<8x512xf32>
    tpu.vector_store %arg5[%c24_198, %c0_199], %262 {strides = array<i32>} : memref<80x512xf32, #tpu.memory_space<vmem>>, vector<8x512xf32>,
    %c32_200 = arith.constant 32 : index
    %c0_201 = arith.constant 0 : index
    %283 = vector.load %arg5[%c32_200, %c0_201] : memref<80x512xf32, #tpu.memory_space<vmem>>, vector<8x512xf32>
    tpu.vector_store %arg5[%c32_200, %c0_201], %246 {strides = array<i32>} : memref<80x512xf32, #tpu.memory_space<vmem>>, vector<8x512xf32>,
    %c40_202 = arith.constant 40 : index
    %c0_203 = arith.constant 0 : index
    %284 = vector.load %arg5[%c40_202, %c0_203] : memref<80x512xf32, #tpu.memory_space<vmem>>, vector<8x512xf32>
    tpu.vector_store %arg5[%c40_202, %c0_203], %266 {strides = array<i32>} : memref<80x512xf32, #tpu.memory_space<vmem>>, vector<8x512xf32>,
    %c48_204 = arith.constant 48 : index
    %c0_205 = arith.constant 0 : index
    %285 = vector.load %arg5[%c48_204, %c0_205] : memref<80x512xf32, #tpu.memory_space<vmem>>, vector<8x512xf32>
    tpu.vector_store %arg5[%c48_204, %c0_205], %270 {strides = array<i32>} : memref<80x512xf32, #tpu.memory_space<vmem>>, vector<8x512xf32>,
    %c56_206 = arith.constant 56 : index
    %c0_207 = arith.constant 0 : index
    %286 = vector.load %arg5[%c56_206, %c0_207] : memref<80x512xf32, #tpu.memory_space<vmem>>, vector<8x512xf32>
    tpu.vector_store %arg5[%c56_206, %c0_207], %274 {strides = array<i32>} : memref<80x512xf32, #tpu.memory_space<vmem>>, vector<8x512xf32>,
    %c64_208 = arith.constant 64 : index
    %c0_209 = arith.constant 0 : index
    %287 = vector.load %arg5[%c64_208, %c0_209] : memref<80x512xf32, #tpu.memory_space<vmem>>, vector<8x512xf32>
    tpu.vector_store %arg5[%c64_208, %c0_209], %278 {strides = array<i32>} : memref<80x512xf32, #tpu.memory_space<vmem>>, vector<8x512xf32>,
    %c16_210 = arith.constant 16 : index
    %c0_211 = arith.constant 0 : index
    %288 = vector.load %arg1[%c16_210, %c0_211] : memref<160x80xf32, #tpu.memory_space<vmem>>, vector<8x80xf32>
    %c0_212 = arith.constant 0 : index
    %c0_213 = arith.constant 0 : index
    %289 = vector.load %arg5[%c0_212, %c0_213] : memref<80x512xf32, #tpu.memory_space<vmem>>, vector<80x512xf32>
    %cst_214 = arith.constant dense<0.000000e+00> : vector<8x512xf32>
    %290 = tpu.matmul %288, %289, %cst_214 {dimension_numbers = #tpu.dot_dimension_numbers<[1], [0], [0], [1], [0, 0, 1, 1], [], []>} : vector<8x80xf32>, vector<80x512xf32>, vector<8x512xf32> -> vector<8x512xf32>
    %cst_215 = arith.constant 0.000000e+00 : f32
    %291 = vector.broadcast %cst_215 : f32 to vector<8x512xf32>
    %292 = arith.maximumf %290, %291 : vector<8x512xf32>
    %c17_i32_216 = arith.constant 17 : i32
    %293 = tpu.dynamic_rotate %292 by %c17_i32_216 dim 1 : vector<8x512xf32>, i32 -> vector<8x512xf32>
    %c0_217 = arith.constant 0 : index
    %c0_218 = arith.constant 0 : index
    %294 = vector.load %arg2[%c0_217, %c0_218] : memref<13x512xf32, #tpu.memory_space<vmem>>, vector<1x512xf32>
    %295 = vector.broadcast %294 : vector<1x512xf32> to vector<8x512xf32>
    %296 = arith.mulf %293, %295 : vector<8x512xf32>
    %c16_i32_219 = arith.constant 16 : i32
    %297 = tpu.dynamic_rotate %292 by %c16_i32_219 dim 1 : vector<8x512xf32>, i32 -> vector<8x512xf32>
    %c1_220 = arith.constant 1 : index
    %c0_221 = arith.constant 0 : index
    %298 = vector.load %arg2[%c1_220, %c0_221] : memref<13x512xf32, #tpu.memory_space<vmem>>, vector<1x512xf32>
    %299 = vector.broadcast %298 : vector<1x512xf32> to vector<8x512xf32>
    %300 = arith.mulf %297, %299 : vector<8x512xf32>
    %c15_i32_222 = arith.constant 15 : i32
    %301 = tpu.dynamic_rotate %292 by %c15_i32_222 dim 1 : vector<8x512xf32>, i32 -> vector<8x512xf32>
    %c2_223 = arith.constant 2 : index
    %c0_224 = arith.constant 0 : index
    %302 = vector.load %arg2[%c2_223, %c0_224] : memref<13x512xf32, #tpu.memory_space<vmem>>, vector<1x512xf32>
    %303 = vector.broadcast %302 : vector<1x512xf32> to vector<8x512xf32>
    %304 = arith.mulf %301, %303 : vector<8x512xf32>
    %c1_i32_225 = arith.constant 1 : i32
    %305 = tpu.dynamic_rotate %292 by %c1_i32_225 dim 1 : vector<8x512xf32>, i32 -> vector<8x512xf32>
    %c3_226 = arith.constant 3 : index
    %c0_227 = arith.constant 0 : index
    %306 = vector.load %arg2[%c3_226, %c0_227] : memref<13x512xf32, #tpu.memory_space<vmem>>, vector<1x512xf32>
    %307 = vector.broadcast %306 : vector<1x512xf32> to vector<8x512xf32>
    %308 = arith.mulf %305, %307 : vector<8x512xf32>
    %c511_i32_228 = arith.constant 511 : i32
    %309 = tpu.dynamic_rotate %292 by %c511_i32_228 dim 1 : vector<8x512xf32>, i32 -> vector<8x512xf32>
    %c5_229 = arith.constant 5 : index
    %c0_230 = arith.constant 0 : index
    %310 = vector.load %arg2[%c5_229, %c0_230] : memref<13x512xf32, #tpu.memory_space<vmem>>, vector<1x512xf32>
    %311 = vector.broadcast %310 : vector<1x512xf32> to vector<8x512xf32>
    %312 = arith.mulf %309, %311 : vector<8x512xf32>
    %c497_i32_231 = arith.constant 497 : i32
    %313 = tpu.dynamic_rotate %292 by %c497_i32_231 dim 1 : vector<8x512xf32>, i32 -> vector<8x512xf32>
    %c6_232 = arith.constant 6 : index
    %c0_233 = arith.constant 0 : index
    %314 = vector.load %arg2[%c6_232, %c0_233] : memref<13x512xf32, #tpu.memory_space<vmem>>, vector<1x512xf32>
    %315 = vector.broadcast %314 : vector<1x512xf32> to vector<8x512xf32>
    %316 = arith.mulf %313, %315 : vector<8x512xf32>
    %c496_i32_234 = arith.constant 496 : i32
    %317 = tpu.dynamic_rotate %292 by %c496_i32_234 dim 1 : vector<8x512xf32>, i32 -> vector<8x512xf32>
    %c7_235 = arith.constant 7 : index
    %c0_236 = arith.constant 0 : index
    %318 = vector.load %arg2[%c7_235, %c0_236] : memref<13x512xf32, #tpu.memory_space<vmem>>, vector<1x512xf32>
    %319 = vector.broadcast %318 : vector<1x512xf32> to vector<8x512xf32>
    %320 = arith.mulf %317, %319 : vector<8x512xf32>
    %c495_i32_237 = arith.constant 495 : i32
    %321 = tpu.dynamic_rotate %292 by %c495_i32_237 dim 1 : vector<8x512xf32>, i32 -> vector<8x512xf32>
    %c8_238 = arith.constant 8 : index
    %c0_239 = arith.constant 0 : index
    %322 = vector.load %arg2[%c8_238, %c0_239] : memref<13x512xf32, #tpu.memory_space<vmem>>, vector<1x512xf32>
    %323 = vector.broadcast %322 : vector<1x512xf32> to vector<8x512xf32>
    %324 = arith.mulf %321, %323 : vector<8x512xf32>
    %c0_240 = arith.constant 0 : index
    %c0_241 = arith.constant 0 : index
    %325 = vector.load %arg5[%c0_240, %c0_241] : memref<80x512xf32, #tpu.memory_space<vmem>>, vector<8x512xf32>
    tpu.vector_store %arg5[%c0_240, %c0_241], %296 {strides = array<i32>} : memref<80x512xf32, #tpu.memory_space<vmem>>, vector<8x512xf32>,
    %c8_242 = arith.constant 8 : index
    %c0_243 = arith.constant 0 : index
    %326 = vector.load %arg5[%c8_242, %c0_243] : memref<80x512xf32, #tpu.memory_space<vmem>>, vector<8x512xf32>
    tpu.vector_store %arg5[%c8_242, %c0_243], %300 {strides = array<i32>} : memref<80x512xf32, #tpu.memory_space<vmem>>, vector<8x512xf32>,
    %c16_244 = arith.constant 16 : index
    %c0_245 = arith.constant 0 : index
    %327 = vector.load %arg5[%c16_244, %c0_245] : memref<80x512xf32, #tpu.memory_space<vmem>>, vector<8x512xf32>
    tpu.vector_store %arg5[%c16_244, %c0_245], %304 {strides = array<i32>} : memref<80x512xf32, #tpu.memory_space<vmem>>, vector<8x512xf32>,
    %c24_246 = arith.constant 24 : index
    %c0_247 = arith.constant 0 : index
    %328 = vector.load %arg5[%c24_246, %c0_247] : memref<80x512xf32, #tpu.memory_space<vmem>>, vector<8x512xf32>
    tpu.vector_store %arg5[%c24_246, %c0_247], %308 {strides = array<i32>} : memref<80x512xf32, #tpu.memory_space<vmem>>, vector<8x512xf32>,
    %c32_248 = arith.constant 32 : index
    %c0_249 = arith.constant 0 : index
    %329 = vector.load %arg5[%c32_248, %c0_249] : memref<80x512xf32, #tpu.memory_space<vmem>>, vector<8x512xf32>
    tpu.vector_store %arg5[%c32_248, %c0_249], %292 {strides = array<i32>} : memref<80x512xf32, #tpu.memory_space<vmem>>, vector<8x512xf32>,
    %c40_250 = arith.constant 40 : index
    %c0_251 = arith.constant 0 : index
    %330 = vector.load %arg5[%c40_250, %c0_251] : memref<80x512xf32, #tpu.memory_space<vmem>>, vector<8x512xf32>
    tpu.vector_store %arg5[%c40_250, %c0_251], %312 {strides = array<i32>} : memref<80x512xf32, #tpu.memory_space<vmem>>, vector<8x512xf32>,
    %c48_252 = arith.constant 48 : index
    %c0_253 = arith.constant 0 : index
    %331 = vector.load %arg5[%c48_252, %c0_253] : memref<80x512xf32, #tpu.memory_space<vmem>>, vector<8x512xf32>
    tpu.vector_store %arg5[%c48_252, %c0_253], %316 {strides = array<i32>} : memref<80x512xf32, #tpu.memory_space<vmem>>, vector<8x512xf32>,
    %c56_254 = arith.constant 56 : index
    %c0_255 = arith.constant 0 : index
    %332 = vector.load %arg5[%c56_254, %c0_255] : memref<80x512xf32, #tpu.memory_space<vmem>>, vector<8x512xf32>
    tpu.vector_store %arg5[%c56_254, %c0_255], %320 {strides = array<i32>} : memref<80x512xf32, #tpu.memory_space<vmem>>, vector<8x512xf32>,
    %c64_256 = arith.constant 64 : index
    %c0_257 = arith.constant 0 : index
    %333 = vector.load %arg5[%c64_256, %c0_257] : memref<80x512xf32, #tpu.memory_space<vmem>>, vector<8x512xf32>
    tpu.vector_store %arg5[%c64_256, %c0_257], %324 {strides = array<i32>} : memref<80x512xf32, #tpu.memory_space<vmem>>, vector<8x512xf32>,
    %c24_258 = arith.constant 24 : index
    %c0_259 = arith.constant 0 : index
    %334 = vector.load %arg1[%c24_258, %c0_259] : memref<160x80xf32, #tpu.memory_space<vmem>>, vector<8x80xf32>
    %c0_260 = arith.constant 0 : index
    %c0_261 = arith.constant 0 : index
    %335 = vector.load %arg5[%c0_260, %c0_261] : memref<80x512xf32, #tpu.memory_space<vmem>>, vector<80x512xf32>
    %cst_262 = arith.constant dense<0.000000e+00> : vector<8x512xf32>
    %336 = tpu.matmul %334, %335, %cst_262 {dimension_numbers = #tpu.dot_dimension_numbers<[1], [0], [0], [1], [0, 0, 1, 1], [], []>} : vector<8x80xf32>, vector<80x512xf32>, vector<8x512xf32> -> vector<8x512xf32>
    %c17_i32_263 = arith.constant 17 : i32
    %337 = tpu.dynamic_rotate %336 by %c17_i32_263 dim 1 : vector<8x512xf32>, i32 -> vector<8x512xf32>
    %c0_264 = arith.constant 0 : index
    %c0_265 = arith.constant 0 : index
    %338 = vector.load %arg2[%c0_264, %c0_265] : memref<13x512xf32, #tpu.memory_space<vmem>>, vector<1x512xf32>
    %339 = vector.broadcast %338 : vector<1x512xf32> to vector<8x512xf32>
    %340 = arith.mulf %337, %339 : vector<8x512xf32>
    %c16_i32_266 = arith.constant 16 : i32
    %341 = tpu.dynamic_rotate %336 by %c16_i32_266 dim 1 : vector<8x512xf32>, i32 -> vector<8x512xf32>
    %c1_267 = arith.constant 1 : index
    %c0_268 = arith.constant 0 : index
    %342 = vector.load %arg2[%c1_267, %c0_268] : memref<13x512xf32, #tpu.memory_space<vmem>>, vector<1x512xf32>
    %343 = vector.broadcast %342 : vector<1x512xf32> to vector<8x512xf32>
    %344 = arith.mulf %341, %343 : vector<8x512xf32>
    %c15_i32_269 = arith.constant 15 : i32
    %345 = tpu.dynamic_rotate %336 by %c15_i32_269 dim 1 : vector<8x512xf32>, i32 -> vector<8x512xf32>
    %c2_270 = arith.constant 2 : index
    %c0_271 = arith.constant 0 : index
    %346 = vector.load %arg2[%c2_270, %c0_271] : memref<13x512xf32, #tpu.memory_space<vmem>>, vector<1x512xf32>
    %347 = vector.broadcast %346 : vector<1x512xf32> to vector<8x512xf32>
    %348 = arith.mulf %345, %347 : vector<8x512xf32>
    %c1_i32_272 = arith.constant 1 : i32
    %349 = tpu.dynamic_rotate %336 by %c1_i32_272 dim 1 : vector<8x512xf32>, i32 -> vector<8x512xf32>
    %c3_273 = arith.constant 3 : index
    %c0_274 = arith.constant 0 : index
    %350 = vector.load %arg2[%c3_273, %c0_274] : memref<13x512xf32, #tpu.memory_space<vmem>>, vector<1x512xf32>
    %351 = vector.broadcast %350 : vector<1x512xf32> to vector<8x512xf32>
    %352 = arith.mulf %349, %351 : vector<8x512xf32>
    %c511_i32_275 = arith.constant 511 : i32
    %353 = tpu.dynamic_rotate %336 by %c511_i32_275 dim 1 : vector<8x512xf32>, i32 -> vector<8x512xf32>
    %c5_276 = arith.constant 5 : index
    %c0_277 = arith.constant 0 : index
    %354 = vector.load %arg2[%c5_276, %c0_277] : memref<13x512xf32, #tpu.memory_space<vmem>>, vector<1x512xf32>
    %355 = vector.broadcast %354 : vector<1x512xf32> to vector<8x512xf32>
    %356 = arith.mulf %353, %355 : vector<8x512xf32>
    %c497_i32_278 = arith.constant 497 : i32
    %357 = tpu.dynamic_rotate %336 by %c497_i32_278 dim 1 : vector<8x512xf32>, i32 -> vector<8x512xf32>
    %c6_279 = arith.constant 6 : index
    %c0_280 = arith.constant 0 : index
    %358 = vector.load %arg2[%c6_279, %c0_280] : memref<13x512xf32, #tpu.memory_space<vmem>>, vector<1x512xf32>
    %359 = vector.broadcast %358 : vector<1x512xf32> to vector<8x512xf32>
    %360 = arith.mulf %357, %359 : vector<8x512xf32>
    %c496_i32_281 = arith.constant 496 : i32
    %361 = tpu.dynamic_rotate %336 by %c496_i32_281 dim 1 : vector<8x512xf32>, i32 -> vector<8x512xf32>
    %c7_282 = arith.constant 7 : index
    %c0_283 = arith.constant 0 : index
    %362 = vector.load %arg2[%c7_282, %c0_283] : memref<13x512xf32, #tpu.memory_space<vmem>>, vector<1x512xf32>
    %363 = vector.broadcast %362 : vector<1x512xf32> to vector<8x512xf32>
    %364 = arith.mulf %361, %363 : vector<8x512xf32>
    %c495_i32_284 = arith.constant 495 : i32
    %365 = tpu.dynamic_rotate %336 by %c495_i32_284 dim 1 : vector<8x512xf32>, i32 -> vector<8x512xf32>
    %c8_285 = arith.constant 8 : index
    %c0_286 = arith.constant 0 : index
    %366 = vector.load %arg2[%c8_285, %c0_286] : memref<13x512xf32, #tpu.memory_space<vmem>>, vector<1x512xf32>
    %367 = vector.broadcast %366 : vector<1x512xf32> to vector<8x512xf32>
    %368 = arith.mulf %365, %367 : vector<8x512xf32>
    %c0_287 = arith.constant 0 : index
    %c0_288 = arith.constant 0 : index
    %369 = vector.load %arg5[%c0_287, %c0_288] : memref<80x512xf32, #tpu.memory_space<vmem>>, vector<8x512xf32>
    tpu.vector_store %arg5[%c0_287, %c0_288], %340 {strides = array<i32>} : memref<80x512xf32, #tpu.memory_space<vmem>>, vector<8x512xf32>,
    %c8_289 = arith.constant 8 : index
    %c0_290 = arith.constant 0 : index
    %370 = vector.load %arg5[%c8_289, %c0_290] : memref<80x512xf32, #tpu.memory_space<vmem>>, vector<8x512xf32>
    tpu.vector_store %arg5[%c8_289, %c0_290], %344 {strides = array<i32>} : memref<80x512xf32, #tpu.memory_space<vmem>>, vector<8x512xf32>,
    %c16_291 = arith.constant 16 : index
    %c0_292 = arith.constant 0 : index
    %371 = vector.load %arg5[%c16_291, %c0_292] : memref<80x512xf32, #tpu.memory_space<vmem>>, vector<8x512xf32>
    tpu.vector_store %arg5[%c16_291, %c0_292], %348 {strides = array<i32>} : memref<80x512xf32, #tpu.memory_space<vmem>>, vector<8x512xf32>,
    %c24_293 = arith.constant 24 : index
    %c0_294 = arith.constant 0 : index
    %372 = vector.load %arg5[%c24_293, %c0_294] : memref<80x512xf32, #tpu.memory_space<vmem>>, vector<8x512xf32>
    tpu.vector_store %arg5[%c24_293, %c0_294], %352 {strides = array<i32>} : memref<80x512xf32, #tpu.memory_space<vmem>>, vector<8x512xf32>,
    %c32_295 = arith.constant 32 : index
    %c0_296 = arith.constant 0 : index
    %373 = vector.load %arg5[%c32_295, %c0_296] : memref<80x512xf32, #tpu.memory_space<vmem>>, vector<8x512xf32>
    tpu.vector_store %arg5[%c32_295, %c0_296], %336 {strides = array<i32>} : memref<80x512xf32, #tpu.memory_space<vmem>>, vector<8x512xf32>,
    %c40_297 = arith.constant 40 : index
    %c0_298 = arith.constant 0 : index
    %374 = vector.load %arg5[%c40_297, %c0_298] : memref<80x512xf32, #tpu.memory_space<vmem>>, vector<8x512xf32>
    tpu.vector_store %arg5[%c40_297, %c0_298], %356 {strides = array<i32>} : memref<80x512xf32, #tpu.memory_space<vmem>>, vector<8x512xf32>,
    %c48_299 = arith.constant 48 : index
    %c0_300 = arith.constant 0 : index
    %375 = vector.load %arg5[%c48_299, %c0_300] : memref<80x512xf32, #tpu.memory_space<vmem>>, vector<8x512xf32>
    tpu.vector_store %arg5[%c48_299, %c0_300], %360 {strides = array<i32>} : memref<80x512xf32, #tpu.memory_space<vmem>>, vector<8x512xf32>,
    %c56_301 = arith.constant 56 : index
    %c0_302 = arith.constant 0 : index
    %376 = vector.load %arg5[%c56_301, %c0_302] : memref<80x512xf32, #tpu.memory_space<vmem>>, vector<8x512xf32>
    tpu.vector_store %arg5[%c56_301, %c0_302], %364 {strides = array<i32>} : memref<80x512xf32, #tpu.memory_space<vmem>>, vector<8x512xf32>,
    %c64_303 = arith.constant 64 : index
    %c0_304 = arith.constant 0 : index
    %377 = vector.load %arg5[%c64_303, %c0_304] : memref<80x512xf32, #tpu.memory_space<vmem>>, vector<8x512xf32>
    tpu.vector_store %arg5[%c64_303, %c0_304], %368 {strides = array<i32>} : memref<80x512xf32, #tpu.memory_space<vmem>>, vector<8x512xf32>,
    %c48_305 = arith.constant 48 : index
    %c0_306 = arith.constant 0 : index
    %378 = vector.load %arg1[%c48_305, %c0_306] : memref<160x80xf32, #tpu.memory_space<vmem>>, vector<8x80xf32>
    %c0_307 = arith.constant 0 : index
    %c0_308 = arith.constant 0 : index
    %379 = vector.load %arg5[%c0_307, %c0_308] : memref<80x512xf32, #tpu.memory_space<vmem>>, vector<80x512xf32>
    %cst_309 = arith.constant dense<0.000000e+00> : vector<8x512xf32>
    %380 = tpu.matmul %378, %379, %cst_309 {dimension_numbers = #tpu.dot_dimension_numbers<[1], [0], [0], [1], [0, 0, 1, 1], [], []>} : vector<8x80xf32>, vector<80x512xf32>, vector<8x512xf32> -> vector<8x512xf32>
    %c17_i32_310 = arith.constant 17 : i32
    %381 = tpu.dynamic_rotate %380 by %c17_i32_310 dim 1 : vector<8x512xf32>, i32 -> vector<8x512xf32>
    %c0_311 = arith.constant 0 : index
    %c0_312 = arith.constant 0 : index
    %382 = vector.load %arg2[%c0_311, %c0_312] : memref<13x512xf32, #tpu.memory_space<vmem>>, vector<1x512xf32>
    %383 = vector.broadcast %382 : vector<1x512xf32> to vector<8x512xf32>
    %384 = arith.mulf %381, %383 : vector<8x512xf32>
    %c16_i32_313 = arith.constant 16 : i32
    %385 = tpu.dynamic_rotate %380 by %c16_i32_313 dim 1 : vector<8x512xf32>, i32 -> vector<8x512xf32>
    %c1_314 = arith.constant 1 : index
    %c0_315 = arith.constant 0 : index
    %386 = vector.load %arg2[%c1_314, %c0_315] : memref<13x512xf32, #tpu.memory_space<vmem>>, vector<1x512xf32>
    %387 = vector.broadcast %386 : vector<1x512xf32> to vector<8x512xf32>
    %388 = arith.mulf %385, %387 : vector<8x512xf32>
    %c15_i32_316 = arith.constant 15 : i32
    %389 = tpu.dynamic_rotate %380 by %c15_i32_316 dim 1 : vector<8x512xf32>, i32 -> vector<8x512xf32>
    %c2_317 = arith.constant 2 : index
    %c0_318 = arith.constant 0 : index
    %390 = vector.load %arg2[%c2_317, %c0_318] : memref<13x512xf32, #tpu.memory_space<vmem>>, vector<1x512xf32>
    %391 = vector.broadcast %390 : vector<1x512xf32> to vector<8x512xf32>
    %392 = arith.mulf %389, %391 : vector<8x512xf32>
    %c1_i32_319 = arith.constant 1 : i32
    %393 = tpu.dynamic_rotate %380 by %c1_i32_319 dim 1 : vector<8x512xf32>, i32 -> vector<8x512xf32>
    %c3_320 = arith.constant 3 : index
    %c0_321 = arith.constant 0 : index
    %394 = vector.load %arg2[%c3_320, %c0_321] : memref<13x512xf32, #tpu.memory_space<vmem>>, vector<1x512xf32>
    %395 = vector.broadcast %394 : vector<1x512xf32> to vector<8x512xf32>
    %396 = arith.mulf %393, %395 : vector<8x512xf32>
    %c511_i32_322 = arith.constant 511 : i32
    %397 = tpu.dynamic_rotate %380 by %c511_i32_322 dim 1 : vector<8x512xf32>, i32 -> vector<8x512xf32>
    %c5_323 = arith.constant 5 : index
    %c0_324 = arith.constant 0 : index
    %398 = vector.load %arg2[%c5_323, %c0_324] : memref<13x512xf32, #tpu.memory_space<vmem>>, vector<1x512xf32>
    %399 = vector.broadcast %398 : vector<1x512xf32> to vector<8x512xf32>
    %400 = arith.mulf %397, %399 : vector<8x512xf32>
    %c497_i32_325 = arith.constant 497 : i32
    %401 = tpu.dynamic_rotate %380 by %c497_i32_325 dim 1 : vector<8x512xf32>, i32 -> vector<8x512xf32>
    %c6_326 = arith.constant 6 : index
    %c0_327 = arith.constant 0 : index
    %402 = vector.load %arg2[%c6_326, %c0_327] : memref<13x512xf32, #tpu.memory_space<vmem>>, vector<1x512xf32>
    %403 = vector.broadcast %402 : vector<1x512xf32> to vector<8x512xf32>
    %404 = arith.mulf %401, %403 : vector<8x512xf32>
    %c496_i32_328 = arith.constant 496 : i32
    %405 = tpu.dynamic_rotate %380 by %c496_i32_328 dim 1 : vector<8x512xf32>, i32 -> vector<8x512xf32>
    %c7_329 = arith.constant 7 : index
    %c0_330 = arith.constant 0 : index
    %406 = vector.load %arg2[%c7_329, %c0_330] : memref<13x512xf32, #tpu.memory_space<vmem>>, vector<1x512xf32>
    %407 = vector.broadcast %406 : vector<1x512xf32> to vector<8x512xf32>
    %408 = arith.mulf %405, %407 : vector<8x512xf32>
    %c495_i32_331 = arith.constant 495 : i32
    %409 = tpu.dynamic_rotate %380 by %c495_i32_331 dim 1 : vector<8x512xf32>, i32 -> vector<8x512xf32>
    %c8_332 = arith.constant 8 : index
    %c0_333 = arith.constant 0 : index
    %410 = vector.load %arg2[%c8_332, %c0_333] : memref<13x512xf32, #tpu.memory_space<vmem>>, vector<1x512xf32>
    %411 = vector.broadcast %410 : vector<1x512xf32> to vector<8x512xf32>
    %412 = arith.mulf %409, %411 : vector<8x512xf32>
    %c0_334 = arith.constant 0 : index
    %c0_335 = arith.constant 0 : index
    %413 = vector.load %arg5[%c0_334, %c0_335] : memref<80x512xf32, #tpu.memory_space<vmem>>, vector<8x512xf32>
    tpu.vector_store %arg5[%c0_334, %c0_335], %384 {strides = array<i32>} : memref<80x512xf32, #tpu.memory_space<vmem>>, vector<8x512xf32>,
    %c8_336 = arith.constant 8 : index
    %c0_337 = arith.constant 0 : index
    %414 = vector.load %arg5[%c8_336, %c0_337] : memref<80x512xf32, #tpu.memory_space<vmem>>, vector<8x512xf32>
    tpu.vector_store %arg5[%c8_336, %c0_337], %388 {strides = array<i32>} : memref<80x512xf32, #tpu.memory_space<vmem>>, vector<8x512xf32>,
    %c16_338 = arith.constant 16 : index
    %c0_339 = arith.constant 0 : index
    %415 = vector.load %arg5[%c16_338, %c0_339] : memref<80x512xf32, #tpu.memory_space<vmem>>, vector<8x512xf32>
    tpu.vector_store %arg5[%c16_338, %c0_339], %392 {strides = array<i32>} : memref<80x512xf32, #tpu.memory_space<vmem>>, vector<8x512xf32>,
    %c24_340 = arith.constant 24 : index
    %c0_341 = arith.constant 0 : index
    %416 = vector.load %arg5[%c24_340, %c0_341] : memref<80x512xf32, #tpu.memory_space<vmem>>, vector<8x512xf32>
    tpu.vector_store %arg5[%c24_340, %c0_341], %396 {strides = array<i32>} : memref<80x512xf32, #tpu.memory_space<vmem>>, vector<8x512xf32>,
    %c32_342 = arith.constant 32 : index
    %c0_343 = arith.constant 0 : index
    %417 = vector.load %arg5[%c32_342, %c0_343] : memref<80x512xf32, #tpu.memory_space<vmem>>, vector<8x512xf32>
    tpu.vector_store %arg5[%c32_342, %c0_343], %380 {strides = array<i32>} : memref<80x512xf32, #tpu.memory_space<vmem>>, vector<8x512xf32>,
    %c40_344 = arith.constant 40 : index
    %c0_345 = arith.constant 0 : index
    %418 = vector.load %arg5[%c40_344, %c0_345] : memref<80x512xf32, #tpu.memory_space<vmem>>, vector<8x512xf32>
    tpu.vector_store %arg5[%c40_344, %c0_345], %400 {strides = array<i32>} : memref<80x512xf32, #tpu.memory_space<vmem>>, vector<8x512xf32>,
    %c48_346 = arith.constant 48 : index
    %c0_347 = arith.constant 0 : index
    %419 = vector.load %arg5[%c48_346, %c0_347] : memref<80x512xf32, #tpu.memory_space<vmem>>, vector<8x512xf32>
    tpu.vector_store %arg5[%c48_346, %c0_347], %404 {strides = array<i32>} : memref<80x512xf32, #tpu.memory_space<vmem>>, vector<8x512xf32>,
    %c56_348 = arith.constant 56 : index
    %c0_349 = arith.constant 0 : index
    %420 = vector.load %arg5[%c56_348, %c0_349] : memref<80x512xf32, #tpu.memory_space<vmem>>, vector<8x512xf32>
    tpu.vector_store %arg5[%c56_348, %c0_349], %408 {strides = array<i32>} : memref<80x512xf32, #tpu.memory_space<vmem>>, vector<8x512xf32>,
    %c64_350 = arith.constant 64 : index
    %c0_351 = arith.constant 0 : index
    %421 = vector.load %arg5[%c64_350, %c0_351] : memref<80x512xf32, #tpu.memory_space<vmem>>, vector<8x512xf32>
    tpu.vector_store %arg5[%c64_350, %c0_351], %412 {strides = array<i32>} : memref<80x512xf32, #tpu.memory_space<vmem>>, vector<8x512xf32>,
    %c56_352 = arith.constant 56 : index
    %c0_353 = arith.constant 0 : index
    %422 = vector.load %arg1[%c56_352, %c0_353] : memref<160x80xf32, #tpu.memory_space<vmem>>, vector<8x80xf32>
    %c0_354 = arith.constant 0 : index
    %c0_355 = arith.constant 0 : index
    %423 = vector.load %arg5[%c0_354, %c0_355] : memref<80x512xf32, #tpu.memory_space<vmem>>, vector<80x512xf32>
    %cst_356 = arith.constant dense<0.000000e+00> : vector<8x512xf32>
    %424 = tpu.matmul %422, %423, %cst_356 {dimension_numbers = #tpu.dot_dimension_numbers<[1], [0], [0], [1], [0, 0, 1, 1], [], []>} : vector<8x80xf32>, vector<80x512xf32>, vector<8x512xf32> -> vector<8x512xf32>
    %cst_357 = arith.constant 0.000000e+00 : f32
    %425 = vector.broadcast %cst_357 : f32 to vector<8x512xf32>
    %426 = arith.maximumf %424, %425 : vector<8x512xf32>
    %c17_i32_358 = arith.constant 17 : i32
    %427 = tpu.dynamic_rotate %426 by %c17_i32_358 dim 1 : vector<8x512xf32>, i32 -> vector<8x512xf32>
    %c0_359 = arith.constant 0 : index
    %c0_360 = arith.constant 0 : index
    %428 = vector.load %arg2[%c0_359, %c0_360] : memref<13x512xf32, #tpu.memory_space<vmem>>, vector<1x512xf32>
    %429 = vector.broadcast %428 : vector<1x512xf32> to vector<8x512xf32>
    %430 = arith.mulf %427, %429 : vector<8x512xf32>
    %c16_i32_361 = arith.constant 16 : i32
    %431 = tpu.dynamic_rotate %426 by %c16_i32_361 dim 1 : vector<8x512xf32>, i32 -> vector<8x512xf32>
    %c1_362 = arith.constant 1 : index
    %c0_363 = arith.constant 0 : index
    %432 = vector.load %arg2[%c1_362, %c0_363] : memref<13x512xf32, #tpu.memory_space<vmem>>, vector<1x512xf32>
    %433 = vector.broadcast %432 : vector<1x512xf32> to vector<8x512xf32>
    %434 = arith.mulf %431, %433 : vector<8x512xf32>
    %c15_i32_364 = arith.constant 15 : i32
    %435 = tpu.dynamic_rotate %426 by %c15_i32_364 dim 1 : vector<8x512xf32>, i32 -> vector<8x512xf32>
    %c2_365 = arith.constant 2 : index
    %c0_366 = arith.constant 0 : index
    %436 = vector.load %arg2[%c2_365, %c0_366] : memref<13x512xf32, #tpu.memory_space<vmem>>, vector<1x512xf32>
    %437 = vector.broadcast %436 : vector<1x512xf32> to vector<8x512xf32>
    %438 = arith.mulf %435, %437 : vector<8x512xf32>
    %c1_i32_367 = arith.constant 1 : i32
    %439 = tpu.dynamic_rotate %426 by %c1_i32_367 dim 1 : vector<8x512xf32>, i32 -> vector<8x512xf32>
    %c3_368 = arith.constant 3 : index
    %c0_369 = arith.constant 0 : index
    %440 = vector.load %arg2[%c3_368, %c0_369] : memref<13x512xf32, #tpu.memory_space<vmem>>, vector<1x512xf32>
    %441 = vector.broadcast %440 : vector<1x512xf32> to vector<8x512xf32>
    %442 = arith.mulf %439, %441 : vector<8x512xf32>
    %c511_i32_370 = arith.constant 511 : i32
    %443 = tpu.dynamic_rotate %426 by %c511_i32_370 dim 1 : vector<8x512xf32>, i32 -> vector<8x512xf32>
    %c5_371 = arith.constant 5 : index
    %c0_372 = arith.constant 0 : index
    %444 = vector.load %arg2[%c5_371, %c0_372] : memref<13x512xf32, #tpu.memory_space<vmem>>, vector<1x512xf32>
    %445 = vector.broadcast %444 : vector<1x512xf32> to vector<8x512xf32>
    %446 = arith.mulf %443, %445 : vector<8x512xf32>
    %c497_i32_373 = arith.constant 497 : i32
    %447 = tpu.dynamic_rotate %426 by %c497_i32_373 dim 1 : vector<8x512xf32>, i32 -> vector<8x512xf32>
    %c6_374 = arith.constant 6 : index
    %c0_375 = arith.constant 0 : index
    %448 = vector.load %arg2[%c6_374, %c0_375] : memref<13x512xf32, #tpu.memory_space<vmem>>, vector<1x512xf32>
    %449 = vector.broadcast %448 : vector<1x512xf32> to vector<8x512xf32>
    %450 = arith.mulf %447, %449 : vector<8x512xf32>
    %c496_i32_376 = arith.constant 496 : i32
    %451 = tpu.dynamic_rotate %426 by %c496_i32_376 dim 1 : vector<8x512xf32>, i32 -> vector<8x512xf32>
    %c7_377 = arith.constant 7 : index
    %c0_378 = arith.constant 0 : index
    %452 = vector.load %arg2[%c7_377, %c0_378] : memref<13x512xf32, #tpu.memory_space<vmem>>, vector<1x512xf32>
    %453 = vector.broadcast %452 : vector<1x512xf32> to vector<8x512xf32>
    %454 = arith.mulf %451, %453 : vector<8x512xf32>
    %c495_i32_379 = arith.constant 495 : i32
    %455 = tpu.dynamic_rotate %426 by %c495_i32_379 dim 1 : vector<8x512xf32>, i32 -> vector<8x512xf32>
    %c8_380 = arith.constant 8 : index
    %c0_381 = arith.constant 0 : index
    %456 = vector.load %arg2[%c8_380, %c0_381] : memref<13x512xf32, #tpu.memory_space<vmem>>, vector<1x512xf32>
    %457 = vector.broadcast %456 : vector<1x512xf32> to vector<8x512xf32>
    %458 = arith.mulf %455, %457 : vector<8x512xf32>
    %c0_382 = arith.constant 0 : index
    %c0_383 = arith.constant 0 : index
    %459 = vector.load %arg5[%c0_382, %c0_383] : memref<80x512xf32, #tpu.memory_space<vmem>>, vector<8x512xf32>
    tpu.vector_store %arg5[%c0_382, %c0_383], %430 {strides = array<i32>} : memref<80x512xf32, #tpu.memory_space<vmem>>, vector<8x512xf32>,
    %c8_384 = arith.constant 8 : index
    %c0_385 = arith.constant 0 : index
    %460 = vector.load %arg5[%c8_384, %c0_385] : memref<80x512xf32, #tpu.memory_space<vmem>>, vector<8x512xf32>
    tpu.vector_store %arg5[%c8_384, %c0_385], %434 {strides = array<i32>} : memref<80x512xf32, #tpu.memory_space<vmem>>, vector<8x512xf32>,
    %c16_386 = arith.constant 16 : index
    %c0_387 = arith.constant 0 : index
    %461 = vector.load %arg5[%c16_386, %c0_387] : memref<80x512xf32, #tpu.memory_space<vmem>>, vector<8x512xf32>
    tpu.vector_store %arg5[%c16_386, %c0_387], %438 {strides = array<i32>} : memref<80x512xf32, #tpu.memory_space<vmem>>, vector<8x512xf32>,
    %c24_388 = arith.constant 24 : index
    %c0_389 = arith.constant 0 : index
    %462 = vector.load %arg5[%c24_388, %c0_389] : memref<80x512xf32, #tpu.memory_space<vmem>>, vector<8x512xf32>
    tpu.vector_store %arg5[%c24_388, %c0_389], %442 {strides = array<i32>} : memref<80x512xf32, #tpu.memory_space<vmem>>, vector<8x512xf32>,
    %c32_390 = arith.constant 32 : index
    %c0_391 = arith.constant 0 : index
    %463 = vector.load %arg5[%c32_390, %c0_391] : memref<80x512xf32, #tpu.memory_space<vmem>>, vector<8x512xf32>
    tpu.vector_store %arg5[%c32_390, %c0_391], %426 {strides = array<i32>} : memref<80x512xf32, #tpu.memory_space<vmem>>, vector<8x512xf32>,
    %c40_392 = arith.constant 40 : index
    %c0_393 = arith.constant 0 : index
    %464 = vector.load %arg5[%c40_392, %c0_393] : memref<80x512xf32, #tpu.memory_space<vmem>>, vector<8x512xf32>
    tpu.vector_store %arg5[%c40_392, %c0_393], %446 {strides = array<i32>} : memref<80x512xf32, #tpu.memory_space<vmem>>, vector<8x512xf32>,
    %c48_394 = arith.constant 48 : index
    %c0_395 = arith.constant 0 : index
    %465 = vector.load %arg5[%c48_394, %c0_395] : memref<80x512xf32, #tpu.memory_space<vmem>>, vector<8x512xf32>
    tpu.vector_store %arg5[%c48_394, %c0_395], %450 {strides = array<i32>} : memref<80x512xf32, #tpu.memory_space<vmem>>, vector<8x512xf32>,
    %c56_396 = arith.constant 56 : index
    %c0_397 = arith.constant 0 : index
    %466 = vector.load %arg5[%c56_396, %c0_397] : memref<80x512xf32, #tpu.memory_space<vmem>>, vector<8x512xf32>
    tpu.vector_store %arg5[%c56_396, %c0_397], %454 {strides = array<i32>} : memref<80x512xf32, #tpu.memory_space<vmem>>, vector<8x512xf32>,
    %c64_398 = arith.constant 64 : index
    %c0_399 = arith.constant 0 : index
    %467 = vector.load %arg5[%c64_398, %c0_399] : memref<80x512xf32, #tpu.memory_space<vmem>>, vector<8x512xf32>
    tpu.vector_store %arg5[%c64_398, %c0_399], %458 {strides = array<i32>} : memref<80x512xf32, #tpu.memory_space<vmem>>, vector<8x512xf32>,
    %c64_400 = arith.constant 64 : index
    %c0_401 = arith.constant 0 : index
    %468 = vector.load %arg1[%c64_400, %c0_401] : memref<160x80xf32, #tpu.memory_space<vmem>>, vector<8x80xf32>
    %c0_402 = arith.constant 0 : index
    %c0_403 = arith.constant 0 : index
    %469 = vector.load %arg5[%c0_402, %c0_403] : memref<80x512xf32, #tpu.memory_space<vmem>>, vector<80x512xf32>
    %cst_404 = arith.constant dense<0.000000e+00> : vector<8x512xf32>
    %470 = tpu.matmul %468, %469, %cst_404 {dimension_numbers = #tpu.dot_dimension_numbers<[1], [0], [0], [1], [0, 0, 1, 1], [], []>} : vector<8x80xf32>, vector<80x512xf32>, vector<8x512xf32> -> vector<8x512xf32>
    %471 = arith.addf %380, %470 : vector<8x512xf32>
    %c17_i32_405 = arith.constant 17 : i32
    %472 = tpu.dynamic_rotate %471 by %c17_i32_405 dim 1 : vector<8x512xf32>, i32 -> vector<8x512xf32>
    %c0_406 = arith.constant 0 : index
    %c0_407 = arith.constant 0 : index
    %473 = vector.load %arg2[%c0_406, %c0_407] : memref<13x512xf32, #tpu.memory_space<vmem>>, vector<1x512xf32>
    %474 = vector.broadcast %473 : vector<1x512xf32> to vector<8x512xf32>
    %475 = arith.mulf %472, %474 : vector<8x512xf32>
    %c16_i32_408 = arith.constant 16 : i32
    %476 = tpu.dynamic_rotate %471 by %c16_i32_408 dim 1 : vector<8x512xf32>, i32 -> vector<8x512xf32>
    %c1_409 = arith.constant 1 : index
    %c0_410 = arith.constant 0 : index
    %477 = vector.load %arg2[%c1_409, %c0_410] : memref<13x512xf32, #tpu.memory_space<vmem>>, vector<1x512xf32>
    %478 = vector.broadcast %477 : vector<1x512xf32> to vector<8x512xf32>
    %479 = arith.mulf %476, %478 : vector<8x512xf32>
    %c15_i32_411 = arith.constant 15 : i32
    %480 = tpu.dynamic_rotate %471 by %c15_i32_411 dim 1 : vector<8x512xf32>, i32 -> vector<8x512xf32>
    %c2_412 = arith.constant 2 : index
    %c0_413 = arith.constant 0 : index
    %481 = vector.load %arg2[%c2_412, %c0_413] : memref<13x512xf32, #tpu.memory_space<vmem>>, vector<1x512xf32>
    %482 = vector.broadcast %481 : vector<1x512xf32> to vector<8x512xf32>
    %483 = arith.mulf %480, %482 : vector<8x512xf32>
    %c1_i32_414 = arith.constant 1 : i32
    %484 = tpu.dynamic_rotate %471 by %c1_i32_414 dim 1 : vector<8x512xf32>, i32 -> vector<8x512xf32>
    %c3_415 = arith.constant 3 : index
    %c0_416 = arith.constant 0 : index
    %485 = vector.load %arg2[%c3_415, %c0_416] : memref<13x512xf32, #tpu.memory_space<vmem>>, vector<1x512xf32>
    %486 = vector.broadcast %485 : vector<1x512xf32> to vector<8x512xf32>
    %487 = arith.mulf %484, %486 : vector<8x512xf32>
    %c511_i32_417 = arith.constant 511 : i32
    %488 = tpu.dynamic_rotate %471 by %c511_i32_417 dim 1 : vector<8x512xf32>, i32 -> vector<8x512xf32>
    %c5_418 = arith.constant 5 : index
    %c0_419 = arith.constant 0 : index
    %489 = vector.load %arg2[%c5_418, %c0_419] : memref<13x512xf32, #tpu.memory_space<vmem>>, vector<1x512xf32>
    %490 = vector.broadcast %489 : vector<1x512xf32> to vector<8x512xf32>
    %491 = arith.mulf %488, %490 : vector<8x512xf32>
    %c497_i32_420 = arith.constant 497 : i32
    %492 = tpu.dynamic_rotate %471 by %c497_i32_420 dim 1 : vector<8x512xf32>, i32 -> vector<8x512xf32>
    %c6_421 = arith.constant 6 : index
    %c0_422 = arith.constant 0 : index
    %493 = vector.load %arg2[%c6_421, %c0_422] : memref<13x512xf32, #tpu.memory_space<vmem>>, vector<1x512xf32>
    %494 = vector.broadcast %493 : vector<1x512xf32> to vector<8x512xf32>
    %495 = arith.mulf %492, %494 : vector<8x512xf32>
    %c496_i32_423 = arith.constant 496 : i32
    %496 = tpu.dynamic_rotate %471 by %c496_i32_423 dim 1 : vector<8x512xf32>, i32 -> vector<8x512xf32>
    %c7_424 = arith.constant 7 : index
    %c0_425 = arith.constant 0 : index
    %497 = vector.load %arg2[%c7_424, %c0_425] : memref<13x512xf32, #tpu.memory_space<vmem>>, vector<1x512xf32>
    %498 = vector.broadcast %497 : vector<1x512xf32> to vector<8x512xf32>
    %499 = arith.mulf %496, %498 : vector<8x512xf32>
    %c495_i32_426 = arith.constant 495 : i32
    %500 = tpu.dynamic_rotate %471 by %c495_i32_426 dim 1 : vector<8x512xf32>, i32 -> vector<8x512xf32>
    %c8_427 = arith.constant 8 : index
    %c0_428 = arith.constant 0 : index
    %501 = vector.load %arg2[%c8_427, %c0_428] : memref<13x512xf32, #tpu.memory_space<vmem>>, vector<1x512xf32>
    %502 = vector.broadcast %501 : vector<1x512xf32> to vector<8x512xf32>
    %503 = arith.mulf %500, %502 : vector<8x512xf32>
    %c0_429 = arith.constant 0 : index
    %c0_430 = arith.constant 0 : index
    %504 = vector.load %arg5[%c0_429, %c0_430] : memref<80x512xf32, #tpu.memory_space<vmem>>, vector<8x512xf32>
    tpu.vector_store %arg5[%c0_429, %c0_430], %475 {strides = array<i32>} : memref<80x512xf32, #tpu.memory_space<vmem>>, vector<8x512xf32>,
    %c8_431 = arith.constant 8 : index
    %c0_432 = arith.constant 0 : index
    %505 = vector.load %arg5[%c8_431, %c0_432] : memref<80x512xf32, #tpu.memory_space<vmem>>, vector<8x512xf32>
    tpu.vector_store %arg5[%c8_431, %c0_432], %479 {strides = array<i32>} : memref<80x512xf32, #tpu.memory_space<vmem>>, vector<8x512xf32>,
    %c16_433 = arith.constant 16 : index
    %c0_434 = arith.constant 0 : index
    %506 = vector.load %arg5[%c16_433, %c0_434] : memref<80x512xf32, #tpu.memory_space<vmem>>, vector<8x512xf32>
    tpu.vector_store %arg5[%c16_433, %c0_434], %483 {strides = array<i32>} : memref<80x512xf32, #tpu.memory_space<vmem>>, vector<8x512xf32>,
    %c24_435 = arith.constant 24 : index
    %c0_436 = arith.constant 0 : index
    %507 = vector.load %arg5[%c24_435, %c0_436] : memref<80x512xf32, #tpu.memory_space<vmem>>, vector<8x512xf32>
    tpu.vector_store %arg5[%c24_435, %c0_436], %487 {strides = array<i32>} : memref<80x512xf32, #tpu.memory_space<vmem>>, vector<8x512xf32>,
    %c32_437 = arith.constant 32 : index
    %c0_438 = arith.constant 0 : index
    %508 = vector.load %arg5[%c32_437, %c0_438] : memref<80x512xf32, #tpu.memory_space<vmem>>, vector<8x512xf32>
    tpu.vector_store %arg5[%c32_437, %c0_438], %471 {strides = array<i32>} : memref<80x512xf32, #tpu.memory_space<vmem>>, vector<8x512xf32>,
    %c40_439 = arith.constant 40 : index
    %c0_440 = arith.constant 0 : index
    %509 = vector.load %arg5[%c40_439, %c0_440] : memref<80x512xf32, #tpu.memory_space<vmem>>, vector<8x512xf32>
    tpu.vector_store %arg5[%c40_439, %c0_440], %491 {strides = array<i32>} : memref<80x512xf32, #tpu.memory_space<vmem>>, vector<8x512xf32>,
    %c48_441 = arith.constant 48 : index
    %c0_442 = arith.constant 0 : index
    %510 = vector.load %arg5[%c48_441, %c0_442] : memref<80x512xf32, #tpu.memory_space<vmem>>, vector<8x512xf32>
    tpu.vector_store %arg5[%c48_441, %c0_442], %495 {strides = array<i32>} : memref<80x512xf32, #tpu.memory_space<vmem>>, vector<8x512xf32>,
    %c56_443 = arith.constant 56 : index
    %c0_444 = arith.constant 0 : index
    %511 = vector.load %arg5[%c56_443, %c0_444] : memref<80x512xf32, #tpu.memory_space<vmem>>, vector<8x512xf32>
    tpu.vector_store %arg5[%c56_443, %c0_444], %499 {strides = array<i32>} : memref<80x512xf32, #tpu.memory_space<vmem>>, vector<8x512xf32>,
    %c64_445 = arith.constant 64 : index
    %c0_446 = arith.constant 0 : index
    %512 = vector.load %arg5[%c64_445, %c0_446] : memref<80x512xf32, #tpu.memory_space<vmem>>, vector<8x512xf32>
    tpu.vector_store %arg5[%c64_445, %c0_446], %503 {strides = array<i32>} : memref<80x512xf32, #tpu.memory_space<vmem>>, vector<8x512xf32>,
    %c72_447 = arith.constant 72 : index
    %c0_448 = arith.constant 0 : index
    %513 = vector.load %arg1[%c72_447, %c0_448] : memref<160x80xf32, #tpu.memory_space<vmem>>, vector<8x80xf32>
    %c0_449 = arith.constant 0 : index
    %c0_450 = arith.constant 0 : index
    %514 = vector.load %arg5[%c0_449, %c0_450] : memref<80x512xf32, #tpu.memory_space<vmem>>, vector<80x512xf32>
    %cst_451 = arith.constant dense<0.000000e+00> : vector<8x512xf32>
    %515 = tpu.matmul %513, %514, %cst_451 {dimension_numbers = #tpu.dot_dimension_numbers<[1], [0], [0], [1], [0, 0, 1, 1], [], []>} : vector<8x80xf32>, vector<80x512xf32>, vector<8x512xf32> -> vector<8x512xf32>
    %516 = arith.addf %515, %380 : vector<8x512xf32>
    %c17_i32_452 = arith.constant 17 : i32
    %517 = tpu.dynamic_rotate %516 by %c17_i32_452 dim 1 : vector<8x512xf32>, i32 -> vector<8x512xf32>
    %c0_453 = arith.constant 0 : index
    %c0_454 = arith.constant 0 : index
    %518 = vector.load %arg2[%c0_453, %c0_454] : memref<13x512xf32, #tpu.memory_space<vmem>>, vector<1x512xf32>
    %519 = vector.broadcast %518 : vector<1x512xf32> to vector<8x512xf32>
    %520 = arith.mulf %517, %519 : vector<8x512xf32>
    %c16_i32_455 = arith.constant 16 : i32
    %521 = tpu.dynamic_rotate %516 by %c16_i32_455 dim 1 : vector<8x512xf32>, i32 -> vector<8x512xf32>
    %c1_456 = arith.constant 1 : index
    %c0_457 = arith.constant 0 : index
    %522 = vector.load %arg2[%c1_456, %c0_457] : memref<13x512xf32, #tpu.memory_space<vmem>>, vector<1x512xf32>
    %523 = vector.broadcast %522 : vector<1x512xf32> to vector<8x512xf32>
    %524 = arith.mulf %521, %523 : vector<8x512xf32>
    %c15_i32_458 = arith.constant 15 : i32
    %525 = tpu.dynamic_rotate %516 by %c15_i32_458 dim 1 : vector<8x512xf32>, i32 -> vector<8x512xf32>
    %c2_459 = arith.constant 2 : index
    %c0_460 = arith.constant 0 : index
    %526 = vector.load %arg2[%c2_459, %c0_460] : memref<13x512xf32, #tpu.memory_space<vmem>>, vector<1x512xf32>
    %527 = vector.broadcast %526 : vector<1x512xf32> to vector<8x512xf32>
    %528 = arith.mulf %525, %527 : vector<8x512xf32>
    %c1_i32_461 = arith.constant 1 : i32
    %529 = tpu.dynamic_rotate %516 by %c1_i32_461 dim 1 : vector<8x512xf32>, i32 -> vector<8x512xf32>
    %c3_462 = arith.constant 3 : index
    %c0_463 = arith.constant 0 : index
    %530 = vector.load %arg2[%c3_462, %c0_463] : memref<13x512xf32, #tpu.memory_space<vmem>>, vector<1x512xf32>
    %531 = vector.broadcast %530 : vector<1x512xf32> to vector<8x512xf32>
    %532 = arith.mulf %529, %531 : vector<8x512xf32>
    %c511_i32_464 = arith.constant 511 : i32
    %533 = tpu.dynamic_rotate %516 by %c511_i32_464 dim 1 : vector<8x512xf32>, i32 -> vector<8x512xf32>
    %c5_465 = arith.constant 5 : index
    %c0_466 = arith.constant 0 : index
    %534 = vector.load %arg2[%c5_465, %c0_466] : memref<13x512xf32, #tpu.memory_space<vmem>>, vector<1x512xf32>
    %535 = vector.broadcast %534 : vector<1x512xf32> to vector<8x512xf32>
    %536 = arith.mulf %533, %535 : vector<8x512xf32>
    %c497_i32_467 = arith.constant 497 : i32
    %537 = tpu.dynamic_rotate %516 by %c497_i32_467 dim 1 : vector<8x512xf32>, i32 -> vector<8x512xf32>
    %c6_468 = arith.constant 6 : index
    %c0_469 = arith.constant 0 : index
    %538 = vector.load %arg2[%c6_468, %c0_469] : memref<13x512xf32, #tpu.memory_space<vmem>>, vector<1x512xf32>
    %539 = vector.broadcast %538 : vector<1x512xf32> to vector<8x512xf32>
    %540 = arith.mulf %537, %539 : vector<8x512xf32>
    %c496_i32_470 = arith.constant 496 : i32
    %541 = tpu.dynamic_rotate %516 by %c496_i32_470 dim 1 : vector<8x512xf32>, i32 -> vector<8x512xf32>
    %c7_471 = arith.constant 7 : index
    %c0_472 = arith.constant 0 : index
    %542 = vector.load %arg2[%c7_471, %c0_472] : memref<13x512xf32, #tpu.memory_space<vmem>>, vector<1x512xf32>
    %543 = vector.broadcast %542 : vector<1x512xf32> to vector<8x512xf32>
    %544 = arith.mulf %541, %543 : vector<8x512xf32>
    %c495_i32_473 = arith.constant 495 : i32
    %545 = tpu.dynamic_rotate %516 by %c495_i32_473 dim 1 : vector<8x512xf32>, i32 -> vector<8x512xf32>
    %c8_474 = arith.constant 8 : index
    %c0_475 = arith.constant 0 : index
    %546 = vector.load %arg2[%c8_474, %c0_475] : memref<13x512xf32, #tpu.memory_space<vmem>>, vector<1x512xf32>
    %547 = vector.broadcast %546 : vector<1x512xf32> to vector<8x512xf32>
    %548 = arith.mulf %545, %547 : vector<8x512xf32>
    %c0_476 = arith.constant 0 : index
    %c0_477 = arith.constant 0 : index
    %549 = vector.load %arg5[%c0_476, %c0_477] : memref<80x512xf32, #tpu.memory_space<vmem>>, vector<8x512xf32>
    tpu.vector_store %arg5[%c0_476, %c0_477], %520 {strides = array<i32>} : memref<80x512xf32, #tpu.memory_space<vmem>>, vector<8x512xf32>,
    %c8_478 = arith.constant 8 : index
    %c0_479 = arith.constant 0 : index
    %550 = vector.load %arg5[%c8_478, %c0_479] : memref<80x512xf32, #tpu.memory_space<vmem>>, vector<8x512xf32>
    tpu.vector_store %arg5[%c8_478, %c0_479], %524 {strides = array<i32>} : memref<80x512xf32, #tpu.memory_space<vmem>>, vector<8x512xf32>,
    %c16_480 = arith.constant 16 : index
    %c0_481 = arith.constant 0 : index
    %551 = vector.load %arg5[%c16_480, %c0_481] : memref<80x512xf32, #tpu.memory_space<vmem>>, vector<8x512xf32>
    tpu.vector_store %arg5[%c16_480, %c0_481], %528 {strides = array<i32>} : memref<80x512xf32, #tpu.memory_space<vmem>>, vector<8x512xf32>,
    %c24_482 = arith.constant 24 : index
    %c0_483 = arith.constant 0 : index
    %552 = vector.load %arg5[%c24_482, %c0_483] : memref<80x512xf32, #tpu.memory_space<vmem>>, vector<8x512xf32>
    tpu.vector_store %arg5[%c24_482, %c0_483], %532 {strides = array<i32>} : memref<80x512xf32, #tpu.memory_space<vmem>>, vector<8x512xf32>,
    %c32_484 = arith.constant 32 : index
    %c0_485 = arith.constant 0 : index
    %553 = vector.load %arg5[%c32_484, %c0_485] : memref<80x512xf32, #tpu.memory_space<vmem>>, vector<8x512xf32>
    tpu.vector_store %arg5[%c32_484, %c0_485], %516 {strides = array<i32>} : memref<80x512xf32, #tpu.memory_space<vmem>>, vector<8x512xf32>,
    %c40_486 = arith.constant 40 : index
    %c0_487 = arith.constant 0 : index
    %554 = vector.load %arg5[%c40_486, %c0_487] : memref<80x512xf32, #tpu.memory_space<vmem>>, vector<8x512xf32>
    tpu.vector_store %arg5[%c40_486, %c0_487], %536 {strides = array<i32>} : memref<80x512xf32, #tpu.memory_space<vmem>>, vector<8x512xf32>,
    %c48_488 = arith.constant 48 : index
    %c0_489 = arith.constant 0 : index
    %555 = vector.load %arg5[%c48_488, %c0_489] : memref<80x512xf32, #tpu.memory_space<vmem>>, vector<8x512xf32>
    tpu.vector_store %arg5[%c48_488, %c0_489], %540 {strides = array<i32>} : memref<80x512xf32, #tpu.memory_space<vmem>>, vector<8x512xf32>,
    %c56_490 = arith.constant 56 : index
    %c0_491 = arith.constant 0 : index
    %556 = vector.load %arg5[%c56_490, %c0_491] : memref<80x512xf32, #tpu.memory_space<vmem>>, vector<8x512xf32>
    tpu.vector_store %arg5[%c56_490, %c0_491], %544 {strides = array<i32>} : memref<80x512xf32, #tpu.memory_space<vmem>>, vector<8x512xf32>,
    %c64_492 = arith.constant 64 : index
    %c0_493 = arith.constant 0 : index
    %557 = vector.load %arg5[%c64_492, %c0_493] : memref<80x512xf32, #tpu.memory_space<vmem>>, vector<8x512xf32>
    tpu.vector_store %arg5[%c64_492, %c0_493], %548 {strides = array<i32>} : memref<80x512xf32, #tpu.memory_space<vmem>>, vector<8x512xf32>,
    %c80 = arith.constant 80 : index
    %c0_494 = arith.constant 0 : index
    %558 = vector.load %arg1[%c80, %c0_494] : memref<160x80xf32, #tpu.memory_space<vmem>>, vector<8x80xf32>
    %c0_495 = arith.constant 0 : index
    %c0_496 = arith.constant 0 : index
    %559 = vector.load %arg5[%c0_495, %c0_496] : memref<80x512xf32, #tpu.memory_space<vmem>>, vector<80x512xf32>
    %cst_497 = arith.constant dense<0.000000e+00> : vector<8x512xf32>
    %560 = tpu.matmul %558, %559, %cst_497 {dimension_numbers = #tpu.dot_dimension_numbers<[1], [0], [0], [1], [0, 0, 1, 1], [], []>} : vector<8x80xf32>, vector<80x512xf32>, vector<8x512xf32> -> vector<8x512xf32>
    %561 = arith.subf %560, %336 : vector<8x512xf32>
    %c1_498 = arith.constant 1 : index
    %562 = memref.load %arg3[%c1_498] : memref<2xf32, #tpu.memory_space<smem>>
    %c17_i32_499 = arith.constant 17 : i32
    %563 = tpu.dynamic_rotate %8 by %c17_i32_499 dim 1 : vector<1x512xf32>, i32 -> vector<1x512xf32>
    %c0_500 = arith.constant 0 : index
    %c0_501 = arith.constant 0 : index
    %564 = vector.load %arg2[%c0_500, %c0_501] : memref<13x512xf32, #tpu.memory_space<vmem>>, vector<1x512xf32>
    %565 = arith.mulf %563, %564 : vector<1x512xf32>
    %c16_i32_502 = arith.constant 16 : i32
    %566 = tpu.dynamic_rotate %8 by %c16_i32_502 dim 1 : vector<1x512xf32>, i32 -> vector<1x512xf32>
    %c1_503 = arith.constant 1 : index
    %c0_504 = arith.constant 0 : index
    %567 = vector.load %arg2[%c1_503, %c0_504] : memref<13x512xf32, #tpu.memory_space<vmem>>, vector<1x512xf32>
    %568 = arith.mulf %566, %567 : vector<1x512xf32>
    %c15_i32_505 = arith.constant 15 : i32
    %569 = tpu.dynamic_rotate %8 by %c15_i32_505 dim 1 : vector<1x512xf32>, i32 -> vector<1x512xf32>
    %c2_506 = arith.constant 2 : index
    %c0_507 = arith.constant 0 : index
    %570 = vector.load %arg2[%c2_506, %c0_507] : memref<13x512xf32, #tpu.memory_space<vmem>>, vector<1x512xf32>
    %571 = arith.mulf %569, %570 : vector<1x512xf32>
    %c1_i32_508 = arith.constant 1 : i32
    %572 = tpu.dynamic_rotate %8 by %c1_i32_508 dim 1 : vector<1x512xf32>, i32 -> vector<1x512xf32>
    %c3_509 = arith.constant 3 : index
    %c0_510 = arith.constant 0 : index
    %573 = vector.load %arg2[%c3_509, %c0_510] : memref<13x512xf32, #tpu.memory_space<vmem>>, vector<1x512xf32>
    %574 = arith.mulf %572, %573 : vector<1x512xf32>
    %c511_i32_511 = arith.constant 511 : i32
    %575 = tpu.dynamic_rotate %8 by %c511_i32_511 dim 1 : vector<1x512xf32>, i32 -> vector<1x512xf32>
    %c5_512 = arith.constant 5 : index
    %c0_513 = arith.constant 0 : index
    %576 = vector.load %arg2[%c5_512, %c0_513] : memref<13x512xf32, #tpu.memory_space<vmem>>, vector<1x512xf32>
    %577 = arith.mulf %575, %576 : vector<1x512xf32>
    %c497_i32_514 = arith.constant 497 : i32
    %578 = tpu.dynamic_rotate %8 by %c497_i32_514 dim 1 : vector<1x512xf32>, i32 -> vector<1x512xf32>
    %c6_515 = arith.constant 6 : index
    %c0_516 = arith.constant 0 : index
    %579 = vector.load %arg2[%c6_515, %c0_516] : memref<13x512xf32, #tpu.memory_space<vmem>>, vector<1x512xf32>
    %580 = arith.mulf %578, %579 : vector<1x512xf32>
    %c496_i32_517 = arith.constant 496 : i32
    %581 = tpu.dynamic_rotate %8 by %c496_i32_517 dim 1 : vector<1x512xf32>, i32 -> vector<1x512xf32>
    %c7_518 = arith.constant 7 : index
    %c0_519 = arith.constant 0 : index
    %582 = vector.load %arg2[%c7_518, %c0_519] : memref<13x512xf32, #tpu.memory_space<vmem>>, vector<1x512xf32>
    %583 = arith.mulf %581, %582 : vector<1x512xf32>
    %c495_i32_520 = arith.constant 495 : i32
    %584 = tpu.dynamic_rotate %8 by %c495_i32_520 dim 1 : vector<1x512xf32>, i32 -> vector<1x512xf32>
    %c8_521 = arith.constant 8 : index
    %c0_522 = arith.constant 0 : index
    %585 = vector.load %arg2[%c8_521, %c0_522] : memref<13x512xf32, #tpu.memory_space<vmem>>, vector<1x512xf32>
    %586 = arith.mulf %584, %585 : vector<1x512xf32>
    %c104 = arith.constant 104 : index
    %c0_523 = arith.constant 0 : index
    %587 = vector.load %arg1[%c104, %c0_523] : memref<160x80xf32, #tpu.memory_space<vmem>>, vector<8x1xf32>
    %588 = vector.broadcast %587 : vector<8x1xf32> to vector<8x512xf32>
    %589 = vector.broadcast %565 : vector<1x512xf32> to vector<8x512xf32>
    %590 = arith.mulf %588, %589 : vector<8x512xf32>
    %c104_524 = arith.constant 104 : index
    %c1_525 = arith.constant 1 : index
    %591 = vector.load %arg1[%c104_524, %c1_525] : memref<160x80xf32, #tpu.memory_space<vmem>>, vector<8x1xf32>
    %592 = vector.broadcast %591 : vector<8x1xf32> to vector<8x512xf32>
    %593 = vector.broadcast %568 : vector<1x512xf32> to vector<8x512xf32>
    %594 = arith.mulf %592, %593 : vector<8x512xf32>
    %595 = arith.addf %590, %594 : vector<8x512xf32>
    %c104_526 = arith.constant 104 : index
    %c2_527 = arith.constant 2 : index
    %596 = vector.load %arg1[%c104_526, %c2_527] : memref<160x80xf32, #tpu.memory_space<vmem>>, vector<8x1xf32>
    %597 = vector.broadcast %596 : vector<8x1xf32> to vector<8x512xf32>
    %598 = vector.broadcast %571 : vector<1x512xf32> to vector<8x512xf32>
    %599 = arith.mulf %597, %598 : vector<8x512xf32>
    %600 = arith.addf %595, %599 : vector<8x512xf32>
    %c104_528 = arith.constant 104 : index
    %c3_529 = arith.constant 3 : index
    %601 = vector.load %arg1[%c104_528, %c3_529] : memref<160x80xf32, #tpu.memory_space<vmem>>, vector<8x1xf32>
    %602 = vector.broadcast %601 : vector<8x1xf32> to vector<8x512xf32>
    %603 = vector.broadcast %574 : vector<1x512xf32> to vector<8x512xf32>
    %604 = arith.mulf %602, %603 : vector<8x512xf32>
    %605 = arith.addf %600, %604 : vector<8x512xf32>
    %c104_530 = arith.constant 104 : index
    %c4_531 = arith.constant 4 : index
    %606 = vector.load %arg1[%c104_530, %c4_531] : memref<160x80xf32, #tpu.memory_space<vmem>>, vector<8x1xf32>
    %607 = vector.broadcast %606 : vector<8x1xf32> to vector<8x512xf32>
    %608 = vector.broadcast %8 : vector<1x512xf32> to vector<8x512xf32>
    %609 = arith.mulf %607, %608 : vector<8x512xf32>
    %610 = arith.addf %605, %609 : vector<8x512xf32>
    %c104_532 = arith.constant 104 : index
    %c5_533 = arith.constant 5 : index
    %611 = vector.load %arg1[%c104_532, %c5_533] : memref<160x80xf32, #tpu.memory_space<vmem>>, vector<8x1xf32>
    %612 = vector.broadcast %611 : vector<8x1xf32> to vector<8x512xf32>
    %613 = vector.broadcast %577 : vector<1x512xf32> to vector<8x512xf32>
    %614 = arith.mulf %612, %613 : vector<8x512xf32>
    %615 = arith.addf %610, %614 : vector<8x512xf32>
    %c104_534 = arith.constant 104 : index
    %c6_535 = arith.constant 6 : index
    %616 = vector.load %arg1[%c104_534, %c6_535] : memref<160x80xf32, #tpu.memory_space<vmem>>, vector<8x1xf32>
    %617 = vector.broadcast %616 : vector<8x1xf32> to vector<8x512xf32>
    %618 = vector.broadcast %580 : vector<1x512xf32> to vector<8x512xf32>
    %619 = arith.mulf %617, %618 : vector<8x512xf32>
    %620 = arith.addf %615, %619 : vector<8x512xf32>
    %c104_536 = arith.constant 104 : index
    %c7_537 = arith.constant 7 : index
    %621 = vector.load %arg1[%c104_536, %c7_537] : memref<160x80xf32, #tpu.memory_space<vmem>>, vector<8x1xf32>
    %622 = vector.broadcast %621 : vector<8x1xf32> to vector<8x512xf32>
    %623 = vector.broadcast %583 : vector<1x512xf32> to vector<8x512xf32>
    %624 = arith.mulf %622, %623 : vector<8x512xf32>
    %625 = arith.addf %620, %624 : vector<8x512xf32>
    %c104_538 = arith.constant 104 : index
    %c8_539 = arith.constant 8 : index
    %626 = vector.load %arg1[%c104_538, %c8_539] : memref<160x80xf32, #tpu.memory_space<vmem>>, vector<8x1xf32>
    %627 = vector.broadcast %626 : vector<8x1xf32> to vector<8x512xf32>
    %628 = vector.broadcast %586 : vector<1x512xf32> to vector<8x512xf32>
    %629 = arith.mulf %627, %628 : vector<8x512xf32>
    %630 = arith.addf %625, %629 : vector<8x512xf32>
    %c104_540 = arith.constant 104 : index
    %c72_541 = arith.constant 72 : index
    %631 = vector.load %arg1[%c104_540, %c72_541] : memref<160x80xf32, #tpu.memory_space<vmem>>, vector<8x1xf32>
    %632 = vector.broadcast %631 : vector<8x1xf32> to vector<8x512xf32>
    %633 = arith.addf %630, %632 : vector<8x512xf32>
    %cst_542 = arith.constant 0.000000e+00 : f32
    %634 = vector.broadcast %cst_542 : f32 to vector<8x512xf32>
    %635 = arith.maximumf %633, %634 : vector<8x512xf32>
    %c17_i32_543 = arith.constant 17 : i32
    %636 = tpu.dynamic_rotate %635 by %c17_i32_543 dim 1 : vector<8x512xf32>, i32 -> vector<8x512xf32>
    %c0_544 = arith.constant 0 : index
    %c0_545 = arith.constant 0 : index
    %637 = vector.load %arg2[%c0_544, %c0_545] : memref<13x512xf32, #tpu.memory_space<vmem>>, vector<1x512xf32>
    %638 = vector.broadcast %637 : vector<1x512xf32> to vector<8x512xf32>
    %639 = arith.mulf %636, %638 : vector<8x512xf32>
    %c16_i32_546 = arith.constant 16 : i32
    %640 = tpu.dynamic_rotate %635 by %c16_i32_546 dim 1 : vector<8x512xf32>, i32 -> vector<8x512xf32>
    %c1_547 = arith.constant 1 : index
    %c0_548 = arith.constant 0 : index
    %641 = vector.load %arg2[%c1_547, %c0_548] : memref<13x512xf32, #tpu.memory_space<vmem>>, vector<1x512xf32>
    %642 = vector.broadcast %641 : vector<1x512xf32> to vector<8x512xf32>
    %643 = arith.mulf %640, %642 : vector<8x512xf32>
    %c15_i32_549 = arith.constant 15 : i32
    %644 = tpu.dynamic_rotate %635 by %c15_i32_549 dim 1 : vector<8x512xf32>, i32 -> vector<8x512xf32>
    %c2_550 = arith.constant 2 : index
    %c0_551 = arith.constant 0 : index
    %645 = vector.load %arg2[%c2_550, %c0_551] : memref<13x512xf32, #tpu.memory_space<vmem>>, vector<1x512xf32>
    %646 = vector.broadcast %645 : vector<1x512xf32> to vector<8x512xf32>
    %647 = arith.mulf %644, %646 : vector<8x512xf32>
    %c1_i32_552 = arith.constant 1 : i32
    %648 = tpu.dynamic_rotate %635 by %c1_i32_552 dim 1 : vector<8x512xf32>, i32 -> vector<8x512xf32>
    %c3_553 = arith.constant 3 : index
    %c0_554 = arith.constant 0 : index
    %649 = vector.load %arg2[%c3_553, %c0_554] : memref<13x512xf32, #tpu.memory_space<vmem>>, vector<1x512xf32>
    %650 = vector.broadcast %649 : vector<1x512xf32> to vector<8x512xf32>
    %651 = arith.mulf %648, %650 : vector<8x512xf32>
    %c511_i32_555 = arith.constant 511 : i32
    %652 = tpu.dynamic_rotate %635 by %c511_i32_555 dim 1 : vector<8x512xf32>, i32 -> vector<8x512xf32>
    %c5_556 = arith.constant 5 : index
    %c0_557 = arith.constant 0 : index
    %653 = vector.load %arg2[%c5_556, %c0_557] : memref<13x512xf32, #tpu.memory_space<vmem>>, vector<1x512xf32>
    %654 = vector.broadcast %653 : vector<1x512xf32> to vector<8x512xf32>
    %655 = arith.mulf %652, %654 : vector<8x512xf32>
    %c497_i32_558 = arith.constant 497 : i32
    %656 = tpu.dynamic_rotate %635 by %c497_i32_558 dim 1 : vector<8x512xf32>, i32 -> vector<8x512xf32>
    %c6_559 = arith.constant 6 : index
    %c0_560 = arith.constant 0 : index
    %657 = vector.load %arg2[%c6_559, %c0_560] : memref<13x512xf32, #tpu.memory_space<vmem>>, vector<1x512xf32>
    %658 = vector.broadcast %657 : vector<1x512xf32> to vector<8x512xf32>
    %659 = arith.mulf %656, %658 : vector<8x512xf32>
    %c496_i32_561 = arith.constant 496 : i32
    %660 = tpu.dynamic_rotate %635 by %c496_i32_561 dim 1 : vector<8x512xf32>, i32 -> vector<8x512xf32>
    %c7_562 = arith.constant 7 : index
    %c0_563 = arith.constant 0 : index
    %661 = vector.load %arg2[%c7_562, %c0_563] : memref<13x512xf32, #tpu.memory_space<vmem>>, vector<1x512xf32>
    %662 = vector.broadcast %661 : vector<1x512xf32> to vector<8x512xf32>
    %663 = arith.mulf %660, %662 : vector<8x512xf32>
    %c495_i32_564 = arith.constant 495 : i32
    %664 = tpu.dynamic_rotate %635 by %c495_i32_564 dim 1 : vector<8x512xf32>, i32 -> vector<8x512xf32>
    %c8_565 = arith.constant 8 : index
    %c0_566 = arith.constant 0 : index
    %665 = vector.load %arg2[%c8_565, %c0_566] : memref<13x512xf32, #tpu.memory_space<vmem>>, vector<1x512xf32>
    %666 = vector.broadcast %665 : vector<1x512xf32> to vector<8x512xf32>
    %667 = arith.mulf %664, %666 : vector<8x512xf32>
    %c0_567 = arith.constant 0 : index
    %c0_568 = arith.constant 0 : index
    %668 = vector.load %arg5[%c0_567, %c0_568] : memref<80x512xf32, #tpu.memory_space<vmem>>, vector<8x512xf32>
    tpu.vector_store %arg5[%c0_567, %c0_568], %639 {strides = array<i32>} : memref<80x512xf32, #tpu.memory_space<vmem>>, vector<8x512xf32>,
    %c8_569 = arith.constant 8 : index
    %c0_570 = arith.constant 0 : index
    %669 = vector.load %arg5[%c8_569, %c0_570] : memref<80x512xf32, #tpu.memory_space<vmem>>, vector<8x512xf32>
    tpu.vector_store %arg5[%c8_569, %c0_570], %643 {strides = array<i32>} : memref<80x512xf32, #tpu.memory_space<vmem>>, vector<8x512xf32>,
    %c16_571 = arith.constant 16 : index
    %c0_572 = arith.constant 0 : index
    %670 = vector.load %arg5[%c16_571, %c0_572] : memref<80x512xf32, #tpu.memory_space<vmem>>, vector<8x512xf32>
    tpu.vector_store %arg5[%c16_571, %c0_572], %647 {strides = array<i32>} : memref<80x512xf32, #tpu.memory_space<vmem>>, vector<8x512xf32>,
    %c24_573 = arith.constant 24 : index
    %c0_574 = arith.constant 0 : index
    %671 = vector.load %arg5[%c24_573, %c0_574] : memref<80x512xf32, #tpu.memory_space<vmem>>, vector<8x512xf32>
    tpu.vector_store %arg5[%c24_573, %c0_574], %651 {strides = array<i32>} : memref<80x512xf32, #tpu.memory_space<vmem>>, vector<8x512xf32>,
    %c32_575 = arith.constant 32 : index
    %c0_576 = arith.constant 0 : index
    %672 = vector.load %arg5[%c32_575, %c0_576] : memref<80x512xf32, #tpu.memory_space<vmem>>, vector<8x512xf32>
    tpu.vector_store %arg5[%c32_575, %c0_576], %635 {strides = array<i32>} : memref<80x512xf32, #tpu.memory_space<vmem>>, vector<8x512xf32>,
    %c40_577 = arith.constant 40 : index
    %c0_578 = arith.constant 0 : index
    %673 = vector.load %arg5[%c40_577, %c0_578] : memref<80x512xf32, #tpu.memory_space<vmem>>, vector<8x512xf32>
    tpu.vector_store %arg5[%c40_577, %c0_578], %655 {strides = array<i32>} : memref<80x512xf32, #tpu.memory_space<vmem>>, vector<8x512xf32>,
    %c48_579 = arith.constant 48 : index
    %c0_580 = arith.constant 0 : index
    %674 = vector.load %arg5[%c48_579, %c0_580] : memref<80x512xf32, #tpu.memory_space<vmem>>, vector<8x512xf32>
    tpu.vector_store %arg5[%c48_579, %c0_580], %659 {strides = array<i32>} : memref<80x512xf32, #tpu.memory_space<vmem>>, vector<8x512xf32>,
    %c56_581 = arith.constant 56 : index
    %c0_582 = arith.constant 0 : index
    %675 = vector.load %arg5[%c56_581, %c0_582] : memref<80x512xf32, #tpu.memory_space<vmem>>, vector<8x512xf32>
    tpu.vector_store %arg5[%c56_581, %c0_582], %663 {strides = array<i32>} : memref<80x512xf32, #tpu.memory_space<vmem>>, vector<8x512xf32>,
    %c64_583 = arith.constant 64 : index
    %c0_584 = arith.constant 0 : index
    %676 = vector.load %arg5[%c64_583, %c0_584] : memref<80x512xf32, #tpu.memory_space<vmem>>, vector<8x512xf32>
    tpu.vector_store %arg5[%c64_583, %c0_584], %667 {strides = array<i32>} : memref<80x512xf32, #tpu.memory_space<vmem>>, vector<8x512xf32>,
    %c112 = arith.constant 112 : index
    %c0_585 = arith.constant 0 : index
    %677 = vector.load %arg1[%c112, %c0_585] : memref<160x80xf32, #tpu.memory_space<vmem>>, vector<8x80xf32>
    %c0_586 = arith.constant 0 : index
    %c0_587 = arith.constant 0 : index
    %678 = vector.load %arg5[%c0_586, %c0_587] : memref<80x512xf32, #tpu.memory_space<vmem>>, vector<80x512xf32>
    %cst_588 = arith.constant dense<0.000000e+00> : vector<8x512xf32>
    %679 = tpu.matmul %677, %678, %cst_588 {dimension_numbers = #tpu.dot_dimension_numbers<[1], [0], [0], [1], [0, 0, 1, 1], [], []>} : vector<8x80xf32>, vector<80x512xf32>, vector<8x512xf32> -> vector<8x512xf32>
    %680 = arith.addf %560, %561 : vector<8x512xf32>
    %681 = vector.broadcast %562 : f32 to vector<8x512xf32>
    %682 = arith.mulf %681, %680 : vector<8x512xf32>
    %683 = arith.addf %679, %682 : vector<8x512xf32>
    %c17_i32_589 = arith.constant 17 : i32
    %684 = tpu.dynamic_rotate %683 by %c17_i32_589 dim 1 : vector<8x512xf32>, i32 -> vector<8x512xf32>
    %c0_590 = arith.constant 0 : index
    %c0_591 = arith.constant 0 : index
    %685 = vector.load %arg2[%c0_590, %c0_591] : memref<13x512xf32, #tpu.memory_space<vmem>>, vector<1x512xf32>
    %686 = vector.broadcast %685 : vector<1x512xf32> to vector<8x512xf32>
    %687 = arith.mulf %684, %686 : vector<8x512xf32>
    %c16_i32_592 = arith.constant 16 : i32
    %688 = tpu.dynamic_rotate %683 by %c16_i32_592 dim 1 : vector<8x512xf32>, i32 -> vector<8x512xf32>
    %c1_593 = arith.constant 1 : index
    %c0_594 = arith.constant 0 : index
    %689 = vector.load %arg2[%c1_593, %c0_594] : memref<13x512xf32, #tpu.memory_space<vmem>>, vector<1x512xf32>
    %690 = vector.broadcast %689 : vector<1x512xf32> to vector<8x512xf32>
    %691 = arith.mulf %688, %690 : vector<8x512xf32>
    %c15_i32_595 = arith.constant 15 : i32
    %692 = tpu.dynamic_rotate %683 by %c15_i32_595 dim 1 : vector<8x512xf32>, i32 -> vector<8x512xf32>
    %c2_596 = arith.constant 2 : index
    %c0_597 = arith.constant 0 : index
    %693 = vector.load %arg2[%c2_596, %c0_597] : memref<13x512xf32, #tpu.memory_space<vmem>>, vector<1x512xf32>
    %694 = vector.broadcast %693 : vector<1x512xf32> to vector<8x512xf32>
    %695 = arith.mulf %692, %694 : vector<8x512xf32>
    %c1_i32_598 = arith.constant 1 : i32
    %696 = tpu.dynamic_rotate %683 by %c1_i32_598 dim 1 : vector<8x512xf32>, i32 -> vector<8x512xf32>
    %c3_599 = arith.constant 3 : index
    %c0_600 = arith.constant 0 : index
    %697 = vector.load %arg2[%c3_599, %c0_600] : memref<13x512xf32, #tpu.memory_space<vmem>>, vector<1x512xf32>
    %698 = vector.broadcast %697 : vector<1x512xf32> to vector<8x512xf32>
    %699 = arith.mulf %696, %698 : vector<8x512xf32>
    %c511_i32_601 = arith.constant 511 : i32
    %700 = tpu.dynamic_rotate %683 by %c511_i32_601 dim 1 : vector<8x512xf32>, i32 -> vector<8x512xf32>
    %c5_602 = arith.constant 5 : index
    %c0_603 = arith.constant 0 : index
    %701 = vector.load %arg2[%c5_602, %c0_603] : memref<13x512xf32, #tpu.memory_space<vmem>>, vector<1x512xf32>
    %702 = vector.broadcast %701 : vector<1x512xf32> to vector<8x512xf32>
    %703 = arith.mulf %700, %702 : vector<8x512xf32>
    %c497_i32_604 = arith.constant 497 : i32
    %704 = tpu.dynamic_rotate %683 by %c497_i32_604 dim 1 : vector<8x512xf32>, i32 -> vector<8x512xf32>
    %c6_605 = arith.constant 6 : index
    %c0_606 = arith.constant 0 : index
    %705 = vector.load %arg2[%c6_605, %c0_606] : memref<13x512xf32, #tpu.memory_space<vmem>>, vector<1x512xf32>
    %706 = vector.broadcast %705 : vector<1x512xf32> to vector<8x512xf32>
    %707 = arith.mulf %704, %706 : vector<8x512xf32>
    %c496_i32_607 = arith.constant 496 : i32
    %708 = tpu.dynamic_rotate %683 by %c496_i32_607 dim 1 : vector<8x512xf32>, i32 -> vector<8x512xf32>
    %c7_608 = arith.constant 7 : index
    %c0_609 = arith.constant 0 : index
    %709 = vector.load %arg2[%c7_608, %c0_609] : memref<13x512xf32, #tpu.memory_space<vmem>>, vector<1x512xf32>
    %710 = vector.broadcast %709 : vector<1x512xf32> to vector<8x512xf32>
    %711 = arith.mulf %708, %710 : vector<8x512xf32>
    %c495_i32_610 = arith.constant 495 : i32
    %712 = tpu.dynamic_rotate %683 by %c495_i32_610 dim 1 : vector<8x512xf32>, i32 -> vector<8x512xf32>
    %c8_611 = arith.constant 8 : index
    %c0_612 = arith.constant 0 : index
    %713 = vector.load %arg2[%c8_611, %c0_612] : memref<13x512xf32, #tpu.memory_space<vmem>>, vector<1x512xf32>
    %714 = vector.broadcast %713 : vector<1x512xf32> to vector<8x512xf32>
    %715 = arith.mulf %712, %714 : vector<8x512xf32>
    %c0_613 = arith.constant 0 : index
    %c0_614 = arith.constant 0 : index
    %716 = vector.load %arg5[%c0_613, %c0_614] : memref<80x512xf32, #tpu.memory_space<vmem>>, vector<8x512xf32>
    tpu.vector_store %arg5[%c0_613, %c0_614], %687 {strides = array<i32>} : memref<80x512xf32, #tpu.memory_space<vmem>>, vector<8x512xf32>,
    %c8_615 = arith.constant 8 : index
    %c0_616 = arith.constant 0 : index
    %717 = vector.load %arg5[%c8_615, %c0_616] : memref<80x512xf32, #tpu.memory_space<vmem>>, vector<8x512xf32>
    tpu.vector_store %arg5[%c8_615, %c0_616], %691 {strides = array<i32>} : memref<80x512xf32, #tpu.memory_space<vmem>>, vector<8x512xf32>,
    %c16_617 = arith.constant 16 : index
    %c0_618 = arith.constant 0 : index
    %718 = vector.load %arg5[%c16_617, %c0_618] : memref<80x512xf32, #tpu.memory_space<vmem>>, vector<8x512xf32>
    tpu.vector_store %arg5[%c16_617, %c0_618], %695 {strides = array<i32>} : memref<80x512xf32, #tpu.memory_space<vmem>>, vector<8x512xf32>,
    %c24_619 = arith.constant 24 : index
    %c0_620 = arith.constant 0 : index
    %719 = vector.load %arg5[%c24_619, %c0_620] : memref<80x512xf32, #tpu.memory_space<vmem>>, vector<8x512xf32>
    tpu.vector_store %arg5[%c24_619, %c0_620], %699 {strides = array<i32>} : memref<80x512xf32, #tpu.memory_space<vmem>>, vector<8x512xf32>,
    %c32_621 = arith.constant 32 : index
    %c0_622 = arith.constant 0 : index
    %720 = vector.load %arg5[%c32_621, %c0_622] : memref<80x512xf32, #tpu.memory_space<vmem>>, vector<8x512xf32>
    tpu.vector_store %arg5[%c32_621, %c0_622], %683 {strides = array<i32>} : memref<80x512xf32, #tpu.memory_space<vmem>>, vector<8x512xf32>,
    %c40_623 = arith.constant 40 : index
    %c0_624 = arith.constant 0 : index
    %721 = vector.load %arg5[%c40_623, %c0_624] : memref<80x512xf32, #tpu.memory_space<vmem>>, vector<8x512xf32>
    tpu.vector_store %arg5[%c40_623, %c0_624], %703 {strides = array<i32>} : memref<80x512xf32, #tpu.memory_space<vmem>>, vector<8x512xf32>,
    %c48_625 = arith.constant 48 : index
    %c0_626 = arith.constant 0 : index
    %722 = vector.load %arg5[%c48_625, %c0_626] : memref<80x512xf32, #tpu.memory_space<vmem>>, vector<8x512xf32>
    tpu.vector_store %arg5[%c48_625, %c0_626], %707 {strides = array<i32>} : memref<80x512xf32, #tpu.memory_space<vmem>>, vector<8x512xf32>,
    %c56_627 = arith.constant 56 : index
    %c0_628 = arith.constant 0 : index
    %723 = vector.load %arg5[%c56_627, %c0_628] : memref<80x512xf32, #tpu.memory_space<vmem>>, vector<8x512xf32>
    tpu.vector_store %arg5[%c56_627, %c0_628], %711 {strides = array<i32>} : memref<80x512xf32, #tpu.memory_space<vmem>>, vector<8x512xf32>,
    %c64_629 = arith.constant 64 : index
    %c0_630 = arith.constant 0 : index
    %724 = vector.load %arg5[%c64_629, %c0_630] : memref<80x512xf32, #tpu.memory_space<vmem>>, vector<8x512xf32>
    tpu.vector_store %arg5[%c64_629, %c0_630], %715 {strides = array<i32>} : memref<80x512xf32, #tpu.memory_space<vmem>>, vector<8x512xf32>,
    %c88 = arith.constant 88 : index
    %c0_631 = arith.constant 0 : index
    %725 = vector.load %arg1[%c88, %c0_631] : memref<160x80xf32, #tpu.memory_space<vmem>>, vector<8x80xf32>
    %c0_632 = arith.constant 0 : index
    %c0_633 = arith.constant 0 : index
    %726 = vector.load %arg5[%c0_632, %c0_633] : memref<80x512xf32, #tpu.memory_space<vmem>>, vector<80x512xf32>
    %cst_634 = arith.constant dense<0.000000e+00> : vector<8x512xf32>
    %727 = tpu.matmul %725, %726, %cst_634 {dimension_numbers = #tpu.dot_dimension_numbers<[1], [0], [0], [1], [0, 0, 1, 1], [], []>} : vector<8x80xf32>, vector<80x512xf32>, vector<8x512xf32> -> vector<8x512xf32>
    %cst_635 = arith.constant 0.000000e+00 : f32
    %728 = vector.broadcast %cst_635 : f32 to vector<8x512xf32>
    %729 = arith.maximumf %727, %728 : vector<8x512xf32>
    %c17_i32_636 = arith.constant 17 : i32
    %730 = tpu.dynamic_rotate %729 by %c17_i32_636 dim 1 : vector<8x512xf32>, i32 -> vector<8x512xf32>
    %c0_637 = arith.constant 0 : index
    %c0_638 = arith.constant 0 : index
    %731 = vector.load %arg2[%c0_637, %c0_638] : memref<13x512xf32, #tpu.memory_space<vmem>>, vector<1x512xf32>
    %732 = vector.broadcast %731 : vector<1x512xf32> to vector<8x512xf32>
    %733 = arith.mulf %730, %732 : vector<8x512xf32>
    %c16_i32_639 = arith.constant 16 : i32
    %734 = tpu.dynamic_rotate %729 by %c16_i32_639 dim 1 : vector<8x512xf32>, i32 -> vector<8x512xf32>
    %c1_640 = arith.constant 1 : index
    %c0_641 = arith.constant 0 : index
    %735 = vector.load %arg2[%c1_640, %c0_641] : memref<13x512xf32, #tpu.memory_space<vmem>>, vector<1x512xf32>
    %736 = vector.broadcast %735 : vector<1x512xf32> to vector<8x512xf32>
    %737 = arith.mulf %734, %736 : vector<8x512xf32>
    %c15_i32_642 = arith.constant 15 : i32
    %738 = tpu.dynamic_rotate %729 by %c15_i32_642 dim 1 : vector<8x512xf32>, i32 -> vector<8x512xf32>
    %c2_643 = arith.constant 2 : index
    %c0_644 = arith.constant 0 : index
    %739 = vector.load %arg2[%c2_643, %c0_644] : memref<13x512xf32, #tpu.memory_space<vmem>>, vector<1x512xf32>
    %740 = vector.broadcast %739 : vector<1x512xf32> to vector<8x512xf32>
    %741 = arith.mulf %738, %740 : vector<8x512xf32>
    %c1_i32_645 = arith.constant 1 : i32
    %742 = tpu.dynamic_rotate %729 by %c1_i32_645 dim 1 : vector<8x512xf32>, i32 -> vector<8x512xf32>
    %c3_646 = arith.constant 3 : index
    %c0_647 = arith.constant 0 : index
    %743 = vector.load %arg2[%c3_646, %c0_647] : memref<13x512xf32, #tpu.memory_space<vmem>>, vector<1x512xf32>
    %744 = vector.broadcast %743 : vector<1x512xf32> to vector<8x512xf32>
    %745 = arith.mulf %742, %744 : vector<8x512xf32>
    %c511_i32_648 = arith.constant 511 : i32
    %746 = tpu.dynamic_rotate %729 by %c511_i32_648 dim 1 : vector<8x512xf32>, i32 -> vector<8x512xf32>
    %c5_649 = arith.constant 5 : index
    %c0_650 = arith.constant 0 : index
    %747 = vector.load %arg2[%c5_649, %c0_650] : memref<13x512xf32, #tpu.memory_space<vmem>>, vector<1x512xf32>
    %748 = vector.broadcast %747 : vector<1x512xf32> to vector<8x512xf32>
    %749 = arith.mulf %746, %748 : vector<8x512xf32>
    %c497_i32_651 = arith.constant 497 : i32
    %750 = tpu.dynamic_rotate %729 by %c497_i32_651 dim 1 : vector<8x512xf32>, i32 -> vector<8x512xf32>
    %c6_652 = arith.constant 6 : index
    %c0_653 = arith.constant 0 : index
    %751 = vector.load %arg2[%c6_652, %c0_653] : memref<13x512xf32, #tpu.memory_space<vmem>>, vector<1x512xf32>
    %752 = vector.broadcast %751 : vector<1x512xf32> to vector<8x512xf32>
    %753 = arith.mulf %750, %752 : vector<8x512xf32>
    %c496_i32_654 = arith.constant 496 : i32
    %754 = tpu.dynamic_rotate %729 by %c496_i32_654 dim 1 : vector<8x512xf32>, i32 -> vector<8x512xf32>
    %c7_655 = arith.constant 7 : index
    %c0_656 = arith.constant 0 : index
    %755 = vector.load %arg2[%c7_655, %c0_656] : memref<13x512xf32, #tpu.memory_space<vmem>>, vector<1x512xf32>
    %756 = vector.broadcast %755 : vector<1x512xf32> to vector<8x512xf32>
    %757 = arith.mulf %754, %756 : vector<8x512xf32>
    %c495_i32_657 = arith.constant 495 : i32
    %758 = tpu.dynamic_rotate %729 by %c495_i32_657 dim 1 : vector<8x512xf32>, i32 -> vector<8x512xf32>
    %c8_658 = arith.constant 8 : index
    %c0_659 = arith.constant 0 : index
    %759 = vector.load %arg2[%c8_658, %c0_659] : memref<13x512xf32, #tpu.memory_space<vmem>>, vector<1x512xf32>
    %760 = vector.broadcast %759 : vector<1x512xf32> to vector<8x512xf32>
    %761 = arith.mulf %758, %760 : vector<8x512xf32>
    %c0_660 = arith.constant 0 : index
    %c0_661 = arith.constant 0 : index
    %762 = vector.load %arg5[%c0_660, %c0_661] : memref<80x512xf32, #tpu.memory_space<vmem>>, vector<8x512xf32>
    tpu.vector_store %arg5[%c0_660, %c0_661], %733 {strides = array<i32>} : memref<80x512xf32, #tpu.memory_space<vmem>>, vector<8x512xf32>,
    %c8_662 = arith.constant 8 : index
    %c0_663 = arith.constant 0 : index
    %763 = vector.load %arg5[%c8_662, %c0_663] : memref<80x512xf32, #tpu.memory_space<vmem>>, vector<8x512xf32>
    tpu.vector_store %arg5[%c8_662, %c0_663], %737 {strides = array<i32>} : memref<80x512xf32, #tpu.memory_space<vmem>>, vector<8x512xf32>,
    %c16_664 = arith.constant 16 : index
    %c0_665 = arith.constant 0 : index
    %764 = vector.load %arg5[%c16_664, %c0_665] : memref<80x512xf32, #tpu.memory_space<vmem>>, vector<8x512xf32>
    tpu.vector_store %arg5[%c16_664, %c0_665], %741 {strides = array<i32>} : memref<80x512xf32, #tpu.memory_space<vmem>>, vector<8x512xf32>,
    %c24_666 = arith.constant 24 : index
    %c0_667 = arith.constant 0 : index
    %765 = vector.load %arg5[%c24_666, %c0_667] : memref<80x512xf32, #tpu.memory_space<vmem>>, vector<8x512xf32>
    tpu.vector_store %arg5[%c24_666, %c0_667], %745 {strides = array<i32>} : memref<80x512xf32, #tpu.memory_space<vmem>>, vector<8x512xf32>,
    %c32_668 = arith.constant 32 : index
    %c0_669 = arith.constant 0 : index
    %766 = vector.load %arg5[%c32_668, %c0_669] : memref<80x512xf32, #tpu.memory_space<vmem>>, vector<8x512xf32>
    tpu.vector_store %arg5[%c32_668, %c0_669], %729 {strides = array<i32>} : memref<80x512xf32, #tpu.memory_space<vmem>>, vector<8x512xf32>,
    %c40_670 = arith.constant 40 : index
    %c0_671 = arith.constant 0 : index
    %767 = vector.load %arg5[%c40_670, %c0_671] : memref<80x512xf32, #tpu.memory_space<vmem>>, vector<8x512xf32>
    tpu.vector_store %arg5[%c40_670, %c0_671], %749 {strides = array<i32>} : memref<80x512xf32, #tpu.memory_space<vmem>>, vector<8x512xf32>,
    %c48_672 = arith.constant 48 : index
    %c0_673 = arith.constant 0 : index
    %768 = vector.load %arg5[%c48_672, %c0_673] : memref<80x512xf32, #tpu.memory_space<vmem>>, vector<8x512xf32>
    tpu.vector_store %arg5[%c48_672, %c0_673], %753 {strides = array<i32>} : memref<80x512xf32, #tpu.memory_space<vmem>>, vector<8x512xf32>,
    %c56_674 = arith.constant 56 : index
    %c0_675 = arith.constant 0 : index
    %769 = vector.load %arg5[%c56_674, %c0_675] : memref<80x512xf32, #tpu.memory_space<vmem>>, vector<8x512xf32>
    tpu.vector_store %arg5[%c56_674, %c0_675], %757 {strides = array<i32>} : memref<80x512xf32, #tpu.memory_space<vmem>>, vector<8x512xf32>,
    %c64_676 = arith.constant 64 : index
    %c0_677 = arith.constant 0 : index
    %770 = vector.load %arg5[%c64_676, %c0_677] : memref<80x512xf32, #tpu.memory_space<vmem>>, vector<8x512xf32>
    tpu.vector_store %arg5[%c64_676, %c0_677], %761 {strides = array<i32>} : memref<80x512xf32, #tpu.memory_space<vmem>>, vector<8x512xf32>,
    %c96 = arith.constant 96 : index
    %c0_678 = arith.constant 0 : index
    %771 = vector.load %arg1[%c96, %c0_678] : memref<160x80xf32, #tpu.memory_space<vmem>>, vector<8x80xf32>
    %c0_679 = arith.constant 0 : index
    %c0_680 = arith.constant 0 : index
    %772 = vector.load %arg5[%c0_679, %c0_680] : memref<80x512xf32, #tpu.memory_space<vmem>>, vector<80x512xf32>
    %cst_681 = arith.constant dense<0.000000e+00> : vector<8x512xf32>
    %773 = tpu.matmul %771, %772, %cst_681 {dimension_numbers = #tpu.dot_dimension_numbers<[1], [0], [0], [1], [0, 0, 1, 1], [], []>} : vector<8x80xf32>, vector<80x512xf32>, vector<8x512xf32> -> vector<8x512xf32>
    %774 = arith.subf %773, %561 : vector<8x512xf32>
    %c17_i32_682 = arith.constant 17 : i32
    %775 = tpu.dynamic_rotate %774 by %c17_i32_682 dim 1 : vector<8x512xf32>, i32 -> vector<8x512xf32>
    %c0_683 = arith.constant 0 : index
    %c0_684 = arith.constant 0 : index
    %776 = vector.load %arg2[%c0_683, %c0_684] : memref<13x512xf32, #tpu.memory_space<vmem>>, vector<1x512xf32>
    %777 = vector.broadcast %776 : vector<1x512xf32> to vector<8x512xf32>
    %778 = arith.mulf %775, %777 : vector<8x512xf32>
    %c16_i32_685 = arith.constant 16 : i32
    %779 = tpu.dynamic_rotate %774 by %c16_i32_685 dim 1 : vector<8x512xf32>, i32 -> vector<8x512xf32>
    %c1_686 = arith.constant 1 : index
    %c0_687 = arith.constant 0 : index
    %780 = vector.load %arg2[%c1_686, %c0_687] : memref<13x512xf32, #tpu.memory_space<vmem>>, vector<1x512xf32>
    %781 = vector.broadcast %780 : vector<1x512xf32> to vector<8x512xf32>
    %782 = arith.mulf %779, %781 : vector<8x512xf32>
    %c15_i32_688 = arith.constant 15 : i32
    %783 = tpu.dynamic_rotate %774 by %c15_i32_688 dim 1 : vector<8x512xf32>, i32 -> vector<8x512xf32>
    %c2_689 = arith.constant 2 : index
    %c0_690 = arith.constant 0 : index
    %784 = vector.load %arg2[%c2_689, %c0_690] : memref<13x512xf32, #tpu.memory_space<vmem>>, vector<1x512xf32>
    %785 = vector.broadcast %784 : vector<1x512xf32> to vector<8x512xf32>
    %786 = arith.mulf %783, %785 : vector<8x512xf32>
    %c1_i32_691 = arith.constant 1 : i32
    %787 = tpu.dynamic_rotate %774 by %c1_i32_691 dim 1 : vector<8x512xf32>, i32 -> vector<8x512xf32>
    %c3_692 = arith.constant 3 : index
    %c0_693 = arith.constant 0 : index
    %788 = vector.load %arg2[%c3_692, %c0_693] : memref<13x512xf32, #tpu.memory_space<vmem>>, vector<1x512xf32>
    %789 = vector.broadcast %788 : vector<1x512xf32> to vector<8x512xf32>
    %790 = arith.mulf %787, %789 : vector<8x512xf32>
    %c511_i32_694 = arith.constant 511 : i32
    %791 = tpu.dynamic_rotate %774 by %c511_i32_694 dim 1 : vector<8x512xf32>, i32 -> vector<8x512xf32>
    %c5_695 = arith.constant 5 : index
    %c0_696 = arith.constant 0 : index
    %792 = vector.load %arg2[%c5_695, %c0_696] : memref<13x512xf32, #tpu.memory_space<vmem>>, vector<1x512xf32>
    %793 = vector.broadcast %792 : vector<1x512xf32> to vector<8x512xf32>
    %794 = arith.mulf %791, %793 : vector<8x512xf32>
    %c497_i32_697 = arith.constant 497 : i32
    %795 = tpu.dynamic_rotate %774 by %c497_i32_697 dim 1 : vector<8x512xf32>, i32 -> vector<8x512xf32>
    %c6_698 = arith.constant 6 : index
    %c0_699 = arith.constant 0 : index
    %796 = vector.load %arg2[%c6_698, %c0_699] : memref<13x512xf32, #tpu.memory_space<vmem>>, vector<1x512xf32>
    %797 = vector.broadcast %796 : vector<1x512xf32> to vector<8x512xf32>
    %798 = arith.mulf %795, %797 : vector<8x512xf32>
    %c496_i32_700 = arith.constant 496 : i32
    %799 = tpu.dynamic_rotate %774 by %c496_i32_700 dim 1 : vector<8x512xf32>, i32 -> vector<8x512xf32>
    %c7_701 = arith.constant 7 : index
    %c0_702 = arith.constant 0 : index
    %800 = vector.load %arg2[%c7_701, %c0_702] : memref<13x512xf32, #tpu.memory_space<vmem>>, vector<1x512xf32>
    %801 = vector.broadcast %800 : vector<1x512xf32> to vector<8x512xf32>
    %802 = arith.mulf %799, %801 : vector<8x512xf32>
    %c495_i32_703 = arith.constant 495 : i32
    %803 = tpu.dynamic_rotate %774 by %c495_i32_703 dim 1 : vector<8x512xf32>, i32 -> vector<8x512xf32>
    %c8_704 = arith.constant 8 : index
    %c0_705 = arith.constant 0 : index
    %804 = vector.load %arg2[%c8_704, %c0_705] : memref<13x512xf32, #tpu.memory_space<vmem>>, vector<1x512xf32>
    %805 = vector.broadcast %804 : vector<1x512xf32> to vector<8x512xf32>
    %806 = arith.mulf %803, %805 : vector<8x512xf32>
    %c0_706 = arith.constant 0 : index
    %c0_707 = arith.constant 0 : index
    %807 = vector.load %arg5[%c0_706, %c0_707] : memref<80x512xf32, #tpu.memory_space<vmem>>, vector<8x512xf32>
    tpu.vector_store %arg5[%c0_706, %c0_707], %778 {strides = array<i32>} : memref<80x512xf32, #tpu.memory_space<vmem>>, vector<8x512xf32>,
    %c8_708 = arith.constant 8 : index
    %c0_709 = arith.constant 0 : index
    %808 = vector.load %arg5[%c8_708, %c0_709] : memref<80x512xf32, #tpu.memory_space<vmem>>, vector<8x512xf32>
    tpu.vector_store %arg5[%c8_708, %c0_709], %782 {strides = array<i32>} : memref<80x512xf32, #tpu.memory_space<vmem>>, vector<8x512xf32>,
    %c16_710 = arith.constant 16 : index
    %c0_711 = arith.constant 0 : index
    %809 = vector.load %arg5[%c16_710, %c0_711] : memref<80x512xf32, #tpu.memory_space<vmem>>, vector<8x512xf32>
    tpu.vector_store %arg5[%c16_710, %c0_711], %786 {strides = array<i32>} : memref<80x512xf32, #tpu.memory_space<vmem>>, vector<8x512xf32>,
    %c24_712 = arith.constant 24 : index
    %c0_713 = arith.constant 0 : index
    %810 = vector.load %arg5[%c24_712, %c0_713] : memref<80x512xf32, #tpu.memory_space<vmem>>, vector<8x512xf32>
    tpu.vector_store %arg5[%c24_712, %c0_713], %790 {strides = array<i32>} : memref<80x512xf32, #tpu.memory_space<vmem>>, vector<8x512xf32>,
    %c32_714 = arith.constant 32 : index
    %c0_715 = arith.constant 0 : index
    %811 = vector.load %arg5[%c32_714, %c0_715] : memref<80x512xf32, #tpu.memory_space<vmem>>, vector<8x512xf32>
    tpu.vector_store %arg5[%c32_714, %c0_715], %774 {strides = array<i32>} : memref<80x512xf32, #tpu.memory_space<vmem>>, vector<8x512xf32>,
    %c40_716 = arith.constant 40 : index
    %c0_717 = arith.constant 0 : index
    %812 = vector.load %arg5[%c40_716, %c0_717] : memref<80x512xf32, #tpu.memory_space<vmem>>, vector<8x512xf32>
    tpu.vector_store %arg5[%c40_716, %c0_717], %794 {strides = array<i32>} : memref<80x512xf32, #tpu.memory_space<vmem>>, vector<8x512xf32>,
    %c48_718 = arith.constant 48 : index
    %c0_719 = arith.constant 0 : index
    %813 = vector.load %arg5[%c48_718, %c0_719] : memref<80x512xf32, #tpu.memory_space<vmem>>, vector<8x512xf32>
    tpu.vector_store %arg5[%c48_718, %c0_719], %798 {strides = array<i32>} : memref<80x512xf32, #tpu.memory_space<vmem>>, vector<8x512xf32>,
    %c56_720 = arith.constant 56 : index
    %c0_721 = arith.constant 0 : index
    %814 = vector.load %arg5[%c56_720, %c0_721] : memref<80x512xf32, #tpu.memory_space<vmem>>, vector<8x512xf32>
    tpu.vector_store %arg5[%c56_720, %c0_721], %802 {strides = array<i32>} : memref<80x512xf32, #tpu.memory_space<vmem>>, vector<8x512xf32>,
    %c64_722 = arith.constant 64 : index
    %c0_723 = arith.constant 0 : index
    %815 = vector.load %arg5[%c64_722, %c0_723] : memref<80x512xf32, #tpu.memory_space<vmem>>, vector<8x512xf32>
    tpu.vector_store %arg5[%c64_722, %c0_723], %806 {strides = array<i32>} : memref<80x512xf32, #tpu.memory_space<vmem>>, vector<8x512xf32>,
    %c120 = arith.constant 120 : index
    %c0_724 = arith.constant 0 : index
    %816 = vector.load %arg1[%c120, %c0_724] : memref<160x80xf32, #tpu.memory_space<vmem>>, vector<8x80xf32>
    %c0_725 = arith.constant 0 : index
    %c0_726 = arith.constant 0 : index
    %817 = vector.load %arg5[%c0_725, %c0_726] : memref<80x512xf32, #tpu.memory_space<vmem>>, vector<80x512xf32>
    %cst_727 = arith.constant dense<0.000000e+00> : vector<8x512xf32>
    %818 = tpu.matmul %816, %817, %cst_727 {dimension_numbers = #tpu.dot_dimension_numbers<[1], [0], [0], [1], [0, 0, 1, 1], [], []>} : vector<8x80xf32>, vector<80x512xf32>, vector<8x512xf32> -> vector<8x512xf32>
    %c17_i32_728 = arith.constant 17 : i32
    %819 = tpu.dynamic_rotate %818 by %c17_i32_728 dim 1 : vector<8x512xf32>, i32 -> vector<8x512xf32>
    %c0_729 = arith.constant 0 : index
    %c0_730 = arith.constant 0 : index
    %820 = vector.load %arg2[%c0_729, %c0_730] : memref<13x512xf32, #tpu.memory_space<vmem>>, vector<1x512xf32>
    %821 = vector.broadcast %820 : vector<1x512xf32> to vector<8x512xf32>
    %822 = arith.mulf %819, %821 : vector<8x512xf32>
    %c16_i32_731 = arith.constant 16 : i32
    %823 = tpu.dynamic_rotate %818 by %c16_i32_731 dim 1 : vector<8x512xf32>, i32 -> vector<8x512xf32>
    %c1_732 = arith.constant 1 : index
    %c0_733 = arith.constant 0 : index
    %824 = vector.load %arg2[%c1_732, %c0_733] : memref<13x512xf32, #tpu.memory_space<vmem>>, vector<1x512xf32>
    %825 = vector.broadcast %824 : vector<1x512xf32> to vector<8x512xf32>
    %826 = arith.mulf %823, %825 : vector<8x512xf32>
    %c15_i32_734 = arith.constant 15 : i32
    %827 = tpu.dynamic_rotate %818 by %c15_i32_734 dim 1 : vector<8x512xf32>, i32 -> vector<8x512xf32>
    %c2_735 = arith.constant 2 : index
    %c0_736 = arith.constant 0 : index
    %828 = vector.load %arg2[%c2_735, %c0_736] : memref<13x512xf32, #tpu.memory_space<vmem>>, vector<1x512xf32>
    %829 = vector.broadcast %828 : vector<1x512xf32> to vector<8x512xf32>
    %830 = arith.mulf %827, %829 : vector<8x512xf32>
    %c1_i32_737 = arith.constant 1 : i32
    %831 = tpu.dynamic_rotate %818 by %c1_i32_737 dim 1 : vector<8x512xf32>, i32 -> vector<8x512xf32>
    %c3_738 = arith.constant 3 : index
    %c0_739 = arith.constant 0 : index
    %832 = vector.load %arg2[%c3_738, %c0_739] : memref<13x512xf32, #tpu.memory_space<vmem>>, vector<1x512xf32>
    %833 = vector.broadcast %832 : vector<1x512xf32> to vector<8x512xf32>
    %834 = arith.mulf %831, %833 : vector<8x512xf32>
    %c511_i32_740 = arith.constant 511 : i32
    %835 = tpu.dynamic_rotate %818 by %c511_i32_740 dim 1 : vector<8x512xf32>, i32 -> vector<8x512xf32>
    %c5_741 = arith.constant 5 : index
    %c0_742 = arith.constant 0 : index
    %836 = vector.load %arg2[%c5_741, %c0_742] : memref<13x512xf32, #tpu.memory_space<vmem>>, vector<1x512xf32>
    %837 = vector.broadcast %836 : vector<1x512xf32> to vector<8x512xf32>
    %838 = arith.mulf %835, %837 : vector<8x512xf32>
    %c497_i32_743 = arith.constant 497 : i32
    %839 = tpu.dynamic_rotate %818 by %c497_i32_743 dim 1 : vector<8x512xf32>, i32 -> vector<8x512xf32>
    %c6_744 = arith.constant 6 : index
    %c0_745 = arith.constant 0 : index
    %840 = vector.load %arg2[%c6_744, %c0_745] : memref<13x512xf32, #tpu.memory_space<vmem>>, vector<1x512xf32>
    %841 = vector.broadcast %840 : vector<1x512xf32> to vector<8x512xf32>
    %842 = arith.mulf %839, %841 : vector<8x512xf32>
    %c496_i32_746 = arith.constant 496 : i32
    %843 = tpu.dynamic_rotate %818 by %c496_i32_746 dim 1 : vector<8x512xf32>, i32 -> vector<8x512xf32>
    %c7_747 = arith.constant 7 : index
    %c0_748 = arith.constant 0 : index
    %844 = vector.load %arg2[%c7_747, %c0_748] : memref<13x512xf32, #tpu.memory_space<vmem>>, vector<1x512xf32>
    %845 = vector.broadcast %844 : vector<1x512xf32> to vector<8x512xf32>
    %846 = arith.mulf %843, %845 : vector<8x512xf32>
    %c495_i32_749 = arith.constant 495 : i32
    %847 = tpu.dynamic_rotate %818 by %c495_i32_749 dim 1 : vector<8x512xf32>, i32 -> vector<8x512xf32>
    %c8_750 = arith.constant 8 : index
    %c0_751 = arith.constant 0 : index
    %848 = vector.load %arg2[%c8_750, %c0_751] : memref<13x512xf32, #tpu.memory_space<vmem>>, vector<1x512xf32>
    %849 = vector.broadcast %848 : vector<1x512xf32> to vector<8x512xf32>
    %850 = arith.mulf %847, %849 : vector<8x512xf32>
    %c0_752 = arith.constant 0 : index
    %c0_753 = arith.constant 0 : index
    %851 = vector.load %arg5[%c0_752, %c0_753] : memref<80x512xf32, #tpu.memory_space<vmem>>, vector<8x512xf32>
    tpu.vector_store %arg5[%c0_752, %c0_753], %822 {strides = array<i32>} : memref<80x512xf32, #tpu.memory_space<vmem>>, vector<8x512xf32>,
    %c8_754 = arith.constant 8 : index
    %c0_755 = arith.constant 0 : index
    %852 = vector.load %arg5[%c8_754, %c0_755] : memref<80x512xf32, #tpu.memory_space<vmem>>, vector<8x512xf32>
    tpu.vector_store %arg5[%c8_754, %c0_755], %826 {strides = array<i32>} : memref<80x512xf32, #tpu.memory_space<vmem>>, vector<8x512xf32>,
    %c16_756 = arith.constant 16 : index
    %c0_757 = arith.constant 0 : index
    %853 = vector.load %arg5[%c16_756, %c0_757] : memref<80x512xf32, #tpu.memory_space<vmem>>, vector<8x512xf32>
    tpu.vector_store %arg5[%c16_756, %c0_757], %830 {strides = array<i32>} : memref<80x512xf32, #tpu.memory_space<vmem>>, vector<8x512xf32>,
    %c24_758 = arith.constant 24 : index
    %c0_759 = arith.constant 0 : index
    %854 = vector.load %arg5[%c24_758, %c0_759] : memref<80x512xf32, #tpu.memory_space<vmem>>, vector<8x512xf32>
    tpu.vector_store %arg5[%c24_758, %c0_759], %834 {strides = array<i32>} : memref<80x512xf32, #tpu.memory_space<vmem>>, vector<8x512xf32>,
    %c32_760 = arith.constant 32 : index
    %c0_761 = arith.constant 0 : index
    %855 = vector.load %arg5[%c32_760, %c0_761] : memref<80x512xf32, #tpu.memory_space<vmem>>, vector<8x512xf32>
    tpu.vector_store %arg5[%c32_760, %c0_761], %818 {strides = array<i32>} : memref<80x512xf32, #tpu.memory_space<vmem>>, vector<8x512xf32>,
    %c40_762 = arith.constant 40 : index
    %c0_763 = arith.constant 0 : index
    %856 = vector.load %arg5[%c40_762, %c0_763] : memref<80x512xf32, #tpu.memory_space<vmem>>, vector<8x512xf32>
    tpu.vector_store %arg5[%c40_762, %c0_763], %838 {strides = array<i32>} : memref<80x512xf32, #tpu.memory_space<vmem>>, vector<8x512xf32>,
    %c48_764 = arith.constant 48 : index
    %c0_765 = arith.constant 0 : index
    %857 = vector.load %arg5[%c48_764, %c0_765] : memref<80x512xf32, #tpu.memory_space<vmem>>, vector<8x512xf32>
    tpu.vector_store %arg5[%c48_764, %c0_765], %842 {strides = array<i32>} : memref<80x512xf32, #tpu.memory_space<vmem>>, vector<8x512xf32>,
    %c56_766 = arith.constant 56 : index
    %c0_767 = arith.constant 0 : index
    %858 = vector.load %arg5[%c56_766, %c0_767] : memref<80x512xf32, #tpu.memory_space<vmem>>, vector<8x512xf32>
    tpu.vector_store %arg5[%c56_766, %c0_767], %846 {strides = array<i32>} : memref<80x512xf32, #tpu.memory_space<vmem>>, vector<8x512xf32>,
    %c64_768 = arith.constant 64 : index
    %c0_769 = arith.constant 0 : index
    %859 = vector.load %arg5[%c64_768, %c0_769] : memref<80x512xf32, #tpu.memory_space<vmem>>, vector<8x512xf32>
    tpu.vector_store %arg5[%c64_768, %c0_769], %850 {strides = array<i32>} : memref<80x512xf32, #tpu.memory_space<vmem>>, vector<8x512xf32>,
    %c128 = arith.constant 128 : index
    %c0_770 = arith.constant 0 : index
    %860 = vector.load %arg1[%c128, %c0_770] : memref<160x80xf32, #tpu.memory_space<vmem>>, vector<8x80xf32>
    %c0_771 = arith.constant 0 : index
    %c0_772 = arith.constant 0 : index
    %861 = vector.load %arg5[%c0_771, %c0_772] : memref<80x512xf32, #tpu.memory_space<vmem>>, vector<80x512xf32>
    %cst_773 = arith.constant dense<0.000000e+00> : vector<8x512xf32>
    %862 = tpu.matmul %860, %861, %cst_773 {dimension_numbers = #tpu.dot_dimension_numbers<[1], [0], [0], [1], [0, 0, 1, 1], [], []>} : vector<8x80xf32>, vector<80x512xf32>, vector<8x512xf32> -> vector<8x512xf32>
    %cst_774 = arith.constant 0.000000e+00 : f32
    %863 = vector.broadcast %cst_774 : f32 to vector<8x512xf32>
    %864 = arith.maximumf %862, %863 : vector<8x512xf32>
    %c17_i32_775 = arith.constant 17 : i32
    %865 = tpu.dynamic_rotate %864 by %c17_i32_775 dim 1 : vector<8x512xf32>, i32 -> vector<8x512xf32>
    %c0_776 = arith.constant 0 : index
    %c0_777 = arith.constant 0 : index
    %866 = vector.load %arg2[%c0_776, %c0_777] : memref<13x512xf32, #tpu.memory_space<vmem>>, vector<1x512xf32>
    %867 = vector.broadcast %866 : vector<1x512xf32> to vector<8x512xf32>
    %868 = arith.mulf %865, %867 : vector<8x512xf32>
    %c16_i32_778 = arith.constant 16 : i32
    %869 = tpu.dynamic_rotate %864 by %c16_i32_778 dim 1 : vector<8x512xf32>, i32 -> vector<8x512xf32>
    %c1_779 = arith.constant 1 : index
    %c0_780 = arith.constant 0 : index
    %870 = vector.load %arg2[%c1_779, %c0_780] : memref<13x512xf32, #tpu.memory_space<vmem>>, vector<1x512xf32>
    %871 = vector.broadcast %870 : vector<1x512xf32> to vector<8x512xf32>
    %872 = arith.mulf %869, %871 : vector<8x512xf32>
    %c15_i32_781 = arith.constant 15 : i32
    %873 = tpu.dynamic_rotate %864 by %c15_i32_781 dim 1 : vector<8x512xf32>, i32 -> vector<8x512xf32>
    %c2_782 = arith.constant 2 : index
    %c0_783 = arith.constant 0 : index
    %874 = vector.load %arg2[%c2_782, %c0_783] : memref<13x512xf32, #tpu.memory_space<vmem>>, vector<1x512xf32>
    %875 = vector.broadcast %874 : vector<1x512xf32> to vector<8x512xf32>
    %876 = arith.mulf %873, %875 : vector<8x512xf32>
    %c1_i32_784 = arith.constant 1 : i32
    %877 = tpu.dynamic_rotate %864 by %c1_i32_784 dim 1 : vector<8x512xf32>, i32 -> vector<8x512xf32>
    %c3_785 = arith.constant 3 : index
    %c0_786 = arith.constant 0 : index
    %878 = vector.load %arg2[%c3_785, %c0_786] : memref<13x512xf32, #tpu.memory_space<vmem>>, vector<1x512xf32>
    %879 = vector.broadcast %878 : vector<1x512xf32> to vector<8x512xf32>
    %880 = arith.mulf %877, %879 : vector<8x512xf32>
    %c511_i32_787 = arith.constant 511 : i32
    %881 = tpu.dynamic_rotate %864 by %c511_i32_787 dim 1 : vector<8x512xf32>, i32 -> vector<8x512xf32>
    %c5_788 = arith.constant 5 : index
    %c0_789 = arith.constant 0 : index
    %882 = vector.load %arg2[%c5_788, %c0_789] : memref<13x512xf32, #tpu.memory_space<vmem>>, vector<1x512xf32>
    %883 = vector.broadcast %882 : vector<1x512xf32> to vector<8x512xf32>
    %884 = arith.mulf %881, %883 : vector<8x512xf32>
    %c497_i32_790 = arith.constant 497 : i32
    %885 = tpu.dynamic_rotate %864 by %c497_i32_790 dim 1 : vector<8x512xf32>, i32 -> vector<8x512xf32>
    %c6_791 = arith.constant 6 : index
    %c0_792 = arith.constant 0 : index
    %886 = vector.load %arg2[%c6_791, %c0_792] : memref<13x512xf32, #tpu.memory_space<vmem>>, vector<1x512xf32>
    %887 = vector.broadcast %886 : vector<1x512xf32> to vector<8x512xf32>
    %888 = arith.mulf %885, %887 : vector<8x512xf32>
    %c496_i32_793 = arith.constant 496 : i32
    %889 = tpu.dynamic_rotate %864 by %c496_i32_793 dim 1 : vector<8x512xf32>, i32 -> vector<8x512xf32>
    %c7_794 = arith.constant 7 : index
    %c0_795 = arith.constant 0 : index
    %890 = vector.load %arg2[%c7_794, %c0_795] : memref<13x512xf32, #tpu.memory_space<vmem>>, vector<1x512xf32>
    %891 = vector.broadcast %890 : vector<1x512xf32> to vector<8x512xf32>
    %892 = arith.mulf %889, %891 : vector<8x512xf32>
    %c495_i32_796 = arith.constant 495 : i32
    %893 = tpu.dynamic_rotate %864 by %c495_i32_796 dim 1 : vector<8x512xf32>, i32 -> vector<8x512xf32>
    %c8_797 = arith.constant 8 : index
    %c0_798 = arith.constant 0 : index
    %894 = vector.load %arg2[%c8_797, %c0_798] : memref<13x512xf32, #tpu.memory_space<vmem>>, vector<1x512xf32>
    %895 = vector.broadcast %894 : vector<1x512xf32> to vector<8x512xf32>
    %896 = arith.mulf %893, %895 : vector<8x512xf32>
    %c0_799 = arith.constant 0 : index
    %c0_800 = arith.constant 0 : index
    %897 = vector.load %arg5[%c0_799, %c0_800] : memref<80x512xf32, #tpu.memory_space<vmem>>, vector<8x512xf32>
    tpu.vector_store %arg5[%c0_799, %c0_800], %868 {strides = array<i32>} : memref<80x512xf32, #tpu.memory_space<vmem>>, vector<8x512xf32>,
    %c8_801 = arith.constant 8 : index
    %c0_802 = arith.constant 0 : index
    %898 = vector.load %arg5[%c8_801, %c0_802] : memref<80x512xf32, #tpu.memory_space<vmem>>, vector<8x512xf32>
    tpu.vector_store %arg5[%c8_801, %c0_802], %872 {strides = array<i32>} : memref<80x512xf32, #tpu.memory_space<vmem>>, vector<8x512xf32>,
    %c16_803 = arith.constant 16 : index
    %c0_804 = arith.constant 0 : index
    %899 = vector.load %arg5[%c16_803, %c0_804] : memref<80x512xf32, #tpu.memory_space<vmem>>, vector<8x512xf32>
    tpu.vector_store %arg5[%c16_803, %c0_804], %876 {strides = array<i32>} : memref<80x512xf32, #tpu.memory_space<vmem>>, vector<8x512xf32>,
    %c24_805 = arith.constant 24 : index
    %c0_806 = arith.constant 0 : index
    %900 = vector.load %arg5[%c24_805, %c0_806] : memref<80x512xf32, #tpu.memory_space<vmem>>, vector<8x512xf32>
    tpu.vector_store %arg5[%c24_805, %c0_806], %880 {strides = array<i32>} : memref<80x512xf32, #tpu.memory_space<vmem>>, vector<8x512xf32>,
    %c32_807 = arith.constant 32 : index
    %c0_808 = arith.constant 0 : index
    %901 = vector.load %arg5[%c32_807, %c0_808] : memref<80x512xf32, #tpu.memory_space<vmem>>, vector<8x512xf32>
    tpu.vector_store %arg5[%c32_807, %c0_808], %864 {strides = array<i32>} : memref<80x512xf32, #tpu.memory_space<vmem>>, vector<8x512xf32>,
    %c40_809 = arith.constant 40 : index
    %c0_810 = arith.constant 0 : index
    %902 = vector.load %arg5[%c40_809, %c0_810] : memref<80x512xf32, #tpu.memory_space<vmem>>, vector<8x512xf32>
    tpu.vector_store %arg5[%c40_809, %c0_810], %884 {strides = array<i32>} : memref<80x512xf32, #tpu.memory_space<vmem>>, vector<8x512xf32>,
    %c48_811 = arith.constant 48 : index
    %c0_812 = arith.constant 0 : index
    %903 = vector.load %arg5[%c48_811, %c0_812] : memref<80x512xf32, #tpu.memory_space<vmem>>, vector<8x512xf32>
    tpu.vector_store %arg5[%c48_811, %c0_812], %888 {strides = array<i32>} : memref<80x512xf32, #tpu.memory_space<vmem>>, vector<8x512xf32>,
    %c56_813 = arith.constant 56 : index
    %c0_814 = arith.constant 0 : index
    %904 = vector.load %arg5[%c56_813, %c0_814] : memref<80x512xf32, #tpu.memory_space<vmem>>, vector<8x512xf32>
    tpu.vector_store %arg5[%c56_813, %c0_814], %892 {strides = array<i32>} : memref<80x512xf32, #tpu.memory_space<vmem>>, vector<8x512xf32>,
    %c64_815 = arith.constant 64 : index
    %c0_816 = arith.constant 0 : index
    %905 = vector.load %arg5[%c64_815, %c0_816] : memref<80x512xf32, #tpu.memory_space<vmem>>, vector<8x512xf32>
    tpu.vector_store %arg5[%c64_815, %c0_816], %896 {strides = array<i32>} : memref<80x512xf32, #tpu.memory_space<vmem>>, vector<8x512xf32>,
    %c136 = arith.constant 136 : index
    %c0_817 = arith.constant 0 : index
    %906 = vector.load %arg1[%c136, %c0_817] : memref<160x80xf32, #tpu.memory_space<vmem>>, vector<8x80xf32>
    %c0_818 = arith.constant 0 : index
    %c0_819 = arith.constant 0 : index
    %907 = vector.load %arg5[%c0_818, %c0_819] : memref<80x512xf32, #tpu.memory_space<vmem>>, vector<80x512xf32>
    %cst_820 = arith.constant dense<0.000000e+00> : vector<8x512xf32>
    %908 = tpu.matmul %906, %907, %cst_820 {dimension_numbers = #tpu.dot_dimension_numbers<[1], [0], [0], [1], [0, 0, 1, 1], [], []>} : vector<8x80xf32>, vector<80x512xf32>, vector<8x512xf32> -> vector<8x512xf32>
    %909 = arith.addf %818, %908 : vector<8x512xf32>
    %c17_i32_821 = arith.constant 17 : i32
    %910 = tpu.dynamic_rotate %909 by %c17_i32_821 dim 1 : vector<8x512xf32>, i32 -> vector<8x512xf32>
    %c0_822 = arith.constant 0 : index
    %c0_823 = arith.constant 0 : index
    %911 = vector.load %arg2[%c0_822, %c0_823] : memref<13x512xf32, #tpu.memory_space<vmem>>, vector<1x512xf32>
    %912 = vector.broadcast %911 : vector<1x512xf32> to vector<8x512xf32>
    %913 = arith.mulf %910, %912 : vector<8x512xf32>
    %c16_i32_824 = arith.constant 16 : i32
    %914 = tpu.dynamic_rotate %909 by %c16_i32_824 dim 1 : vector<8x512xf32>, i32 -> vector<8x512xf32>
    %c1_825 = arith.constant 1 : index
    %c0_826 = arith.constant 0 : index
    %915 = vector.load %arg2[%c1_825, %c0_826] : memref<13x512xf32, #tpu.memory_space<vmem>>, vector<1x512xf32>
    %916 = vector.broadcast %915 : vector<1x512xf32> to vector<8x512xf32>
    %917 = arith.mulf %914, %916 : vector<8x512xf32>
    %c15_i32_827 = arith.constant 15 : i32
    %918 = tpu.dynamic_rotate %909 by %c15_i32_827 dim 1 : vector<8x512xf32>, i32 -> vector<8x512xf32>
    %c2_828 = arith.constant 2 : index
    %c0_829 = arith.constant 0 : index
    %919 = vector.load %arg2[%c2_828, %c0_829] : memref<13x512xf32, #tpu.memory_space<vmem>>, vector<1x512xf32>
    %920 = vector.broadcast %919 : vector<1x512xf32> to vector<8x512xf32>
    %921 = arith.mulf %918, %920 : vector<8x512xf32>
    %c1_i32_830 = arith.constant 1 : i32
    %922 = tpu.dynamic_rotate %909 by %c1_i32_830 dim 1 : vector<8x512xf32>, i32 -> vector<8x512xf32>
    %c3_831 = arith.constant 3 : index
    %c0_832 = arith.constant 0 : index
    %923 = vector.load %arg2[%c3_831, %c0_832] : memref<13x512xf32, #tpu.memory_space<vmem>>, vector<1x512xf32>
    %924 = vector.broadcast %923 : vector<1x512xf32> to vector<8x512xf32>
    %925 = arith.mulf %922, %924 : vector<8x512xf32>
    %c511_i32_833 = arith.constant 511 : i32
    %926 = tpu.dynamic_rotate %909 by %c511_i32_833 dim 1 : vector<8x512xf32>, i32 -> vector<8x512xf32>
    %c5_834 = arith.constant 5 : index
    %c0_835 = arith.constant 0 : index
    %927 = vector.load %arg2[%c5_834, %c0_835] : memref<13x512xf32, #tpu.memory_space<vmem>>, vector<1x512xf32>
    %928 = vector.broadcast %927 : vector<1x512xf32> to vector<8x512xf32>
    %929 = arith.mulf %926, %928 : vector<8x512xf32>
    %c497_i32_836 = arith.constant 497 : i32
    %930 = tpu.dynamic_rotate %909 by %c497_i32_836 dim 1 : vector<8x512xf32>, i32 -> vector<8x512xf32>
    %c6_837 = arith.constant 6 : index
    %c0_838 = arith.constant 0 : index
    %931 = vector.load %arg2[%c6_837, %c0_838] : memref<13x512xf32, #tpu.memory_space<vmem>>, vector<1x512xf32>
    %932 = vector.broadcast %931 : vector<1x512xf32> to vector<8x512xf32>
    %933 = arith.mulf %930, %932 : vector<8x512xf32>
    %c496_i32_839 = arith.constant 496 : i32
    %934 = tpu.dynamic_rotate %909 by %c496_i32_839 dim 1 : vector<8x512xf32>, i32 -> vector<8x512xf32>
    %c7_840 = arith.constant 7 : index
    %c0_841 = arith.constant 0 : index
    %935 = vector.load %arg2[%c7_840, %c0_841] : memref<13x512xf32, #tpu.memory_space<vmem>>, vector<1x512xf32>
    %936 = vector.broadcast %935 : vector<1x512xf32> to vector<8x512xf32>
    %937 = arith.mulf %934, %936 : vector<8x512xf32>
    %c495_i32_842 = arith.constant 495 : i32
    %938 = tpu.dynamic_rotate %909 by %c495_i32_842 dim 1 : vector<8x512xf32>, i32 -> vector<8x512xf32>
    %c8_843 = arith.constant 8 : index
    %c0_844 = arith.constant 0 : index
    %939 = vector.load %arg2[%c8_843, %c0_844] : memref<13x512xf32, #tpu.memory_space<vmem>>, vector<1x512xf32>
    %940 = vector.broadcast %939 : vector<1x512xf32> to vector<8x512xf32>
    %941 = arith.mulf %938, %940 : vector<8x512xf32>
    %c0_845 = arith.constant 0 : index
    %c0_846 = arith.constant 0 : index
    %942 = vector.load %arg5[%c0_845, %c0_846] : memref<80x512xf32, #tpu.memory_space<vmem>>, vector<8x512xf32>
    tpu.vector_store %arg5[%c0_845, %c0_846], %913 {strides = array<i32>} : memref<80x512xf32, #tpu.memory_space<vmem>>, vector<8x512xf32>,
    %c8_847 = arith.constant 8 : index
    %c0_848 = arith.constant 0 : index
    %943 = vector.load %arg5[%c8_847, %c0_848] : memref<80x512xf32, #tpu.memory_space<vmem>>, vector<8x512xf32>
    tpu.vector_store %arg5[%c8_847, %c0_848], %917 {strides = array<i32>} : memref<80x512xf32, #tpu.memory_space<vmem>>, vector<8x512xf32>,
    %c16_849 = arith.constant 16 : index
    %c0_850 = arith.constant 0 : index
    %944 = vector.load %arg5[%c16_849, %c0_850] : memref<80x512xf32, #tpu.memory_space<vmem>>, vector<8x512xf32>
    tpu.vector_store %arg5[%c16_849, %c0_850], %921 {strides = array<i32>} : memref<80x512xf32, #tpu.memory_space<vmem>>, vector<8x512xf32>,
    %c24_851 = arith.constant 24 : index
    %c0_852 = arith.constant 0 : index
    %945 = vector.load %arg5[%c24_851, %c0_852] : memref<80x512xf32, #tpu.memory_space<vmem>>, vector<8x512xf32>
    tpu.vector_store %arg5[%c24_851, %c0_852], %925 {strides = array<i32>} : memref<80x512xf32, #tpu.memory_space<vmem>>, vector<8x512xf32>,
    %c32_853 = arith.constant 32 : index
    %c0_854 = arith.constant 0 : index
    %946 = vector.load %arg5[%c32_853, %c0_854] : memref<80x512xf32, #tpu.memory_space<vmem>>, vector<8x512xf32>
    tpu.vector_store %arg5[%c32_853, %c0_854], %909 {strides = array<i32>} : memref<80x512xf32, #tpu.memory_space<vmem>>, vector<8x512xf32>,
    %c40_855 = arith.constant 40 : index
    %c0_856 = arith.constant 0 : index
    %947 = vector.load %arg5[%c40_855, %c0_856] : memref<80x512xf32, #tpu.memory_space<vmem>>, vector<8x512xf32>
    tpu.vector_store %arg5[%c40_855, %c0_856], %929 {strides = array<i32>} : memref<80x512xf32, #tpu.memory_space<vmem>>, vector<8x512xf32>,
    %c48_857 = arith.constant 48 : index
    %c0_858 = arith.constant 0 : index
    %948 = vector.load %arg5[%c48_857, %c0_858] : memref<80x512xf32, #tpu.memory_space<vmem>>, vector<8x512xf32>
    tpu.vector_store %arg5[%c48_857, %c0_858], %933 {strides = array<i32>} : memref<80x512xf32, #tpu.memory_space<vmem>>, vector<8x512xf32>,
    %c56_859 = arith.constant 56 : index
    %c0_860 = arith.constant 0 : index
    %949 = vector.load %arg5[%c56_859, %c0_860] : memref<80x512xf32, #tpu.memory_space<vmem>>, vector<8x512xf32>
    tpu.vector_store %arg5[%c56_859, %c0_860], %937 {strides = array<i32>} : memref<80x512xf32, #tpu.memory_space<vmem>>, vector<8x512xf32>,
    %c64_861 = arith.constant 64 : index
    %c0_862 = arith.constant 0 : index
    %950 = vector.load %arg5[%c64_861, %c0_862] : memref<80x512xf32, #tpu.memory_space<vmem>>, vector<8x512xf32>
    tpu.vector_store %arg5[%c64_861, %c0_862], %941 {strides = array<i32>} : memref<80x512xf32, #tpu.memory_space<vmem>>, vector<8x512xf32>,
    %c144 = arith.constant 144 : index
    %c0_863 = arith.constant 0 : index
    %951 = vector.load %arg1[%c144, %c0_863] : memref<160x80xf32, #tpu.memory_space<vmem>>, vector<8x80xf32>
    %c0_864 = arith.constant 0 : index
    %c0_865 = arith.constant 0 : index
    %952 = vector.load %arg5[%c0_864, %c0_865] : memref<80x512xf32, #tpu.memory_space<vmem>>, vector<80x512xf32>
    %cst_866 = arith.constant dense<0.000000e+00> : vector<8x512xf32>
    %953 = tpu.matmul %951, %952, %cst_866 {dimension_numbers = #tpu.dot_dimension_numbers<[1], [0], [0], [1], [0, 0, 1, 1], [], []>} : vector<8x80xf32>, vector<80x512xf32>, vector<8x512xf32> -> vector<8x512xf32>
    %954 = arith.addf %953, %818 : vector<8x512xf32>
    %c17_i32_867 = arith.constant 17 : i32
    %955 = tpu.dynamic_rotate %954 by %c17_i32_867 dim 1 : vector<8x512xf32>, i32 -> vector<8x512xf32>
    %c0_868 = arith.constant 0 : index
    %c0_869 = arith.constant 0 : index
    %956 = vector.load %arg2[%c0_868, %c0_869] : memref<13x512xf32, #tpu.memory_space<vmem>>, vector<1x512xf32>
    %957 = vector.broadcast %956 : vector<1x512xf32> to vector<8x512xf32>
    %958 = arith.mulf %955, %957 : vector<8x512xf32>
    %c16_i32_870 = arith.constant 16 : i32
    %959 = tpu.dynamic_rotate %954 by %c16_i32_870 dim 1 : vector<8x512xf32>, i32 -> vector<8x512xf32>
    %c1_871 = arith.constant 1 : index
    %c0_872 = arith.constant 0 : index
    %960 = vector.load %arg2[%c1_871, %c0_872] : memref<13x512xf32, #tpu.memory_space<vmem>>, vector<1x512xf32>
    %961 = vector.broadcast %960 : vector<1x512xf32> to vector<8x512xf32>
    %962 = arith.mulf %959, %961 : vector<8x512xf32>
    %c15_i32_873 = arith.constant 15 : i32
    %963 = tpu.dynamic_rotate %954 by %c15_i32_873 dim 1 : vector<8x512xf32>, i32 -> vector<8x512xf32>
    %c2_874 = arith.constant 2 : index
    %c0_875 = arith.constant 0 : index
    %964 = vector.load %arg2[%c2_874, %c0_875] : memref<13x512xf32, #tpu.memory_space<vmem>>, vector<1x512xf32>
    %965 = vector.broadcast %964 : vector<1x512xf32> to vector<8x512xf32>
    %966 = arith.mulf %963, %965 : vector<8x512xf32>
    %c1_i32_876 = arith.constant 1 : i32
    %967 = tpu.dynamic_rotate %954 by %c1_i32_876 dim 1 : vector<8x512xf32>, i32 -> vector<8x512xf32>
    %c3_877 = arith.constant 3 : index
    %c0_878 = arith.constant 0 : index
    %968 = vector.load %arg2[%c3_877, %c0_878] : memref<13x512xf32, #tpu.memory_space<vmem>>, vector<1x512xf32>
    %969 = vector.broadcast %968 : vector<1x512xf32> to vector<8x512xf32>
    %970 = arith.mulf %967, %969 : vector<8x512xf32>
    %c511_i32_879 = arith.constant 511 : i32
    %971 = tpu.dynamic_rotate %954 by %c511_i32_879 dim 1 : vector<8x512xf32>, i32 -> vector<8x512xf32>
    %c5_880 = arith.constant 5 : index
    %c0_881 = arith.constant 0 : index
    %972 = vector.load %arg2[%c5_880, %c0_881] : memref<13x512xf32, #tpu.memory_space<vmem>>, vector<1x512xf32>
    %973 = vector.broadcast %972 : vector<1x512xf32> to vector<8x512xf32>
    %974 = arith.mulf %971, %973 : vector<8x512xf32>
    %c497_i32_882 = arith.constant 497 : i32
    %975 = tpu.dynamic_rotate %954 by %c497_i32_882 dim 1 : vector<8x512xf32>, i32 -> vector<8x512xf32>
    %c6_883 = arith.constant 6 : index
    %c0_884 = arith.constant 0 : index
    %976 = vector.load %arg2[%c6_883, %c0_884] : memref<13x512xf32, #tpu.memory_space<vmem>>, vector<1x512xf32>
    %977 = vector.broadcast %976 : vector<1x512xf32> to vector<8x512xf32>
    %978 = arith.mulf %975, %977 : vector<8x512xf32>
    %c496_i32_885 = arith.constant 496 : i32
    %979 = tpu.dynamic_rotate %954 by %c496_i32_885 dim 1 : vector<8x512xf32>, i32 -> vector<8x512xf32>
    %c7_886 = arith.constant 7 : index
    %c0_887 = arith.constant 0 : index
    %980 = vector.load %arg2[%c7_886, %c0_887] : memref<13x512xf32, #tpu.memory_space<vmem>>, vector<1x512xf32>
    %981 = vector.broadcast %980 : vector<1x512xf32> to vector<8x512xf32>
    %982 = arith.mulf %979, %981 : vector<8x512xf32>
    %c495_i32_888 = arith.constant 495 : i32
    %983 = tpu.dynamic_rotate %954 by %c495_i32_888 dim 1 : vector<8x512xf32>, i32 -> vector<8x512xf32>
    %c8_889 = arith.constant 8 : index
    %c0_890 = arith.constant 0 : index
    %984 = vector.load %arg2[%c8_889, %c0_890] : memref<13x512xf32, #tpu.memory_space<vmem>>, vector<1x512xf32>
    %985 = vector.broadcast %984 : vector<1x512xf32> to vector<8x512xf32>
    %986 = arith.mulf %983, %985 : vector<8x512xf32>
    %c0_891 = arith.constant 0 : index
    %c0_892 = arith.constant 0 : index
    %987 = vector.load %arg5[%c0_891, %c0_892] : memref<80x512xf32, #tpu.memory_space<vmem>>, vector<8x512xf32>
    tpu.vector_store %arg5[%c0_891, %c0_892], %958 {strides = array<i32>} : memref<80x512xf32, #tpu.memory_space<vmem>>, vector<8x512xf32>,
    %c8_893 = arith.constant 8 : index
    %c0_894 = arith.constant 0 : index
    %988 = vector.load %arg5[%c8_893, %c0_894] : memref<80x512xf32, #tpu.memory_space<vmem>>, vector<8x512xf32>
    tpu.vector_store %arg5[%c8_893, %c0_894], %962 {strides = array<i32>} : memref<80x512xf32, #tpu.memory_space<vmem>>, vector<8x512xf32>,
    %c16_895 = arith.constant 16 : index
    %c0_896 = arith.constant 0 : index
    %989 = vector.load %arg5[%c16_895, %c0_896] : memref<80x512xf32, #tpu.memory_space<vmem>>, vector<8x512xf32>
    tpu.vector_store %arg5[%c16_895, %c0_896], %966 {strides = array<i32>} : memref<80x512xf32, #tpu.memory_space<vmem>>, vector<8x512xf32>,
    %c24_897 = arith.constant 24 : index
    %c0_898 = arith.constant 0 : index
    %990 = vector.load %arg5[%c24_897, %c0_898] : memref<80x512xf32, #tpu.memory_space<vmem>>, vector<8x512xf32>
    tpu.vector_store %arg5[%c24_897, %c0_898], %970 {strides = array<i32>} : memref<80x512xf32, #tpu.memory_space<vmem>>, vector<8x512xf32>,
    %c32_899 = arith.constant 32 : index
    %c0_900 = arith.constant 0 : index
    %991 = vector.load %arg5[%c32_899, %c0_900] : memref<80x512xf32, #tpu.memory_space<vmem>>, vector<8x512xf32>
    tpu.vector_store %arg5[%c32_899, %c0_900], %954 {strides = array<i32>} : memref<80x512xf32, #tpu.memory_space<vmem>>, vector<8x512xf32>,
    %c40_901 = arith.constant 40 : index
    %c0_902 = arith.constant 0 : index
    %992 = vector.load %arg5[%c40_901, %c0_902] : memref<80x512xf32, #tpu.memory_space<vmem>>, vector<8x512xf32>
    tpu.vector_store %arg5[%c40_901, %c0_902], %974 {strides = array<i32>} : memref<80x512xf32, #tpu.memory_space<vmem>>, vector<8x512xf32>,
    %c48_903 = arith.constant 48 : index
    %c0_904 = arith.constant 0 : index
    %993 = vector.load %arg5[%c48_903, %c0_904] : memref<80x512xf32, #tpu.memory_space<vmem>>, vector<8x512xf32>
    tpu.vector_store %arg5[%c48_903, %c0_904], %978 {strides = array<i32>} : memref<80x512xf32, #tpu.memory_space<vmem>>, vector<8x512xf32>,
    %c56_905 = arith.constant 56 : index
    %c0_906 = arith.constant 0 : index
    %994 = vector.load %arg5[%c56_905, %c0_906] : memref<80x512xf32, #tpu.memory_space<vmem>>, vector<8x512xf32>
    tpu.vector_store %arg5[%c56_905, %c0_906], %982 {strides = array<i32>} : memref<80x512xf32, #tpu.memory_space<vmem>>, vector<8x512xf32>,
    %c64_907 = arith.constant 64 : index
    %c0_908 = arith.constant 0 : index
    %995 = vector.load %arg5[%c64_907, %c0_908] : memref<80x512xf32, #tpu.memory_space<vmem>>, vector<8x512xf32>
    tpu.vector_store %arg5[%c64_907, %c0_908], %986 {strides = array<i32>} : memref<80x512xf32, #tpu.memory_space<vmem>>, vector<8x512xf32>,
    %c152 = arith.constant 152 : index
    %c0_909 = arith.constant 0 : index
    %996 = vector.load %arg1[%c152, %c0_909] : memref<160x80xf32, #tpu.memory_space<vmem>>, vector<8x80xf32>
    %c0_910 = arith.constant 0 : index
    %c0_911 = arith.constant 0 : index
    %997 = vector.load %arg5[%c0_910, %c0_911] : memref<80x512xf32, #tpu.memory_space<vmem>>, vector<80x512xf32>
    %cst_912 = arith.constant dense<0.000000e+00> : vector<8x512xf32>
    %998 = tpu.matmul %996, %997, %cst_912 {dimension_numbers = #tpu.dot_dimension_numbers<[1], [0], [0], [1], [0, 0, 1, 1], [], []>} : vector<8x80xf32>, vector<80x512xf32>, vector<8x512xf32> -> vector<8x512xf32>
    %c0_913 = arith.constant 0 : index
    %c0_914 = arith.constant 0 : index
    %999 = vector.load %arg4[%c0_913, %c0_914] : memref<9x512xf32, #tpu.memory_space<vmem>>, vector<8x512xf32>
    tpu.vector_store %arg4[%c0_913, %c0_914], %998 {strides = array<i32>} : memref<9x512xf32, #tpu.memory_space<vmem>>, vector<8x512xf32>,
    %c8_915 = arith.constant 8 : index
    %c0_916 = arith.constant 0 : index
    %1000 = vector.load %arg4[%c8_915, %c0_916] : memref<9x512xf32, #tpu.memory_space<vmem>>, vector<1x512xf32>
    tpu.vector_store %arg4[%c8_915, %c0_916], %8 {strides = array<i32>} : memref<9x512xf32, #tpu.memory_space<vmem>>, vector<1x512xf32>,
    return
  }
}

</mosaic_0001>

<bundles_post_ra>
// kernel: admmn_forward.1
= control target key start
LH: loop header
LB: loop body
LE: loop exit
PB: predicated region body
PF: predicated region fallthrough
CT: control target
= control target key end

     0   :  { %9 = vsyncpa [#allocation4], 0  ;;  %s16136_s0 = inlined_call_operand.vmem [shape: f32[4,512], index: 0, kind: input, shape index: {}]   ;;  %s16137_s1 = inlined_call_operand.vmem [shape: f32[160,80], index: 1, kind: input, shape index: {}]   ;;  %s16138_s2 = inlined_call_operand.vmem [shape: f32[13,512], index: 2, kind: input, shape index: {}]   ;;  %s16139_s3 = inlined_call_operand.vmem [shape: f32[2], index: 3, kind: input, shape index: {}]   ;;  %s16140_s4 = inlined_call_operand.vmem [shape: f32[9,512], index: 4, kind: output, shape index: {}]  }
   0x1   :  { %s22_s17 = sshll.u32 %s16139_s3, 4  ;;  %s23_s17 = int_to_ptr.vmem [resolvable:$true] %s22_s17 }
   0x2   :  { %s10978_s18 = scalar_lea.vmem %s23_s17, 16  ;;  %p10983_p1 = scmp.lt.s32.totalorder %s23_s17, %s23_s17 }
   0x3   :  { %p10979_p0 = scmp.ne.s32.totalorder %s23_s17, %s10978_s18  ;;  %p10984_p2 = scmp.lt.s32.totalorder %s10978_s18, %s10978_s18 }
   0x5   :  { %p10985_p3 = por %p10984_p2, %p10983_p1 }
   0x7   :  { %p10986_p4 = pnand %p10985_p3, %p10979_p0 }
   0x9   :  { %10989 = shalt.err (!%p10986_p4)
}
   0xa   :  { %s10992_s19 = smov [#allocation3]  }
   0xb   :  { %25 = dma.vmem_to_smem %s23_s17, 16, %s10992_s19, [#allocation4]  }
   0xc   :  { %10990 = dma.done.wait [#allocation4], 16  }
   0xd   :  { %10991 = vsyncadd [#allocation4], 4294967280 }
   0xe   :  { %29 = sfence }
   0xf   :  { %v11045_v0 = vld [vmem:[%s16137_s1] sm:$0xff]  ;;  %v16149_v1 = vmov 2   ;;  %v10994_v2 = vmov 0   ;;  %vm55_vm0 = vcmask 1042432   ;;  %vm56_vm1 = vcmask 1046532   ;;  %v42_v15 = vld [vmem:[%s16136_s0 + $0x8] sm:$0xff] }
  0x10   :  { %10944 = vset.pattern.permute.xlu1 %v16149_v1  ;;  %10943 = vset.pattern.permute.xlu0 %v10994_v2  ;;  %v10972_v3 = vld [vmem:[%s16138_s2 + $0x20] ss:$8 sps:$4 sm:$0xee]   ;;  %v10974_v4 = vld [vmem:[%s16138_s2 + $0x24] ss:$8 sps:$4 sm:$0x11]   ;;  %vm11060_vm2 = vmor %vm55_vm0, %vm56_vm1 }
  0x11   :  { %482 = vperm.xlu1 %10944, %v11045_v0   ;;  %430 = vperm.xlu0 %10943, %v11045_v0   ;;  %v41_v5 = vld [vmem:[%s16136_s0] sm:$0xff]  ;;  %v10084_v7 = vrot.slane %v10972_v3, 9  ;;  %v60_v8 = vrot.slane %v10974_v4, 5  ;;  %v10975_v9 = vld [vmem:[%s16138_s2 + $0x30] ss:$8 sps:$4 sm:$0xee]  }
  0x12   :  { %v10977_v10 = vld [vmem:[%s16138_s2 + $0x34] ss:$8 sps:$4 sm:$0x11]   ;;  %vm76_vm3 = vcmask 1043456   ;;  %v10085_v12 = vrot.slane %v10975_v9, 9  ;;  %v16147_v13 = vmov 3  }
  0x13   :  { %v61_v11 = vsel %vm11060_vm2, %v10084_v7, %v60_v8  ;;  %v64_v16 = vrot.slane %v10977_v10, 5  ;;  %v16145_v17 = vmov 5   ;;  %s10997_s0 = smov 15   ;;  %s10998_s7 = smov 17   ;;  %v16148_v50 = vmov 4   ;;  %v1232_v54 = vld [vmem:[%s16137_s1 + $0x20] sm:$0xff] }
  0x14   :  { %v68_v14 = vmul.f32 %v61_v11, %v41_v5  ;;  %s10999_s8 = smov 16   ;;  %s11000_s9 = smov 1   ;;  %v16146_v51 = vmov 7   ;;  %v16142_v52 = vmov 6   ;;  %v16143_v53 = vmov 72  }
  0x15   :  { %10945 = vset.pattern.permute.xlu0 %v16147_v13  ;;  %10947 = vset.pattern.permute.xlu1 %v16145_v17  ;;  %v65_v19 = vsel %vm11060_vm2, %v10085_v12, %v64_v16  ;;  %s11002_s10 = smov 127   ;;  %s11004_s11 = smov 113   ;;  %v16141_v55 = vmov 8   ;;  %v11010_v56 = vmov 1   ;;  %v16150_v7 = vlaneseq }
  0x16   :  { %v77_v18 = vsel %vm76_vm3, %v68_v14, 0.0  ;;  %v72_v20 = vcombine.high %v68_v14, %v68_v14  ;;  %v69_v22 = vmul.f32 %v65_v19, %v42_v15  ;;  %s11006_s12 = smov 112   ;;  %s11008_s13 = smov 111   ;;  %v1024_v12 = vld [vmem:[%s16138_s2] ss:$8 sm:$0xf] }
  0x17   :  { %v78_v21 = vrot.slane %v77_v18, 4  ;;  %v11207_v9 = vshrl.u32 %v16150_v7, 7  ;;  %v11220_v14 = vand.u32 127, %v16150_v7  ;;  %vm878_vm13 = vcmask 654336   ;;  %s105_s14 = sld [smem:[#allocation3]]  ;;  %s10167_s21 = sld [smem:[#allocation3 + $0x1]] }
  0x18   :  { %v84_v23 = vsel %vm76_vm3, %v72_v20, 0.0  ;;  %v73_v25 = vcombine.high %v69_v22, %v69_v22  ;;  %v91_v26 = vsel %vm76_vm3, %v69_v22, 0.0  ;;  %v10095_v20 = vld [vmem:[%s16138_s2 + $0x1] ss:$8 sm:$0xf] }
  0x19   :  { %v79_v24 = vadd.f32 %v78_v21, %v77_v18  ;;  %v85_v27 = vrot.slane %v84_v23, 4  ;;  %v92_v28 = vrot.slane %v91_v26, 4  ;;  %16324 = vst [vmem:[#allocation10_spill] sm:$0xff] %v11207_v9  ;;  %16326 = vst [vmem:[#allocation12_spill] sm:$0xff] %v11220_v14  ;;  %v11223_v15 = vsub.s32 0, %v11207_v9 }
  0x1a   :  { %v98_v30 = vsel %vm76_vm3, %v73_v25, 0.0  ;;  %v11226_v16 = vsub.s32 3, %v11207_v9  ;;  %v10086_v18 = vld [vmem:[%s16138_s2 + $0x1] ss:$8 sm:$0xf]  ;;  %v11232_v19 = vsub.s32 1, %v11207_v9 }
  0x1b   :  { %v80_v29 = vrot.slane %v79_v24, 2  ;;  %v86_v31 = vadd.f32 %v85_v27, %v84_v23  ;;  %v99_v32 = vrot.slane %v98_v30, 4  ;;  %v93_v33 = vadd.f32 %v92_v28, %v91_v26 }
  0x1c   :  { %16327 = vst [vmem:[#allocation13_spill] sm:$0xff] %v11226_v16  ;;  %16328 = vst [vmem:[#allocation14_spill] sm:$0xff] %v11232_v19  ;;  %v11238_v21 = vsub.s32 2, %v11207_v9  ;;  %vm116_vm4 = vcmp.lt.s32.totalorder %v11220_v14, 17  ;;  %v11249_v25 = vrot.slane %v1024_v12, %v11223_v15  ;;  %v11255_v27 = vrot.slane %v1024_v12, %v11226_v16 }
  0x1d   :  { %v81_v34 = vadd.f32 %v80_v29, %v79_v24  ;;  %v87_v35 = vrot.slane %v86_v31, 2  ;;  %v100_v36 = vadd.f32 %v99_v32, %v98_v30  ;;  %v94_v37 = vrot.slane %v93_v33, 2  ;;  %v10087_v30 = vld [vmem:[%s16138_s2 + $0x2] ss:$8 sm:$0xf] }
  0x1e   :  { %16329 = vst [vmem:[#allocation15_spill] sm:$0xff] %v11238_v21  ;;  %16331 = vst [vmem:[#allocation17_spill] sm:$0xff] %v11249_v25  ;;  %v11258_v28 = vrot.slane %v10086_v18, %v11232_v19  ;;  %v11261_v29 = vrot.slane %v10095_v20, %v11232_v19  ;;  %v11270_v32 = vrot.slane %v10095_v20, %v11238_v21  ;;  %vm155_vm5 = vcmp.lt.s32.totalorder %v11220_v14, 16  ;;  %v10090_v9 = vld [vmem:[%s16138_s2 + $0x6] ss:$8 sm:$0xf] }
  0x1f   :  { %v82_v38 = vrot.slane %v81_v34, 1  ;;  %v101_v39 = vrot.slane %v100_v36, 2  ;;  %v95_v40 = vadd.f32 %v94_v37, %v93_v33  ;;  %v88_v41 = vadd.f32 %v87_v35, %v86_v31  ;;  %16333 = vst [vmem:[#allocation19_spill] sm:$0xff] %v11255_v27  ;;  %v10096_v35 = vld [vmem:[%s16138_s2 + $0x2] ss:$8 sm:$0xf] }
  0x20   :  { %16334 = vst [vmem:[#allocation20_spill] sm:$0xff] %v11258_v28  ;;  %16335 = vst [vmem:[#allocation21_spill] sm:$0xff] %v11261_v29  ;;  %v11267_v31 = vrot.slane %v10086_v18, %v11238_v21  ;;  %v11273_v33 = vrot.slane %v10086_v18, %v11223_v15  ;;  %v11285_v37 = vrot.slane %v10095_v20, %v11226_v16  ;;  %vm195_vm6 = vcmp.lt.s32.totalorder %v11220_v14, 15 }
  0x21   :  { %v11083_v42 = vadd.f32 %v82_v38, %v81_v34  ;;  %v102_v43 = vadd.f32 %v101_v39, %v100_v36  ;;  %v96_v44 = vrot.slane %v95_v40, 1  ;;  %v89_v47 = vrot.slane %v88_v41, 1  ;;  %16337 = vst [vmem:[#allocation23_spill] sm:$0xff] %v11270_v32 }
  0x22   :  { %16336 = vst [vmem:[#allocation22_spill] sm:$0xff] %v11267_v31  ;;  %16338 = vst [vmem:[#allocation24_spill] sm:$0xff] %v11273_v33  ;;  %v11276_v34 = vrot.slane %v10086_v18, %v11226_v16  ;;  %v11282_v36 = vrot.slane %v10095_v20, %v11223_v15  ;;  %v11323_v18 = vrot.slane %v10087_v30, %v11223_v15  ;;  %vm235_vm7 = vcmp.lt.s32.totalorder %v11220_v14, 1 }
  0x23   :  { %16320 = vst [vmem:[#allocation6_spill] sm:$0xff] %v11083_v42  ;;  %187 = vrot.lane.b32.xlu0 %v11083_v42, %s10997_s0  ;;  %106 = vrot.lane.b32.xlu1 %v11083_v42, %s10998_s7  ;;  %v103_v45 = vrot.slane %v102_v43, 1  ;;  %v11089_v46 = vadd.f32 %v96_v44, %v95_v40  ;;  %v11097_v49 = vadd.f32 %v89_v47, %v88_v41  ;;  %16341 = vst [vmem:[#allocation27_spill] sm:$0xff] %v11285_v37  ;;  %v10088_v40 = vld [vmem:[%s16138_s2 + $0x3] ss:$8 sm:$0xf] }
  0x24   :  { %16339 = vst [vmem:[#allocation25_spill] sm:$0xff] %v11276_v34  ;;  %16340 = vst [vmem:[#allocation26_spill] sm:$0xff] %v11282_v36  ;;  %v11302_v44 = vrot.slane %v1024_v12, %v11238_v21  ;;  %v11308_v47 = vrot.slane %v10087_v30, %v11238_v21  ;;  %v11326_v20 = vrot.slane %v10087_v30, %v11226_v16  ;;  %vm275_vm8 = vcmp.lt.s32.totalorder %v11220_v14, 127 }
  0x25   :  { %16321 = vst [vmem:[#allocation7_spill] sm:$0xff] %v11089_v46  ;;  %v11091_v48 = vadd.f32 %v103_v45, %v102_v43  ;;  %16323 = vst [vmem:[#allocation9_spill] sm:$0xff] %v11097_v49  ;;  %v11299_v43 = vrot.slane %v1024_v12, %v11232_v19  ;;  %v11305_v45 = vrot.slane %v10087_v30, %v11232_v19  ;;  %v10098_v30 = vld [vmem:[%s16138_s2 + $0x5] ss:$8 sm:$0xf]  ;;  %vm315_vm9 = vcmp.lt.s32.totalorder %v11220_v14, 113 }
  0x26   :  { %16346 = vst [vmem:[#allocation32_spill] sm:$0xff] %v11302_v44  ;;  %16348 = vst [vmem:[#allocation34_spill] sm:$0xff] %v11308_v47  ;;  %v11320_v12 = vrot.slane %v10096_v35, %v11238_v21  ;;  %vm355_vm10 = vcmp.lt.s32.totalorder %v11220_v14, 112  ;;  %vm395_vm11 = vcmp.lt.s32.totalorder %v11220_v14, 111 }
  0x27   :  { %16322 = vst [vmem:[#allocation8_spill] sm:$0xff] %v11091_v48  ;;  %110 = vrot.lane.b32.xlu1 %v11089_v46, %s10998_s7  ;;  %112 = vrot.lane.b32.xlu0 %v11091_v48, %s10998_s7  ;;  %16345 = vst [vmem:[#allocation31_spill] sm:$0xff] %v11299_v43 }
  0x28   :  { %16347 = vst [vmem:[#allocation33_spill] sm:$0xff] %v11305_v45  ;;  %16350 = vst [vmem:[#allocation36_spill] sm:$0xff] %v11320_v12 }
  0x29   :  { %16351 = vst [vmem:[#allocation37_spill] sm:$0xff] %v11323_v18  ;;  %16352 = vst [vmem:[#allocation38_spill] sm:$0xff] %v11326_v20 }
  0x2b   :  { %147 = vrot.lane.b32.xlu1 %v11083_v42, %s10999_s8  ;;  %149 = vrot.lane.b32.xlu0 %v11097_v49, %s10999_s8 }
  0x2f   :  { %151 = vrot.lane.b32.xlu1 %v11089_v46, %s10999_s8  ;;  %153 = vrot.lane.b32.xlu0 %v11091_v48, %s10999_s8 }
  0x33   :  { %108 = vrot.lane.b32.xlu1 %v11097_v49, %s10998_s7  ;;  %191 = vrot.lane.b32.xlu0 %v11089_v46, %s10997_s0 }
  0x37   :  { %189 = vrot.lane.b32.xlu1 %v11097_v49, %s10997_s0  ;;  %510 = vperm.xlu0 %10945, %v11045_v0  }
  0x3b   :  { %193 = vrot.lane.b32.xlu1 %v11091_v48, %s10997_s0  ;;  %231 = vrot.lane.b32.xlu0 %v11089_v46, %s11000_s9 }
  0x3c   :  { %10946 = vset.pattern.permute.xlu0 %v16148_v50 }
  0x3f   :  { %227 = vrot.lane.b32.xlu1 %v11083_v42, %s11000_s9  ;;  %538 = vperm.xlu0 %10946, %v11045_v0  }
  0x43   :  { %229 = vrot.lane.b32.xlu1 %v11097_v49, %s11000_s9  ;;  %269 = vrot.lane.b32.xlu0 %v11097_v49, %s11002_s10 }
  0x44   :  { %10949 = vset.pattern.permute.xlu0 %v16146_v51 }
  0x47   :  { %233 = vrot.lane.b32.xlu1 %v11091_v48, %s11000_s9  ;;  %273 = vrot.lane.b32.xlu0 %v11091_v48, %s11002_s10 }
  0x4b   :  { %550 = vperm.xlu1 %10947, %v11045_v0   ;;  %307 = vrot.lane.b32.xlu0 %v11083_v42, %s11004_s11 }
  0x4f   :  { %267 = vrot.lane.b32.xlu1 %v11083_v42, %s11002_s10  ;;  %311 = vrot.lane.b32.xlu0 %v11089_v46, %s11004_s11 }
  0x50   :  { %10948 = vset.pattern.permute.xlu1 %v16142_v52 }
  0x53   :  { %271 = vrot.lane.b32.xlu1 %v11089_v46, %s11002_s10  ;;  %606 = vperm.xlu0 %10949, %v11045_v0  }
  0x57   :  { %578 = vperm.xlu1 %10948, %v11045_v0   ;;  %351 = vrot.lane.b32.xlu0 %v11089_v46, %s11006_s12 }
  0x58   :  { %10950 = vset.pattern.permute.xlu0 %v16143_v53 }
  0x5b   :  { %309 = vrot.lane.b32.xlu1 %v11097_v49, %s11004_s11  ;;  %391 = vrot.lane.b32.xlu0 %v11089_v46, %s11008_s13 }
  0x5c   :  { %10951 = vset.pattern.permute.xlu1 %v10994_v2 }
  0x5f   :  { %313 = vrot.lane.b32.xlu1 %v11091_v48, %s11004_s11  ;;  %662 = vperm.xlu0 %10950, %v11045_v0  }
  0x63   :  { %347 = vrot.lane.b32.xlu1 %v11083_v42, %s11006_s12  ;;  %10953 = vset.pattern.permute.xlu0 %v16149_v1  ;;  %v11353_v1 = vrot.slane %v10088_v40, %v11226_v16 }
  0x64   :  { %1287 = vperm.xlu0 %10953, %v1232_v54  }
  0x65   :  { %16359 = vst [vmem:[#allocation45_spill] sm:$0xff] %v11353_v1  ;;  %v11435_v1 = vrot.slane %v10090_v9, %v11226_v16 }
  0x67   :  { %349 = vrot.lane.b32.xlu1 %v11097_v49, %s11006_s12  ;;  %16380 = vst [vmem:[#allocation66_spill] sm:$0xff] %v11435_v1 }
  0x68   :  { %10956 = vset.pattern.permute.xlu0 %v16145_v17  ;;  %v11338_v17 = vrot.slane %v10088_v40, %v11232_v19 }
  0x69   :  { %1355 = vperm.xlu0 %10956, %v1232_v54  }
  0x6a   :  { %16355 = vst [vmem:[#allocation41_spill] sm:$0xff] %v11338_v17 }
  0x6b   :  { %353 = vrot.lane.b32.xlu1 %v11091_v48, %s11006_s12 }
  0x6d   :  { %10957 = vset.pattern.permute.xlu0 %v16141_v55  ;;  %v10089_v55 = vld [vmem:[%s16138_s2 + $0x5] ss:$8 sm:$0xf] }
  0x6e   :  { %634 = vperm.xlu0 %10957, %v11045_v0  }
  0x6f   :  { %387 = vrot.lane.b32.xlu1 %v11083_v42, %s11008_s13  ;;  %v11379_v42 = vrot.slane %v10098_v30, %v11223_v15 }
  0x71   :  { %16366 = vst [vmem:[#allocation52_spill] sm:$0xff] %v11379_v42  ;;  %v11402_v42 = vrot.slane %v10098_v30, %v11238_v21 }
  0x72   :  { %1439 = vperm.xlu0 %10957, %v1232_v54  }
  0x73   :  { %389 = vrot.lane.b32.xlu1 %v11097_v49, %s11008_s13  ;;  %v11370_v49 = vrot.slane %v10089_v55, %v11223_v15  ;;  %16372 = vst [vmem:[#allocation58_spill] sm:$0xff] %v11402_v42  ;;  %v11423_v42 = vrot.slane %v10090_v9, %v11232_v19 }
  0x75   :  { %16364 = vst [vmem:[#allocation50_spill] sm:$0xff] %v11370_v49  ;;  %16376 = vst [vmem:[#allocation62_spill] sm:$0xff] %v11423_v42  ;;  %v10092_v42 = vld [vmem:[%s16138_s2 + $0x20] ss:$8 sm:$0xf] }
  0x76   :  { %10960 = vset.pattern.permute.xlu0 %v11010_v56 }
  0x77   :  { %393 = vrot.lane.b32.xlu1 %v11091_v48, %s11008_s13  ;;  %454 = vperm.xlu0 %10960, %v11045_v0  }
  0x7b   :  { %1235 = vperm.xlu1 %10951, %v1232_v54  }
  0x7f   :  { %10952 = vset.pattern.permute.xlu1 %v11010_v56 }
  0x80   :  { %1259 = vperm.xlu1 %10952, %v1232_v54  }
  0x84   :  { %10954 = vset.pattern.permute.xlu1 %v16147_v13  ;;  %v11347_v13 = vrot.slane %v10088_v40, %v11223_v15 }
  0x85   :  { %1315 = vperm.xlu1 %10954, %v1232_v54  }
  0x86   :  { %16357 = vst [vmem:[#allocation43_spill] sm:$0xff] %v11347_v13 }
  0x89   :  { %10955 = vset.pattern.permute.xlu1 %v16148_v50  ;;  %v11350_v50 = vrot.slane %v10088_v40, %v11238_v21  ;;  %v11373_v40 = vrot.slane %v10089_v55, %v11226_v16 }
  0x8a   :  { %1343 = vperm.xlu1 %10955, %v1232_v54  }
  0x8b   :  { %16358 = vst [vmem:[#allocation44_spill] sm:$0xff] %v11350_v50  ;;  %16365 = vst [vmem:[#allocation51_spill] sm:$0xff] %v11373_v40 }
  0x8e   :  { %10958 = vset.pattern.permute.xlu1 %v16142_v52  ;;  %v11332_v52 = vrot.slane %v10096_v35, %v11223_v15 }
  0x8f   :  { %1383 = vperm.xlu1 %10958, %v1232_v54  }
  0x90   :  { %v11177_v57 = vpop.permute.xlu1 %482  ;;  %v11180_v58 = vpop.permute.xlu0 %430  ;;  %16353 = vst [vmem:[#allocation39_spill] sm:$0xff] %v11332_v52 }
  0x93   :  { %10959 = vset.pattern.permute.xlu1 %v16146_v51 }
  0x94   :  { %1411 = vperm.xlu1 %10959, %v1232_v54  }
  0x95   :  { %v11182_v59 = vpop.permute.xlu1 %106  ;;  %v11187_v61 = vpop.permute.xlu0 %187 }
  0x98   :  { %10961 = vset.pattern.permute.xlu1 %v16143_v53  ;;  %v11335_v53 = vrot.slane %v10096_v35, %v11226_v16 }
  0x99   :  { %v11185_v60 = vpop.permute.xlu1 %110  ;;  %1467 = vperm.xlu1 %10961, %v1232_v54   ;;  %v11192_v63 = vpop.permute.xlu0 %112  ;;  %v10097_v54 = vld [vmem:[%s16138_s2 + $0x3] ss:$8 sm:$0xf] }
  0x9a   :  { %16354 = vst [vmem:[#allocation40_spill] sm:$0xff] %v11335_v53  ;;  %v11341_v51 = vrot.slane %v10097_v54, %v11232_v19  ;;  %v11364_v48 = vrot.slane %v10097_v54, %v11223_v15  ;;  %v11367_v46 = vrot.slane %v10097_v54, %v11226_v16  ;;  %v11394_v40 = vsel %vm116_vm4, %v11192_v63, %v11182_v59 }
  0x9b   :  { %16370 = vst [vmem:[#allocation56_spill] sm:$0xff] %v11394_v40 }
  0x9c   :  { %16356 = vst [vmem:[#allocation42_spill] sm:$0xff] %v11341_v51  ;;  %16362 = vst [vmem:[#allocation48_spill] sm:$0xff] %v11364_v48 }
  0x9d   :  { %v11189_v62 = vpop.permute.xlu1 %147  ;;  %10962 = vset.pattern.permute.xlu1 %v10994_v2  ;;  %v11196_v3 = vpop.permute.xlu0 %149  ;;  %v121_v2 = vld [vmem:[%s16138_s2] ss:$8 sm:$0xf]  ;;  %16363 = vst [vmem:[#allocation49_spill] sm:$0xff] %v11367_v46  ;;  %v11399_v46 = vrot.slane %v10098_v30, %v11232_v19 }
  0x9e   :  { %v11246_v24 = vrot.slane %v121_v2, %v11223_v15  ;;  %v11252_v26 = vrot.slane %v121_v2, %v11226_v16  ;;  %v11288_v38 = vrot.slane %v121_v2, %v11232_v19  ;;  %v11291_v39 = vrot.slane %v121_v2, %v11238_v21 }
  0x9f   :  { %v11317_v2 = vrot.slane %v10096_v35, %v11232_v19  ;;  %v11356_v35 = vrot.slane %v10097_v54, %v11238_v21  ;;  %v11388_v54 = vrot.slane %v10089_v55, %v11238_v21  ;;  %16371 = vst [vmem:[#allocation57_spill] sm:$0xff] %v11399_v46 }
  0xa0   :  { %16330 = vst [vmem:[#allocation16_spill] sm:$0xff] %v11246_v24  ;;  %16332 = vst [vmem:[#allocation18_spill] sm:$0xff] %v11252_v26 }
  0xa1   :  { %v11194_v0 = vpop.permute.xlu1 %151  ;;  %v11200_v5 = vpop.permute.xlu0 %153  ;;  %16342 = vst [vmem:[#allocation28_spill] sm:$0xff] %v11288_v38  ;;  %16343 = vst [vmem:[#allocation29_spill] sm:$0xff] %v11291_v39 }
  0xa2   :  { %16349 = vst [vmem:[#allocation35_spill] sm:$0xff] %v11317_v2  ;;  %16360 = vst [vmem:[#allocation46_spill] sm:$0xff] %v11356_v35  ;;  %v11432_v35 = vrot.slane %v10090_v9, %v11238_v21 }
  0xa3   :  { %16369 = vst [vmem:[#allocation55_spill] sm:$0xff] %v11388_v54  ;;  %v10100_v54 = vld [vmem:[%s16138_s2 + $0x7] ss:$8 sm:$0xf] }
  0xa4   :  { %16379 = vst [vmem:[#allocation65_spill] sm:$0xff] %v11432_v35  ;;  %v11479_v48 = vrot.slane %v10100_v54, %v11226_v16 }
  0xa5   :  { %v11198_v4 = vpop.permute.xlu1 %108  ;;  %v11204_v8 = vpop.permute.xlu0 %191 }
  0xa6   :  { %16391 = vst [vmem:[#allocation77_spill] sm:$0xff] %v11479_v48 }
  0xa9   :  { %v11202_v6 = vpop.permute.xlu1 %189 }
  0xad   :  { %v11209_v10 = vpop.permute.xlu1 %193 }
  0xb1   :  { %v11240_v22 = vpop.permute.xlu1 %227 }
  0xb5   :  { %v11313_v56 = vpop.permute.xlu1 %229 }
  0xb6   :  { %v11214_v11 = vpop.permute.xlu0 %510 }
  0xb7   :  { %16325 = vst [vmem:[#allocation11_spill] sm:$0xff] %v11214_v11  ;;  %v11382_v11 = vrot.slane %v10098_v30, %v11226_v16 }
  0xb9   :  { %16367 = vst [vmem:[#allocation53_spill] sm:$0xff] %v11382_v11  ;;  %v11396_v49 = vpop.permute.xlu1 %233  ;;  %v11405_v11 = vrot.slane %v10090_v9, %v11223_v15  ;;  %v11455_v9 = vrot.slane %v10100_v54, %v11232_v19 }
  0xba   :  { %v11242_v23 = vpop.permute.xlu0 %231 }
  0xbb   :  { %16373 = vst [vmem:[#allocation59_spill] sm:$0xff] %v11405_v11  ;;  %16385 = vst [vmem:[#allocation71_spill] sm:$0xff] %v11455_v9  ;;  %v11476_v9 = vrot.slane %v10100_v54, %v11238_v21 }
  0xbd   :  { %16390 = vst [vmem:[#allocation76_spill] sm:$0xff] %v11476_v9 }
  0xbe   :  { %v11296_v41 = vpop.permute.xlu0 %538 }
  0xbf   :  { %16344 = vst [vmem:[#allocation30_spill] sm:$0xff] %v11296_v41  ;;  %v10099_v41 = vld [vmem:[%s16138_s2 + $0x6] ss:$8 sm:$0xf] }
  0xc0   :  { %v11426_v46 = vrot.slane %v10099_v41, %v11223_v15  ;;  %v11429_v11 = vrot.slane %v10099_v41, %v11232_v19 }
  0xc2   :  { %v11358_v7 = vpop.permute.xlu0 %269  ;;  %16377 = vst [vmem:[#allocation63_spill] sm:$0xff] %v11426_v46  ;;  %16378 = vst [vmem:[#allocation64_spill] sm:$0xff] %v11429_v11  ;;  %v143_v46 = vmul.f32 %v11246_v24, %v11394_v40  ;;  %v11465_v24 = vrot.slane %v10100_v54, %v11223_v15 }
  0xc3   :  { %16361 = vst [vmem:[#allocation47_spill] sm:$0xff] %v11358_v7  ;;  %v11385_v7 = vrot.slane %v10089_v55, %v11232_v19  ;;  %v10091_v55 = vld [vmem:[%s16138_s2 + $0x7] ss:$8 sm:$0xf] }
  0xc4   :  { %v11449_v11 = vrot.slane %v10091_v55, %v11223_v15  ;;  %v11452_v35 = vrot.slane %v10091_v55, %v11232_v19  ;;  %16387 = vst [vmem:[#allocation73_spill] sm:$0xff] %v11465_v24 }
  0xc5   :  { %16368 = vst [vmem:[#allocation54_spill] sm:$0xff] %v11385_v7  ;;  %v11417_v7 = vsel %vm116_vm4, %v11185_v60, %v11192_v63  ;;  %v11438_v63 = vrot.slane %v10099_v41, %v11238_v21 }
  0xc6   :  { %16374 = vst [vmem:[#allocation60_spill] sm:$0xff] %v11417_v7  ;;  %v11420_v30 = vpop.permute.xlu0 %273  ;;  %16383 = vst [vmem:[#allocation69_spill] sm:$0xff] %v11449_v11  ;;  %v11468_v11 = vrot.slane %v10091_v55, %v11238_v21 }
  0xc7   :  { %16375 = vst [vmem:[#allocation61_spill] sm:$0xff] %v11420_v30  ;;  %16381 = vst [vmem:[#allocation67_spill] sm:$0xff] %v11438_v63  ;;  %v11441_v30 = vrot.slane %v10099_v41, %v11226_v16  ;;  %v10101_v41 = vld [vmem:[%s16138_s2 + $0x20] ss:$8 sm:$0xf] }
  0xc8   :  { %16384 = vst [vmem:[#allocation70_spill] sm:$0xff] %v11452_v35  ;;  %16388 = vst [vmem:[#allocation74_spill] sm:$0xff] %v11468_v11  ;;  %v11471_v35 = vrot.slane %v10091_v55, %v11226_v16  ;;  %v11489_v11 = vmul.f32 %v11249_v25, %v11394_v40  ;;  %v11495_v55 = vsel %vm155_vm5, %v11189_v62, %v11196_v3 }
  0xc9   :  { %16382 = vst [vmem:[#allocation68_spill] sm:$0xff] %v11441_v30  ;;  %v146_v30 = vmul.f32 %v11252_v26, %v11417_v7  ;;  %v11482_v26 = vrot.slane %v10092_v42, %v11223_v15  ;;  %16395 = vst [vmem:[#allocation81_spill] sm:$0xff] %v11495_v55  ;;  %v11499_v54 = vrot.slane %v10101_v41, %v11223_v15 }
  0xca   :  { %v11462_v63 = vpop.permute.xlu1 %550  ;;  %16389 = vst [vmem:[#allocation75_spill] sm:$0xff] %v11471_v35  ;;  %v11473_v1 = vpop.permute.xlu0 %307  ;;  %16394 = vst [vmem:[#allocation80_spill] sm:$0xff] %v11489_v11  ;;  %v11502_v48 = vrot.slane %v10101_v41, %v11232_v19  ;;  %v11507_v40 = vmul.f32 %v11255_v27, %v11417_v7  ;;  %v11513_v25 = vsel %vm155_vm5, %v11196_v3, %v11194_v0  ;;  %v16461_v11 = vld [vmem:[#allocation65_spill] sm:$0xff] }
  0xcb   :  { %16386 = vst [vmem:[#allocation72_spill] sm:$0xff] %v11462_v63  ;;  %16392 = vst [vmem:[#allocation78_spill] sm:$0xff] %v11482_v26  ;;  %v11485_v63 = vrot.slane %v10092_v42, %v11232_v19  ;;  %v448_v19 = vrot.slane %v146_v30, %v11223_v15  ;;  %v11528_v7 = vrot.slane %v10092_v42, %v11226_v16 }
  0xcc   :  { %16396 = vst [vmem:[#allocation82_spill] sm:$0xff] %v11499_v54  ;;  %16397 = vst [vmem:[#allocation83_spill] sm:$0xff] %v11502_v48  ;;  %v11519_v54 = vsel %vm155_vm5, %v11200_v5, %v11189_v62  ;;  %v11531_v27 = vrot.slane %v10101_v41, %v11238_v21  ;;  %v11535_v3 = vmul.f32 %v11258_v28, %v11495_v55 }
  0xcd   :  { %16393 = vst [vmem:[#allocation79_spill] sm:$0xff] %v11485_v63  ;;  %v436_v63 = vrot.slane %v143_v46, %v11223_v15  ;;  %16398 = vst [vmem:[#allocation84_spill] sm:$0xff] %v11507_v40  ;;  %v11525_v46 = vrot.slane %v10092_v42, %v11238_v21  ;;  %v11539_v62 = vmul.f32 %v11261_v29, %v11495_v55  ;;  %v16458_v40 = vld [vmem:[#allocation62_spill] sm:$0xff] }
  0xce   :  { %16399 = vst [vmem:[#allocation85_spill] sm:$0xff] %v11513_v25  ;;  %16400 = vst [vmem:[#allocation86_spill] sm:$0xff] %v11519_v54  ;;  %v11522_v48 = vpop.permute.xlu1 %267  ;;  %v11545_v30 = vsel %vm155_vm5, %v11194_v0, %v11200_v5  ;;  %v11551_v42 = vsel %vm116_vm4, %v11182_v59, %v11198_v4  ;;  %v11553_v21 = vpop.permute.xlu0 %311  ;;  %v11557_v28 = vmul.f32 %v11267_v31, %v11513_v25 }
  0xcf   :  { %16401 = vst [vmem:[#allocation87_spill] sm:$0xff] %v11528_v7  ;;  %16402 = vst [vmem:[#allocation88_spill] sm:$0xff] %v11531_v27  ;;  %v11561_v55 = vmul.f32 %v11270_v32, %v11513_v25  ;;  %v11565_v0 = vmul.f32 %v11273_v33, %v11519_v54  ;;  %v11571_v59 = vsel %vm116_vm4, %v11198_v4, %v11185_v60  ;;  %v16469_v27 = vld [vmem:[#allocation67_spill] sm:$0xff] }
  0xd0   :  { %16403 = vst [vmem:[#allocation89_spill] sm:$0xff] %v11539_v62  ;;  %16404 = vst [vmem:[#allocation90_spill] sm:$0xff] %v11545_v30  ;;  %v11574_v5 = vmul.f32 %v436_v63, %v11180_v58  ;;  %v11581_v32 = vrot.slane %v10101_v41, %v11226_v16  ;;  %v11584_v33 = vmul.f32 %v448_v19, %v11180_v58  ;;  %v16452_v62 = vld [vmem:[#allocation8_spill] sm:$0xff] }
  0xd1   :  { %16405 = vst [vmem:[#allocation91_spill] sm:$0xff] %v11551_v42  ;;  %16406 = vst [vmem:[#allocation92_spill] sm:$0xff] %v11561_v55  ;;  %v11588_v31 = vmul.f32 %v11276_v34, %v11545_v30  ;;  %v144_v60 = vmul.f32 %v11288_v38, %v11551_v42  ;;  %v11596_v4 = vsel %vm195_vm6, %v11187_v61, %v11202_v6 }
  0xd2   :  { %16407 = vst [vmem:[#allocation93_spill] sm:$0xff] %v11571_v59  ;;  %16408 = vst [vmem:[#allocation94_spill] sm:$0xff] %v11581_v32  ;;  %v11598_v63 = vpop.permute.xlu1 %271  ;;  %v11606_v25 = vmul.f32 %v11282_v36, %v11519_v54  ;;  %v145_v29 = vmul.f32 %v11291_v39, %v11571_v59  ;;  %v11610_v16 = vpop.permute.xlu0 %606  ;;  %v11620_v19 = vmul.f32 %v11285_v37, %v11545_v30  ;;  %v16437_v32 = vld [vmem:[#allocation30_spill] sm:$0xff] }
  0xd3   :  { %16409 = vst [vmem:[#allocation95_spill] sm:$0xff] %v11596_v4  ;;  %v11624_v54 = vmul.f32 %v11299_v43, %v11551_v42  ;;  %v11630_v36 = vsel %vm195_vm6, %v11202_v6, %v11204_v8  ;;  %v224_v38 = vmul.f32 %v11305_v45, %v11596_v4  ;;  %v11638_v34 = vsel %vm195_vm6, %v11209_v10, %v11187_v61 }
  0xd4   :  { %16410 = vst [vmem:[#allocation96_spill] sm:$0xff] %v11606_v25  ;;  %16411 = vst [vmem:[#allocation97_spill] sm:$0xff] %v11620_v19  ;;  %v440_v42 = vrot.slane %v144_v60, %v11223_v15  ;;  %v11645_v30 = vmul.f32 %v11302_v44, %v11571_v59  ;;  %v11651_v6 = vsel %vm195_vm6, %v11204_v8, %v11209_v10 }
  0xd5   :  { %16412 = vst [vmem:[#allocation98_spill] sm:$0xff] %v11624_v54  ;;  %16413 = vst [vmem:[#allocation99_spill] sm:$0xff] %v11630_v36  ;;  %v444_v41 = vrot.slane %v145_v29, %v11223_v15  ;;  %v11663_v60 = vsel %vm235_vm7, %v11240_v22, %v11313_v56  ;;  %v11669_v8 = vsel %vm235_vm7, %v11396_v49, %v11240_v22 }
  0xd6   :  { %16414 = vst [vmem:[#allocation100_spill] sm:$0xff] %v11638_v34  ;;  %16415 = vst [vmem:[#allocation101_spill] sm:$0xff] %v11645_v30  ;;  %v11654_v37 = vpop.permute.xlu1 %578  ;;  %v11671_v10 = vpop.permute.xlu0 %351  ;;  %v225_v29 = vmul.f32 %v11308_v47, %v11630_v36  ;;  %v223_v61 = vmul.f32 %v11323_v18, %v11638_v34  ;;  %v11683_v44 = vsel %vm235_vm7, %v11313_v56, %v11242_v23 }
  0xd7   :  { %16416 = vst [vmem:[#allocation102_spill] sm:$0xff] %v11651_v6  ;;  %16417 = vst [vmem:[#allocation103_spill] sm:$0xff] %v11663_v60  ;;  %v492_v43 = vrot.slane %v224_v38, %v11223_v15  ;;  %v11690_v59 = vmul.f32 %v11317_v2, %v11596_v4  ;;  %v226_v47 = vmul.f32 %v11326_v20, %v11651_v6 }
  0xd8   :  { %16418 = vst [vmem:[#allocation104_spill] sm:$0xff] %v11669_v8  ;;  %16419 = vst [vmem:[#allocation105_spill] sm:$0xff] %v11683_v44  ;;  %v11695_v18 = vmul.f32 %v440_v42, %v11180_v58  ;;  %v264_v56 = vmul.f32 %v11338_v17, %v11663_v60  ;;  %v263_v22 = vmul.f32 %v11347_v13, %v11669_v8 }
  0xd9   :  { %v11705_v4 = vmul.f32 %v444_v41, %v11180_v58  ;;  %v11709_v2 = vmul.f32 %v11320_v12, %v11630_v36  ;;  %v11715_v42 = vsel %vm235_vm7, %v11242_v23, %v11396_v49  ;;  %v265_v45 = vmul.f32 %v11350_v50, %v11683_v44 }
  0xda   :  { %v310_v38 = vpop.permute.xlu1 %309  ;;  %16420 = vst [vmem:[#allocation106_spill] sm:$0xff] %v11715_v42  ;;  %v11719_v13 = vpop.permute.xlu0 %391  ;;  %v496_v20 = vrot.slane %v225_v29, %v11223_v15  ;;  %v488_v58 = vrot.slane %v223_v61, %v11223_v15  ;;  %v11725_v41 = vmul.f32 %v11332_v52, %v11638_v34  ;;  %v11729_v36 = vmul.f32 %v11335_v53, %v11651_v6  ;;  %v16422_v52 = vld [vmem:[#allocation48_spill] sm:$0xff] }
  0xdb   :  { %v11732_v49 = vmul.f32 %v492_v43, %v11177_v57  ;;  %v500_v12 = vrot.slane %v226_v47, %v11223_v15  ;;  %v11739_v29 = vmul.f32 %v11341_v51, %v11663_v60  ;;  %v520_v61 = vrot.slane %v264_v56, %v11223_v15  ;;  %v16424_v43 = vld [vmem:[#allocation45_spill] sm:$0xff]  ;;  %v16425_v60 = vld [vmem:[#allocation46_spill] sm:$0xff] }
  0xdc   :  { %v516_v34 = vrot.slane %v263_v22, %v11223_v15  ;;  %v11745_v6 = vmul.f32 %v16422_v52, %v11669_v8  ;;  %v266_v53 = vmul.f32 %v16424_v43, %v11715_v42  ;;  %v524_v47 = vrot.slane %v265_v45, %v11223_v15  ;;  %v16427_v56 = vld [vmem:[#allocation49_spill] sm:$0xff] }
  0xdd   :  { %16421 = vst [vmem:[#allocation107_spill] sm:$0xff] %v11739_v29  ;;  %v11754_v51 = vmul.f32 %v16425_v60, %v11683_v44  ;;  %v11758_v22 = vmul.f32 %v16427_v56, %v11715_v42  ;;  %v11764_v8 = vmul.f32 %v496_v20, %v11177_v57  ;;  %v11767_v52 = vmul.f32 %v488_v58, %v11177_v57  ;;  %v16430_v56 = vld [vmem:[#allocation47_spill] sm:$0xff]  ;;  %v16432_v58 = vld [vmem:[#allocation61_spill] sm:$0xff] }
  0xde   :  { %16423 = vst [vmem:[#allocation108_spill] sm:$0xff] %v11745_v6  ;;  %v314_v50 = vpop.permute.xlu1 %313  ;;  %v11760_v17 = vpop.permute.xlu0 %662  ;;  %v11774_v44 = vmul.f32 %v500_v12, %v11177_v57  ;;  %v11782_v20 = vsel %vm275_vm8, %v11522_v48, %v16430_v56  ;;  %v11788_v45 = vsel %vm275_vm8, %v16432_v58, %v11522_v48  ;;  %v16434_v60 = vld [vmem:[#allocation11_spill] sm:$0xff]  ;;  %v528_v42 = vrot.slane %v266_v53, %v11223_v15  ;;  %v16436_v12 = vld [vmem:[#allocation6_spill] sm:$0xff] }
  0xdf   :  { %16426 = vst [vmem:[#allocation109_spill] sm:$0xff] %v11754_v51  ;;  %16428 = vst [vmem:[#allocation110_spill] sm:$0xff] %v11758_v22  ;;  %v11791_v23 = vmul.f32 %v520_v61, %v16434_v60  ;;  %v11794_v57 = vmul.f32 %v516_v34, %v16434_v60  ;;  %v11802_v39 = vmul.f32 %v524_v47, %v16434_v60  ;;  %v16440_v29 = vld [vmem:[#allocation51_spill] sm:$0xff] }
  0xe0   :  { %16429 = vst [vmem:[#allocation111_spill] sm:$0xff] %v11760_v17  ;;  %16431 = vst [vmem:[#allocation47_spill] sm:$0xff] %v11782_v20  ;;  %v11812_v34 = vsel %vm275_vm8, %v16430_v56, %v11598_v63  ;;  %v11816_v53 = vmul.f32 %v16437_v32, %v16436_v12  ;;  %v16439_v17 = vld [vmem:[#allocation50_spill] sm:$0xff]  ;;  %v306_v6 = vmul.f32 %v16440_v29, %v11788_v45  ;;  %v16442_v56 = vld [vmem:[#allocation52_spill] sm:$0xff] }
  0xe1   :  { %16433 = vst [vmem:[#allocation61_spill] sm:$0xff] %v11788_v45  ;;  %16435 = vst [vmem:[#allocation11_spill] sm:$0xff] %v11812_v34  ;;  %v303_v47 = vmul.f32 %v16439_v17, %v11782_v20  ;;  %v11826_v61 = vsel %vm275_vm8, %v11598_v63, %v16432_v58  ;;  %v11832_v22 = vmul.f32 %v16442_v56, %v11782_v20  ;;  %v16443_v12 = vld [vmem:[#allocation53_spill] sm:$0xff]  ;;  %v16449_v56 = vld [vmem:[#allocation7_spill] sm:$0xff] }
  0xe2   :  { %v11799_v43 = vpop.permute.xlu1 %347  ;;  %16438 = vst [vmem:[#allocation30_spill] sm:$0xff] %v11816_v53  ;;  %16441 = vst [vmem:[#allocation112_spill] sm:$0xff] %v11826_v61  ;;  %v11836_v51 = vmul.f32 %v16443_v12, %v11788_v45  ;;  %v11841_v29 = vsel %vm315_vm9, %v310_v38, %v11553_v21  ;;  %v11846_v63 = vsel %vm315_vm9, %v11473_v1, %v310_v38  ;;  %v16447_v17 = vld [vmem:[#allocation9_spill] sm:$0xff]  ;;  %v16451_v12 = vld [vmem:[#allocation54_spill] sm:$0xff] }
  0xe3   :  { %v11828_v48 = vpop.permute.xlu0 %1287  ;;  %16444 = vst [vmem:[#allocation113_spill] sm:$0xff] %v11841_v29  ;;  %16445 = vst [vmem:[#allocation114_spill] sm:$0xff] %v11846_v63  ;;  %v11849_v58 = vmul.f32 %v528_v42, %v16434_v60  ;;  %v11853_v20 = vmul.f32 %v16437_v32, %v16447_v17  ;;  %v11857_v45 = vmul.f32 %v16437_v32, %v16449_v56  ;;  %v16454_v38 = vld [vmem:[#allocation55_spill] sm:$0xff] }
  0xe4   :  { %v304_v19 = vmul.f32 %v16451_v12, %v11812_v34  ;;  %v11863_v25 = vmul.f32 %v16437_v32, %v16452_v62  ;;  %v305_v60 = vmul.f32 %v16454_v38, %v11826_v61  ;;  %v11870_v42 = vsel %vm315_vm9, %v11553_v21, %v314_v50  ;;  %v16457_v32 = vld [vmem:[#allocation59_spill] sm:$0xff] }
  0xe5   :  { %16446 = vst [vmem:[#allocation115_spill] sm:$0xff] %v11849_v58  ;;  %16448 = vst [vmem:[#allocation116_spill] sm:$0xff] %v11853_v20  ;;  %v11875_v56 = vsel %vm315_vm9, %v314_v50, %v11473_v1  ;;  %v556_v12 = vrot.slane %v303_v47, %v11223_v15  ;;  %v568_v17 = vrot.slane %v306_v6, %v11223_v15  ;;  %v16459_v1 = vld [vmem:[#allocation57_spill] sm:$0xff]  ;;  %v16460_v47 = vld [vmem:[#allocation58_spill] sm:$0xff] }
  0xe6   :  { %16450 = vst [vmem:[#allocation117_spill] sm:$0xff] %v11857_v45  ;;  %v350_v55 = vpop.permute.xlu1 %349  ;;  %16453 = vst [vmem:[#allocation118_spill] sm:$0xff] %v11863_v25  ;;  %v343_v62 = vmul.f32 %v16457_v32, %v11846_v63  ;;  %v344_v38 = vmul.f32 %v16458_v40, %v11841_v29  ;;  %v1361_v21 = vrot.slane %v11832_v22, %v11223_v15  ;;  %v16462_v25 = vld [vmem:[#allocation66_spill] sm:$0xff] }
  0xe7   :  { %16455 = vst [vmem:[#allocation119_spill] sm:$0xff] %v11870_v42  ;;  %16456 = vst [vmem:[#allocation120_spill] sm:$0xff] %v11875_v56  ;;  %v1373_v30 = vrot.slane %v11836_v51, %v11223_v15  ;;  %v1151_v50 = vmul.f32 %v16459_v1, %v11812_v34  ;;  %v1152_v6 = vmul.f32 %v16460_v47, %v11826_v61  ;;  %v16464_v1 = vld [vmem:[#allocation63_spill] sm:$0xff] }
  0xe8   :  { %v1356_v54 = vpop.permute.xlu0 %1355  ;;  %v560_v32 = vrot.slane %v304_v19, %v11223_v15  ;;  %v345_v40 = vmul.f32 %v16461_v11, %v11870_v42  ;;  %v346_v45 = vmul.f32 %v16462_v25, %v11875_v56  ;;  %v11900_v22 = vsel %vm355_vm10, %v11799_v43, %v350_v55  ;;  %v16465_v19 = vld [vmem:[#allocation64_spill] sm:$0xff] }
  0xe9   :  { %16463 = vst [vmem:[#allocation121_spill] sm:$0xff] %v11900_v22  ;;  %v564_v34 = vrot.slane %v305_v60, %v11223_v15  ;;  %v11905_v61 = vmul.f32 %v16464_v1, %v11846_v63  ;;  %v11909_v47 = vmul.f32 %v16465_v19, %v11841_v29  ;;  %v11914_v25 = vsel %vm355_vm10, %v350_v55, %v11671_v10  ;;  %v16467_v11 = vld [vmem:[#allocation72_spill] sm:$0xff] }
  0xea   :  { %v354_v51 = vpop.permute.xlu1 %353  ;;  %16466 = vst [vmem:[#allocation122_spill] sm:$0xff] %v11914_v25  ;;  %v11917_v20 = vmul.f32 %v556_v12, %v16467_v11  ;;  %v584_v53 = vrot.slane %v343_v62, %v11223_v15  ;;  %v588_v60 = vrot.slane %v344_v38, %v11223_v15  ;;  %v11923_v63 = vmul.f32 %v16469_v27, %v11870_v42  ;;  %v16471_v19 = vld [vmem:[#allocation68_spill] sm:$0xff]  ;;  %v16472_v12 = vld [vmem:[#allocation69_spill] sm:$0xff]  ;;  %v16473_v42 = vld [vmem:[#allocation70_spill] sm:$0xff] }
  0xeb   :  { %v11926_v1 = vmul.f32 %v568_v17, %v16467_v11  ;;  %v1365_v29 = vrot.slane %v1151_v50, %v11223_v15  ;;  %v11931_v55 = vmul.f32 %v16471_v19, %v11875_v56  ;;  %v1369_v62 = vrot.slane %v1152_v6, %v11223_v15 }
  0xec   :  { %16468 = vst [vmem:[#allocation72_spill] sm:$0xff] %v11917_v20  ;;  %v383_v20 = vmul.f32 %v16472_v12, %v11900_v22  ;;  %v592_v38 = vrot.slane %v345_v40, %v11223_v15  ;;  %v596_v58 = vrot.slane %v346_v45, %v11223_v15  ;;  %v384_v27 = vmul.f32 %v16473_v42, %v11914_v25 }
  0xed   :  { %16470 = vst [vmem:[#allocation123_spill] sm:$0xff] %v11926_v1  ;;  %v11940_v17 = vpop.permute.xlu0 %634  ;;  %v11943_v50 = vmul.f32 %v560_v32, %v16467_v11  ;;  %v11946_v56 = vmul.f32 %v564_v34, %v16467_v11  ;;  %v11953_v45 = vmul.f32 %v584_v53, %v11654_v37  ;;  %v11956_v6 = vmul.f32 %v588_v60, %v11654_v37 }
  0xee   :  { %v388_v1 = vpop.permute.xlu1 %387  ;;  %v11962_v32 = vmul.f32 %v11465_v24, %v11900_v22  ;;  %v612_v34 = vrot.slane %v383_v20, %v11223_v15  ;;  %v11970_v53 = vsel %vm355_vm10, %v11671_v10, %v354_v51  ;;  %v11975_v60 = vsel %vm355_vm10, %v354_v51, %v11799_v43 }
  0xef   :  { %16474 = vst [vmem:[#allocation124_spill] sm:$0xff] %v11970_v53  ;;  %16475 = vst [vmem:[#allocation125_spill] sm:$0xff] %v11975_v60  ;;  %v11978_v42 = vmul.f32 %v592_v38, %v11654_v37  ;;  %v11981_v40 = vmul.f32 %v596_v58, %v11654_v37  ;;  %v16476_v20 = vrot.slane %v11725_v41, %v11223_v15 }
  0xf0   :  { %v616_v10 = vrot.slane %v384_v27, %v11223_v15  ;;  %v16478_v43 = vrot.slane %v11690_v59, %v11223_v15  ;;  %v16479_v37 = vrot.slane %v11709_v2, %v11223_v15  ;;  %v16480_v41 = vrot.slane %v11729_v36, %v11223_v15  ;;  %v16482_v59 = vld [vmem:[#allocation71_spill] sm:$0xff]  ;;  %v16483_v2 = vld [vmem:[#allocation74_spill] sm:$0xff] }
  0xf1   :  { %v11987_v11 = vmul.f32 %v16476_v20, %v11828_v48  ;;  %v11990_v19 = vpop.permute.xlu0 %1439  ;;  %v12016_v20 = vmul.f32 %v16482_v59, %v11914_v25  ;;  %v386_v24 = vmul.f32 %v11471_v35, %v11975_v60  ;;  %v12025_v36 = vmul.f32 %v612_v34, %v11610_v16 }
  0xf2   :  { %16477 = vst [vmem:[#allocation126_spill] sm:$0xff] %v11990_v19  ;;  %v390_v22 = vpop.permute.xlu1 %389  ;;  %v11996_v51 = vmul.f32 %v16478_v43, %v11828_v48  ;;  %v12002_v58 = vmul.f32 %v16479_v37, %v11828_v48  ;;  %v12008_v27 = vmul.f32 %v16480_v41, %v11828_v48  ;;  %v385_v37 = vmul.f32 %v16483_v2, %v11970_v53 }
  0xf3   :  { %v12012_v38 = vsel %vm395_vm11, %v388_v1, %v390_v22  ;;  %v12027_v48 = vmul.f32 %v1361_v21, %v1356_v54  ;;  %v12029_v41 = vmul.f32 %v1365_v29, %v1356_v54  ;;  %v12034_v25 = vsel %vm395_vm11, %v390_v22, %v11719_v13  ;;  %v16485_v21 = vld [vmem:[#allocation77_spill] sm:$0xff] }
  0xf4   :  { %16481 = vst [vmem:[#allocation127_spill] sm:$0xff] %v12012_v38  ;;  %16484 = vst [vmem:[#allocation128_spill] sm:$0xff] %v12034_v25  ;;  %v12037_v43 = vmul.f32 %v616_v10, %v11610_v16  ;;  %v12039_v59 = vmul.f32 %v1369_v62, %v1356_v54  ;;  %v12041_v2 = vmul.f32 %v1373_v30, %v1356_v54 }
  0xf5   :  { %v423_v34 = vmul.f32 %v11482_v26, %v12012_v38  ;;  %v12047_v29 = vmul.f32 %v11476_v9, %v11970_v53  ;;  %v12051_v12 = vmul.f32 %v16485_v21, %v11975_v60  ;;  %v620_v30 = vrot.slane %v385_v37, %v11223_v15  ;;  %v16486_v53 = vld [vmem:[#allocation79_spill] sm:$0xff]  ;;  %v16487_v60 = vld [vmem:[#allocation82_spill] sm:$0xff] }
  0xf6   :  { %v394_v35 = vpop.permute.xlu1 %393  ;;  %v455_v22 = vpop.permute.xlu0 %454  ;;  %v624_v10 = vrot.slane %v386_v24, %v11223_v15  ;;  %v424_v9 = vmul.f32 %v16486_v53, %v12034_v25  ;;  %v12068_v21 = vmul.f32 %v16487_v60, %v12012_v38  ;;  %v16488_v26 = vrot.slane %v11565_v0, %v11223_v15  ;;  %v16492_v38 = vld [vmem:[#allocation83_spill] sm:$0xff] }
  0xf7   :  { %v12056_v62 = vsel %vm395_vm11, %v11719_v13, %v394_v35  ;;  %v12060_v54 = vsel %vm395_vm11, %v394_v35, %v388_v1  ;;  %v16489_v14 = vrot.slane %v11535_v3, %v11223_v15  ;;  %v16490_v1 = vrot.slane %v11557_v28, %v11223_v15 }
  0xf8   :  { %v473_v13 = vmul.f32 %v16488_v26, %v455_v22  ;;  %v16491_v24 = vrot.slane %v11588_v31, %v11223_v15  ;;  %v640_v19 = vrot.slane %v423_v34, %v11223_v15  ;;  %v12085_v60 = vmul.f32 %v16492_v38, %v12034_v25 }
  0xf9   :  { %v474_v35 = vmul.f32 %v16489_v14, %v455_v22  ;;  %v475_v37 = vmul.f32 %v16490_v1, %v455_v22  ;;  %v425_v26 = vmul.f32 %v11525_v46, %v12056_v62  ;;  %v426_v14 = vmul.f32 %v11528_v7, %v12060_v54 }
  0xfa   :  { %v476_v53 = vmul.f32 %v16491_v24, %v455_v22  ;;  %v1236_v3 = vpop.permute.xlu1 %1235  ;;  %v477_v28 = vadd.f32 %v473_v13, %v11574_v5  ;;  %v627_v34 = vmul.f32 %v620_v30, %v11610_v16  ;;  %v644_v1 = vrot.slane %v424_v9, %v11223_v15  ;;  %v16493_v13 = vld [vmem:[#allocation115_spill] sm:$0xff]  ;;  %v16513_v9 = vld [vmem:[#allocation92_spill] sm:$0xff] }
  0xfb   :  { %v478_v0 = vadd.f32 %v474_v35, %v11695_v18  ;;  %v479_v31 = vadd.f32 %v475_v37, %v11705_v4  ;;  %v648_v24 = vrot.slane %v425_v26, %v11223_v15  ;;  %v652_v25 = vrot.slane %v426_v14, %v11223_v15  ;;  %v16495_v26 = vld [vmem:[#allocation30_spill] sm:$0xff] }
  0xfc   :  { %v480_v22 = vadd.f32 %v476_v53, %v11584_v33  ;;  %v505_v38 = vadd.f32 %v11767_v52, %v477_v28  ;;  %v628_v4 = vmul.f32 %v624_v10, %v11610_v16  ;;  %v653_v33 = vmul.f32 %v640_v19, %v11940_v17  ;;  %v16494_v10 = vld [vmem:[#allocation88_spill] sm:$0xff] }
  0xfd   :  { %v506_v7 = vadd.f32 %v11732_v49, %v478_v0  ;;  %v507_v5 = vadd.f32 %v11764_v8, %v479_v31  ;;  %v1445_v53 = vrot.slane %v12068_v21, %v11223_v15  ;;  %v655_v16 = vmul.f32 %v648_v24, %v11940_v17  ;;  %v16499_v0 = vld [vmem:[#allocation80_spill] sm:$0xff] }
  0xfe   :  { %v508_v18 = vadd.f32 %v11774_v44, %v480_v22  ;;  %v533_v30 = vadd.f32 %v11794_v57, %v505_v38  ;;  %v654_v44 = vmul.f32 %v644_v1, %v11940_v17  ;;  %v656_v19 = vmul.f32 %v652_v25, %v11940_v17  ;;  %v16496_v57 = vld [vmem:[#allocation116_spill] sm:$0xff]  ;;  %v16501_v1 = vld [vmem:[#allocation98_spill] sm:$0xff]  ;;  %v16503_v17 = vld [vmem:[#allocation101_spill] sm:$0xff] }
  0xff   :  { %v534_v52 = vadd.f32 %v11791_v23, %v506_v7  ;;  %v535_v49 = vadd.f32 %v11802_v39, %v507_v5  ;;  %v1260_v35 = vpop.permute.xlu1 %1259  ;;  %v12118_v37 = vmul.f32 %v16494_v10, %v12056_v62  ;;  %v16497_v7 = vld [vmem:[#allocation117_spill] sm:$0xff]  ;;  %v16498_v39 = vld [vmem:[#allocation118_spill] sm:$0xff]  ;;  %v16500_v31 = vrot.slane %v16499_v0, %v11223_v15  ;;  %v16509_v0 = vld [vmem:[#allocation96_spill] sm:$0xff] }
 0x100   :  { %v536_v8 = vadd.f32 %v16493_v13, %v508_v18  ;;  %v545_v14 = vadd.f32 %v16495_v26, %v533_v30  ;;  %v16502_v24 = vrot.slane %v16501_v1, %v11223_v15  ;;  %v16504_v5 = vrot.slane %v16503_v17, %v11223_v15  ;;  %v16505_v13 = vld [vmem:[#allocation84_spill] sm:$0xff] }
 0x101   :  { %v546_v38 = vadd.f32 %v16496_v57, %v534_v52  ;;  %v547_v23 = vadd.f32 %v16497_v7, %v535_v49  ;;  %v1254_v22 = vmul.f32 %v16500_v31, %v1236_v3  ;;  %v16506_v30 = vrot.slane %v16505_v13, %v11223_v15  ;;  %v16507_v26 = vld [vmem:[#allocation72_spill] sm:$0xff]  ;;  %v16508_v7 = vld [vmem:[#allocation123_spill] sm:$0xff] }
 0x102   :  { %v548_v28 = vadd.f32 %v16498_v39, %v536_v8  ;;  %v1255_v25 = vmul.f32 %v16502_v24, %v1236_v3  ;;  %v1256_v18 = vmul.f32 %v16504_v5, %v1236_v3  ;;  %v573_v49 = vadd.f32 %v16507_v26, %v545_v14  ;;  %v16511_v24 = vld [vmem:[#allocation89_spill] sm:$0xff] }
 0x103   :  { %v1257_v52 = vmul.f32 %v16506_v30, %v1236_v3  ;;  %v574_v8 = vadd.f32 %v11943_v50, %v546_v38  ;;  %v575_v57 = vadd.f32 %v11946_v56, %v547_v23  ;;  %v16510_v31 = vrot.slane %v16509_v0, %v11223_v15  ;;  %v16515_v30 = vld [vmem:[#allocation97_spill] sm:$0xff] }
 0x104   :  { %v576_v39 = vadd.f32 %v16508_v7, %v548_v28  ;;  %v16512_v17 = vrot.slane %v16511_v24, %v11223_v15  ;;  %v16514_v13 = vrot.slane %v16513_v9, %v11223_v15  ;;  %v16516_v14 = vrot.slane %v16515_v30, %v11223_v15  ;;  %v1316_v38 = vpop.permute.xlu1 %1315 }
 0x105   :  { %v1278_v1 = vmul.f32 %v16510_v31, %v1260_v35  ;;  %v601_v56 = vadd.f32 %v11953_v45, %v573_v49  ;;  %v602_v23 = vadd.f32 %v11956_v6, %v574_v8  ;;  %v603_v28 = vadd.f32 %v11978_v42, %v575_v57 }
 0x106   :  { %v1279_v5 = vmul.f32 %v16512_v17, %v1260_v35  ;;  %v1280_v3 = vmul.f32 %v16514_v13, %v1260_v35  ;;  %v1281_v50 = vmul.f32 %v16516_v14, %v1260_v35  ;;  %v604_v26 = vadd.f32 %v11981_v40, %v576_v39  ;;  %v16526_v39 = vld [vmem:[#allocation94_spill] sm:$0xff] }
 0x107   :  { %v1282_v7 = vadd.f32 %v1278_v1, %v1254_v22  ;;  %v629_v9 = vadd.f32 %v12025_v36, %v601_v56  ;;  %v630_v17 = vadd.f32 %v12037_v43, %v602_v23  ;;  %v631_v13 = vadd.f32 %v627_v34, %v603_v28  ;;  %v16519_v43 = vld [vmem:[#allocation107_spill] sm:$0xff] }
 0x108   :  { %v1283_v0 = vadd.f32 %v1279_v5, %v1255_v25  ;;  %v1284_v31 = vadd.f32 %v1280_v3, %v1256_v18  ;;  %v1285_v24 = vadd.f32 %v1281_v50, %v1257_v52  ;;  %v632_v30 = vadd.f32 %v628_v4, %v604_v26  ;;  %v16517_v52 = vld [vmem:[#allocation108_spill] sm:$0xff] }
 0x109   :  { %v1310_v35 = vadd.f32 %v11987_v11, %v1282_v7  ;;  %v657_v49 = vadd.f32 %v653_v33, %v629_v9  ;;  %v658_v40 = vadd.f32 %v654_v44, %v630_v17  ;;  %v659_v22 = vadd.f32 %v655_v16, %v631_v13  ;;  %v1344_v18 = vpop.permute.xlu1 %1343  ;;  %v16521_v11 = vld [vmem:[#allocation109_spill] sm:$0xff]  ;;  %v16525_v44 = vld [vmem:[#allocation111_spill] sm:$0xff]  ;;  %v16527_v7 = vld [vmem:[#allocation6_spill] sm:$0xff] }
 0x10a   :  { %v1311_v45 = vadd.f32 %v11996_v51, %v1283_v0  ;;  %v1312_v6 = vadd.f32 %v12002_v58, %v1284_v31  ;;  %v1313_v42 = vadd.f32 %v12008_v27, %v1285_v24  ;;  %v660_v25 = vadd.f32 %v656_v19, %v632_v30  ;;  %v16523_v58 = vld [vmem:[#allocation110_spill] sm:$0xff]  ;;  %v16528_v31 = vld [vmem:[#allocation9_spill] sm:$0xff]  ;;  %v16529_v9 = vld [vmem:[#allocation7_spill] sm:$0xff] }
 0x10b   :  { %v16518_v36 = vrot.slane %v16517_v52, %v11223_v15  ;;  %v16520_v34 = vrot.slane %v16519_v43, %v11223_v15  ;;  %v16522_v51 = vrot.slane %v16521_v11, %v11223_v15  ;;  %v16524_v27 = vrot.slane %v16523_v58, %v11223_v15  ;;  %v16530_v13 = vld [vmem:[#allocation8_spill] sm:$0xff] }
 0x10c   :  { %v665_v16 = vadd.f32 %v16525_v44, %v657_v49  ;;  %v666_v19 = vadd.f32 %v16525_v44, %v658_v40  ;;  %v1231_v1 = vmul.f32 %v16526_v39, %v12060_v54  ;;  %v1453_v5 = vrot.slane %v12118_v37, %v11223_v15 }
 0x10d   :  { %v1334_v8 = vmul.f32 %v16518_v36, %v1316_v38  ;;  %v1335_v4 = vmul.f32 %v16520_v34, %v1316_v38  ;;  %v1336_v57 = vmul.f32 %v16522_v51, %v1316_v38  ;;  %v1337_v33 = vmul.f32 %v16524_v27, %v1316_v38 }
 0x10e   :  { %v12180_v23 = vmax.f32 %v665_v16, 0.0  ;;  %v12182_v28 = vmax.f32 %v666_v19, 0.0  ;;  %v667_v38 = vadd.f32 %v16525_v44, %v659_v22  ;;  %v668_v26 = vadd.f32 %v16525_v44, %v660_v25  ;;  %v1384_v30 = vpop.permute.xlu1 %1383  ;;  %v16536_v16 = vld [vmem:[#allocation126_spill] sm:$0xff] }
 0x10f   :  { %v1338_v3 = vadd.f32 %v1334_v8, %v1310_v35  ;;  %v1339_v14 = vadd.f32 %v1335_v4, %v1311_v45  ;;  %v1340_v50 = vadd.f32 %v1336_v57, %v1312_v6  ;;  %v1341_v56 = vadd.f32 %v1337_v33, %v1313_v42 }
 0x110   :  { %v1346_v0 = vmul.f32 %v1344_v18, %v16527_v7  ;;  %v1347_v24 = vmul.f32 %v1344_v18, %v16528_v31  ;;  %v1348_v17 = vmul.f32 %v1344_v18, %v16529_v9  ;;  %v1349_v37 = vmul.f32 %v1344_v18, %v16530_v13  ;;  %673 = vrot.lane.b32.xlu1 %v12180_v23, %s10998_s7 }
 0x111   :  { %675 = vrot.lane.b32.xlu0 %v12182_v28, %s10998_s7  ;;  %v16531_v35 = vrot.slane %v11905_v61, %v11223_v15  ;;  %v16532_v6 = vrot.slane %v11909_v47, %v11223_v15  ;;  %v16533_v49 = vrot.slane %v11923_v63, %v11223_v15  ;;  %v12203_v36 = vmax.f32 %v667_v38, 0.0 }
 0x112   :  { %v1350_v22 = vadd.f32 %v1346_v0, %v1338_v3  ;;  %v1351_v25 = vadd.f32 %v1347_v24, %v1339_v14  ;;  %v1352_v18 = vadd.f32 %v1348_v17, %v1340_v50  ;;  %v1353_v52 = vadd.f32 %v1349_v37, %v1341_v56 }
 0x113   :  { %v1402_v45 = vmul.f32 %v16531_v35, %v1384_v30  ;;  %v1403_v42 = vmul.f32 %v16532_v6, %v1384_v30  ;;  %v1404_v40 = vmul.f32 %v16533_v49, %v1384_v30  ;;  %v12205_v8 = vmax.f32 %v668_v26, 0.0 }
 0x114   :  { %v1457_v43 = vrot.slane %v1231_v1, %v11223_v15  ;;  %v16534_v61 = vrot.slane %v11931_v55, %v11223_v15  ;;  %v1378_v47 = vadd.f32 %v12027_v48, %v1350_v22  ;;  %v1379_v4 = vadd.f32 %v12029_v41, %v1351_v25  ;;  %677 = vrot.lane.b32.xlu1 %v12203_v36, %s10998_s7  ;;  %v1412_v55 = vpop.permute.xlu1 %1411 }
 0x115   :  { %v1380_v63 = vadd.f32 %v12039_v59, %v1352_v18  ;;  %v1381_v11 = vadd.f32 %v12041_v2, %v1353_v52  ;;  %v1421_v51 = vrot.slane %v12016_v20, %v11223_v15  ;;  %v1425_v57 = vrot.slane %v12047_v29, %v11223_v15  ;;  %679 = vrot.lane.b32.xlu0 %v12205_v8, %s10998_s7 }
 0x116   :  { %v1405_v34 = vmul.f32 %v16534_v61, %v1384_v30  ;;  %v1429_v58 = vrot.slane %v12051_v12, %v11223_v15  ;;  %v1406_v48 = vadd.f32 %v1402_v45, %v1378_v47  ;;  %v1407_v59 = vadd.f32 %v1403_v42, %v1379_v4  ;;  %v16541_v61 = vld [vmem:[#allocation10_spill] sm:$0xff] }
 0x117   :  { %v1408_v41 = vadd.f32 %v1404_v40, %v1380_v63  ;;  %v16535_v20 = vrot.slane %v11962_v32, %v11223_v15  ;;  %v1431_v33 = vmul.f32 %v1421_v51, %v1412_v55  ;;  %v1432_v29 = vmul.f32 %v1425_v57, %v1412_v55 }
 0x118   :  { %v1409_v2 = vadd.f32 %v1405_v34, %v1381_v11  ;;  %v1433_v44 = vmul.f32 %v1429_v58, %v1412_v55  ;;  %v1458_v12 = vmul.f32 %v1445_v53, %v16536_v16  ;;  %v16537_v19 = vrot.slane %v12085_v60, %v11223_v15  ;;  %689 = vrot.lane.b32.xlu1 %v12180_v23, %s10999_s8  ;;  %v1468_v37 = vpop.permute.xlu1 %1467 }
 0x119   :  { %v1430_v27 = vmul.f32 %v16535_v20, %v1412_v55  ;;  %v1460_v3 = vmul.f32 %v1453_v5, %v16536_v16  ;;  %v1461_v14 = vmul.f32 %v1457_v43, %v16536_v16  ;;  %v1435_v32 = vadd.f32 %v1431_v33, %v1407_v59  ;;  %691 = vrot.lane.b32.xlu0 %v12182_v28, %s10999_s8  ;;  %v16543_v33 = vld [vmem:[#allocation28_spill] sm:$0xff] }
 0x11a   :  { %v1459_v1 = vmul.f32 %v16537_v19, %v16536_v16  ;;  %v1436_v56 = vadd.f32 %v1432_v29, %v1408_v41  ;;  %v1437_v38 = vadd.f32 %v1433_v44, %v1409_v2  ;;  %v16538_v60 = vlaneseq  ;;  %v16544_v16 = vld [vmem:[#allocation20_spill] sm:$0xff] }
 0x11b   :  { %v1434_v50 = vadd.f32 %v1430_v27, %v1406_v48  ;;  %v11011_v24 = vmov 1.0   ;;  %v16284_v17 = vmov 0.0   ;;  %v11013_v42 = vmov 1966171168  }
 0x11c   :  { %v1463_v53 = vadd.f32 %v1459_v1, %v1435_v32  ;;  %v1464_v26 = vadd.f32 %v1460_v3, %v1436_v56  ;;  %v1465_v0 = vadd.f32 %v1461_v14, %v1437_v38  ;;  %693 = vrot.lane.b32.xlu1 %v12203_v36, %s10999_s8  ;;  %vm12275_vm12 = vcmp.lt.s32.totalorder %v16538_v60, 512  ;;  %38 = vst [vmem:[#allocation2 + $0x128] sm:$0xfe] %v16284_v17  ;;  %v16545_v56 = vld [vmem:[#allocation29_spill] sm:$0xff]  ;;  %v16547_v60 = vld [vmem:[#allocation16_spill] sm:$0xff] }
 0x11d   :  { %v1462_v21 = vadd.f32 %v1458_v12, %v1434_v50  ;;  %695 = vrot.lane.b32.xlu0 %v12205_v8, %s10999_s8  ;;  %35 = vst.msk [vmem:[#allocation2 + $0x120] ss:$8 sm:$0xf] %vm12275_vm12, %v11011_v24  ;;  %37 = vst [vmem:[#allocation2 + $0x120] sm:$0xfe] %v16284_v17  ;;  %946 = vmatprep.mubr.f32.mxu0 %v16284_v17  ;;  %v10054_v49 = vunpack.c.l.s4 %v11013_v42  ;;  %v10051_v25 = vcombine.low %v16527_v7, %v16528_v31  ;;  %v16548_v24 = vld [vmem:[#allocation18_spill] sm:$0xff] }
 0x11e   :  { %39 = vst [vmem:[#allocation2 + $0x130] sm:$0xfe] %v16284_v17  ;;  %40 = vst [vmem:[#allocation2 + $0x138] sm:$0xfe] %v16284_v17  ;;  %1017 = vmatprep.mubr.f32.mxu1 %v16284_v17  ;;  %v1471_v35 = vadd.f32 %v1468_v37, %v1463_v53  ;;  %v1472_v45 = vadd.f32 %v1468_v37, %v1464_v26  ;;  %v1473_v40 = vadd.f32 %v1468_v37, %v1465_v0 }
 0x11f   :  { %v1470_v30 = vadd.f32 %v1468_v37, %v1462_v21  ;;  %v10052_v18 = vcombine.low %v16529_v9, %v16530_v13  ;;  %v10055_v52 = vunpack.c.0.s8 %v10054_v49  ;;  %v16546_v21 = vld [vmem:[#allocation22_spill] sm:$0xff] }
 0x120   :  { %705 = vrot.lane.b32.xlu1 %v12180_v23, %s10997_s0  ;;  %v12309_v22 = vmax.f32 %v1471_v35, 0.0  ;;  %v12319_v43 = vmax.f32 %v1472_v45, 0.0  ;;  %v12322_v47 = vmax.f32 %v1473_v40, 0.0  ;;  %v16550_v45 = vld [vmem:[#allocation25_spill] sm:$0xff] }
 0x121   :  { %707 = vrot.lane.b32.xlu0 %v12182_v28, %s10997_s0  ;;  %v12307_v6 = vmax.f32 %v1470_v30, 0.0  ;;  %v10058_v34 = vsub.s32 %v10055_v52, %v16541_v61  ;;  %v16549_v30 = vld [vmem:[#allocation24_spill] sm:$0xff] }
 0x123   :  { %v10059_v4 = vrot.slane %v10051_v25, %v10058_v34  ;;  %v10066_v63 = vrot.slane %v10052_v18, %v10058_v34 }
 0x124   :  { %709 = vrot.lane.b32.xlu1 %v12203_v36, %s10997_s0 }
 0x125   :  { %711 = vrot.lane.b32.xlu0 %v12205_v8, %s10997_s0  ;;  %v10067_v11 = vcombine.low %v10059_v4, %v10066_v63 }
 0x127   :  { %v10074_v51 = vrot.slane %v10067_v11, %v10058_v34 }
 0x128   :  { %721 = vrot.lane.b32.xlu1 %v12180_v23, %s11000_s9 }
 0x129   :  { %723 = vrot.lane.b32.xlu0 %v12182_v28, %s11000_s9  ;;  %10240 = vst.msk [vmem:[%s16140_s4 + $0x20] ss:$8 sm:$0xf] %vm12275_vm12, %v10074_v51 }
 0x12c   :  { %725 = vrot.lane.b32.xlu1 %v12203_v36, %s11000_s9 }
 0x12d   :  { %727 = vrot.lane.b32.xlu0 %v12205_v8, %s11000_s9 }
 0x130   :  { %737 = vrot.lane.b32.xlu1 %v12180_v23, %s11002_s10 }
 0x131   :  { %739 = vrot.lane.b32.xlu0 %v12182_v28, %s11002_s10 }
 0x134   :  { %741 = vrot.lane.b32.xlu1 %v12203_v36, %s11002_s10 }
 0x135   :  { %743 = vrot.lane.b32.xlu0 %v12205_v8, %s11002_s10 }
 0x138   :  { %753 = vrot.lane.b32.xlu1 %v12180_v23, %s11004_s11 }
 0x139   :  { %755 = vrot.lane.b32.xlu0 %v12182_v28, %s11004_s11 }
 0x13c   :  { %757 = vrot.lane.b32.xlu1 %v12203_v36, %s11004_s11 }
 0x13d   :  { %759 = vrot.lane.b32.xlu0 %v12205_v8, %s11004_s11 }
 0x140   :  { %769 = vrot.lane.b32.xlu1 %v12180_v23, %s11006_s12 }
 0x141   :  { %771 = vrot.lane.b32.xlu0 %v12182_v28, %s11006_s12 }
 0x144   :  { %773 = vrot.lane.b32.xlu1 %v12203_v36, %s11006_s12 }
 0x145   :  { %775 = vrot.lane.b32.xlu0 %v12205_v8, %s11006_s12 }
 0x148   :  { %785 = vrot.lane.b32.xlu1 %v12180_v23, %s11008_s13 }
 0x149   :  { %787 = vrot.lane.b32.xlu0 %v12182_v28, %s11008_s13 }
 0x14c   :  { %789 = vrot.lane.b32.xlu1 %v12203_v36, %s11008_s13 }
 0x14d   :  { %791 = vrot.lane.b32.xlu0 %v12205_v8, %s11008_s13 }
 0x150   :  { %1478 = vrot.lane.b32.xlu1 %v12307_v6, %s10998_s7 }
 0x151   :  { %1480 = vrot.lane.b32.xlu0 %v12309_v22, %s10998_s7 }
 0x154   :  { %1482 = vrot.lane.b32.xlu1 %v12319_v43, %s10998_s7 }
 0x155   :  { %1484 = vrot.lane.b32.xlu0 %v12322_v47, %s10998_s7 }
 0x158   :  { %1494 = vrot.lane.b32.xlu1 %v12307_v6, %s10999_s8 }
 0x159   :  { %1496 = vrot.lane.b32.xlu0 %v12309_v22, %s10999_s8 }
 0x15c   :  { %1498 = vrot.lane.b32.xlu1 %v12319_v43, %s10999_s8 }
 0x15d   :  { %1500 = vrot.lane.b32.xlu0 %v12322_v47, %s10999_s8 }
 0x160   :  { %1510 = vrot.lane.b32.xlu1 %v12307_v6, %s10997_s0 }
 0x161   :  { %1512 = vrot.lane.b32.xlu0 %v12309_v22, %s10997_s0 }
 0x164   :  { %1514 = vrot.lane.b32.xlu1 %v12319_v43, %s10997_s0 }
 0x165   :  { %1516 = vrot.lane.b32.xlu0 %v12322_v47, %s10997_s0 }
 0x168   :  { %1526 = vrot.lane.b32.xlu1 %v12307_v6, %s11000_s9 }
 0x169   :  { %1528 = vrot.lane.b32.xlu0 %v12309_v22, %s11000_s9 }
 0x16c   :  { %1530 = vrot.lane.b32.xlu1 %v12319_v43, %s11000_s9 }
 0x16d   :  { %1532 = vrot.lane.b32.xlu0 %v12322_v47, %s11000_s9 }
 0x170   :  { %1542 = vrot.lane.b32.xlu1 %v12307_v6, %s11002_s10 }
 0x171   :  { %1544 = vrot.lane.b32.xlu0 %v12309_v22, %s11002_s10 }
 0x174   :  { %1546 = vrot.lane.b32.xlu1 %v12319_v43, %s11002_s10 }
 0x175   :  { %1548 = vrot.lane.b32.xlu0 %v12322_v47, %s11002_s10 }
 0x178   :  { %1558 = vrot.lane.b32.xlu1 %v12307_v6, %s11004_s11 }
 0x179   :  { %1560 = vrot.lane.b32.xlu0 %v12309_v22, %s11004_s11 }
 0x17c   :  { %1562 = vrot.lane.b32.xlu1 %v12319_v43, %s11004_s11 }
 0x17d   :  { %1564 = vrot.lane.b32.xlu0 %v12322_v47, %s11004_s11 }
 0x180   :  { %1574 = vrot.lane.b32.xlu1 %v12307_v6, %s11006_s12 }
 0x181   :  { %1576 = vrot.lane.b32.xlu0 %v12309_v22, %s11006_s12 }
 0x182   :  { %v674_v57 = vpop.permute.xlu1 %673 }
 0x183   :  { %v676_v58 = vpop.permute.xlu0 %675 }
 0x184   :  { %1578 = vrot.lane.b32.xlu1 %v12319_v43, %s11006_s12  ;;  %v683_v41 = vsel %vm116_vm4, %v674_v57, %v676_v58 }
 0x185   :  { %1580 = vrot.lane.b32.xlu0 %v12322_v47, %s11006_s12  ;;  %v686_v29 = vmul.f32 %v683_v41, %v16543_v33 }
 0x186   :  { %v678_v55 = vpop.permute.xlu1 %677 }
 0x187   :  { %v680_v48 = vpop.permute.xlu0 %679  ;;  %v682_v44 = vsel %vm116_vm4, %v676_v58, %v678_v55 }
 0x188   :  { %1590 = vrot.lane.b32.xlu1 %v12307_v6, %s11008_s13  ;;  %v681_v19 = vsel %vm116_vm4, %v678_v55, %v680_v48  ;;  %v684_v1 = vsel %vm116_vm4, %v680_v48, %v674_v57  ;;  %v687_v38 = vmul.f32 %v682_v44, %v16545_v56  ;;  %v16551_v57 = vld [vmem:[#allocation33_spill] sm:$0xff]  ;;  %v16556_v56 = vld [vmem:[#allocation38_spill] sm:$0xff] }
 0x189   :  { %1592 = vrot.lane.b32.xlu0 %v12309_v22, %s11008_s13  ;;  %v685_v5 = vmul.f32 %v684_v1, %v16547_v60  ;;  %v688_v37 = vmul.f32 %v681_v19, %v16548_v24  ;;  %v16552_v48 = vld [vmem:[#allocation41_spill] sm:$0xff]  ;;  %v16554_v19 = vld [vmem:[#allocation44_spill] sm:$0xff] }
 0x18a   :  { %v690_v2 = vpop.permute.xlu1 %689 }
 0x18b   :  { %v692_v20 = vpop.permute.xlu0 %691 }
 0x18c   :  { %v699_v27 = vsel %vm155_vm5, %v690_v2, %v692_v20  ;;  %1594 = vrot.lane.b32.xlu1 %v12319_v43, %s11008_s13 }
 0x18d   :  { %v702_v12 = vmul.f32 %v699_v27, %v16544_v16  ;;  %1596 = vrot.lane.b32.xlu0 %v12322_v47, %s11008_s13  ;;  %v16553_v16 = vld [vmem:[#allocation34_spill] sm:$0xff] }
 0x18e   :  { %v694_v3 = vpop.permute.xlu1 %693 }
 0x18f   :  { %v698_v14 = vsel %vm155_vm5, %v692_v20, %v694_v3  ;;  %v696_v50 = vpop.permute.xlu0 %695  ;;  %v10241_v32 = vpack.c.bf16 %v702_v12, %v686_v29 }
 0x190   :  { %v703_v53 = vmul.f32 %v698_v14, %v16546_v21  ;;  %v697_v26 = vsel %vm155_vm5, %v694_v3, %v696_v50  ;;  %v700_v0 = vsel %vm155_vm5, %v696_v50, %v690_v2  ;;  %v16555_v50 = vld [vmem:[#allocation37_spill] sm:$0xff]  ;;  %v16557_v21 = vld [vmem:[#allocation43_spill] sm:$0xff] }
 0x191   :  { %v701_v35 = vmul.f32 %v700_v0, %v16549_v30  ;;  %v704_v42 = vmul.f32 %v697_v26, %v16550_v45  ;;  %10242 = vmatprep.subr.bf16.mxu0 %v10241_v32  ;;  %v16558_v26 = vld [vmem:[#allocation45_spill] sm:$0xff] }
 0x192   :  { %v706_v49 = vpop.permute.xlu1 %705  ;;  %v10263_v40 = vpack.c.bf16 %v703_v53, %v687_v38 }
 0x193   :  { %v708_v25 = vpop.permute.xlu0 %707  ;;  %v10243_v18 = vpack.c.bf16 %v701_v35, %v685_v5  ;;  %v10261_v52 = vpack.c.bf16 %v704_v42, %v688_v37  ;;  %v16559_v42 = vld [vmem:[#allocation50_spill] sm:$0xff] }
 0x194   :  { %v715_v4 = vsel %vm195_vm6, %v706_v49, %v708_v25 }
 0x195   :  { %10244 = vmatpush1.bf16.msra.mxu0 %v10243_v18  ;;  %10262 = vmatprep.subr.bf16.mxu1 %v10261_v52  ;;  %v718_v58 = vmul.f32 %v715_v4, %v16551_v57  ;;  %v16560_v18 = vld [vmem:[#allocation54_spill] sm:$0xff]  ;;  %v16561_v4 = vld [vmem:[#allocation55_spill] sm:$0xff] }
 0x196   :  { %v710_v61 = vpop.permute.xlu1 %709  ;;  %10264 = vmatpush1.bf16.msra.mxu1 %v10263_v40 }
 0x197   :  { %v712_v34 = vpop.permute.xlu0 %711  ;;  %v714_v55 = vsel %vm195_vm6, %v708_v25, %v710_v61 }
 0x198   :  { %v713_v2 = vsel %vm195_vm6, %v710_v61, %v712_v34  ;;  %v716_v20 = vsel %vm195_vm6, %v712_v34, %v706_v49  ;;  %v719_v12 = vmul.f32 %v714_v55, %v16553_v16 }
 0x199   :  { %v717_v32 = vmul.f32 %v716_v20, %v16555_v50  ;;  %v720_v38 = vmul.f32 %v713_v2, %v16556_v56 }
 0x19a   :  { %v722_v63 = vpop.permute.xlu1 %721 }
 0x19b   :  { %v724_v11 = vpop.permute.xlu0 %723 }
 0x19c   :  { %v731_v51 = vsel %vm235_vm7, %v722_v63, %v724_v11 }
 0x19d   :  { %v734_v41 = vmul.f32 %v731_v51, %v16552_v48 }
 0x19e   :  { %v726_v27 = vpop.permute.xlu1 %725 }
 0x19f   :  { %v730_v33 = vsel %vm235_vm7, %v724_v11, %v726_v27  ;;  %v728_v29 = vpop.permute.xlu0 %727  ;;  %v10245_v44 = vpack.c.bf16 %v734_v41, %v718_v58  ;;  %v16562_v11 = vld [vmem:[#allocation51_spill] sm:$0xff] }
 0x1a0   :  { %v735_v1 = vmul.f32 %v730_v33, %v16554_v19  ;;  %v729_v3 = vsel %vm235_vm7, %v726_v27, %v728_v29  ;;  %v732_v14 = vsel %vm235_vm7, %v728_v29, %v722_v63 }
 0x1a1   :  { %v733_v53 = vmul.f32 %v732_v14, %v16557_v21  ;;  %v736_v0 = vmul.f32 %v729_v3, %v16558_v26  ;;  %10246 = vmatprep.subr.bf16.mxu0 %v10245_v44 }
 0x1a2   :  { %v738_v60 = vpop.permute.xlu1 %737  ;;  %v10267_v5 = vpack.c.bf16 %v735_v1, %v719_v12  ;;  %v16563_v12 = vld [vmem:[#allocation59_spill] sm:$0xff]  ;;  %v16564_v1 = vld [vmem:[#allocation69_spill] sm:$0xff] }
 0x1a3   :  { %v740_v24 = vpop.permute.xlu0 %739  ;;  %v10247_v37 = vpack.c.bf16 %v733_v53, %v717_v32  ;;  %v10265_v30 = vpack.c.bf16 %v736_v0, %v720_v38  ;;  %v16565_v32 = vld [vmem:[#allocation62_spill] sm:$0xff]  ;;  %v16567_v0 = vld [vmem:[#allocation65_spill] sm:$0xff] }
 0x1a4   :  { %v747_v35 = vsel %vm275_vm8, %v738_v60, %v740_v24  ;;  %v16566_v38 = vld [vmem:[#allocation70_spill] sm:$0xff] }
 0x1a5   :  { %10248 = vmatpush1.bf16.msra.mxu0 %v10247_v37  ;;  %10266 = vmatprep.subr.bf16.mxu1 %v10265_v30  ;;  %v749_v49 = vmul.f32 %v747_v35, %v16559_v42  ;;  %v16569_v37 = vld [vmem:[#allocation74_spill] sm:$0xff]  ;;  %v16570_v35 = vld [vmem:[#allocation75_spill] sm:$0xff] }
 0x1a6   :  { %v742_v45 = vpop.permute.xlu1 %741  ;;  %10268 = vmatpush1.bf16.msra.mxu1 %v10267_v5  ;;  %v16568_v5 = vld [vmem:[#allocation66_spill] sm:$0xff] }
 0x1a7   :  { %v746_v40 = vsel %vm275_vm8, %v740_v24, %v742_v45  ;;  %v744_v25 = vpop.permute.xlu0 %743  ;;  %v10251_v41 = vpack.c.bf16 %v749_v49, %v12180_v23 }
 0x1a8   :  { %v750_v52 = vmul.f32 %v746_v40, %v16560_v18  ;;  %v745_v61 = vsel %vm275_vm8, %v742_v45, %v744_v25  ;;  %v748_v34 = vsel %vm275_vm8, %v744_v25, %v738_v60 }
 0x1a9   :  { %v751_v63 = vmul.f32 %v745_v61, %v16561_v4  ;;  %v752_v51 = vmul.f32 %v748_v34, %v16562_v11  ;;  %v16571_v4 = vld [vmem:[#allocation78_spill] sm:$0xff] }
 0x1aa   :  { %v754_v57 = vpop.permute.xlu1 %753  ;;  %v10249_v58 = vpack.c.bf16 %v750_v52, %v12182_v28 }
 0x1ab   :  { %v756_v55 = vpop.permute.xlu0 %755  ;;  %v10269_v48 = vpack.c.bf16 %v752_v51, %v12205_v8  ;;  %v10271_v2 = vpack.c.bf16 %v751_v63, %v12203_v36 }
 0x1ac   :  { %10250 = vmatprep.subr.bf16.mxu0 %v10249_v58  ;;  %v763_v44 = vsel %vm315_vm9, %v754_v57, %v756_v55  ;;  %v16572_v58 = vld [vmem:[#allocation79_spill] sm:$0xff] }
 0x1ad   :  { %10270 = vmatprep.subr.bf16.mxu1 %v10269_v48  ;;  %10252 = vmatpush1.bf16.msra.mxu0 %v10251_v41  ;;  %v765_v19 = vmul.f32 %v763_v44, %v16563_v12 }
 0x1ae   :  { %v758_v20 = vpop.permute.xlu1 %757  ;;  %10272 = vmatpush1.bf16.msra.mxu1 %v10271_v2  ;;  %v12489_v2 = vld [vmem:[#allocation2 + $0x138] sm:$0xff] }
 0x1af   :  { %v760_v27 = vpop.permute.xlu0 %759  ;;  %v762_v8 = vsel %vm315_vm9, %v756_v55, %v758_v20 }
 0x1b0   :  { %v761_v23 = vsel %vm315_vm9, %v758_v20, %v760_v27  ;;  %v764_v36 = vsel %vm315_vm9, %v760_v27, %v754_v57  ;;  %v766_v56 = vmul.f32 %v762_v8, %v16565_v32  ;;  %v12482_v57 = vld [vmem:[#allocation2 + $0x128] sm:$0xff]  ;;  %v12491_v20 = vld [vmem:[#allocation2 + $0x120] sm:$0xff]  ;;  %v12493_v27 = vld [vmem:[#allocation2 + $0x130] sm:$0xff] }
 0x1b1   :  { %v767_v60 = vmul.f32 %v761_v23, %v16567_v0  ;;  %v768_v24 = vmul.f32 %v764_v36, %v16568_v5 }
 0x1b2   :  { %v770_v33 = vpop.permute.xlu1 %769 }
 0x1b3   :  { %v772_v29 = vpop.permute.xlu0 %771 }
 0x1b4   :  { %v779_v28 = vsel %vm355_vm10, %v770_v33, %v772_v29 }
 0x1b5   :  { %v781_v3 = vmul.f32 %v779_v28, %v16564_v1 }
 0x1b6   :  { %v774_v16 = vpop.permute.xlu1 %773 }
 0x1b7   :  { %v778_v14 = vsel %vm355_vm10, %v772_v29, %v774_v16  ;;  %v776_v50 = vpop.permute.xlu0 %775  ;;  %v10255_v18 = vpack.c.bf16 %v781_v3, %v765_v19  ;;  %v16573_v29 = vld [vmem:[#allocation87_spill] sm:$0xff] }
 0x1b8   :  { %v782_v21 = vmul.f32 %v778_v14, %v16566_v38  ;;  %v777_v53 = vsel %vm355_vm10, %v774_v16, %v776_v50  ;;  %v780_v26 = vsel %vm355_vm10, %v776_v50, %v770_v33  ;;  %v837_v19 = vld [vmem:[%s16137_s1 + $0x8] sm:$0xff] }
 0x1b9   :  { %v783_v30 = vmul.f32 %v777_v53, %v16569_v37  ;;  %v784_v45 = vmul.f32 %v780_v26, %v16570_v35  ;;  %v16575_v53 = vld [vmem:[#allocation21_spill] sm:$0xff]  ;;  %v16576_v35 = vld [vmem:[#allocation32_spill] sm:$0xff] }
 0x1ba   :  { %v786_v42 = vpop.permute.xlu1 %785  ;;  %v10253_v49 = vpack.c.bf16 %v782_v21, %v766_v56  ;;  %v16574_v56 = vld [vmem:[#allocation31_spill] sm:$0xff] }
 0x1bb   :  { %v788_v40 = vpop.permute.xlu0 %787  ;;  %v10273_v25 = vpack.c.bf16 %v784_v45, %v768_v24  ;;  %v10275_v52 = vpack.c.bf16 %v783_v30, %v767_v60 }
 0x1bc   :  { %v795_v61 = vsel %vm395_vm11, %v786_v42, %v788_v40  ;;  %10254 = vmatprep.subr.bf16.mxu0 %v10253_v49 }
 0x1bd   :  { %10274 = vmatprep.subr.bf16.mxu1 %v10273_v25  ;;  %10256 = vmatpush1.bf16.msra.mxu0 %v10255_v18  ;;  %v797_v63 = vmul.f32 %v795_v61, %v16571_v4  ;;  %v16578_v18 = vld [vmem:[#allocation17_spill] sm:$0xff]  ;;  %v16579_v61 = vld [vmem:[#allocation19_spill] sm:$0xff]  ;;  %v16580_v4 = vld [vmem:[#allocation26_spill] sm:$0xff] }
 0x1be   :  { %v790_v34 = vpop.permute.xlu1 %789  ;;  %10276 = vmatpush1.bf16.msra.mxu1 %v10275_v52 }
 0x1bf   :  { %v794_v11 = vsel %vm395_vm11, %v788_v40, %v790_v34  ;;  %v792_v51 = vpop.permute.xlu0 %791  ;;  %v10259_v16 = vpack.c.bf16 %v12491_v20, %v797_v63 }
 0x1c0   :  { %v798_v55 = vmul.f32 %v794_v11, %v16572_v58  ;;  %v793_v48 = vsel %vm395_vm11, %v790_v34, %v792_v51  ;;  %v796_v41 = vsel %vm395_vm11, %v792_v51, %v786_v42  ;;  %v16577_v42 = vld [vmem:[#allocation23_spill] sm:$0xff] }
 0x1c1   :  { %v799_v33 = vmul.f32 %v793_v48, %v11525_v46  ;;  %v800_v44 = vmul.f32 %v796_v41, %v16573_v29  ;;  %v16581_v11 = vld [vmem:[#allocation27_spill] sm:$0xff] }
 0x1c2   :  { %v1479_v28 = vpop.permute.xlu1 %1478  ;;  %v10257_v8 = vpack.c.bf16 %v12482_v57, %v798_v55 }
 0x1c3   :  { %v1481_v23 = vpop.permute.xlu0 %1480  ;;  %v10277_v36 = vpack.c.bf16 %v12489_v2, %v800_v44  ;;  %v10279_v12 = vpack.c.bf16 %v12493_v27, %v799_v33 }
 0x1c4   :  { %10258 = vmatprep.subr.bf16.mxu0 %v10257_v8  ;;  %v1488_v3 = vsel %vm116_vm4, %v1479_v28, %v1481_v23 }
 0x1c5   :  { %10278 = vmatprep.subr.bf16.mxu1 %v10277_v36  ;;  %10260 = vmatpush1.bf16.msra.mxu0 %v10259_v16  ;;  %v1491_v38 = vmul.f32 %v1488_v3, %v16574_v56  ;;  %v16582_v16 = vld [vmem:[#allocation35_spill] sm:$0xff] }
 0x1c6   :  { %v1483_v46 = vpop.permute.xlu1 %1482  ;;  %10280 = vmatpush1.bf16.msra.mxu1 %v10279_v12 }
 0x1c7   :  { %v1485_v1 = vpop.permute.xlu0 %1484  ;;  %v1487_v21 = vsel %vm116_vm4, %v1481_v23, %v1483_v46 }
 0x1c8   :  { %10093 = vmatmul.mubr.msk.f32.vlgmr.msra.gmra.mrb[0].mxu0 %vm878_vm13, %v837_v19  ;;  %v1486_v0 = vsel %vm116_vm4, %v1483_v46, %v1485_v1  ;;  %v1489_v60 = vsel %vm116_vm4, %v1485_v1, %v1479_v28  ;;  %v1492_v45 = vmul.f32 %v1487_v21, %v16576_v35  ;;  %v16583_v46 = vld [vmem:[#allocation42_spill] sm:$0xff]  ;;  %v16584_v21 = vld [vmem:[#allocation36_spill] sm:$0xff] }
 0x1c9   :  { %10094 = vmatmul.mubr.msk.f32.vlgmr.msra.gmra.mrb[0].mxu1 %vm878_vm13, %v837_v19  ;;  %1755 = vmatprep.mubr.f32.mxu0 %v16284_v17  ;;  %v1490_v52 = vmul.f32 %v1489_v60, %v16578_v18  ;;  %v1493_v34 = vmul.f32 %v1486_v0, %v16579_v61 }
 0x1ca   :  { %v1495_v14 = vpop.permute.xlu1 %1494  ;;  %1826 = vmatprep.mubr.f32.mxu1 %v16284_v17 }
 0x1cb   :  { %v1497_v50 = vpop.permute.xlu0 %1496 }
 0x1cc   :  { %v1504_v32 = vsel %vm155_vm5, %v1495_v14, %v1497_v50 }
 0x1cd   :  { %v1507_v26 = vmul.f32 %v1504_v32, %v16575_v53 }
 0x1ce   :  { %v1499_v5 = vpop.permute.xlu1 %1498 }
 0x1cf   :  { %v1503_v24 = vsel %vm155_vm5, %v1497_v50, %v1499_v5  ;;  %v1501_v37 = vpop.permute.xlu0 %1500  ;;  %v10281_v30 = vpack.c.bf16 %v1507_v26, %v1491_v38  ;;  %v16585_v26 = vld [vmem:[#allocation46_spill] sm:$0xff] }
 0x1d0   :  { %v1508_v49 = vmul.f32 %v1503_v24, %v16577_v42  ;;  %v1502_v40 = vsel %vm155_vm5, %v1499_v5, %v1501_v37  ;;  %v1505_v25 = vsel %vm155_vm5, %v1501_v37, %v1495_v14  ;;  %v16586_v24 = vld [vmem:[#allocation39_spill] sm:$0xff] }
 0x1d1   :  { %v1506_v63 = vmul.f32 %v1505_v25, %v16580_v4  ;;  %v1509_v51 = vmul.f32 %v1502_v40, %v16581_v11  ;;  %10282 = vmatprep.subr.bf16.mxu0 %v10281_v30  ;;  %v16587_v30 = vld [vmem:[#allocation40_spill] sm:$0xff] }
 0x1d2   :  { %v1511_v58 = vpop.permute.xlu1 %1510  ;;  %v10303_v55 = vpack.c.bf16 %v1508_v49, %v1492_v45  ;;  %v16588_v45 = vld [vmem:[#allocation48_spill] sm:$0xff]  ;;  %v16589_v49 = vld [vmem:[#allocation49_spill] sm:$0xff] }
 0x1d3   :  { %v1513_v48 = vpop.permute.xlu0 %1512  ;;  %v10283_v41 = vpack.c.bf16 %v1506_v63, %v1490_v52  ;;  %v10301_v33 = vpack.c.bf16 %v1509_v51, %v1493_v34  ;;  %v16590_v11 = vld [vmem:[#allocation52_spill] sm:$0xff] }
 0x1d4   :  { %v1520_v28 = vsel %vm195_vm6, %v1511_v58, %v1513_v48 }
 0x1d5   :  { %10284 = vmatpush1.bf16.msra.mxu0 %v10283_v41  ;;  %10302 = vmatprep.subr.bf16.mxu1 %v10301_v33  ;;  %v1523_v12 = vmul.f32 %v1520_v28, %v16582_v16 }
 0x1d6   :  { %v1515_v29 = vpop.permute.xlu1 %1514  ;;  %10304 = vmatpush1.bf16.msra.mxu1 %v10303_v55 }
 0x1d7   :  { %v1517_v44 = vpop.permute.xlu0 %1516  ;;  %v1519_v19 = vsel %vm195_vm6, %v1513_v48, %v1515_v29  ;;  %v16591_v48 = vld [vmem:[#allocation57_spill] sm:$0xff] }
 0x1d8   :  { %v1518_v3 = vsel %vm195_vm6, %v1515_v29, %v1517_v44  ;;  %v1521_v14 = vsel %vm195_vm6, %v1517_v44, %v1511_v58  ;;  %v1524_v53 = vmul.f32 %v1519_v19, %v16584_v21  ;;  %v16592_v44 = vld [vmem:[#allocation58_spill] sm:$0xff]  ;;  %v16594_v21 = vld [vmem:[#allocation63_spill] sm:$0xff] }
 0x1d9   :  { %v1522_v37 = vmul.f32 %v1521_v14, %v16586_v24  ;;  %v1525_v35 = vmul.f32 %v1518_v3, %v16587_v30  ;;  %v16596_v24 = vld [vmem:[#allocation64_spill] sm:$0xff]  ;;  %v16597_v30 = vld [vmem:[#allocation71_spill] sm:$0xff] }
 0x1da   :  { %v1527_v8 = vpop.permute.xlu1 %1526 }
 0x1db   :  { %v1529_v23 = vpop.permute.xlu0 %1528 }
 0x1dc   :  { %v1536_v36 = vsel %vm235_vm7, %v1527_v8, %v1529_v23 }
 0x1dd   :  { %v1539_v1 = vmul.f32 %v1536_v36, %v16583_v46 }
 0x1de   :  { %v1531_v50 = vpop.permute.xlu1 %1530 }
 0x1df   :  { %v1535_v32 = vsel %vm235_vm7, %v1529_v23, %v1531_v50  ;;  %v1533_v56 = vpop.permute.xlu0 %1532  ;;  %v10285_v38 = vpack.c.bf16 %v1539_v1, %v1523_v12 }
 0x1e0   :  { %v1540_v0 = vmul.f32 %v1535_v32, %v16585_v26  ;;  %v1534_v60 = vsel %vm235_vm7, %v1531_v50, %v1533_v56  ;;  %v1537_v5 = vsel %vm235_vm7, %v1533_v56, %v1527_v8  ;;  %v16593_v8 = vld [vmem:[#allocation53_spill] sm:$0xff] }
 0x1e1   :  { %v1538_v42 = vmul.f32 %v1537_v5, %v16588_v45  ;;  %v1541_v40 = vmul.f32 %v1534_v60, %v16589_v49  ;;  %10286 = vmatprep.subr.bf16.mxu0 %v10285_v38  ;;  %v16595_v26 = vld [vmem:[#allocation73_spill] sm:$0xff]  ;;  %v16598_v49 = vld [vmem:[#allocation67_spill] sm:$0xff] }
 0x1e2   :  { %v1543_v25 = vpop.permute.xlu1 %1542  ;;  %v10307_v18 = vpack.c.bf16 %v1540_v0, %v1524_v53 }
 0x1e3   :  { %v1545_v52 = vpop.permute.xlu0 %1544  ;;  %v10287_v61 = vpack.c.bf16 %v1538_v42, %v1522_v37  ;;  %v10305_v34 = vpack.c.bf16 %v1541_v40, %v1525_v35 }
 0x1e4   :  { %v1552_v4 = vsel %vm275_vm8, %v1543_v25, %v1545_v52 }
 0x1e5   :  { %10288 = vmatpush1.bf16.msra.mxu0 %v10287_v61  ;;  %10306 = vmatprep.subr.bf16.mxu1 %v10305_v34  ;;  %v1554_v51 = vmul.f32 %v1552_v4, %v16590_v11  ;;  %v16601_v34 = vld [vmem:[#allocation77_spill] sm:$0xff] }
 0x1e6   :  { %v1547_v63 = vpop.permute.xlu1 %1546  ;;  %10308 = vmatpush1.bf16.msra.mxu1 %v10307_v18 }
 0x1e7   :  { %v1551_v58 = vsel %vm275_vm8, %v1545_v52, %v1547_v63  ;;  %v1549_v55 = vpop.permute.xlu0 %1548  ;;  %v10291_v46 = vpack.c.bf16 %v1554_v51, %v12307_v6  ;;  %v16600_v52 = vld [vmem:[#allocation76_spill] sm:$0xff] }
 0x1e8   :  { %v1555_v41 = vmul.f32 %v1551_v58, %v16591_v48  ;;  %v1550_v33 = vsel %vm275_vm8, %v1547_v63, %v1549_v55  ;;  %v1553_v29 = vsel %vm275_vm8, %v1549_v55, %v1543_v25  ;;  %v16599_v25 = vld [vmem:[#allocation68_spill] sm:$0xff] }
 0x1e9   :  { %v1556_v28 = vmul.f32 %v1550_v33, %v16592_v44  ;;  %v1557_v23 = vmul.f32 %v1553_v29, %v16593_v8  ;;  %v16602_v29 = vld [vmem:[#allocation82_spill] sm:$0xff] }
 0x1ea   :  { %v1559_v36 = vpop.permute.xlu1 %1558  ;;  %v10289_v16 = vpack.c.bf16 %v1555_v41, %v12309_v22 }
 0x1eb   :  { %v1561_v12 = vpop.permute.xlu0 %1560  ;;  %v10309_v19 = vpack.c.bf16 %v1557_v23, %v12322_v47  ;;  %v10311_v1 = vpack.c.bf16 %v1556_v28, %v12319_v43  ;;  %v16603_v23 = vld [vmem:[#allocation83_spill] sm:$0xff] }
 0x1ec   :  { %10290 = vmatprep.subr.bf16.mxu0 %v10289_v16  ;;  %v1568_v56 = vsel %vm315_vm9, %v1559_v36, %v1561_v12 }
 0x1ed   :  { %10310 = vmatprep.subr.bf16.mxu1 %v10309_v19  ;;  %10292 = vmatpush1.bf16.msra.mxu0 %v10291_v46  ;;  %v1570_v53 = vmul.f32 %v1568_v56, %v16594_v21 }
 0x1ee   :  { %v1563_v3 = vpop.permute.xlu1 %1562  ;;  %10312 = vmatpush1.bf16.msra.mxu1 %v10311_v1 }
 0x1ef   :  { %v1565_v14 = vpop.permute.xlu0 %1564  ;;  %v1567_v47 = vsel %vm315_vm9, %v1561_v12, %v1563_v3 }
 0x1f0   :  { %v1566_v6 = vsel %vm315_vm9, %v1563_v3, %v1565_v14  ;;  %v1569_v43 = vsel %vm315_vm9, %v1565_v14, %v1559_v36  ;;  %v1571_v37 = vmul.f32 %v1567_v47, %v16596_v24 }
 0x1f1   :  { %v1572_v40 = vmul.f32 %v1566_v6, %v16598_v49  ;;  %v1573_v18 = vmul.f32 %v1569_v43, %v16599_v25  ;;  %v10104_v49 = vld [vmem:[%s16138_s2 + $0x1] ss:$8 sm:$0xf] }
 0x1f2   :  { %v1575_v50 = vpop.permute.xlu1 %1574  ;;  %v16604_v25 = vld [vmem:[#allocation14_spill] sm:$0xff] }
 0x1f3   :  { %v1577_v32 = vpop.permute.xlu0 %1576 }
 0x1f4   :  { %v1584_v22 = vsel %vm355_vm10, %v1575_v50, %v1577_v32 }
 0x1f5   :  { %v1586_v0 = vmul.f32 %v1584_v22, %v16595_v26  ;;  %v1683_v22 = vstv %s105_s14 }
 0x1f6   :  { %v1579_v38 = vpop.permute.xlu1 %1578 }
 0x1f7   :  { %v1583_v60 = vsel %vm355_vm10, %v1577_v32, %v1579_v38  ;;  %v1581_v5 = vpop.permute.xlu0 %1580  ;;  %v10295_v55 = vpack.c.bf16 %v1586_v0, %v1570_v53  ;;  %v1642_v32 = vld [vmem:[%s16137_s1 + $0x28] sm:$0xff] }
 0x1f8   :  { %v1587_v35 = vmul.f32 %v1583_v60, %v16597_v30  ;;  %v1582_v45 = vsel %vm355_vm10, %v1579_v38, %v1581_v5  ;;  %v1585_v42 = vsel %vm355_vm10, %v1581_v5, %v1575_v50 }
 0x1f9   :  { %v1588_v61 = vmul.f32 %v1582_v45, %v16600_v52  ;;  %v1589_v4 = vmul.f32 %v1585_v42, %v16601_v34  ;;  %v1845_v45 = vld [vmem:[%s16138_s2] ss:$8 sm:$0xf]  ;;  %v1892_v52 = vrot.slane %v10104_v49, %v16604_v25 }
 0x1fa   :  { %v1591_v63 = vpop.permute.xlu1 %1590  ;;  %v10293_v11 = vpack.c.bf16 %v1587_v35, %v1571_v37 }
 0x1fb   :  { %v1593_v51 = vpop.permute.xlu0 %1592  ;;  %v10313_v58 = vpack.c.bf16 %v1589_v4, %v1573_v18  ;;  %v10315_v48 = vpack.c.bf16 %v1588_v61, %v1572_v40  ;;  %v1854_v18 = vrot.slane %v1845_v45, %v16604_v25 }
 0x1fc   :  { %v1600_v41 = vsel %vm395_vm11, %v1591_v63, %v1593_v51  ;;  %10294 = vmatprep.subr.bf16.mxu0 %v10293_v11  ;;  %v16605_v11 = vld [vmem:[#allocation13_spill] sm:$0xff] }
 0x1fd   :  { %10314 = vmatprep.subr.bf16.mxu1 %v10313_v58  ;;  %10296 = vmatpush1.bf16.msra.mxu0 %v10295_v55  ;;  %v1602_v44 = vmul.f32 %v1600_v41, %v16602_v29  ;;  %v16606_v55 = vld [vmem:[#allocation15_spill] sm:$0xff]  ;;  %v1888_v29 = vrot.slane %v10104_v49, %v11223_v15 }
 0x1fe   :  { %v1595_v33 = vpop.permute.xlu1 %1594  ;;  %10316 = vmatpush1.bf16.msra.mxu1 %v10315_v48  ;;  %v1896_v48 = vrot.slane %v10104_v49, %v16606_v55 }
 0x1ff   :  { %v1599_v28 = vsel %vm395_vm11, %v1593_v51, %v1595_v33  ;;  %v1597_v8 = vpop.permute.xlu0 %1596  ;;  %v10299_v14 = vpack.c.bf16 %v12491_v20, %v1602_v44  ;;  %v1862_v51 = vrot.slane %v1845_v45, %v16605_v11  ;;  %v1900_v44 = vrot.slane %v10104_v49, %v16605_v11 }
 0x200   :  { %v1603_v36 = vmul.f32 %v1599_v28, %v16603_v23  ;;  %v1598_v16 = vsel %vm395_vm11, %v1595_v33, %v1597_v8  ;;  %v1601_v12 = vsel %vm395_vm11, %v1597_v8, %v1591_v63  ;;  %v1850_v63 = vrot.slane %v1845_v45, %v11223_v15 }
 0x201   :  { %v1604_v19 = vmul.f32 %v1598_v16, %v16494_v10  ;;  %v1605_v46 = vmul.f32 %v1601_v12, %v16526_v39  ;;  %v1858_v28 = vrot.slane %v1845_v45, %v16606_v55 }
 0x202   :  { %v10297_v1 = vpack.c.bf16 %v12482_v57, %v1603_v36 }
 0x203   :  { %v10317_v3 = vpack.c.bf16 %v12489_v2, %v1605_v46  ;;  %v10319_v50 = vpack.c.bf16 %v12493_v27, %v1604_v19 }
 0x204   :  { %10298 = vmatprep.subr.bf16.mxu0 %v10297_v1 }
 0x205   :  { %10318 = vmatprep.subr.bf16.mxu1 %v10317_v3  ;;  %10300 = vmatpush1.bf16.msra.mxu0 %v10299_v14 }
 0x206   :  { %10320 = vmatpush1.bf16.msra.mxu1 %v10319_v50 }
 0x208   :  { %10102 = vmatmul.mubr.msk.f32.vlgmr.msra.gmra.mrb[2].mxu0 %vm878_vm13, %v1642_v32 }
 0x209   :  { %10103 = vmatmul.mubr.msk.f32.vlgmr.msra.gmra.mrb[2].mxu1 %vm878_vm13, %v1642_v32  ;;  %2281 = vmatprep.mubr.f32.mxu0 %v16284_v17 }
 0x20a   :  { %2352 = vmatprep.mubr.f32.mxu1 %v16284_v17 }
 0x29b   :  { %v948_v10 = vpop.f32.mrb[0].mxu0 }
 0x29c   :  { %v950_v39 = vpop.f32.mrb[1].mxu0  ;;  %v1019_v57 = vpop.f32.mrb[0].mxu1  ;;  %v1684_v47 = vmul.f32 %v1683_v22, %v948_v10 }
 0x29d   :  { %v1021_v56 = vpop.f32.mrb[1].mxu1  ;;  %v1685_v6 = vmul.f32 %v1683_v22, %v950_v39  ;;  %v1686_v43 = vmul.f32 %v1683_v22, %v1019_v57 }
 0x29e   :  { %v1687_v21 = vmul.f32 %v1683_v22, %v1021_v56 }
 0x2db   :  { %v1757_v38 = vpop.f32.mrb[2].mxu0 }
 0x2dc   :  { %v12619_v53 = vadd.f32 %v1757_v38, %v1684_v47  ;;  %v1828_v26 = vpop.f32.mrb[2].mxu1  ;;  %v1759_v0 = vpop.f32.mrb[3].mxu0  ;;  %v10105_v38 = vld [vmem:[%s16138_s2 + $0x2] ss:$8 sm:$0xf] }
 0x2dd   :  { %v12621_v60 = vadd.f32 %v1828_v26, %v1686_v43  ;;  %v12623_v5 = vadd.f32 %v1759_v0, %v1685_v6  ;;  %v1830_v24 = vpop.f32.mrb[3].mxu1  ;;  %v10106_v26 = vld [vmem:[%s16138_s2 + $0x3] ss:$8 sm:$0xf]  ;;  %v1926_v49 = vrot.slane %v10105_v38, %v11223_v15 }
 0x2de   :  { %v12625_v37 = vadd.f32 %v1830_v24, %v1687_v21  ;;  %1833 = vrot.lane.b32.xlu1 %v12619_v53, %s10998_s7  ;;  %v1930_v24 = vrot.slane %v10105_v38, %v16604_v25 }
 0x2df   :  { %1835 = vrot.lane.b32.xlu0 %v12623_v5, %s10998_s7 }
 0x2e2   :  { %1837 = vrot.lane.b32.xlu1 %v12621_v60, %s10998_s7 }
 0x2e3   :  { %1839 = vrot.lane.b32.xlu0 %v12625_v37, %s10998_s7 }
 0x2e6   :  { %1871 = vrot.lane.b32.xlu1 %v12619_v53, %s10999_s8 }
 0x2e7   :  { %1873 = vrot.lane.b32.xlu0 %v12623_v5, %s10999_s8 }
 0x2ea   :  { %1875 = vrot.lane.b32.xlu1 %v12621_v60, %s10999_s8 }
 0x2eb   :  { %1877 = vrot.lane.b32.xlu0 %v12625_v37, %s10999_s8 }
 0x2ee   :  { %1909 = vrot.lane.b32.xlu1 %v12619_v53, %s10997_s0 }
 0x2ef   :  { %1911 = vrot.lane.b32.xlu0 %v12623_v5, %s10997_s0 }
 0x2f2   :  { %1913 = vrot.lane.b32.xlu1 %v12621_v60, %s10997_s0 }
 0x2f3   :  { %1915 = vrot.lane.b32.xlu0 %v12625_v37, %s10997_s0 }
 0x2f6   :  { %1947 = vrot.lane.b32.xlu1 %v12619_v53, %s11000_s9 }
 0x2f7   :  { %1949 = vrot.lane.b32.xlu0 %v12623_v5, %s11000_s9 }
 0x2fa   :  { %1951 = vrot.lane.b32.xlu1 %v12621_v60, %s11000_s9 }
 0x2fb   :  { %1953 = vrot.lane.b32.xlu0 %v12625_v37, %s11000_s9 }
 0x2fe   :  { %1985 = vrot.lane.b32.xlu1 %v12619_v53, %s11002_s10 }
 0x2ff   :  { %1987 = vrot.lane.b32.xlu0 %v12623_v5, %s11002_s10 }
 0x302   :  { %1989 = vrot.lane.b32.xlu1 %v12621_v60, %s11002_s10 }
 0x303   :  { %1991 = vrot.lane.b32.xlu0 %v12625_v37, %s11002_s10 }
 0x306   :  { %2023 = vrot.lane.b32.xlu1 %v12619_v53, %s11004_s11 }
 0x307   :  { %2025 = vrot.lane.b32.xlu0 %v12623_v5, %s11004_s11 }
 0x30a   :  { %2027 = vrot.lane.b32.xlu1 %v12621_v60, %s11004_s11 }
 0x30b   :  { %2029 = vrot.lane.b32.xlu0 %v12625_v37, %s11004_s11 }
 0x30e   :  { %2061 = vrot.lane.b32.xlu1 %v12619_v53, %s11006_s12 }
 0x30f   :  { %2063 = vrot.lane.b32.xlu0 %v12623_v5, %s11006_s12 }
 0x312   :  { %2065 = vrot.lane.b32.xlu1 %v12621_v60, %s11006_s12 }
 0x313   :  { %2067 = vrot.lane.b32.xlu0 %v12625_v37, %s11006_s12 }
 0x316   :  { %2099 = vrot.lane.b32.xlu1 %v12619_v53, %s11008_s13 }
 0x317   :  { %2101 = vrot.lane.b32.xlu0 %v12623_v5, %s11008_s13 }
 0x31a   :  { %2103 = vrot.lane.b32.xlu1 %v12621_v60, %s11008_s13 }
 0x31b   :  { %2105 = vrot.lane.b32.xlu0 %v12625_v37, %s11008_s13 }
 0x350   :  { %v1834_v30 = vpop.permute.xlu1 %1833 }
 0x351   :  { %v1836_v35 = vpop.permute.xlu0 %1835 }
 0x352   :  { %v1843_v61 = vsel %vm116_vm4, %v1834_v30, %v1836_v35 }
 0x353   :  { %v1868_v41 = vmul.f32 %v1854_v18, %v1843_v61 }
 0x354   :  { %v1838_v42 = vpop.permute.xlu1 %1837 }
 0x355   :  { %v1840_v40 = vpop.permute.xlu0 %1839  ;;  %v1842_v16 = vsel %vm116_vm4, %v1836_v35, %v1838_v42 }
 0x356   :  { %v1841_v8 = vsel %vm116_vm4, %v1838_v42, %v1840_v40  ;;  %v1844_v23 = vsel %vm116_vm4, %v1840_v40, %v1834_v30  ;;  %v1869_v57 = vmul.f32 %v1858_v28, %v1842_v16  ;;  %v1968_v30 = vrot.slane %v10106_v26, %v16604_v25  ;;  %v10107_v16 = vld [vmem:[%s16138_s2 + $0x5] ss:$8 sm:$0xf] }
 0x357   :  { %v1867_v50 = vmul.f32 %v1850_v63, %v1844_v23  ;;  %v1870_v32 = vmul.f32 %v1862_v51, %v1841_v8  ;;  %v1938_v40 = vrot.slane %v10105_v38, %v16605_v11  ;;  %v1976_v63 = vrot.slane %v10106_v26, %v16605_v11 }
 0x358   :  { %v1872_v34 = vpop.permute.xlu1 %1871  ;;  %v1934_v51 = vrot.slane %v10105_v38, %v16606_v55 }
 0x359   :  { %v1874_v4 = vpop.permute.xlu0 %1873 }
 0x35a   :  { %v1881_v58 = vsel %vm155_vm5, %v1872_v34, %v1874_v4 }
 0x35b   :  { %v1906_v33 = vmul.f32 %v1892_v52, %v1881_v58  ;;  %v1972_v52 = vrot.slane %v10106_v26, %v16606_v55 }
 0x35c   :  { %v1876_v36 = vpop.permute.xlu1 %1875 }
 0x35d   :  { %v1880_v12 = vsel %vm155_vm5, %v1874_v4, %v1876_v36  ;;  %v1878_v19 = vpop.permute.xlu0 %1877  ;;  %v10321_v46 = vpack.c.bf16 %v1906_v33, %v1868_v41  ;;  %v1964_v4 = vrot.slane %v10106_v26, %v11223_v15 }
 0x35e   :  { %v1907_v1 = vmul.f32 %v1896_v48, %v1880_v12  ;;  %v1879_v3 = vsel %vm155_vm5, %v1876_v36, %v1878_v19  ;;  %v1882_v14 = vsel %vm155_vm5, %v1878_v19, %v1872_v34 }
 0x35f   :  { %v1905_v10 = vmul.f32 %v1888_v29, %v1882_v14  ;;  %v1908_v39 = vmul.f32 %v1900_v44, %v1879_v3  ;;  %10322 = vmatprep.subr.bf16.mxu0 %v10321_v46 }
 0x360   :  { %v1910_v56 = vpop.permute.xlu1 %1909  ;;  %v10343_v43 = vpack.c.bf16 %v1907_v1, %v1869_v57 }
 0x361   :  { %v1912_v22 = vpop.permute.xlu0 %1911  ;;  %v10323_v47 = vpack.c.bf16 %v1905_v10, %v1867_v50  ;;  %v10341_v6 = vpack.c.bf16 %v1908_v39, %v1870_v32  ;;  %v2002_v50 = vrot.slane %v10107_v16, %v11223_v15 }
 0x362   :  { %v1919_v35 = vsel %vm195_vm6, %v1910_v56, %v1912_v22 }
 0x363   :  { %10324 = vmatpush1.bf16.msra.mxu0 %v10323_v47  ;;  %10342 = vmatprep.subr.bf16.mxu1 %v10341_v6  ;;  %v1944_v61 = vmul.f32 %v1930_v24, %v1919_v35  ;;  %v2010_v47 = vrot.slane %v10107_v16, %v16606_v55  ;;  %v2014_v6 = vrot.slane %v10107_v16, %v16605_v11 }
 0x364   :  { %v1914_v21 = vpop.permute.xlu1 %1913  ;;  %10344 = vmatpush1.bf16.msra.mxu1 %v10343_v43 }
 0x365   :  { %v1916_v0 = vpop.permute.xlu0 %1915  ;;  %v1918_v33 = vsel %vm195_vm6, %v1912_v22, %v1914_v21 }
 0x366   :  { %v1917_v58 = vsel %vm195_vm6, %v1914_v21, %v1916_v0  ;;  %v1920_v48 = vsel %vm195_vm6, %v1916_v0, %v1910_v56  ;;  %v1945_v3 = vmul.f32 %v1934_v51, %v1918_v33  ;;  %v2006_v56 = vrot.slane %v10107_v16, %v16604_v25 }
 0x367   :  { %v1943_v12 = vmul.f32 %v1926_v49, %v1920_v48  ;;  %v1946_v19 = vmul.f32 %v1938_v40, %v1917_v58 }
 0x368   :  { %v1948_v45 = vpop.permute.xlu1 %1947 }
 0x369   :  { %v1950_v42 = vpop.permute.xlu0 %1949 }
 0x36a   :  { %v1957_v18 = vsel %vm235_vm7, %v1948_v45, %v1950_v42 }
 0x36b   :  { %v1982_v34 = vmul.f32 %v1968_v30, %v1957_v18 }
 0x36c   :  { %v1952_v41 = vpop.permute.xlu1 %1951 }
 0x36d   :  { %v1956_v29 = vsel %vm235_vm7, %v1950_v42, %v1952_v41  ;;  %v1954_v44 = vpop.permute.xlu0 %1953  ;;  %v10325_v28 = vpack.c.bf16 %v1982_v34, %v1944_v61 }
 0x36e   :  { %v1983_v8 = vmul.f32 %v1972_v52, %v1956_v29  ;;  %v1955_v23 = vsel %vm235_vm7, %v1952_v41, %v1954_v44  ;;  %v1958_v36 = vsel %vm235_vm7, %v1954_v44, %v1948_v45 }
 0x36f   :  { %v1981_v46 = vmul.f32 %v1964_v4, %v1958_v36  ;;  %v1984_v1 = vmul.f32 %v1976_v63, %v1955_v23  ;;  %10326 = vmatprep.subr.bf16.mxu0 %v10325_v28  ;;  %v10108_v63 = vld [vmem:[%s16138_s2 + $0x6] ss:$8 sm:$0xf] }
 0x370   :  { %v1986_v14 = vpop.permute.xlu1 %1985  ;;  %v10347_v22 = vpack.c.bf16 %v1983_v8, %v1945_v3  ;;  %v2048_v41 = vrot.slane %v10108_v63, %v16606_v55  ;;  %v2052_v28 = vrot.slane %v10108_v63, %v16605_v11 }
 0x371   :  { %v1988_v32 = vpop.permute.xlu0 %1987  ;;  %v10327_v10 = vpack.c.bf16 %v1981_v46, %v1943_v12  ;;  %v10345_v39 = vpack.c.bf16 %v1984_v1, %v1946_v19 }
 0x372   :  { %v1995_v57 = vsel %vm275_vm8, %v1986_v14, %v1988_v32 }
 0x373   :  { %10328 = vmatpush1.bf16.msra.mxu0 %v10327_v10  ;;  %10346 = vmatprep.subr.bf16.mxu1 %v10345_v39  ;;  %v2019_v38 = vmul.f32 %v2002_v50, %v1995_v57  ;;  %v10110_v39 = vld [vmem:[%s16138_s2 + $0x20] ss:$8 sm:$0xf] }
 0x374   :  { %v1990_v43 = vpop.permute.xlu1 %1989  ;;  %10348 = vmatpush1.bf16.msra.mxu1 %v10347_v22 }
 0x375   :  { %v1994_v21 = vsel %vm275_vm8, %v1988_v32, %v1990_v43  ;;  %v1992_v26 = vpop.permute.xlu0 %1991  ;;  %v10331_v18 = vpack.c.bf16 %v2019_v38, %v12619_v53  ;;  %v2040_v53 = vrot.slane %v10108_v63, %v11223_v15  ;;  %v2116_v38 = vrot.slane %v10110_v39, %v11223_v15 }
 0x376   :  { %v2020_v0 = vmul.f32 %v2006_v56, %v1994_v21  ;;  %v1993_v24 = vsel %vm275_vm8, %v1990_v43, %v1992_v26  ;;  %v1996_v30 = vsel %vm275_vm8, %v1992_v26, %v1986_v14 }
 0x377   :  { %v2021_v35 = vmul.f32 %v2010_v47, %v1993_v24  ;;  %v2022_v45 = vmul.f32 %v2014_v6, %v1996_v30 }
 0x378   :  { %v2024_v42 = vpop.permute.xlu1 %2023  ;;  %v10329_v49 = vpack.c.bf16 %v2020_v0, %v12623_v5  ;;  %v10109_v5 = vld [vmem:[%s16138_s2 + $0x7] ss:$8 sm:$0xf] }
 0x379   :  { %v2026_v40 = vpop.permute.xlu0 %2025  ;;  %v10349_v52 = vpack.c.bf16 %v2022_v45, %v12625_v37  ;;  %v10351_v61 = vpack.c.bf16 %v2021_v35, %v12621_v60  ;;  %v2044_v37 = vrot.slane %v10108_v63, %v16604_v25  ;;  %v2078_v60 = vrot.slane %v10109_v5, %v11223_v15 }
 0x37a   :  { %10330 = vmatprep.subr.bf16.mxu0 %v10329_v49  ;;  %v2033_v48 = vsel %vm315_vm9, %v2024_v42, %v2026_v40  ;;  %v2082_v29 = vrot.slane %v10109_v5, %v16604_v25  ;;  %v2086_v8 = vrot.slane %v10109_v5, %v16606_v55  ;;  %v2090_v23 = vrot.slane %v10109_v5, %v16605_v11 }
 0x37b   :  { %10332 = vmatpush1.bf16.msra.mxu0 %v10331_v18  ;;  %10350 = vmatprep.subr.bf16.mxu1 %v10349_v52  ;;  %v2057_v19 = vmul.f32 %v2040_v53, %v2033_v48  ;;  %v2120_v35 = vrot.slane %v10110_v39, %v16604_v25  ;;  %v2124_v45 = vrot.slane %v10110_v39, %v16606_v55  ;;  %v2173_v48 = vld [vmem:[%s16137_s1 + $0x10] sm:$0xff] }
 0x37c   :  { %v2028_v34 = vpop.permute.xlu1 %2027  ;;  %10352 = vmatpush1.bf16.msra.mxu1 %v10351_v61  ;;  %v12811_v61 = vld [vmem:[#allocation2 + $0x128] sm:$0xff] }
 0x37d   :  { %v2030_v4 = vpop.permute.xlu0 %2029  ;;  %v2032_v44 = vsel %vm315_vm9, %v2026_v40, %v2028_v34 }
 0x37e   :  { %v2031_v36 = vsel %vm315_vm9, %v2028_v34, %v2030_v4  ;;  %v2034_v16 = vsel %vm315_vm9, %v2030_v4, %v2024_v42  ;;  %v2058_v14 = vmul.f32 %v2044_v37, %v2032_v44  ;;  %v2128_v42 = vrot.slane %v10110_v39, %v16605_v11 }
 0x37f   :  { %v2059_v57 = vmul.f32 %v2048_v41, %v2031_v36  ;;  %v2060_v56 = vmul.f32 %v2052_v28, %v2034_v16  ;;  %v2375_v36 = vld [vmem:[%s16138_s2] ss:$8 sm:$0xf] }
 0x380   :  { %v2062_v51 = vpop.permute.xlu1 %2061 }
 0x381   :  { %v2064_v58 = vpop.permute.xlu0 %2063 }
 0x382   :  { %v2071_v33 = vsel %vm355_vm10, %v2062_v51, %v2064_v58 }
 0x383   :  { %v2095_v46 = vmul.f32 %v2078_v60, %v2071_v33 }
 0x384   :  { %v2066_v12 = vpop.permute.xlu1 %2065 }
 0x385   :  { %v2070_v1 = vsel %vm355_vm10, %v2064_v58, %v2066_v12  ;;  %v2068_v3 = vpop.permute.xlu0 %2067  ;;  %v10335_v26 = vpack.c.bf16 %v2095_v46, %v2057_v19  ;;  %v2384_v46 = vrot.slane %v2375_v36, %v16604_v25 }
 0x386   :  { %v2096_v50 = vmul.f32 %v2082_v29, %v2070_v1  ;;  %v2069_v32 = vsel %vm355_vm10, %v2066_v12, %v2068_v3  ;;  %v2072_v10 = vsel %vm355_vm10, %v2068_v3, %v2062_v51  ;;  %v10113_v12 = vld [vmem:[%s16138_s2 + $0x1] ss:$8 sm:$0xf] }
 0x387   :  { %v2097_v22 = vmul.f32 %v2086_v8, %v2069_v32  ;;  %v2098_v47 = vmul.f32 %v2090_v23, %v2072_v10  ;;  %v2422_v1 = vrot.slane %v10113_v12, %v16604_v25  ;;  %v2380_v32 = vrot.slane %v2375_v36, %v11223_v15 }
 0x388   :  { %v2100_v6 = vpop.permute.xlu1 %2099  ;;  %v10333_v43 = vpack.c.bf16 %v2096_v50, %v2058_v14  ;;  %v2392_v10 = vrot.slane %v2375_v36, %v16605_v11 }
 0x389   :  { %v2102_v21 = vpop.permute.xlu0 %2101  ;;  %v10353_v0 = vpack.c.bf16 %v2098_v47, %v2060_v56  ;;  %v10355_v24 = vpack.c.bf16 %v2097_v22, %v2059_v57  ;;  %v2426_v57 = vrot.slane %v10113_v12, %v16606_v55  ;;  %v2418_v47 = vrot.slane %v10113_v12, %v11223_v15 }
 0x38a   :  { %v2109_v30 = vsel %vm395_vm11, %v2100_v6, %v2102_v21  ;;  %10334 = vmatprep.subr.bf16.mxu0 %v10333_v43  ;;  %v2388_v43 = vrot.slane %v2375_v36, %v16606_v55 }
 0x38b   :  { %10336 = vmatpush1.bf16.msra.mxu0 %v10335_v26  ;;  %10354 = vmatprep.subr.bf16.mxu1 %v10353_v0  ;;  %v2133_v40 = vmul.f32 %v2116_v38, %v2109_v30 }
 0x38c   :  { %v2104_v49 = vpop.permute.xlu1 %2103  ;;  %10356 = vmatpush1.bf16.msra.mxu1 %v10355_v24 }
 0x38d   :  { %v2108_v18 = vsel %vm395_vm11, %v2102_v21, %v2104_v49  ;;  %v2106_v52 = vpop.permute.xlu0 %2105  ;;  %v10339_v37 = vpack.c.bf16 %v12491_v20, %v2133_v40 }
 0x38e   :  { %v2134_v34 = vmul.f32 %v2120_v35, %v2108_v18  ;;  %v2107_v4 = vsel %vm395_vm11, %v2104_v49, %v2106_v52  ;;  %v2110_v63 = vsel %vm395_vm11, %v2106_v52, %v2100_v6  ;;  %v2430_v6 = vrot.slane %v10113_v12, %v16605_v11 }
 0x38f   :  { %v2135_v5 = vmul.f32 %v2124_v45, %v2107_v4  ;;  %v2136_v51 = vmul.f32 %v2128_v42, %v2110_v63 }
 0x390   :  { %v10337_v53 = vpack.c.bf16 %v12811_v61, %v2134_v34 }
 0x391   :  { %v10357_v60 = vpack.c.bf16 %v12489_v2, %v2136_v51  ;;  %v10359_v58 = vpack.c.bf16 %v12493_v27, %v2135_v5 }
 0x392   :  { %10338 = vmatprep.subr.bf16.mxu0 %v10337_v53 }
 0x393   :  { %10340 = vmatpush1.bf16.msra.mxu0 %v10339_v37  ;;  %10358 = vmatprep.subr.bf16.mxu1 %v10357_v60  ;;  %v10114_v60 = vld [vmem:[%s16138_s2 + $0x2] ss:$8 sm:$0xf] }
 0x394   :  { %10360 = vmatpush1.bf16.msra.mxu1 %v10359_v58  ;;  %v2456_v36 = vrot.slane %v10114_v60, %v11223_v15 }
 0x396   :  { %10111 = vmatmul.mubr.msk.f32.vlgmr.msra.gmra.mrb[4].mxu0 %vm878_vm13, %v2173_v48 }
 0x397   :  { %10112 = vmatmul.mubr.msk.f32.vlgmr.msra.gmra.mrb[4].mxu1 %vm878_vm13, %v2173_v48  ;;  %2811 = vmatprep.mubr.f32.mxu0 %v16284_v17  ;;  %v10115_v48 = vld [vmem:[%s16138_s2 + $0x3] ss:$8 sm:$0xf] }
 0x398   :  { %2882 = vmatprep.mubr.f32.mxu1 %v16284_v17 }
 0x469   :  { %v2283_v20 = vpop.f32.mrb[4].mxu0 }
 0x46a   :  { %v12828_v2 = vmax.f32 %v2283_v20, 0.0  ;;  %v2285_v27 = vpop.f32.mrb[5].mxu0  ;;  %v2354_v41 = vpop.f32.mrb[4].mxu1 }
 0x46b   :  { %v12830_v33 = vmax.f32 %v2285_v27, 0.0  ;;  %v2356_v29 = vpop.f32.mrb[5].mxu1  ;;  %v12832_v44 = vmax.f32 %v2354_v41, 0.0  ;;  %v2460_v27 = vrot.slane %v10114_v60, %v16604_v25  ;;  %v2498_v41 = vrot.slane %v10115_v48, %v16604_v25 }
 0x46c   :  { %2363 = vrot.lane.b32.xlu1 %v12828_v2, %s10998_s7  ;;  %v12836_v28 = vmax.f32 %v2356_v29, 0.0 }
 0x46d   :  { %2365 = vrot.lane.b32.xlu0 %v12830_v33, %s10998_s7 }
 0x470   :  { %2367 = vrot.lane.b32.xlu1 %v12832_v44, %s10998_s7 }
 0x471   :  { %2369 = vrot.lane.b32.xlu0 %v12836_v28, %s10998_s7 }
 0x474   :  { %2401 = vrot.lane.b32.xlu1 %v12828_v2, %s10999_s8 }
 0x475   :  { %2403 = vrot.lane.b32.xlu0 %v12830_v33, %s10999_s8 }
 0x478   :  { %2405 = vrot.lane.b32.xlu1 %v12832_v44, %s10999_s8 }
 0x479   :  { %2407 = vrot.lane.b32.xlu0 %v12836_v28, %s10999_s8 }
 0x47c   :  { %2439 = vrot.lane.b32.xlu1 %v12828_v2, %s10997_s0 }
 0x47d   :  { %2441 = vrot.lane.b32.xlu0 %v12830_v33, %s10997_s0 }
 0x480   :  { %2443 = vrot.lane.b32.xlu1 %v12832_v44, %s10997_s0 }
 0x481   :  { %2445 = vrot.lane.b32.xlu0 %v12836_v28, %s10997_s0 }
 0x484   :  { %2477 = vrot.lane.b32.xlu1 %v12828_v2, %s11000_s9 }
 0x485   :  { %2479 = vrot.lane.b32.xlu0 %v12830_v33, %s11000_s9 }
 0x488   :  { %2481 = vrot.lane.b32.xlu1 %v12832_v44, %s11000_s9 }
 0x489   :  { %2483 = vrot.lane.b32.xlu0 %v12836_v28, %s11000_s9 }
 0x48c   :  { %2515 = vrot.lane.b32.xlu1 %v12828_v2, %s11002_s10 }
 0x48d   :  { %2517 = vrot.lane.b32.xlu0 %v12830_v33, %s11002_s10 }
 0x490   :  { %2519 = vrot.lane.b32.xlu1 %v12832_v44, %s11002_s10 }
 0x491   :  { %2521 = vrot.lane.b32.xlu0 %v12836_v28, %s11002_s10 }
 0x494   :  { %2553 = vrot.lane.b32.xlu1 %v12828_v2, %s11004_s11 }
 0x495   :  { %2555 = vrot.lane.b32.xlu0 %v12830_v33, %s11004_s11 }
 0x498   :  { %2557 = vrot.lane.b32.xlu1 %v12832_v44, %s11004_s11 }
 0x499   :  { %2559 = vrot.lane.b32.xlu0 %v12836_v28, %s11004_s11 }
 0x49c   :  { %2591 = vrot.lane.b32.xlu1 %v12828_v2, %s11006_s12 }
 0x49d   :  { %2593 = vrot.lane.b32.xlu0 %v12830_v33, %s11006_s12 }
 0x4a0   :  { %2595 = vrot.lane.b32.xlu1 %v12832_v44, %s11006_s12 }
 0x4a1   :  { %2597 = vrot.lane.b32.xlu0 %v12836_v28, %s11006_s12 }
 0x4a4   :  { %2629 = vrot.lane.b32.xlu1 %v12828_v2, %s11008_s13 }
 0x4a5   :  { %2631 = vrot.lane.b32.xlu0 %v12830_v33, %s11008_s13 }
 0x4a8   :  { %2633 = vrot.lane.b32.xlu1 %v12832_v44, %s11008_s13 }
 0x4a9   :  { %2635 = vrot.lane.b32.xlu0 %v12836_v28, %s11008_s13 }
 0x4de   :  { %v2364_v8 = vpop.permute.xlu1 %2363 }
 0x4df   :  { %v2366_v23 = vpop.permute.xlu0 %2365 }
 0x4e0   :  { %v2373_v3 = vsel %vm116_vm4, %v2364_v8, %v2366_v23 }
 0x4e1   :  { %v2398_v56 = vmul.f32 %v2384_v46, %v2373_v3  ;;  %v2494_v3 = vrot.slane %v10115_v48, %v11223_v15 }
 0x4e2   :  { %v2368_v16 = vpop.permute.xlu1 %2367 }
 0x4e3   :  { %v2370_v19 = vpop.permute.xlu0 %2369  ;;  %v2372_v0 = vsel %vm116_vm4, %v2366_v23, %v2368_v16 }
 0x4e4   :  { %v2371_v38 = vsel %vm116_vm4, %v2368_v16, %v2370_v19  ;;  %v2374_v21 = vsel %vm116_vm4, %v2370_v19, %v2364_v8  ;;  %v2399_v4 = vmul.f32 %v2388_v43, %v2372_v0  ;;  %v2468_v16 = vrot.slane %v10114_v60, %v16605_v11 }
 0x4e5   :  { %v2397_v40 = vmul.f32 %v2380_v32, %v2374_v21  ;;  %v2400_v18 = vmul.f32 %v2392_v10, %v2371_v38  ;;  %v2502_v19 = vrot.slane %v10115_v48, %v16606_v55  ;;  %v10116_v21 = vld [vmem:[%s16138_s2 + $0x5] ss:$8 sm:$0xf] }
 0x4e6   :  { %v2402_v14 = vpop.permute.xlu1 %2401 }
 0x4e7   :  { %v2404_v50 = vpop.permute.xlu0 %2403 }
 0x4e8   :  { %v2411_v39 = vsel %vm155_vm5, %v2402_v14, %v2404_v50 }
 0x4e9   :  { %v2436_v22 = vmul.f32 %v2422_v1, %v2411_v39 }
 0x4ea   :  { %v2406_v26 = vpop.permute.xlu1 %2405 }
 0x4eb   :  { %v2410_v24 = vsel %vm155_vm5, %v2404_v50, %v2406_v26  ;;  %v2408_v30 = vpop.permute.xlu0 %2407  ;;  %v10361_v35 = vpack.c.bf16 %v2436_v22, %v2398_v56  ;;  %v2464_v50 = vrot.slane %v10114_v60, %v16606_v55 }
 0x4ec   :  { %v2437_v45 = vmul.f32 %v2426_v57, %v2410_v24  ;;  %v2409_v42 = vsel %vm155_vm5, %v2406_v26, %v2408_v30  ;;  %v2412_v49 = vsel %vm155_vm5, %v2408_v30, %v2402_v14  ;;  %v2506_v14 = vrot.slane %v10115_v48, %v16605_v11 }
 0x4ed   :  { %v2435_v52 = vmul.f32 %v2418_v47, %v2412_v49  ;;  %v2438_v34 = vmul.f32 %v2430_v6, %v2409_v42  ;;  %10362 = vmatprep.subr.bf16.mxu0 %v10361_v35  ;;  %v2532_v42 = vrot.slane %v10116_v21, %v11223_v15 }
 0x4ee   :  { %v2440_v63 = vpop.permute.xlu1 %2439  ;;  %v10383_v37 = vpack.c.bf16 %v2437_v45, %v2399_v4 }
 0x4ef   :  { %v2442_v5 = vpop.permute.xlu0 %2441  ;;  %v10363_v51 = vpack.c.bf16 %v2435_v52, %v2397_v40  ;;  %v10381_v53 = vpack.c.bf16 %v2438_v34, %v2400_v18  ;;  %v2536_v34 = vrot.slane %v10116_v21, %v16604_v25 }
 0x4f0   :  { %v2449_v29 = vsel %vm195_vm6, %v2440_v63, %v2442_v5 }
 0x4f1   :  { %10364 = vmatpush1.bf16.msra.mxu0 %v10363_v51  ;;  %10382 = vmatprep.subr.bf16.mxu1 %v10381_v53  ;;  %v2474_v46 = vmul.f32 %v2460_v27, %v2449_v29 }
 0x4f2   :  { %v2444_v58 = vpop.permute.xlu1 %2443  ;;  %10384 = vmatpush1.bf16.msra.mxu1 %v10383_v37 }
 0x4f3   :  { %v2446_v20 = vpop.permute.xlu0 %2445  ;;  %v2448_v57 = vsel %vm195_vm6, %v2442_v5, %v2444_v58  ;;  %v2544_v5 = vrot.slane %v10116_v21, %v16605_v11 }
 0x4f4   :  { %v2447_v32 = vsel %vm195_vm6, %v2444_v58, %v2446_v20  ;;  %v2450_v10 = vsel %vm195_vm6, %v2446_v20, %v2440_v63  ;;  %v2475_v35 = vmul.f32 %v2464_v50, %v2448_v57  ;;  %v2540_v63 = vrot.slane %v10116_v21, %v16606_v55 }
 0x4f5   :  { %v2473_v26 = vmul.f32 %v2456_v36, %v2450_v10  ;;  %v2476_v0 = vmul.f32 %v2468_v16, %v2447_v32 }
 0x4f6   :  { %v2478_v8 = vpop.permute.xlu1 %2477 }
 0x4f7   :  { %v2480_v23 = vpop.permute.xlu0 %2479 }
 0x4f8   :  { %v2487_v12 = vsel %vm235_vm7, %v2478_v8, %v2480_v23 }
 0x4f9   :  { %v2512_v1 = vmul.f32 %v2498_v41, %v2487_v12 }
 0x4fa   :  { %v2482_v39 = vpop.permute.xlu1 %2481 }
 0x4fb   :  { %v2486_v56 = vsel %vm235_vm7, %v2480_v23, %v2482_v39  ;;  %v2484_v22 = vpop.permute.xlu0 %2483  ;;  %v10365_v47 = vpack.c.bf16 %v2512_v1, %v2474_v46  ;;  %v10117_v1 = vld [vmem:[%s16138_s2 + $0x6] ss:$8 sm:$0xf] }
 0x4fc   :  { %v2513_v6 = vmul.f32 %v2502_v19, %v2486_v56  ;;  %v2485_v43 = vsel %vm235_vm7, %v2482_v39, %v2484_v22  ;;  %v2488_v38 = vsel %vm235_vm7, %v2484_v22, %v2478_v8  ;;  %v2578_v32 = vrot.slane %v10117_v1, %v16606_v55 }
 0x4fd   :  { %v2511_v24 = vmul.f32 %v2494_v3, %v2488_v38  ;;  %v2514_v30 = vmul.f32 %v2506_v14, %v2485_v43  ;;  %10366 = vmatprep.subr.bf16.mxu0 %v10365_v47  ;;  %v2582_v56 = vrot.slane %v10117_v1, %v16605_v11 }
 0x4fe   :  { %v2516_v45 = vpop.permute.xlu1 %2515  ;;  %v10387_v4 = vpack.c.bf16 %v2513_v6, %v2475_v35 }
 0x4ff   :  { %v2518_v49 = vpop.permute.xlu0 %2517  ;;  %v10367_v40 = vpack.c.bf16 %v2511_v24, %v2473_v26  ;;  %v10385_v18 = vpack.c.bf16 %v2514_v30, %v2476_v0 }
 0x500   :  { %v2525_v52 = vsel %vm275_vm8, %v2516_v45, %v2518_v49 }
 0x501   :  { %10368 = vmatpush1.bf16.msra.mxu0 %v10367_v40  ;;  %10386 = vmatprep.subr.bf16.mxu1 %v10385_v18  ;;  %v2549_v53 = vmul.f32 %v2532_v42, %v2525_v52 }
 0x502   :  { %v2520_v51 = vpop.permute.xlu1 %2519  ;;  %10388 = vmatpush1.bf16.msra.mxu1 %v10387_v4 }
 0x503   :  { %v2524_v37 = vsel %vm275_vm8, %v2518_v49, %v2520_v51  ;;  %v2522_v60 = vpop.permute.xlu0 %2521  ;;  %v10371_v36 = vpack.c.bf16 %v2549_v53, %v12828_v2  ;;  %v2570_v2 = vrot.slane %v10117_v1, %v11223_v15  ;;  %v10119_v49 = vld [vmem:[%s16138_s2 + $0x20] ss:$8 sm:$0xf] }
 0x504   :  { %v2550_v58 = vmul.f32 %v2536_v34, %v2524_v37  ;;  %v2523_v48 = vsel %vm275_vm8, %v2520_v51, %v2522_v60  ;;  %v2526_v20 = vsel %vm275_vm8, %v2522_v60, %v2516_v45 }
 0x505   :  { %v2551_v27 = vmul.f32 %v2540_v63, %v2523_v48  ;;  %v2552_v41 = vmul.f32 %v2544_v5, %v2526_v20  ;;  %v2646_v5 = vrot.slane %v10119_v49, %v11223_v15  ;;  %v2650_v48 = vrot.slane %v10119_v49, %v16604_v25 }
 0x506   :  { %v2554_v29 = vpop.permute.xlu1 %2553  ;;  %v10369_v8 = vpack.c.bf16 %v2550_v58, %v12830_v33  ;;  %v10118_v33 = vld [vmem:[%s16138_s2 + $0x7] ss:$8 sm:$0xf]  ;;  %v2654_v20 = vrot.slane %v10119_v49, %v16606_v55 }
 0x507   :  { %v2556_v23 = vpop.permute.xlu0 %2555  ;;  %v10389_v16 = vpack.c.bf16 %v2552_v41, %v12836_v28  ;;  %v10391_v12 = vpack.c.bf16 %v2551_v27, %v12832_v44  ;;  %v2574_v28 = vrot.slane %v10117_v1, %v16604_v25  ;;  %v2608_v44 = vrot.slane %v10118_v33, %v11223_v15  ;;  %v13028_v1 = vld [vmem:[#allocation2 + $0x130] sm:$0xff] }
 0x508   :  { %10370 = vmatprep.subr.bf16.mxu0 %v10369_v8  ;;  %v2563_v50 = vsel %vm315_vm9, %v2554_v29, %v2556_v23  ;;  %v2612_v39 = vrot.slane %v10118_v33, %v16604_v25  ;;  %v2616_v22 = vrot.slane %v10118_v33, %v16606_v55  ;;  %v2620_v47 = vrot.slane %v10118_v33, %v16605_v11 }
 0x509   :  { %10372 = vmatpush1.bf16.msra.mxu0 %v10371_v36  ;;  %10390 = vmatprep.subr.bf16.mxu1 %v10389_v16  ;;  %v2587_v21 = vmul.f32 %v2570_v2, %v2563_v50  ;;  %v2658_v27 = vrot.slane %v10119_v49, %v16605_v11  ;;  %v2703_v50 = vld [vmem:[%s16137_s1 + $0x18] sm:$0xff] }
 0x50a   :  { %v2558_v19 = vpop.permute.xlu1 %2557  ;;  %10392 = vmatpush1.bf16.msra.mxu1 %v10391_v12 }
 0x50b   :  { %v2560_v46 = vpop.permute.xlu0 %2559  ;;  %v2562_v57 = vsel %vm315_vm9, %v2556_v23, %v2558_v19 }
 0x50c   :  { %v2561_v6 = vsel %vm315_vm9, %v2558_v19, %v2560_v46  ;;  %v2564_v43 = vsel %vm315_vm9, %v2560_v46, %v2554_v29  ;;  %v2588_v30 = vmul.f32 %v2574_v28, %v2562_v57  ;;  %v13024_v19 = vld [vmem:[#allocation2 + $0x120] sm:$0xff]  ;;  %v13026_v46 = vld [vmem:[#allocation2 + $0x138] sm:$0xff] }
 0x50d   :  { %v2589_v40 = vmul.f32 %v2578_v32, %v2561_v6  ;;  %v2590_v18 = vmul.f32 %v2582_v56, %v2564_v43  ;;  %v10122_v6 = vld [vmem:[%s16138_s2 + $0x1] ss:$8 sm:$0xf] }
 0x50e   :  { %v2592_v3 = vpop.permute.xlu1 %2591 }
 0x50f   :  { %v2594_v14 = vpop.permute.xlu0 %2593 }
 0x510   :  { %v2601_v10 = vsel %vm355_vm10, %v2592_v3, %v2594_v14 }
 0x511   :  { %v2625_v26 = vmul.f32 %v2608_v44, %v2601_v10 }
 0x512   :  { %v2596_v38 = vpop.permute.xlu1 %2595 }
 0x513   :  { %v2600_v0 = vsel %vm355_vm10, %v2594_v14, %v2596_v38  ;;  %v2598_v24 = vpop.permute.xlu0 %2597  ;;  %v10375_v53 = vpack.c.bf16 %v2625_v26, %v2587_v21  ;;  %v2948_v21 = vrot.slane %v10122_v6, %v16604_v25 }
 0x514   :  { %v2626_v35 = vmul.f32 %v2612_v39, %v2600_v0  ;;  %v2599_v45 = vsel %vm355_vm10, %v2596_v38, %v2598_v24  ;;  %v2602_v42 = vsel %vm355_vm10, %v2598_v24, %v2592_v3 }
 0x515   :  { %v2627_v52 = vmul.f32 %v2616_v22, %v2599_v45  ;;  %v2628_v34 = vmul.f32 %v2620_v47, %v2602_v42  ;;  %v2901_v22 = vld [vmem:[%s16138_s2] ss:$8 sm:$0xf]  ;;  %v2952_v42 = vrot.slane %v10122_v6, %v16606_v55 }
 0x516   :  { %v2630_v4 = vpop.permute.xlu1 %2629  ;;  %v10373_v63 = vpack.c.bf16 %v2626_v35, %v2588_v30  ;;  %v2910_v38 = vrot.slane %v2901_v22, %v16604_v25  ;;  %v2906_v30 = vrot.slane %v2901_v22, %v11223_v15  ;;  %v2918_v35 = vrot.slane %v2901_v22, %v16605_v11 }
 0x517   :  { %v2632_v51 = vpop.permute.xlu0 %2631  ;;  %v10393_v37 = vpack.c.bf16 %v2628_v34, %v2590_v18  ;;  %v10395_v60 = vpack.c.bf16 %v2627_v52, %v2589_v40  ;;  %v2944_v18 = vrot.slane %v10122_v6, %v11223_v15  ;;  %v2956_v52 = vrot.slane %v10122_v6, %v16605_v11 }
 0x518   :  { %v2639_v58 = vsel %vm395_vm11, %v2630_v4, %v2632_v51  ;;  %10374 = vmatprep.subr.bf16.mxu0 %v10373_v63  ;;  %v2914_v34 = vrot.slane %v2901_v22, %v16606_v55 }
 0x519   :  { %10376 = vmatpush1.bf16.msra.mxu0 %v10375_v53  ;;  %10394 = vmatprep.subr.bf16.mxu1 %v10393_v37  ;;  %v2663_v29 = vmul.f32 %v2646_v5, %v2639_v58 }
 0x51a   :  { %v2634_v41 = vpop.permute.xlu1 %2633  ;;  %10396 = vmatpush1.bf16.msra.mxu1 %v10395_v60 }
 0x51b   :  { %v2638_v8 = vsel %vm395_vm11, %v2632_v51, %v2634_v41  ;;  %v2636_v23 = vpop.permute.xlu0 %2635  ;;  %v10379_v28 = vpack.c.bf16 %v13024_v19, %v2663_v29 }
 0x51c   :  { %v2664_v36 = vmul.f32 %v2650_v48, %v2638_v8  ;;  %v2637_v16 = vsel %vm395_vm11, %v2634_v41, %v2636_v23  ;;  %v2640_v12 = vsel %vm395_vm11, %v2636_v23, %v2630_v4 }
 0x51d   :  { %v2665_v33 = vmul.f32 %v2654_v20, %v2637_v16  ;;  %v2666_v3 = vmul.f32 %v2658_v27, %v2640_v12 }
 0x51e   :  { %v10377_v2 = vpack.c.bf16 %v12811_v61, %v2664_v36 }
 0x51f   :  { %v10397_v44 = vpack.c.bf16 %v13026_v46, %v2666_v3  ;;  %v10399_v14 = vpack.c.bf16 %v13028_v1, %v2665_v33 }
 0x520   :  { %10378 = vmatprep.subr.bf16.mxu0 %v10377_v2  ;;  %v10123_v2 = vld [vmem:[%s16138_s2 + $0x2] ss:$8 sm:$0xf] }
 0x521   :  { %10380 = vmatpush1.bf16.msra.mxu0 %v10379_v28  ;;  %10398 = vmatprep.subr.bf16.mxu1 %v10397_v44  ;;  %v10124_v44 = vld [vmem:[%s16138_s2 + $0x3] ss:$8 sm:$0xf]  ;;  %v2982_v6 = vrot.slane %v10123_v2, %v11223_v15 }
 0x522   :  { %10400 = vmatpush1.bf16.msra.mxu1 %v10399_v14 }
 0x524   :  { %10120 = vmatmul.mubr.msk.f32.vlgmr.msra.gmra.mrb[6].mxu0 %vm878_vm13, %v2703_v50 }
 0x525   :  { %10121 = vmatmul.mubr.msk.f32.vlgmr.msra.gmra.mrb[6].mxu1 %vm878_vm13, %v2703_v50  ;;  %3337 = vmatprep.mubr.f32.mxu0 %v16284_v17  ;;  %v2986_v50 = vrot.slane %v10123_v2, %v16604_v25 }
 0x526   :  { %3408 = vmatprep.mubr.f32.mxu1 %v16284_v17 }
 0x5f7   :  { %v13041_v61 = vpop.f32.mrb[6].mxu0 }
 0x5f8   :  { %16607 = vst [vmem:[#allocation115_spill] sm:$0xff] %v13041_v61  ;;  %2889 = vrot.lane.b32.xlu1 %v13041_v61, %s10998_s7  ;;  %v13045_v32 = vpop.f32.mrb[7].mxu0  ;;  %v13047_v10 = vpop.f32.mrb[6].mxu1 }
 0x5f9   :  { %16608 = vst [vmem:[#allocation88_spill] sm:$0xff] %v13045_v32  ;;  %16609 = vst [vmem:[#allocation30_spill] sm:$0xff] %v13047_v10  ;;  %2891 = vrot.lane.b32.xlu0 %v13045_v32, %s10998_s7  ;;  %v13051_v39 = vpop.f32.mrb[7].mxu1 }
 0x5fa   :  { %16610 = vst [vmem:[#allocation116_spill] sm:$0xff] %v13051_v39 }
 0x5fc   :  { %2893 = vrot.lane.b32.xlu1 %v13047_v10, %s10998_s7 }
 0x5fd   :  { %2895 = vrot.lane.b32.xlu0 %v13051_v39, %s10998_s7 }
 0x600   :  { %2927 = vrot.lane.b32.xlu1 %v13041_v61, %s10999_s8 }
 0x601   :  { %2929 = vrot.lane.b32.xlu0 %v13045_v32, %s10999_s8 }
 0x604   :  { %2931 = vrot.lane.b32.xlu1 %v13047_v10, %s10999_s8 }
 0x605   :  { %2933 = vrot.lane.b32.xlu0 %v13051_v39, %s10999_s8 }
 0x608   :  { %2965 = vrot.lane.b32.xlu1 %v13041_v61, %s10997_s0 }
 0x609   :  { %2967 = vrot.lane.b32.xlu0 %v13045_v32, %s10997_s0 }
 0x60c   :  { %2969 = vrot.lane.b32.xlu1 %v13047_v10, %s10997_s0 }
 0x60d   :  { %2971 = vrot.lane.b32.xlu0 %v13051_v39, %s10997_s0 }
 0x610   :  { %3003 = vrot.lane.b32.xlu1 %v13041_v61, %s11000_s9 }
 0x611   :  { %3005 = vrot.lane.b32.xlu0 %v13045_v32, %s11000_s9 }
 0x614   :  { %3007 = vrot.lane.b32.xlu1 %v13047_v10, %s11000_s9 }
 0x615   :  { %3009 = vrot.lane.b32.xlu0 %v13051_v39, %s11000_s9 }
 0x618   :  { %3041 = vrot.lane.b32.xlu1 %v13041_v61, %s11002_s10 }
 0x619   :  { %3043 = vrot.lane.b32.xlu0 %v13045_v32, %s11002_s10 }
 0x61c   :  { %3045 = vrot.lane.b32.xlu1 %v13047_v10, %s11002_s10 }
 0x61d   :  { %3047 = vrot.lane.b32.xlu0 %v13051_v39, %s11002_s10 }
 0x620   :  { %3079 = vrot.lane.b32.xlu1 %v13041_v61, %s11004_s11 }
 0x621   :  { %3081 = vrot.lane.b32.xlu0 %v13045_v32, %s11004_s11 }
 0x624   :  { %3083 = vrot.lane.b32.xlu1 %v13047_v10, %s11004_s11 }
 0x625   :  { %3085 = vrot.lane.b32.xlu0 %v13051_v39, %s11004_s11 }
 0x628   :  { %3117 = vrot.lane.b32.xlu1 %v13041_v61, %s11006_s12 }
 0x629   :  { %3119 = vrot.lane.b32.xlu0 %v13045_v32, %s11006_s12 }
 0x62c   :  { %3121 = vrot.lane.b32.xlu1 %v13047_v10, %s11006_s12 }
 0x62d   :  { %3123 = vrot.lane.b32.xlu0 %v13051_v39, %s11006_s12 }
 0x630   :  { %3155 = vrot.lane.b32.xlu1 %v13041_v61, %s11008_s13 }
 0x631   :  { %3157 = vrot.lane.b32.xlu0 %v13045_v32, %s11008_s13 }
 0x634   :  { %3159 = vrot.lane.b32.xlu1 %v13047_v10, %s11008_s13 }
 0x635   :  { %3161 = vrot.lane.b32.xlu0 %v13051_v39, %s11008_s13 }
 0x66a   :  { %v2890_v57 = vpop.permute.xlu1 %2889 }
 0x66b   :  { %v2892_v56 = vpop.permute.xlu0 %2891 }
 0x66c   :  { %v2899_v26 = vsel %vm116_vm4, %v2890_v57, %v2892_v56 }
 0x66d   :  { %v2924_v49 = vmul.f32 %v2910_v38, %v2899_v26 }
 0x66e   :  { %v2894_v47 = vpop.permute.xlu1 %2893 }
 0x66f   :  { %v2896_v43 = vpop.permute.xlu0 %2895  ;;  %v2898_v51 = vsel %vm116_vm4, %v2892_v56, %v2894_v47 }
 0x670   :  { %v2897_v4 = vsel %vm116_vm4, %v2894_v47, %v2896_v43  ;;  %v2900_v63 = vsel %vm116_vm4, %v2896_v43, %v2890_v57  ;;  %v2925_v23 = vmul.f32 %v2914_v34, %v2898_v51  ;;  %v3024_v57 = vrot.slane %v10124_v44, %v16604_v25  ;;  %v10125_v51 = vld [vmem:[%s16138_s2 + $0x5] ss:$8 sm:$0xf] }
 0x671   :  { %v2923_v27 = vmul.f32 %v2906_v30, %v2900_v63  ;;  %v2926_v41 = vmul.f32 %v2918_v35, %v2897_v4  ;;  %v2994_v43 = vrot.slane %v10123_v2, %v16605_v11  ;;  %v3032_v30 = vrot.slane %v10124_v44, %v16605_v11 }
 0x672   :  { %v2928_v0 = vpop.permute.xlu1 %2927  ;;  %v2990_v35 = vrot.slane %v10123_v2, %v16606_v55 }
 0x673   :  { %v2930_v24 = vpop.permute.xlu0 %2929 }
 0x674   :  { %v2937_v45 = vsel %vm155_vm5, %v2928_v0, %v2930_v24 }
 0x675   :  { %v2962_v40 = vmul.f32 %v2948_v21, %v2937_v45  ;;  %v3028_v21 = vrot.slane %v10124_v44, %v16606_v55 }
 0x676   :  { %v2932_v5 = vpop.permute.xlu1 %2931 }
 0x677   :  { %v2936_v53 = vsel %vm155_vm5, %v2930_v24, %v2932_v5  ;;  %v2934_v37 = vpop.permute.xlu0 %2933  ;;  %v10401_v60 = vpack.c.bf16 %v2962_v40, %v2924_v49  ;;  %v3020_v24 = vrot.slane %v10124_v44, %v11223_v15 }
 0x678   :  { %v2963_v58 = vmul.f32 %v2952_v42, %v2936_v53  ;;  %v2935_v48 = vsel %vm155_vm5, %v2932_v5, %v2934_v37  ;;  %v2938_v20 = vsel %vm155_vm5, %v2934_v37, %v2928_v0 }
 0x679   :  { %v2961_v29 = vmul.f32 %v2944_v18, %v2938_v20  ;;  %v2964_v8 = vmul.f32 %v2956_v52, %v2935_v48  ;;  %10402 = vmatprep.subr.bf16.mxu0 %v10401_v60 }
 0x67a   :  { %v2966_v36 = vpop.permute.xlu1 %2965  ;;  %v10423_v3 = vpack.c.bf16 %v2963_v58, %v2925_v23 }
 0x67b   :  { %v2968_v16 = vpop.permute.xlu0 %2967  ;;  %v10403_v12 = vpack.c.bf16 %v2961_v29, %v2923_v27  ;;  %v10421_v33 = vpack.c.bf16 %v2964_v8, %v2926_v41  ;;  %v3058_v27 = vrot.slane %v10125_v51, %v11223_v15 }
 0x67c   :  { %v2975_v56 = vsel %vm195_vm6, %v2966_v36, %v2968_v16 }
 0x67d   :  { %10404 = vmatpush1.bf16.msra.mxu0 %v10403_v12  ;;  %10422 = vmatprep.subr.bf16.mxu1 %v10421_v33  ;;  %v3000_v26 = vmul.f32 %v2986_v50, %v2975_v56  ;;  %v3066_v12 = vrot.slane %v10125_v51, %v16606_v55  ;;  %v3070_v33 = vrot.slane %v10125_v51, %v16605_v11 }
 0x67e   :  { %v2970_v28 = vpop.permute.xlu1 %2969  ;;  %10424 = vmatpush1.bf16.msra.mxu1 %v10423_v3 }
 0x67f   :  { %v2972_v14 = vpop.permute.xlu0 %2971  ;;  %v2974_v40 = vsel %vm195_vm6, %v2968_v16, %v2970_v28 }
 0x680   :  { %v2973_v45 = vsel %vm195_vm6, %v2970_v28, %v2972_v14  ;;  %v2976_v42 = vsel %vm195_vm6, %v2972_v14, %v2966_v36  ;;  %v3001_v48 = vmul.f32 %v2990_v35, %v2974_v40  ;;  %v3062_v36 = vrot.slane %v10125_v51, %v16604_v25  ;;  %v10127_v35 = vld [vmem:[%s16138_s2 + $0x7] ss:$8 sm:$0xf] }
 0x681   :  { %v2999_v53 = vmul.f32 %v2982_v6, %v2976_v42  ;;  %v3002_v37 = vmul.f32 %v2994_v43, %v2973_v45  ;;  %v3134_v40 = vrot.slane %v10127_v35, %v11223_v15 }
 0x682   :  { %v3004_v22 = vpop.permute.xlu1 %3003 }
 0x683   :  { %v3006_v47 = vpop.permute.xlu0 %3005 }
 0x684   :  { %v3013_v38 = vsel %vm235_vm7, %v3004_v22, %v3006_v47 }
 0x685   :  { %v3038_v0 = vmul.f32 %v3024_v57, %v3013_v38 }
 0x686   :  { %v3008_v49 = vpop.permute.xlu1 %3007 }
 0x687   :  { %v3012_v18 = vsel %vm235_vm7, %v3006_v47, %v3008_v49  ;;  %v3010_v52 = vpop.permute.xlu0 %3009  ;;  %v10405_v34 = vpack.c.bf16 %v3038_v0, %v3000_v26 }
 0x688   :  { %v3039_v4 = vmul.f32 %v3028_v21, %v3012_v18  ;;  %v3011_v63 = vsel %vm235_vm7, %v3008_v49, %v3010_v52  ;;  %v3014_v5 = vsel %vm235_vm7, %v3010_v52, %v3004_v22 }
 0x689   :  { %v3037_v60 = vmul.f32 %v3020_v24, %v3014_v5  ;;  %v3040_v58 = vmul.f32 %v3032_v30, %v3011_v63  ;;  %10406 = vmatprep.subr.bf16.mxu0 %v10405_v34  ;;  %v10126_v30 = vld [vmem:[%s16138_s2 + $0x6] ss:$8 sm:$0xf]  ;;  %v3138_v63 = vrot.slane %v10127_v35, %v16604_v25 }
 0x68a   :  { %v3042_v20 = vpop.permute.xlu1 %3041  ;;  %v10427_v16 = vpack.c.bf16 %v3039_v4, %v3001_v48  ;;  %v3096_v42 = vrot.slane %v10126_v30, %v11223_v15  ;;  %v3100_v49 = vrot.slane %v10126_v30, %v16604_v25  ;;  %v3104_v34 = vrot.slane %v10126_v30, %v16606_v55 }
 0x68b   :  { %v3044_v41 = vpop.permute.xlu0 %3043  ;;  %v10407_v29 = vpack.c.bf16 %v3037_v60, %v2999_v53  ;;  %v10425_v8 = vpack.c.bf16 %v3040_v58, %v3002_v37  ;;  %v3108_v51 = vrot.slane %v10126_v30, %v16605_v11  ;;  %v3142_v53 = vrot.slane %v10127_v35, %v16606_v55 }
 0x68c   :  { %v3051_v23 = vsel %vm275_vm8, %v3042_v20, %v3044_v41  ;;  %v3146_v37 = vrot.slane %v10127_v35, %v16605_v11  ;;  %v13233_v35 = vld [vmem:[#allocation2 + $0x128] sm:$0xff] }
 0x68d   :  { %10408 = vmatpush1.bf16.msra.mxu0 %v10407_v29  ;;  %10426 = vmatprep.subr.bf16.mxu1 %v10425_v8  ;;  %v3075_v2 = vmul.f32 %v3058_v27, %v3051_v23 }
 0x68e   :  { %v3046_v3 = vpop.permute.xlu1 %3045  ;;  %10428 = vmatpush1.bf16.msra.mxu1 %v10427_v16 }
 0x68f   :  { %v3050_v28 = vsel %vm275_vm8, %v3044_v41, %v3046_v3  ;;  %v3048_v44 = vpop.permute.xlu0 %3047  ;;  %v10411_v38 = vpack.c.bf16 %v3075_v2, %v13041_v61 }
 0x690   :  { %v3076_v14 = vmul.f32 %v3062_v36, %v3050_v28  ;;  %v3049_v50 = vsel %vm275_vm8, %v3046_v3, %v3048_v44  ;;  %v3052_v57 = vsel %vm275_vm8, %v3048_v44, %v3042_v20 }
 0x691   :  { %v3077_v56 = vmul.f32 %v3066_v12, %v3049_v50  ;;  %v3078_v22 = vmul.f32 %v3070_v33, %v3052_v57  ;;  %v10128_v12 = vld [vmem:[%s16138_s2 + $0x20] ss:$8 sm:$0xf] }
 0x692   :  { %v3080_v47 = vpop.permute.xlu1 %3079  ;;  %v10409_v6 = vpack.c.bf16 %v3076_v14, %v13045_v32  ;;  %v3172_v50 = vrot.slane %v10128_v12, %v11223_v15  ;;  %v16653_v32 = vld [vmem:[#allocation102_spill] sm:$0xff] }
 0x693   :  { %v3082_v43 = vpop.permute.xlu0 %3081  ;;  %v10429_v21 = vpack.c.bf16 %v3078_v22, %v13051_v39  ;;  %v10431_v26 = vpack.c.bf16 %v3077_v56, %v13047_v10  ;;  %v16652_v10 = vld [vmem:[#allocation100_spill] sm:$0xff] }
 0x694   :  { %10410 = vmatprep.subr.bf16.mxu0 %v10409_v6  ;;  %v3089_v52 = vsel %vm315_vm9, %v3080_v47, %v3082_v43 }
 0x695   :  { %10412 = vmatpush1.bf16.msra.mxu0 %v10411_v38  ;;  %10430 = vmatprep.subr.bf16.mxu1 %v10429_v21  ;;  %v3113_v20 = vmul.f32 %v3096_v42, %v3089_v52  ;;  %v3180_v38 = vrot.slane %v10128_v12, %v16606_v55  ;;  %v3184_v21 = vrot.slane %v10128_v12, %v16605_v11 }
 0x696   :  { %v3084_v0 = vpop.permute.xlu1 %3083  ;;  %10432 = vmatpush1.bf16.msra.mxu1 %v10431_v26 }
 0x697   :  { %v3086_v24 = vpop.permute.xlu0 %3085  ;;  %v3088_v5 = vsel %vm315_vm9, %v3082_v43, %v3084_v0  ;;  %v3176_v43 = vrot.slane %v10128_v12, %v16604_v25 }
 0x698   :  { %v3087_v60 = vsel %vm315_vm9, %v3084_v0, %v3086_v24  ;;  %v3090_v58 = vsel %vm315_vm9, %v3086_v24, %v3080_v47  ;;  %v3114_v8 = vmul.f32 %v3100_v49, %v3088_v5  ;;  %v3229_v5 = vld [vmem:[%s16137_s1 + $0x30] sm:$0xff] }
 0x699   :  { %v3115_v33 = vmul.f32 %v3104_v34, %v3087_v60  ;;  %v3116_v3 = vmul.f32 %v3108_v51, %v3090_v58  ;;  %v3427_v60 = vld [vmem:[%s16138_s2] ss:$8 sm:$0xf] }
 0x69a   :  { %v3118_v45 = vpop.permute.xlu1 %3117 }
 0x69b   :  { %v3120_v18 = vpop.permute.xlu0 %3119 }
 0x69c   :  { %v3127_v4 = vsel %vm355_vm10, %v3118_v45, %v3120_v18 }
 0x69d   :  { %v3151_v27 = vmul.f32 %v3134_v40, %v3127_v4 }
 0x69e   :  { %v3122_v48 = vpop.permute.xlu1 %3121 }
 0x69f   :  { %v3126_v41 = vsel %vm355_vm10, %v3120_v18, %v3122_v48  ;;  %v3124_v29 = vpop.permute.xlu0 %3123  ;;  %v10415_v56 = vpack.c.bf16 %v3151_v27, %v3113_v20  ;;  %v3436_v27 = vrot.slane %v3427_v60, %v16604_v25 }
 0x6a0   :  { %v3152_v23 = vmul.f32 %v3138_v63, %v3126_v41  ;;  %v3125_v36 = vsel %vm355_vm10, %v3122_v48, %v3124_v29  ;;  %v3128_v16 = vsel %vm355_vm10, %v3124_v29, %v3118_v45  ;;  %v10131_v48 = vld [vmem:[%s16138_s2 + $0x1] ss:$8 sm:$0xf] }
 0x6a1   :  { %v3153_v2 = vmul.f32 %v3142_v53, %v3125_v36  ;;  %v3154_v28 = vmul.f32 %v3146_v37, %v3128_v16  ;;  %v3474_v41 = vrot.slane %v10131_v48, %v16604_v25  ;;  %v3432_v36 = vrot.slane %v3427_v60, %v11223_v15 }
 0x6a2   :  { %v3156_v44 = vpop.permute.xlu1 %3155  ;;  %v10413_v14 = vpack.c.bf16 %v3152_v23, %v3114_v8  ;;  %v3444_v16 = vrot.slane %v3427_v60, %v16605_v11 }
 0x6a3   :  { %v3158_v57 = vpop.permute.xlu0 %3157  ;;  %v10433_v22 = vpack.c.bf16 %v3154_v28, %v3116_v3  ;;  %v10435_v47 = vpack.c.bf16 %v3153_v2, %v3115_v33  ;;  %v3478_v33 = vrot.slane %v10131_v48, %v16606_v55  ;;  %v3470_v28 = vrot.slane %v10131_v48, %v11223_v15 }
 0x6a4   :  { %v3165_v6 = vsel %vm395_vm11, %v3156_v44, %v3158_v57  ;;  %10414 = vmatprep.subr.bf16.mxu0 %v10413_v14  ;;  %v3440_v14 = vrot.slane %v3427_v60, %v16606_v55 }
 0x6a5   :  { %10416 = vmatpush1.bf16.msra.mxu0 %v10415_v56  ;;  %10434 = vmatprep.subr.bf16.mxu1 %v10433_v22  ;;  %v3189_v0 = vmul.f32 %v3172_v50, %v3165_v6 }
 0x6a6   :  { %v3160_v26 = vpop.permute.xlu1 %3159  ;;  %10436 = vmatpush1.bf16.msra.mxu1 %v10435_v47 }
 0x6a7   :  { %v3164_v24 = vsel %vm395_vm11, %v3158_v57, %v3160_v26  ;;  %v3162_v30 = vpop.permute.xlu0 %3161  ;;  %v10419_v34 = vpack.c.bf16 %v13024_v19, %v3189_v0 }
 0x6a8   :  { %v3190_v45 = vmul.f32 %v3176_v43, %v3164_v24  ;;  %v3163_v42 = vsel %vm395_vm11, %v3160_v26, %v3162_v30  ;;  %v3166_v49 = vsel %vm395_vm11, %v3162_v30, %v3156_v44  ;;  %v3482_v44 = vrot.slane %v10131_v48, %v16605_v11 }
 0x6a9   :  { %v3191_v40 = vmul.f32 %v3180_v38, %v3163_v42  ;;  %v3192_v18 = vmul.f32 %v3184_v21, %v3166_v49 }
 0x6aa   :  { %v10417_v52 = vpack.c.bf16 %v13233_v35, %v3190_v45 }
 0x6ab   :  { %v10437_v4 = vpack.c.bf16 %v13026_v46, %v3192_v18  ;;  %v10439_v63 = vpack.c.bf16 %v13028_v1, %v3191_v40 }
 0x6ac   :  { %10418 = vmatprep.subr.bf16.mxu0 %v10417_v52 }
 0x6ad   :  { %10420 = vmatpush1.bf16.msra.mxu0 %v10419_v34  ;;  %10438 = vmatprep.subr.bf16.mxu1 %v10437_v4  ;;  %v10132_v4 = vld [vmem:[%s16138_s2 + $0x2] ss:$8 sm:$0xf] }
 0x6ae   :  { %10440 = vmatpush1.bf16.msra.mxu1 %v10439_v63 }
 0x6b0   :  { %10129 = vmatmul.mubr.msk.f32.vlgmr.msra.gmra.mrb[8].mxu0 %vm878_vm13, %v3229_v5 }
 0x6b1   :  { %10130 = vmatmul.mubr.msk.f32.vlgmr.msra.gmra.mrb[8].mxu1 %vm878_vm13, %v3229_v5  ;;  %3863 = vmatprep.mubr.f32.mxu0 %v16284_v17  ;;  %v10133_v5 = vld [vmem:[%s16138_s2 + $0x3] ss:$8 sm:$0xf] }
 0x6b2   :  { %3934 = vmatprep.mubr.f32.mxu1 %v16284_v17  ;;  %v3550_v60 = vrot.slane %v10133_v5, %v16604_v25 }
 0x783   :  { %v13250_v19 = vpop.f32.mrb[8].mxu0 }
 0x784   :  { %3415 = vrot.lane.b32.xlu1 %v13250_v19, %s10998_s7  ;;  %v13254_v46 = vpop.f32.mrb[9].mxu0  ;;  %v13256_v1 = vpop.f32.mrb[8].mxu1 }
 0x785   :  { %3417 = vrot.lane.b32.xlu0 %v13254_v46, %s10998_s7  ;;  %v13260_v51 = vpop.f32.mrb[9].mxu1 }
 0x788   :  { %3419 = vrot.lane.b32.xlu1 %v13256_v1, %s10998_s7 }
 0x789   :  { %3421 = vrot.lane.b32.xlu0 %v13260_v51, %s10998_s7 }
 0x78c   :  { %3453 = vrot.lane.b32.xlu1 %v13250_v19, %s10999_s8 }
 0x78d   :  { %3455 = vrot.lane.b32.xlu0 %v13254_v46, %s10999_s8 }
 0x790   :  { %3457 = vrot.lane.b32.xlu1 %v13256_v1, %s10999_s8 }
 0x791   :  { %3459 = vrot.lane.b32.xlu0 %v13260_v51, %s10999_s8 }
 0x794   :  { %3491 = vrot.lane.b32.xlu1 %v13250_v19, %s10997_s0 }
 0x795   :  { %3493 = vrot.lane.b32.xlu0 %v13254_v46, %s10997_s0 }
 0x798   :  { %3495 = vrot.lane.b32.xlu1 %v13256_v1, %s10997_s0 }
 0x799   :  { %3497 = vrot.lane.b32.xlu0 %v13260_v51, %s10997_s0 }
 0x79c   :  { %3529 = vrot.lane.b32.xlu1 %v13250_v19, %s11000_s9 }
 0x79d   :  { %3531 = vrot.lane.b32.xlu0 %v13254_v46, %s11000_s9 }
 0x7a0   :  { %3533 = vrot.lane.b32.xlu1 %v13256_v1, %s11000_s9 }
 0x7a1   :  { %3535 = vrot.lane.b32.xlu0 %v13260_v51, %s11000_s9 }
 0x7a4   :  { %3567 = vrot.lane.b32.xlu1 %v13250_v19, %s11002_s10 }
 0x7a5   :  { %3569 = vrot.lane.b32.xlu0 %v13254_v46, %s11002_s10 }
 0x7a8   :  { %3571 = vrot.lane.b32.xlu1 %v13256_v1, %s11002_s10 }
 0x7a9   :  { %3573 = vrot.lane.b32.xlu0 %v13260_v51, %s11002_s10 }
 0x7ac   :  { %3605 = vrot.lane.b32.xlu1 %v13250_v19, %s11004_s11 }
 0x7ad   :  { %3607 = vrot.lane.b32.xlu0 %v13254_v46, %s11004_s11 }
 0x7b0   :  { %3609 = vrot.lane.b32.xlu1 %v13256_v1, %s11004_s11 }
 0x7b1   :  { %3611 = vrot.lane.b32.xlu0 %v13260_v51, %s11004_s11 }
 0x7b4   :  { %3643 = vrot.lane.b32.xlu1 %v13250_v19, %s11006_s12 }
 0x7b5   :  { %3645 = vrot.lane.b32.xlu0 %v13254_v46, %s11006_s12 }
 0x7b8   :  { %3647 = vrot.lane.b32.xlu1 %v13256_v1, %s11006_s12 }
 0x7b9   :  { %3649 = vrot.lane.b32.xlu0 %v13260_v51, %s11006_s12 }
 0x7bc   :  { %3681 = vrot.lane.b32.xlu1 %v13250_v19, %s11008_s13 }
 0x7bd   :  { %3683 = vrot.lane.b32.xlu0 %v13254_v46, %s11008_s13 }
 0x7c0   :  { %3685 = vrot.lane.b32.xlu1 %v13256_v1, %s11008_s13 }
 0x7c1   :  { %3687 = vrot.lane.b32.xlu0 %v13260_v51, %s11008_s13 }
 0x7f6   :  { %v3416_v53 = vpop.permute.xlu1 %3415 }
 0x7f7   :  { %v3418_v37 = vpop.permute.xlu0 %3417 }
 0x7f8   :  { %v3425_v29 = vsel %vm116_vm4, %v3416_v53, %v3418_v37 }
 0x7f9   :  { %v3450_v3 = vmul.f32 %v3436_v27, %v3425_v29  ;;  %v3508_v27 = vrot.slane %v10132_v4, %v11223_v15 }
 0x7fa   :  { %v3420_v58 = vpop.permute.xlu1 %3419 }
 0x7fb   :  { %v3422_v20 = vpop.permute.xlu0 %3421  ;;  %v3424_v22 = vsel %vm116_vm4, %v3418_v37, %v3420_v58  ;;  %v3512_v37 = vrot.slane %v10132_v4, %v16604_v25 }
 0x7fc   :  { %v3423_v50 = vsel %vm116_vm4, %v3420_v58, %v3422_v20  ;;  %v3426_v57 = vsel %vm116_vm4, %v3422_v20, %v3416_v53  ;;  %v3451_v42 = vmul.f32 %v3440_v14, %v3424_v22 }
 0x7fd   :  { %v3449_v0 = vmul.f32 %v3432_v36, %v3426_v57  ;;  %v3452_v24 = vmul.f32 %v3444_v16, %v3423_v50  ;;  %v3546_v16 = vrot.slane %v10133_v5, %v11223_v15 }
 0x7fe   :  { %v3454_v8 = vpop.permute.xlu1 %3453 }
 0x7ff   :  { %v3456_v23 = vpop.permute.xlu0 %3455 }
 0x800   :  { %v3463_v12 = vsel %vm155_vm5, %v3454_v8, %v3456_v23 }
 0x801   :  { %v3488_v2 = vmul.f32 %v3474_v41, %v3463_v12  ;;  %v3520_v41 = vrot.slane %v10132_v4, %v16605_v11  ;;  %v3558_v12 = vrot.slane %v10133_v5, %v16605_v11 }
 0x802   :  { %v3458_v56 = vpop.permute.xlu1 %3457 }
 0x803   :  { %v3462_v47 = vsel %vm155_vm5, %v3456_v23, %v3458_v56  ;;  %v3460_v6 = vpop.permute.xlu0 %3459  ;;  %v10441_v43 = vpack.c.bf16 %v3488_v2, %v3450_v3 }
 0x804   :  { %v3489_v38 = vmul.f32 %v3478_v33, %v3462_v47  ;;  %v3461_v21 = vsel %vm155_vm5, %v3458_v56, %v3460_v6  ;;  %v3464_v26 = vsel %vm155_vm5, %v3460_v6, %v3454_v8  ;;  %v3554_v8 = vrot.slane %v10133_v5, %v16606_v55  ;;  %v10134_v6 = vld [vmem:[%s16138_s2 + $0x5] ss:$8 sm:$0xf] }
 0x805   :  { %v3487_v30 = vmul.f32 %v3470_v28, %v3464_v26  ;;  %v3490_v45 = vmul.f32 %v3482_v44, %v3461_v21  ;;  %10442 = vmatprep.subr.bf16.mxu0 %v10441_v43  ;;  %v3516_v33 = vrot.slane %v10132_v4, %v16606_v55  ;;  %v3596_v4 = vrot.slane %v10134_v6, %v16605_v11 }
 0x806   :  { %v3492_v49 = vpop.permute.xlu1 %3491  ;;  %v10463_v34 = vpack.c.bf16 %v3489_v38, %v3451_v42 }
 0x807   :  { %v3494_v40 = vpop.permute.xlu0 %3493  ;;  %v10443_v18 = vpack.c.bf16 %v3487_v30, %v3449_v0  ;;  %v10461_v52 = vpack.c.bf16 %v3490_v45, %v3452_v24  ;;  %v3584_v30 = vrot.slane %v10134_v6, %v11223_v15 }
 0x808   :  { %v3501_v58 = vsel %vm195_vm6, %v3492_v49, %v3494_v40 }
 0x809   :  { %10444 = vmatpush1.bf16.msra.mxu0 %v10443_v18  ;;  %10462 = vmatprep.subr.bf16.mxu1 %v10461_v52  ;;  %v3526_v23 = vmul.f32 %v3512_v37, %v3501_v58  ;;  %v3588_v18 = vrot.slane %v10134_v6, %v16604_v25 }
 0x80a   :  { %v3496_v63 = vpop.permute.xlu1 %3495  ;;  %10464 = vmatpush1.bf16.msra.mxu1 %v10463_v34  ;;  %v3592_v34 = vrot.slane %v10134_v6, %v16606_v55 }
 0x80b   :  { %v3498_v53 = vpop.permute.xlu0 %3497  ;;  %v3500_v44 = vsel %vm195_vm6, %v3494_v40, %v3496_v63 }
 0x80c   :  { %v3499_v3 = vsel %vm195_vm6, %v3496_v63, %v3498_v53  ;;  %v3502_v2 = vsel %vm195_vm6, %v3498_v53, %v3492_v49  ;;  %v3527_v0 = vmul.f32 %v3516_v33, %v3500_v44 }
 0x80d   :  { %v3525_v43 = vmul.f32 %v3508_v27, %v3502_v2  ;;  %v3528_v38 = vmul.f32 %v3520_v41, %v3499_v3  ;;  %v10135_v3 = vld [vmem:[%s16138_s2 + $0x6] ss:$8 sm:$0xf]  ;;  %v10136_v2 = vld [vmem:[%s16138_s2 + $0x7] ss:$8 sm:$0xf] }
 0x80e   :  { %v3530_v48 = vpop.permute.xlu1 %3529  ;;  %v3622_v44 = vrot.slane %v10135_v3, %v11223_v15  ;;  %v3664_v6 = vrot.slane %v10136_v2, %v16604_v25 }
 0x80f   :  { %v3532_v20 = vpop.permute.xlu0 %3531 }
 0x810   :  { %v3539_v29 = vsel %vm235_vm7, %v3530_v48, %v3532_v20 }
 0x811   :  { %v3564_v36 = vmul.f32 %v3550_v60, %v3539_v29 }
 0x812   :  { %v3534_v28 = vpop.permute.xlu1 %3533 }
 0x813   :  { %v3538_v14 = vsel %vm235_vm7, %v3532_v20, %v3534_v28  ;;  %v3536_v50 = vpop.permute.xlu0 %3535  ;;  %v10445_v57 = vpack.c.bf16 %v3564_v36, %v3526_v23 }
 0x814   :  { %v3565_v56 = vmul.f32 %v3554_v8, %v3538_v14  ;;  %v3537_v22 = vsel %vm235_vm7, %v3534_v28, %v3536_v50  ;;  %v3540_v47 = vsel %vm235_vm7, %v3536_v50, %v3530_v48  ;;  %v3626_v14 = vrot.slane %v10135_v3, %v16604_v25 }
 0x815   :  { %v3563_v21 = vmul.f32 %v3546_v16, %v3540_v47  ;;  %v3566_v26 = vmul.f32 %v3558_v12, %v3537_v22  ;;  %10446 = vmatprep.subr.bf16.mxu0 %v10445_v57  ;;  %v3660_v50 = vrot.slane %v10136_v2, %v11223_v15  ;;  %v3630_v22 = vrot.slane %v10135_v3, %v16606_v55 }
 0x816   :  { %v3568_v24 = vpop.permute.xlu1 %3567  ;;  %v10467_v52 = vpack.c.bf16 %v3565_v56, %v3527_v0 }
 0x817   :  { %v3570_v45 = vpop.permute.xlu0 %3569  ;;  %v10447_v42 = vpack.c.bf16 %v3563_v21, %v3525_v43  ;;  %v10465_v49 = vpack.c.bf16 %v3566_v26, %v3528_v38  ;;  %v3634_v38 = vrot.slane %v10135_v3, %v16605_v11  ;;  %v3668_v21 = vrot.slane %v10136_v2, %v16606_v55 }
 0x818   :  { %v3577_v40 = vsel %vm275_vm8, %v3568_v24, %v3570_v45  ;;  %v3672_v26 = vrot.slane %v10136_v2, %v16605_v11 }
 0x819   :  { %10448 = vmatpush1.bf16.msra.mxu0 %v10447_v42  ;;  %10466 = vmatprep.subr.bf16.mxu1 %v10465_v49  ;;  %v3601_v5 = vmul.f32 %v3584_v30, %v3577_v40 }
 0x81a   :  { %v3572_v63 = vpop.permute.xlu1 %3571  ;;  %10468 = vmatpush1.bf16.msra.mxu1 %v10467_v52 }
 0x81b   :  { %v3576_v53 = vsel %vm275_vm8, %v3570_v45, %v3572_v63  ;;  %v3574_v37 = vpop.permute.xlu0 %3573  ;;  %v10451_v23 = vpack.c.bf16 %v3601_v5, %v13250_v19 }
 0x81c   :  { %v3602_v60 = vmul.f32 %v3588_v18, %v3576_v53  ;;  %v3575_v58 = vsel %vm275_vm8, %v3572_v63, %v3574_v37  ;;  %v3578_v48 = vsel %vm275_vm8, %v3574_v37, %v3568_v24  ;;  %v10137_v63 = vld [vmem:[%s16138_s2 + $0x20] ss:$8 sm:$0xf] }
 0x81d   :  { %v3603_v20 = vmul.f32 %v3592_v34, %v3575_v58  ;;  %v3604_v27 = vmul.f32 %v3596_v4, %v3578_v48 }
 0x81e   :  { %v3606_v41 = vpop.permute.xlu1 %3605  ;;  %v10449_v29 = vpack.c.bf16 %v3602_v60, %v13254_v46 }
 0x81f   :  { %v3608_v8 = vpop.permute.xlu0 %3607  ;;  %v10469_v36 = vpack.c.bf16 %v3604_v27, %v13260_v51  ;;  %v10471_v16 = vpack.c.bf16 %v3603_v20, %v13256_v1  ;;  %v3698_v20 = vrot.slane %v10137_v63, %v11223_v15 }
 0x820   :  { %10450 = vmatprep.subr.bf16.mxu0 %v10449_v29  ;;  %v3615_v56 = vsel %vm315_vm9, %v3606_v41, %v3608_v8 }
 0x821   :  { %10452 = vmatpush1.bf16.msra.mxu0 %v10451_v23  ;;  %10470 = vmatprep.subr.bf16.mxu1 %v10469_v36  ;;  %v3639_v45 = vmul.f32 %v3622_v44, %v3615_v56  ;;  %v3702_v36 = vrot.slane %v10137_v63, %v16604_v25  ;;  %v13448_v56 = vld [vmem:[#allocation2 + $0x138] sm:$0xff] }
 0x822   :  { %v3610_v12 = vpop.permute.xlu1 %3609  ;;  %10472 = vmatpush1.bf16.msra.mxu1 %v10471_v16  ;;  %v3706_v16 = vrot.slane %v10137_v63, %v16606_v55 }
 0x823   :  { %v3612_v33 = vpop.permute.xlu0 %3611  ;;  %v3614_v43 = vsel %vm315_vm9, %v3608_v8, %v3610_v12 }
 0x824   :  { %v3613_v0 = vsel %vm315_vm9, %v3610_v12, %v3612_v33  ;;  %v3616_v24 = vsel %vm315_vm9, %v3612_v33, %v3606_v41  ;;  %v3640_v18 = vmul.f32 %v3626_v14, %v3614_v43  ;;  %v3710_v12 = vrot.slane %v10137_v63, %v16605_v11 }
 0x825   :  { %v3641_v5 = vmul.f32 %v3630_v22, %v3613_v0  ;;  %v3642_v53 = vmul.f32 %v3634_v38, %v3616_v24  ;;  %v13450_v22 = vld [vmem:[#allocation2 + $0x130] sm:$0xff]  ;;  %v3755_v0 = vld [vmem:[%s16137_s1 + $0x38] sm:$0xff] }
 0x826   :  { %v3644_v28 = vpop.permute.xlu1 %3643 }
 0x827   :  { %v3646_v57 = vpop.permute.xlu0 %3645 }
 0x828   :  { %v3653_v47 = vsel %vm355_vm10, %v3644_v28, %v3646_v57 }
 0x829   :  { %v3677_v42 = vmul.f32 %v3660_v50, %v3653_v47 }
 0x82a   :  { %v3648_v30 = vpop.permute.xlu1 %3647 }
 0x82b   :  { %v3652_v49 = vsel %vm355_vm10, %v3646_v57, %v3648_v30  ;;  %v3650_v40 = vpop.permute.xlu0 %3649  ;;  %v10455_v41 = vpack.c.bf16 %v3677_v42, %v3639_v45  ;;  %v13446_v57 = vld [vmem:[#allocation2 + $0x120] sm:$0xff] }
 0x82c   :  { %v3678_v52 = vmul.f32 %v3664_v6, %v3652_v49  ;;  %v3651_v34 = vsel %vm355_vm10, %v3648_v30, %v3650_v40  ;;  %v3654_v4 = vsel %vm355_vm10, %v3650_v40, %v3644_v28 }
 0x82d   :  { %v3679_v37 = vmul.f32 %v3668_v21, %v3651_v34  ;;  %v3680_v60 = vmul.f32 %v3672_v26, %v3654_v4  ;;  %v3957_v4 = vld [vmem:[%s16138_s2] ss:$8 sm:$0xf] }
 0x82e   :  { %v3682_v58 = vpop.permute.xlu1 %3681  ;;  %v10453_v48 = vpack.c.bf16 %v3678_v52, %v3640_v18 }
 0x82f   :  { %v3684_v27 = vpop.permute.xlu0 %3683  ;;  %v10473_v29 = vpack.c.bf16 %v3680_v60, %v3642_v53  ;;  %v10475_v8 = vpack.c.bf16 %v3679_v37, %v3641_v5  ;;  %v10140_v5 = vld [vmem:[%s16138_s2 + $0x1] ss:$8 sm:$0xf]  ;;  %v3966_v37 = vrot.slane %v3957_v4, %v16604_v25 }
 0x830   :  { %v3691_v23 = vsel %vm395_vm11, %v3682_v58, %v3684_v27  ;;  %10454 = vmatprep.subr.bf16.mxu0 %v10453_v48  ;;  %v4004_v60 = vrot.slane %v10140_v5, %v16604_v25 }
 0x831   :  { %10456 = vmatpush1.bf16.msra.mxu0 %v10455_v41  ;;  %10474 = vmatprep.subr.bf16.mxu1 %v10473_v29  ;;  %v3715_v3 = vmul.f32 %v3698_v20, %v3691_v23  ;;  %v3974_v41 = vrot.slane %v3957_v4, %v16605_v11 }
 0x832   :  { %v3686_v33 = vpop.permute.xlu1 %3685  ;;  %10476 = vmatpush1.bf16.msra.mxu1 %v10475_v8  ;;  %v4008_v8 = vrot.slane %v10140_v5, %v16606_v55 }
 0x833   :  { %v3690_v2 = vsel %vm395_vm11, %v3684_v27, %v3686_v33  ;;  %v3688_v28 = vpop.permute.xlu0 %3687  ;;  %v10459_v38 = vpack.c.bf16 %v13446_v57, %v3715_v3  ;;  %v3962_v27 = vrot.slane %v3957_v4, %v11223_v15 }
 0x834   :  { %v3716_v44 = vmul.f32 %v3702_v36, %v3690_v2  ;;  %v3689_v14 = vsel %vm395_vm11, %v3686_v33, %v3688_v28  ;;  %v3692_v50 = vsel %vm395_vm11, %v3688_v28, %v3682_v58  ;;  %v3970_v33 = vrot.slane %v3957_v4, %v16606_v55 }
 0x835   :  { %v3717_v47 = vmul.f32 %v3706_v16, %v3689_v14  ;;  %v3718_v6 = vmul.f32 %v3710_v12, %v3692_v50  ;;  %v4000_v16 = vrot.slane %v10140_v5, %v11223_v15  ;;  %v4012_v12 = vrot.slane %v10140_v5, %v16605_v11 }
 0x836   :  { %v10457_v43 = vpack.c.bf16 %v13233_v35, %v3716_v44 }
 0x837   :  { %v10477_v21 = vpack.c.bf16 %v13448_v56, %v3718_v6  ;;  %v10479_v26 = vpack.c.bf16 %v13450_v22, %v3717_v47 }
 0x838   :  { %10458 = vmatprep.subr.bf16.mxu0 %v10457_v43 }
 0x839   :  { %10460 = vmatpush1.bf16.msra.mxu0 %v10459_v38  ;;  %10478 = vmatprep.subr.bf16.mxu1 %v10477_v21 }
 0x83a   :  { %10480 = vmatpush1.bf16.msra.mxu1 %v10479_v26 }
 0x83c   :  { %10138 = vmatmul.mubr.msk.f32.vlgmr.msra.gmra.mrb[10].mxu0 %vm878_vm13, %v3755_v0 }
 0x83d   :  { %10139 = vmatmul.mubr.msk.f32.vlgmr.msra.gmra.mrb[10].mxu1 %vm878_vm13, %v3755_v0  ;;  %4393 = vmatprep.mubr.f32.mxu0 %v16284_v17 }
 0x83e   :  { %4464 = vmatprep.mubr.f32.mxu1 %v16284_v17 }
 0x90f   :  { %v3865_v35 = vpop.f32.mrb[10].mxu0 }
 0x910   :  { %v13463_v24 = vmax.f32 %v3865_v35, 0.0  ;;  %v3867_v30 = vpop.f32.mrb[11].mxu0  ;;  %v3936_v45 = vpop.f32.mrb[10].mxu1 }
 0x911   :  { %v13465_v42 = vmax.f32 %v3867_v30, 0.0  ;;  %v3938_v49 = vpop.f32.mrb[11].mxu1  ;;  %v13467_v40 = vmax.f32 %v3936_v45, 0.0 }
 0x912   :  { %3945 = vrot.lane.b32.xlu1 %v13463_v24, %s10998_s7  ;;  %v13471_v18 = vmax.f32 %v3938_v49, 0.0 }
 0x913   :  { %3947 = vrot.lane.b32.xlu0 %v13465_v42, %s10998_s7 }
 0x916   :  { %3949 = vrot.lane.b32.xlu1 %v13467_v40, %s10998_s7 }
 0x917   :  { %3951 = vrot.lane.b32.xlu0 %v13471_v18, %s10998_s7 }
 0x91a   :  { %3983 = vrot.lane.b32.xlu1 %v13463_v24, %s10999_s8 }
 0x91b   :  { %3985 = vrot.lane.b32.xlu0 %v13465_v42, %s10999_s8 }
 0x91e   :  { %3987 = vrot.lane.b32.xlu1 %v13467_v40, %s10999_s8 }
 0x91f   :  { %3989 = vrot.lane.b32.xlu0 %v13471_v18, %s10999_s8 }
 0x922   :  { %4021 = vrot.lane.b32.xlu1 %v13463_v24, %s10997_s0 }
 0x923   :  { %4023 = vrot.lane.b32.xlu0 %v13465_v42, %s10997_s0 }
 0x926   :  { %4025 = vrot.lane.b32.xlu1 %v13467_v40, %s10997_s0 }
 0x927   :  { %4027 = vrot.lane.b32.xlu0 %v13471_v18, %s10997_s0 }
 0x92a   :  { %4059 = vrot.lane.b32.xlu1 %v13463_v24, %s11000_s9 }
 0x92b   :  { %4061 = vrot.lane.b32.xlu0 %v13465_v42, %s11000_s9 }
 0x92e   :  { %4063 = vrot.lane.b32.xlu1 %v13467_v40, %s11000_s9 }
 0x92f   :  { %4065 = vrot.lane.b32.xlu0 %v13471_v18, %s11000_s9 }
 0x932   :  { %4097 = vrot.lane.b32.xlu1 %v13463_v24, %s11002_s10 }
 0x933   :  { %4099 = vrot.lane.b32.xlu0 %v13465_v42, %s11002_s10 }
 0x936   :  { %4101 = vrot.lane.b32.xlu1 %v13467_v40, %s11002_s10 }
 0x937   :  { %4103 = vrot.lane.b32.xlu0 %v13471_v18, %s11002_s10 }
 0x93a   :  { %4135 = vrot.lane.b32.xlu1 %v13463_v24, %s11004_s11 }
 0x93b   :  { %4137 = vrot.lane.b32.xlu0 %v13465_v42, %s11004_s11 }
 0x93e   :  { %4139 = vrot.lane.b32.xlu1 %v13467_v40, %s11004_s11 }
 0x93f   :  { %4141 = vrot.lane.b32.xlu0 %v13471_v18, %s11004_s11 }
 0x942   :  { %4173 = vrot.lane.b32.xlu1 %v13463_v24, %s11006_s12 }
 0x943   :  { %4175 = vrot.lane.b32.xlu0 %v13465_v42, %s11006_s12 }
 0x946   :  { %4177 = vrot.lane.b32.xlu1 %v13467_v40, %s11006_s12 }
 0x947   :  { %4179 = vrot.lane.b32.xlu0 %v13471_v18, %s11006_s12 }
 0x94a   :  { %4211 = vrot.lane.b32.xlu1 %v13463_v24, %s11008_s13 }
 0x94b   :  { %4213 = vrot.lane.b32.xlu0 %v13465_v42, %s11008_s13 }
 0x94e   :  { %4215 = vrot.lane.b32.xlu1 %v13467_v40, %s11008_s13 }
 0x94f   :  { %4217 = vrot.lane.b32.xlu0 %v13471_v18, %s11008_s13 }
 0x984   :  { %v3946_v52 = vpop.permute.xlu1 %3945 }
 0x985   :  { %v3948_v34 = vpop.permute.xlu0 %3947 }
 0x986   :  { %v3955_v58 = vsel %vm116_vm4, %v3946_v52, %v3948_v34 }
 0x987   :  { %v3980_v23 = vmul.f32 %v3966_v37, %v3955_v58 }
 0x988   :  { %v3950_v63 = vpop.permute.xlu1 %3949 }
 0x989   :  { %v3952_v53 = vpop.permute.xlu0 %3951  ;;  %v3954_v44 = vsel %vm116_vm4, %v3948_v34, %v3950_v63 }
 0x98a   :  { %v3953_v3 = vsel %vm116_vm4, %v3950_v63, %v3952_v53  ;;  %v3956_v2 = vsel %vm116_vm4, %v3952_v53, %v3946_v52  ;;  %v3981_v30 = vmul.f32 %v3970_v33, %v3954_v44  ;;  %v10141_v63 = vld [vmem:[%s16138_s2 + $0x2] ss:$8 sm:$0xf]  ;;  %v10142_v53 = vld [vmem:[%s16138_s2 + $0x3] ss:$8 sm:$0xf] }
 0x98b   :  { %v3979_v21 = vmul.f32 %v3962_v27, %v3956_v2  ;;  %v3982_v26 = vmul.f32 %v3974_v41, %v3953_v3  ;;  %v4080_v58 = vrot.slane %v10142_v53, %v16604_v25  ;;  %v4038_v41 = vrot.slane %v10141_v63, %v11223_v15 }
 0x98c   :  { %v3984_v48 = vpop.permute.xlu1 %3983  ;;  %v4088_v33 = vrot.slane %v10142_v53, %v16605_v11  ;;  %v4046_v3 = vrot.slane %v10141_v63, %v16606_v55 }
 0x98d   :  { %v3986_v20 = vpop.permute.xlu0 %3985 }
 0x98e   :  { %v3993_v29 = vsel %vm155_vm5, %v3984_v48, %v3986_v20 }
 0x98f   :  { %v4018_v36 = vmul.f32 %v4004_v60, %v3993_v29  ;;  %v4042_v60 = vrot.slane %v10141_v63, %v16604_v25  ;;  %v4050_v29 = vrot.slane %v10141_v63, %v16605_v11 }
 0x990   :  { %v3988_v28 = vpop.permute.xlu1 %3987 }
 0x991   :  { %v3992_v14 = vsel %vm155_vm5, %v3986_v20, %v3988_v28  ;;  %v3990_v50 = vpop.permute.xlu0 %3989  ;;  %v10481_v47 = vpack.c.bf16 %v4018_v36, %v3980_v23  ;;  %v4084_v23 = vrot.slane %v10142_v53, %v16606_v55 }
 0x992   :  { %v4019_v6 = vmul.f32 %v4008_v8, %v3992_v14  ;;  %v3991_v43 = vsel %vm155_vm5, %v3988_v28, %v3990_v50  ;;  %v3994_v38 = vsel %vm155_vm5, %v3990_v50, %v3984_v48 }
 0x993   :  { %v4017_v0 = vmul.f32 %v4000_v16, %v3994_v38  ;;  %v4020_v35 = vmul.f32 %v4012_v12, %v3991_v43  ;;  %10482 = vmatprep.subr.bf16.mxu0 %v10481_v47  ;;  %v4076_v12 = vrot.slane %v10142_v53, %v11223_v15 }
 0x994   :  { %v4022_v45 = vpop.permute.xlu1 %4021  ;;  %v10503_v4 = vpack.c.bf16 %v4019_v6, %v3981_v30 }
 0x995   :  { %v4024_v49 = vpop.permute.xlu0 %4023  ;;  %v10483_v52 = vpack.c.bf16 %v4017_v0, %v3979_v21  ;;  %v10501_v34 = vpack.c.bf16 %v4020_v35, %v3982_v26  ;;  %v10143_v26 = vld [vmem:[%s16138_s2 + $0x5] ss:$8 sm:$0xf] }
 0x996   :  { %v4031_v48 = vsel %vm195_vm6, %v4022_v45, %v4024_v49 }
 0x997   :  { %10484 = vmatpush1.bf16.msra.mxu0 %v10483_v52  ;;  %10502 = vmatprep.subr.bf16.mxu1 %v10501_v34  ;;  %v4056_v36 = vmul.f32 %v4042_v60, %v4031_v48  ;;  %v4114_v34 = vrot.slane %v10143_v26, %v11223_v15  ;;  %v4126_v48 = vrot.slane %v10143_v26, %v16605_v11 }
 0x998   :  { %v4026_v5 = vpop.permute.xlu1 %4025  ;;  %10504 = vmatpush1.bf16.msra.mxu1 %v10503_v4 }
 0x999   :  { %v4028_v37 = vpop.permute.xlu0 %4027  ;;  %v4030_v14 = vsel %vm195_vm6, %v4024_v49, %v4026_v5 }
 0x99a   :  { %v4029_v2 = vsel %vm195_vm6, %v4026_v5, %v4028_v37  ;;  %v4032_v28 = vsel %vm195_vm6, %v4028_v37, %v4022_v45  ;;  %v4057_v49 = vmul.f32 %v4046_v3, %v4030_v14  ;;  %v4118_v37 = vrot.slane %v10143_v26, %v16604_v25 }
 0x99b   :  { %v4055_v0 = vmul.f32 %v4038_v41, %v4032_v28  ;;  %v4058_v35 = vmul.f32 %v4050_v29, %v4029_v2 }
 0x99c   :  { %v4060_v20 = vpop.permute.xlu1 %4059 }
 0x99d   :  { %v4062_v27 = vpop.permute.xlu0 %4061 }
 0x99e   :  { %v4069_v8 = vsel %vm235_vm7, %v4060_v20, %v4062_v27 }
 0x99f   :  { %v4094_v16 = vmul.f32 %v4080_v58, %v4069_v8  ;;  %v4122_v58 = vrot.slane %v10143_v26, %v16606_v55 }
 0x9a0   :  { %v4064_v44 = vpop.permute.xlu1 %4063 }
 0x9a1   :  { %v4068_v50 = vsel %vm235_vm7, %v4062_v27, %v4064_v44  ;;  %v4066_v47 = vpop.permute.xlu0 %4065  ;;  %v10485_v6 = vpack.c.bf16 %v4094_v16, %v4056_v36 }
 0x9a2   :  { %v4095_v43 = vmul.f32 %v4084_v23, %v4068_v50  ;;  %v4067_v38 = vsel %vm235_vm7, %v4064_v44, %v4066_v47  ;;  %v4070_v21 = vsel %vm235_vm7, %v4066_v47, %v4060_v20 }
 0x9a3   :  { %v4093_v30 = vmul.f32 %v4076_v12, %v4070_v21  ;;  %v4096_v45 = vmul.f32 %v4088_v33, %v4067_v38  ;;  %10486 = vmatprep.subr.bf16.mxu0 %v10485_v6  ;;  %v10144_v6 = vld [vmem:[%s16138_s2 + $0x6] ss:$8 sm:$0xf] }
 0x9a4   :  { %v4098_v52 = vpop.permute.xlu1 %4097  ;;  %v10507_v60 = vpack.c.bf16 %v4095_v43, %v4057_v49  ;;  %v4160_v26 = vrot.slane %v10144_v6, %v16606_v55 }
 0x9a5   :  { %v4100_v4 = vpop.permute.xlu0 %4099  ;;  %v10487_v63 = vpack.c.bf16 %v4093_v30, %v4055_v0  ;;  %v10505_v5 = vpack.c.bf16 %v4096_v45, %v4058_v35  ;;  %v4164_v45 = vrot.slane %v10144_v6, %v16605_v11 }
 0x9a6   :  { %v4107_v53 = vsel %vm275_vm8, %v4098_v52, %v4100_v4 }
 0x9a7   :  { %10488 = vmatpush1.bf16.msra.mxu0 %v10487_v63  ;;  %10506 = vmatprep.subr.bf16.mxu1 %v10505_v5  ;;  %v4131_v27 = vmul.f32 %v4114_v34, %v4107_v53 }
 0x9a8   :  { %v4102_v20 = vpop.permute.xlu1 %4101  ;;  %10508 = vmatpush1.bf16.msra.mxu1 %v10507_v60 }
 0x9a9   :  { %v4106_v41 = vsel %vm275_vm8, %v4100_v4, %v4102_v20  ;;  %v4104_v29 = vpop.permute.xlu0 %4103  ;;  %v10491_v28 = vpack.c.bf16 %v4131_v27, %v13463_v24  ;;  %v4152_v24 = vrot.slane %v10144_v6, %v11223_v15 }
 0x9aa   :  { %v4132_v8 = vmul.f32 %v4118_v37, %v4106_v41  ;;  %v4105_v23 = vsel %vm275_vm8, %v4102_v20, %v4104_v29  ;;  %v4108_v36 = vsel %vm275_vm8, %v4104_v29, %v4098_v52  ;;  %v10146_v41 = vld [vmem:[%s16138_s2 + $0x20] ss:$8 sm:$0xf] }
 0x9ab   :  { %v4133_v16 = vmul.f32 %v4122_v58, %v4105_v23  ;;  %v4134_v12 = vmul.f32 %v4126_v48, %v4108_v36 }
 0x9ac   :  { %v4136_v33 = vpop.permute.xlu1 %4135  ;;  %v10489_v3 = vpack.c.bf16 %v4132_v8, %v13465_v42  ;;  %v10145_v42 = vld [vmem:[%s16138_s2 + $0x7] ss:$8 sm:$0xf] }
 0x9ad   :  { %v4138_v2 = vpop.permute.xlu0 %4137  ;;  %v10509_v44 = vpack.c.bf16 %v4134_v12, %v13471_v18  ;;  %v10511_v14 = vpack.c.bf16 %v4133_v16, %v13467_v40  ;;  %v4156_v18 = vrot.slane %v10144_v6, %v16604_v25  ;;  %v4190_v40 = vrot.slane %v10145_v42, %v11223_v15 }
 0x9ae   :  { %10490 = vmatprep.subr.bf16.mxu0 %v10489_v3  ;;  %v4145_v21 = vsel %vm315_vm9, %v4136_v33, %v4138_v2  ;;  %v4194_v35 = vrot.slane %v10145_v42, %v16604_v25  ;;  %v4198_v49 = vrot.slane %v10145_v42, %v16606_v55  ;;  %v4202_v52 = vrot.slane %v10145_v42, %v16605_v11 }
 0x9af   :  { %10492 = vmatpush1.bf16.msra.mxu0 %v10491_v28  ;;  %10510 = vmatprep.subr.bf16.mxu1 %v10509_v44  ;;  %v4169_v5 = vmul.f32 %v4152_v24, %v4145_v21  ;;  %v4240_v6 = vrot.slane %v10146_v41, %v16605_v11 }
 0x9b0   :  { %v4140_v50 = vpop.permute.xlu1 %4139  ;;  %10512 = vmatpush1.bf16.msra.mxu1 %v10511_v14 }
 0x9b1   :  { %v4142_v47 = vpop.permute.xlu0 %4141  ;;  %v4144_v30 = vsel %vm315_vm9, %v4138_v2, %v4140_v50 }
 0x9b2   :  { %v4143_v34 = vsel %vm315_vm9, %v4140_v50, %v4142_v47  ;;  %v4146_v4 = vsel %vm315_vm9, %v4142_v47, %v4136_v33  ;;  %v4170_v58 = vmul.f32 %v4156_v18, %v4144_v30  ;;  %v4228_v33 = vrot.slane %v10146_v41, %v11223_v15 }
 0x9b3   :  { %v4171_v29 = vmul.f32 %v4160_v26, %v4143_v34  ;;  %v4172_v8 = vmul.f32 %v4164_v45, %v4146_v4  ;;  %v4232_v50 = vrot.slane %v10146_v41, %v16604_v25  ;;  %v4236_v47 = vrot.slane %v10146_v41, %v16606_v55  ;;  %v4285_v34 = vld [vmem:[%s16137_s1 + $0x40] sm:$0xff] }
 0x9b4   :  { %v4174_v43 = vpop.permute.xlu1 %4173  ;;  %v16615_v41 = vmov 5  }
 0x9b5   :  { %v4176_v38 = vpop.permute.xlu0 %4175 }
 0x9b6   :  { %v4183_v0 = vsel %vm355_vm10, %v4174_v43, %v4176_v38 }
 0x9b7   :  { %v4207_v53 = vmul.f32 %v4190_v40, %v4183_v0  ;;  %v13655_v40 = vld [vmem:[#allocation2 + $0x128] sm:$0xff] }
 0x9b8   :  { %v4178_v63 = vpop.permute.xlu1 %4177 }
 0x9b9   :  { %v4182_v37 = vsel %vm355_vm10, %v4176_v38, %v4178_v63  ;;  %v4180_v60 = vpop.permute.xlu0 %4179  ;;  %v10495_v2 = vpack.c.bf16 %v4207_v53, %v4169_v5 }
 0x9ba   :  { %v4208_v48 = vmul.f32 %v4194_v35, %v4182_v37  ;;  %v4181_v20 = vsel %vm355_vm10, %v4178_v63, %v4180_v60  ;;  %v4184_v27 = vsel %vm355_vm10, %v4180_v60, %v4174_v43  ;;  %v5740_v60 = vld [vmem:[%s16137_s1 + $0x68] sm:$0xff] }
 0x9bb   :  { %v4209_v23 = vmul.f32 %v4198_v49, %v4181_v20  ;;  %v4210_v36 = vmul.f32 %v4202_v52, %v4184_v27  ;;  %v16613_v20 = vmov 3   ;;  %v16614_v27 = vmov 7  }
 0x9bc   :  { %v4212_v16 = vpop.permute.xlu1 %4211  ;;  %v10493_v12 = vpack.c.bf16 %v4208_v48, %v4170_v58  ;;  %v16611_v58 = vmov 2   ;;  %v16612_v48 = vmov 4  }
 0x9bd   :  { %v4214_v3 = vpop.permute.xlu0 %4213  ;;  %v10513_v28 = vpack.c.bf16 %v4210_v36, %v4172_v8  ;;  %v10515_v44 = vpack.c.bf16 %v4209_v23, %v4171_v29  ;;  %v16616_v29 = vmov 72   ;;  %v16617_v8 = vmov 6  }
 0x9be   :  { %v4221_v14 = vsel %vm395_vm11, %v4212_v16, %v4214_v3  ;;  %10494 = vmatprep.subr.bf16.mxu0 %v10493_v12  ;;  %v16618_v23 = vmov 8   ;;  %v4487_v12 = vld [vmem:[%s16138_s2] ss:$8 sm:$0xf] }
 0x9bf   :  { %10496 = vmatpush1.bf16.msra.mxu0 %v10495_v2  ;;  %10514 = vmatprep.subr.bf16.mxu1 %v10513_v28  ;;  %v4245_v43 = vmul.f32 %v4228_v33, %v4221_v14  ;;  %v4496_v28 = vrot.slane %v4487_v12, %v16604_v25 }
 0x9c0   :  { %v4216_v42 = vpop.permute.xlu1 %4215  ;;  %10516 = vmatpush1.bf16.msra.mxu1 %v10515_v44 }
 0x9c1   :  { %v4220_v24 = vsel %vm395_vm11, %v4214_v3, %v4216_v42  ;;  %v4218_v18 = vpop.permute.xlu0 %4217  ;;  %v10499_v45 = vpack.c.bf16 %v13446_v57, %v4245_v43  ;;  %v10149_v3 = vld [vmem:[%s16138_s2 + $0x1] ss:$8 sm:$0xf] }
 0x9c2   :  { %v4246_v38 = vmul.f32 %v4232_v50, %v4220_v24  ;;  %v4219_v21 = vsel %vm395_vm11, %v4216_v42, %v4218_v18  ;;  %v4222_v26 = vsel %vm395_vm11, %v4218_v18, %v4212_v16  ;;  %v4534_v44 = vrot.slane %v10149_v3, %v16604_v25 }
 0x9c3   :  { %v4247_v0 = vmul.f32 %v4236_v47, %v4219_v21  ;;  %v4248_v35 = vmul.f32 %v4240_v6, %v4222_v26  ;;  %v4492_v6 = vrot.slane %v4487_v12, %v11223_v15  ;;  %v4504_v42 = vrot.slane %v4487_v12, %v16605_v11 }
 0x9c4   :  { %v10497_v30 = vpack.c.bf16 %v13655_v40, %v4246_v38  ;;  %v4538_v24 = vrot.slane %v10149_v3, %v16606_v55  ;;  %v4530_v21 = vrot.slane %v10149_v3, %v11223_v15  ;;  %v4542_v26 = vrot.slane %v10149_v3, %v16605_v11 }
 0x9c5   :  { %v10517_v49 = vpack.c.bf16 %v13448_v56, %v4248_v35  ;;  %v10519_v52 = vpack.c.bf16 %v13450_v22, %v4247_v0  ;;  %v4500_v0 = vrot.slane %v4487_v12, %v16606_v55 }
 0x9c6   :  { %10498 = vmatprep.subr.bf16.mxu0 %v10497_v30 }
 0x9c7   :  { %10500 = vmatpush1.bf16.msra.mxu0 %v10499_v45  ;;  %10518 = vmatprep.subr.bf16.mxu1 %v10517_v49 }
 0x9c8   :  { %10520 = vmatpush1.bf16.msra.mxu1 %v10519_v52 }
 0x9ca   :  { %10147 = vmatmul.mubr.msk.f32.vlgmr.msra.gmra.mrb[12].mxu0 %vm878_vm13, %v4285_v34 }
 0x9cb   :  { %10148 = vmatmul.mubr.msk.f32.vlgmr.msra.gmra.mrb[12].mxu1 %vm878_vm13, %v4285_v34  ;;  %4923 = vmatprep.mubr.f32.mxu0 %v16284_v17 }
 0x9cc   :  { %4994 = vmatprep.mubr.f32.mxu1 %v16284_v17 }
 0xa9d   :  { %v4395_v57 = vpop.f32.mrb[12].mxu0 }
 0xa9e   :  { %v13673_v56 = vadd.f32 %v4395_v57, %v13250_v19  ;;  %v4397_v22 = vpop.f32.mrb[13].mxu0  ;;  %v4466_v4 = vpop.f32.mrb[12].mxu1 }
 0xa9f   :  { %v13676_v63 = vadd.f32 %v4397_v22, %v13254_v46  ;;  %v13679_v5 = vadd.f32 %v4466_v4, %v13256_v1  ;;  %v4468_v53 = vpop.f32.mrb[13].mxu1 }
 0xaa0   :  { %v13682_v37 = vadd.f32 %v4468_v53, %v13260_v51  ;;  %4475 = vrot.lane.b32.xlu1 %v13673_v56, %s10998_s7 }
 0xaa1   :  { %4477 = vrot.lane.b32.xlu0 %v13676_v63, %s10998_s7 }
 0xaa4   :  { %4479 = vrot.lane.b32.xlu1 %v13679_v5, %s10998_s7 }
 0xaa5   :  { %4481 = vrot.lane.b32.xlu0 %v13682_v37, %s10998_s7 }
 0xaa8   :  { %4513 = vrot.lane.b32.xlu1 %v13673_v56, %s10999_s8 }
 0xaa9   :  { %4515 = vrot.lane.b32.xlu0 %v13676_v63, %s10999_s8 }
 0xaac   :  { %4517 = vrot.lane.b32.xlu1 %v13679_v5, %s10999_s8 }
 0xaad   :  { %4519 = vrot.lane.b32.xlu0 %v13682_v37, %s10999_s8 }
 0xab0   :  { %4551 = vrot.lane.b32.xlu1 %v13673_v56, %s10997_s0 }
 0xab1   :  { %4553 = vrot.lane.b32.xlu0 %v13676_v63, %s10997_s0 }
 0xab4   :  { %4555 = vrot.lane.b32.xlu1 %v13679_v5, %s10997_s0 }
 0xab5   :  { %4557 = vrot.lane.b32.xlu0 %v13682_v37, %s10997_s0 }
 0xab8   :  { %4589 = vrot.lane.b32.xlu1 %v13673_v56, %s11000_s9 }
 0xab9   :  { %4591 = vrot.lane.b32.xlu0 %v13676_v63, %s11000_s9 }
 0xabc   :  { %4593 = vrot.lane.b32.xlu1 %v13679_v5, %s11000_s9 }
 0xabd   :  { %4595 = vrot.lane.b32.xlu0 %v13682_v37, %s11000_s9 }
 0xac0   :  { %4627 = vrot.lane.b32.xlu1 %v13673_v56, %s11002_s10 }
 0xac1   :  { %4629 = vrot.lane.b32.xlu0 %v13676_v63, %s11002_s10 }
 0xac4   :  { %4631 = vrot.lane.b32.xlu1 %v13679_v5, %s11002_s10 }
 0xac5   :  { %4633 = vrot.lane.b32.xlu0 %v13682_v37, %s11002_s10 }
 0xac8   :  { %4665 = vrot.lane.b32.xlu1 %v13673_v56, %s11004_s11 }
 0xac9   :  { %4667 = vrot.lane.b32.xlu0 %v13676_v63, %s11004_s11 }
 0xacc   :  { %4669 = vrot.lane.b32.xlu1 %v13679_v5, %s11004_s11 }
 0xacd   :  { %4671 = vrot.lane.b32.xlu0 %v13682_v37, %s11004_s11 }
 0xad0   :  { %4703 = vrot.lane.b32.xlu1 %v13673_v56, %s11006_s12 }
 0xad1   :  { %4705 = vrot.lane.b32.xlu0 %v13676_v63, %s11006_s12 }
 0xad4   :  { %4707 = vrot.lane.b32.xlu1 %v13679_v5, %s11006_s12 }
 0xad5   :  { %4709 = vrot.lane.b32.xlu0 %v13682_v37, %s11006_s12 }
 0xad8   :  { %4741 = vrot.lane.b32.xlu1 %v13673_v56, %s11008_s13 }
 0xad9   :  { %4743 = vrot.lane.b32.xlu0 %v13676_v63, %s11008_s13 }
 0xadc   :  { %4745 = vrot.lane.b32.xlu1 %v13679_v5, %s11008_s13 }
 0xadd   :  { %4747 = vrot.lane.b32.xlu0 %v13682_v37, %s11008_s13 }
 0xae0   :  { %5743 = vperm.xlu1 %10962, %v5740_v60  }
 0xae1   :  { %5767 = vperm.xlu0 %10960, %v5740_v60  }
 0xae4   :  { %10963 = vset.pattern.permute.xlu1 %v16611_v58 }
 0xae5   :  { %5795 = vperm.xlu1 %10963, %v5740_v60   ;;  %10965 = vset.pattern.permute.xlu0 %v16612_v48 }
 0xae6   :  { %5851 = vperm.xlu0 %10965, %v5740_v60  }
 0xae9   :  { %10964 = vset.pattern.permute.xlu1 %v16613_v20 }
 0xaea   :  { %5823 = vperm.xlu1 %10964, %v5740_v60   ;;  %10968 = vset.pattern.permute.xlu0 %v16614_v27 }
 0xaeb   :  { %5919 = vperm.xlu0 %10968, %v5740_v60  }
 0xaee   :  { %10966 = vset.pattern.permute.xlu1 %v16615_v41 }
 0xaef   :  { %5863 = vperm.xlu1 %10966, %v5740_v60   ;;  %10971 = vset.pattern.permute.xlu0 %v16616_v29 }
 0xaf3   :  { %10967 = vset.pattern.permute.xlu1 %v16617_v8 }
 0xaf4   :  { %5891 = vperm.xlu1 %10967, %v5740_v60  }
 0xaf8   :  { %10969 = vset.pattern.permute.xlu1 %v16618_v23 }
 0xaf9   :  { %5947 = vperm.xlu1 %10969, %v5740_v60  }
 0xafd   :  { %10970 = vset.pattern.permute.xlu1 %v16616_v29 }
 0xafe   :  { %5975 = vperm.xlu1 %10970, %v5740_v60  }
 0xb12   :  { %v4476_v36 = vpop.permute.xlu1 %4475 }
 0xb13   :  { %v4478_v16 = vpop.permute.xlu0 %4477 }
 0xb14   :  { %v4485_v14 = vsel %vm116_vm4, %v4476_v36, %v4478_v16 }
 0xb15   :  { %v4510_v18 = vmul.f32 %v4496_v28, %v4485_v14 }
 0xb16   :  { %v4480_v33 = vpop.permute.xlu1 %4479 }
 0xb17   :  { %v4482_v2 = vpop.permute.xlu0 %4481  ;;  %v4484_v49 = vsel %vm116_vm4, %v4478_v16, %v4480_v33  ;;  %v10150_v16 = vld [vmem:[%s16138_s2 + $0x2] ss:$8 sm:$0xf] }
 0xb18   :  { %v4483_v35 = vsel %vm116_vm4, %v4480_v33, %v4482_v2  ;;  %v4486_v30 = vsel %vm116_vm4, %v4482_v2, %v4476_v36  ;;  %v4511_v27 = vmul.f32 %v4500_v0, %v4484_v49  ;;  %v10151_v33 = vld [vmem:[%s16138_s2 + $0x3] ss:$8 sm:$0xf]  ;;  %v4572_v2 = vrot.slane %v10150_v16, %v16604_v25 }
 0xb19   :  { %v4509_v60 = vmul.f32 %v4492_v6, %v4486_v30  ;;  %v4512_v58 = vmul.f32 %v4504_v42, %v4483_v35  ;;  %v4610_v28 = vrot.slane %v10151_v33, %v16604_v25  ;;  %v4580_v6 = vrot.slane %v10150_v16, %v16605_v11 }
 0xb1a   :  { %v4514_v50 = vpop.permute.xlu1 %4513 }
 0xb1b   :  { %v4516_v47 = vpop.permute.xlu0 %4515 }
 0xb1c   :  { %v4523_v43 = vsel %vm155_vm5, %v4514_v50, %v4516_v47 }
 0xb1d   :  { %v4548_v38 = vmul.f32 %v4534_v44, %v4523_v43  ;;  %v4614_v43 = vrot.slane %v10151_v33, %v16606_v55 }
 0xb1e   :  { %v4518_v45 = vpop.permute.xlu1 %4517 }
 0xb1f   :  { %v4522_v52 = vsel %vm155_vm5, %v4516_v47, %v4518_v45  ;;  %v4520_v34 = vpop.permute.xlu0 %4519  ;;  %v10521_v57 = vpack.c.bf16 %v4548_v38, %v4510_v18  ;;  %v4568_v47 = vrot.slane %v10150_v16, %v11223_v15  ;;  %v4606_v38 = vrot.slane %v10151_v33, %v11223_v15 }
 0xb20   :  { %v4549_v22 = vmul.f32 %v4538_v24, %v4522_v52  ;;  %v4521_v4 = vsel %vm155_vm5, %v4518_v45, %v4520_v34  ;;  %v4524_v53 = vsel %vm155_vm5, %v4520_v34, %v4514_v50 }
 0xb21   :  { %v4547_v48 = vmul.f32 %v4530_v21, %v4524_v53  ;;  %v4550_v20 = vmul.f32 %v4542_v26, %v4521_v4  ;;  %10522 = vmatprep.subr.bf16.mxu0 %v10521_v57  ;;  %v4618_v21 = vrot.slane %v10151_v33, %v16605_v11  ;;  %v4576_v26 = vrot.slane %v10150_v16, %v16606_v55  ;;  %v10152_v53 = vld [vmem:[%s16138_s2 + $0x5] ss:$8 sm:$0xf] }
 0xb22   :  { %v4552_v41 = vpop.permute.xlu1 %4551  ;;  %v10543_v36 = vpack.c.bf16 %v4549_v22, %v4511_v27 }
 0xb23   :  { %v4554_v29 = vpop.permute.xlu0 %4553  ;;  %v10523_v8 = vpack.c.bf16 %v4547_v48, %v4509_v60  ;;  %v10541_v23 = vpack.c.bf16 %v4550_v20, %v4512_v58 }
 0xb24   :  { %v4561_v44 = vsel %vm195_vm6, %v4552_v41, %v4554_v29 }
 0xb25   :  { %10524 = vmatpush1.bf16.msra.mxu0 %v10523_v8  ;;  %10542 = vmatprep.subr.bf16.mxu1 %v10541_v23  ;;  %v4586_v24 = vmul.f32 %v4572_v2, %v4561_v44  ;;  %v4656_v2 = vrot.slane %v10152_v53, %v16605_v11 }
 0xb26   :  { %v4556_v12 = vpop.permute.xlu1 %4555  ;;  %10544 = vmatpush1.bf16.msra.mxu1 %v10543_v36 }
 0xb27   :  { %v4558_v3 = vpop.permute.xlu0 %4557  ;;  %v4560_v45 = vsel %vm195_vm6, %v4554_v29, %v4556_v12  ;;  %v4644_v29 = vrot.slane %v10152_v53, %v11223_v15 }
 0xb28   :  { %v4559_v0 = vsel %vm195_vm6, %v4556_v12, %v4558_v3  ;;  %v4562_v35 = vsel %vm195_vm6, %v4558_v3, %v4552_v41  ;;  %v4587_v27 = vmul.f32 %v4576_v26, %v4560_v45  ;;  %v4648_v12 = vrot.slane %v10152_v53, %v16604_v25 }
 0xb29   :  { %v4585_v60 = vmul.f32 %v4568_v47, %v4562_v35  ;;  %v4588_v58 = vmul.f32 %v4580_v6, %v4559_v0  ;;  %v4652_v3 = vrot.slane %v10152_v53, %v16606_v55 }
 0xb2a   :  { %v4590_v14 = vpop.permute.xlu1 %4589 }
 0xb2b   :  { %v4592_v50 = vpop.permute.xlu0 %4591 }
 0xb2c   :  { %v4599_v42 = vsel %vm235_vm7, %v4590_v14, %v4592_v50 }
 0xb2d   :  { %v4624_v18 = vmul.f32 %v4610_v28, %v4599_v42 }
 0xb2e   :  { %v4594_v30 = vpop.permute.xlu1 %4593 }
 0xb2f   :  { %v4598_v49 = vsel %vm235_vm7, %v4592_v50, %v4594_v30  ;;  %v4596_v52 = vpop.permute.xlu0 %4595  ;;  %v10525_v34 = vpack.c.bf16 %v4624_v18, %v4586_v24 }
 0xb30   :  { %v4625_v57 = vmul.f32 %v4614_v43, %v4598_v49  ;;  %v4597_v22 = vsel %vm235_vm7, %v4594_v30, %v4596_v52  ;;  %v4600_v4 = vsel %vm235_vm7, %v4596_v52, %v4590_v14  ;;  %v10153_v49 = vld [vmem:[%s16138_s2 + $0x6] ss:$8 sm:$0xf] }
 0xb31   :  { %v4623_v48 = vmul.f32 %v4606_v38, %v4600_v4  ;;  %v4626_v20 = vmul.f32 %v4618_v21, %v4597_v22  ;;  %10526 = vmatprep.subr.bf16.mxu0 %v10525_v34  ;;  %v4690_v22 = vrot.slane %v10153_v49, %v16606_v55 }
 0xb32   :  { %v4628_v41 = vpop.permute.xlu1 %4627  ;;  %v10547_v33 = vpack.c.bf16 %v4625_v57, %v4587_v27 }
 0xb33   :  { %v4630_v8 = vpop.permute.xlu0 %4629  ;;  %v10527_v23 = vpack.c.bf16 %v4623_v48, %v4585_v60  ;;  %v10545_v36 = vpack.c.bf16 %v4626_v20, %v4588_v58  ;;  %v4694_v58 = vrot.slane %v10153_v49, %v16605_v11 }
 0xb34   :  { %v4637_v16 = vsel %vm275_vm8, %v4628_v41, %v4630_v8 }
 0xb35   :  { %10528 = vmatpush1.bf16.msra.mxu0 %v10527_v23  ;;  %10546 = vmatprep.subr.bf16.mxu1 %v10545_v36  ;;  %v4661_v44 = vmul.f32 %v4644_v29, %v4637_v16 }
 0xb36   :  { %v4632_v28 = vpop.permute.xlu1 %4631  ;;  %10548 = vmatpush1.bf16.msra.mxu1 %v10547_v33 }
 0xb37   :  { %v4636_v14 = vsel %vm275_vm8, %v4630_v8, %v4632_v28  ;;  %v4634_v50 = vpop.permute.xlu0 %4633  ;;  %v10531_v26 = vpack.c.bf16 %v4661_v44, %v13673_v56  ;;  %v4682_v56 = vrot.slane %v10153_v49, %v11223_v15 }
 0xb38   :  { %v4662_v47 = vmul.f32 %v4648_v12, %v4636_v14  ;;  %v4635_v6 = vsel %vm275_vm8, %v4632_v28, %v4634_v50  ;;  %v4638_v42 = vsel %vm275_vm8, %v4634_v50, %v4628_v41  ;;  %v10155_v28 = vld [vmem:[%s16138_s2 + $0x20] ss:$8 sm:$0xf] }
 0xb39   :  { %v4663_v43 = vmul.f32 %v4652_v3, %v4635_v6  ;;  %v4664_v24 = vmul.f32 %v4656_v2, %v4638_v42 }
 0xb3a   :  { %v4666_v18 = vpop.permute.xlu1 %4665  ;;  %v10529_v38 = vpack.c.bf16 %v4662_v47, %v13676_v63  ;;  %v10154_v63 = vld [vmem:[%s16138_s2 + $0x7] ss:$8 sm:$0xf] }
 0xb3b   :  { %v4668_v21 = vpop.permute.xlu0 %4667  ;;  %v10549_v0 = vpack.c.bf16 %v4664_v24, %v13682_v37  ;;  %v10551_v35 = vpack.c.bf16 %v4663_v43, %v13679_v5  ;;  %v4686_v37 = vrot.slane %v10153_v49, %v16604_v25  ;;  %v4720_v5 = vrot.slane %v10154_v63, %v11223_v15  ;;  %v5532_v43 = vld [vmem:[%s16138_s2] ss:$8 sm:$0xf] }
 0xb3c   :  { %10530 = vmatprep.subr.bf16.mxu0 %v10529_v38  ;;  %v4675_v57 = vsel %vm315_vm9, %v4666_v18, %v4668_v21  ;;  %v4724_v53 = vrot.slane %v10154_v63, %v16604_v25  ;;  %v4728_v48 = vrot.slane %v10154_v63, %v16606_v55  ;;  %v4732_v20 = vrot.slane %v10154_v63, %v16605_v11 }
 0xb3d   :  { %10532 = vmatpush1.bf16.msra.mxu0 %v10531_v26  ;;  %10550 = vmatprep.subr.bf16.mxu1 %v10549_v0  ;;  %v4699_v8 = vmul.f32 %v4682_v56, %v4675_v57  ;;  %v4758_v24 = vrot.slane %v10155_v28, %v11223_v15  ;;  %v10168_v0 = vld [vmem:[%s16138_s2 + $0x1] ss:$8 sm:$0xf]  ;;  %v4770_v49 = vrot.slane %v10155_v28, %v16605_v11 }
 0xb3e   :  { %v4670_v30 = vpop.permute.xlu1 %4669  ;;  %10552 = vmatpush1.bf16.msra.mxu1 %v10551_v35  ;;  %v13885_v63 = vrot.slane %v5532_v43, %v11223_v15  ;;  %v13888_v56 = vrot.slane %v5532_v43, %v16605_v11 }
 0xb3f   :  { %v4672_v45 = vpop.permute.xlu0 %4671  ;;  %v4674_v60 = vsel %vm315_vm9, %v4668_v21, %v4670_v30 }
 0xb40   :  { %v4673_v27 = vsel %vm315_vm9, %v4670_v30, %v4672_v45  ;;  %v4676_v41 = vsel %vm315_vm9, %v4672_v45, %v4666_v18  ;;  %v4700_v12 = vmul.f32 %v4686_v37, %v4674_v60  ;;  %v4762_v30 = vrot.slane %v10155_v28, %v16604_v25  ;;  %16619 = vst [vmem:[#allocation117_spill] sm:$0xff] %v13885_v63 }
 0xb41   :  { %v4701_v44 = vmul.f32 %v4690_v22, %v4673_v27  ;;  %v4702_v14 = vmul.f32 %v4694_v58, %v4676_v41  ;;  %v4766_v45 = vrot.slane %v10155_v28, %v16606_v55  ;;  %16620 = vst [vmem:[#allocation118_spill] sm:$0xff] %v13888_v56  ;;  %v13891_v37 = vrot.slane %v10168_v0, %v16604_v25  ;;  %v4854_v27 = vld [vmem:[#allocation2 + $0x130] sm:$0xff] }
 0xb42   :  { %v4704_v52 = vpop.permute.xlu1 %4703  ;;  %v13906_v41 = vrot.slane %v10168_v0, %v11223_v15 }
 0xb43   :  { %v4706_v34 = vpop.permute.xlu0 %4705  ;;  %16621 = vst [vmem:[#allocation80_spill] sm:$0xff] %v13891_v37 }
 0xb44   :  { %v4713_v4 = vsel %vm355_vm10, %v4704_v52, %v4706_v34  ;;  %16623 = vst [vmem:[#allocation101_spill] sm:$0xff] %v13906_v41 }
 0xb45   :  { %v4737_v23 = vmul.f32 %v4720_v5, %v4713_v4  ;;  %v10169_v5 = vld [vmem:[%s16138_s2 + $0x2] ss:$8 sm:$0xf]  ;;  %v13899_v4 = vrot.slane %v10168_v0, %v16606_v55 }
 0xb46   :  { %v4708_v29 = vpop.permute.xlu1 %4707  ;;  %v13928_v28 = vrot.slane %v10169_v5, %v16606_v55 }
 0xb47   :  { %v4712_v36 = vsel %vm355_vm10, %v4706_v34, %v4708_v29  ;;  %v4710_v16 = vpop.permute.xlu0 %4709  ;;  %v10535_v38 = vpack.c.bf16 %v4737_v23, %v4699_v8  ;;  %16622 = vst [vmem:[#allocation98_spill] sm:$0xff] %v13899_v4 }
 0xb48   :  { %v4738_v33 = vmul.f32 %v4724_v53, %v4712_v36  ;;  %v4711_v3 = vsel %vm355_vm10, %v4708_v29, %v4710_v16  ;;  %v4714_v2 = vsel %vm355_vm10, %v4710_v16, %v4704_v52  ;;  %v13909_v29 = vrot.slane %v10168_v0, %v16605_v11  ;;  %16628 = vst [vmem:[#allocation89_spill] sm:$0xff] %v13928_v28 }
 0xb49   :  { %v4739_v50 = vmul.f32 %v4728_v48, %v4711_v3  ;;  %v4740_v47 = vmul.f32 %v4732_v20, %v4714_v2  ;;  %v4852_v48 = vld [vmem:[#allocation2 + $0x120] sm:$0xff]  ;;  %v4855_v20 = vld [vmem:[#allocation2 + $0x138] sm:$0xff]  ;;  %v13912_v36 = vrot.slane %v5532_v43, %v16604_v25  ;;  %v13915_v16 = vrot.slane %v5532_v43, %v16606_v55 }
 0xb4a   :  { %v4742_v6 = vpop.permute.xlu1 %4741  ;;  %v10533_v42 = vpack.c.bf16 %v4738_v33, %v4700_v12  ;;  %16624 = vst [vmem:[#allocation84_spill] sm:$0xff] %v13909_v29  ;;  %v13918_v12 = vrot.slane %v10169_v5, %v16604_v25  ;;  %v10170_v33 = vld [vmem:[%s16138_s2 + $0x3] ss:$8 sm:$0xf] }
 0xb4b   :  { %v4744_v18 = vpop.permute.xlu0 %4743  ;;  %v10553_v21 = vpack.c.bf16 %v4740_v47, %v4702_v14  ;;  %v10555_v26 = vpack.c.bf16 %v4739_v50, %v4701_v44  ;;  %16625 = vst [vmem:[#allocation72_spill] sm:$0xff] %v13912_v36  ;;  %16626 = vst [vmem:[#allocation123_spill] sm:$0xff] %v13915_v16  ;;  %v10171_v3 = vld [vmem:[%s16138_s2 + $0x5] ss:$8 sm:$0xf]  ;;  %v13940_v43 = vrot.slane %v10170_v33, %v16604_v25 }
 0xb4c   :  { %v4751_v35 = vsel %vm395_vm11, %v4742_v6, %v4744_v18  ;;  %10534 = vmatprep.subr.bf16.mxu0 %v10533_v42  ;;  %16627 = vst [vmem:[#allocation96_spill] sm:$0xff] %v13918_v12  ;;  %v10172_v44 = vld [vmem:[%s16138_s2 + $0x6] ss:$8 sm:$0xf]  ;;  %v13937_v42 = vrot.slane %v10169_v5, %v16605_v11  ;;  %v13961_v0 = vrot.slane %v10171_v3, %v16605_v11 }
 0xb4d   :  { %10536 = vmatpush1.bf16.msra.mxu0 %v10535_v38  ;;  %10554 = vmatprep.subr.bf16.mxu1 %v10553_v21  ;;  %v4775_v34 = vmul.f32 %v4758_v24, %v4751_v35  ;;  %16631 = vst [vmem:[#allocation108_spill] sm:$0xff] %v13940_v43  ;;  %v10173_v24 = vld [vmem:[%s16138_s2 + $0x7] ss:$8 sm:$0xf]  ;;  %v13952_v38 = vrot.slane %v10170_v33, %v16605_v11 }
 0xb4e   :  { %v4746_v52 = vpop.permute.xlu1 %4745  ;;  %10556 = vmatpush1.bf16.msra.mxu1 %v10555_v26  ;;  %16630 = vst [vmem:[#allocation97_spill] sm:$0xff] %v13937_v42  ;;  %v13955_v21 = vrot.slane %v10171_v3, %v11223_v15  ;;  %v4815_v26 = vld [vmem:[%s16137_s1 + $0x48] sm:$0xff]  ;;  %v13964_v35 = vrot.slane %v10171_v3, %v16604_v25 }
 0xb4f   :  { %v4750_v57 = vsel %vm395_vm11, %v4744_v18, %v4746_v52  ;;  %v4748_v22 = vpop.permute.xlu0 %4747  ;;  %v10539_v14 = vpack.c.bf16 %v4852_v48, %v4775_v34  ;;  %v13949_v18 = vrot.slane %v10170_v33, %v16606_v55  ;;  %v13982_v34 = vrot.slane %v10173_v24, %v16604_v25  ;;  %v16643_v48 = vld [vmem:[#allocation60_spill] sm:$0xff] }
 0xb50   :  { %v4776_v53 = vmul.f32 %v4762_v30, %v4750_v57  ;;  %v4749_v60 = vsel %vm395_vm11, %v4746_v52, %v4748_v22  ;;  %v4752_v58 = vsel %vm395_vm11, %v4748_v22, %v4742_v6  ;;  %v13934_v6 = vrot.slane %v10169_v5, %v11223_v15  ;;  %v16639_v57 = vld [vmem:[#allocation56_spill] sm:$0xff] }
 0xb51   :  { %v4777_v8 = vmul.f32 %v4766_v45, %v4749_v60  ;;  %v4778_v23 = vmul.f32 %v4770_v49, %v4752_v58  ;;  %16633 = vst [vmem:[#allocation109_spill] sm:$0xff] %v13949_v18  ;;  %v13967_v30 = vrot.slane %v10171_v3, %v16606_v55  ;;  %v13970_v45 = vrot.slane %v10172_v44, %v11223_v15  ;;  %v10174_v3 = vld [vmem:[%s16138_s2 + $0x20] ss:$8 sm:$0xf] }
 0xb52   :  { %v10537_v2 = vpack.c.bf16 %v13655_v40, %v4776_v53  ;;  %16629 = vst [vmem:[#allocation92_spill] sm:$0xff] %v13934_v6  ;;  %v13943_v40 = vrot.slane %v10170_v33, %v11223_v15  ;;  %v13973_v49 = vrot.slane %v10172_v44, %v16604_v25  ;;  %v13976_v52 = vrot.slane %v10172_v44, %v16606_v55 }
 0xb53   :  { %v10557_v50 = vpack.c.bf16 %v4855_v20, %v4778_v23  ;;  %v10559_v47 = vpack.c.bf16 %v4854_v27, %v4777_v8  ;;  %16634 = vst [vmem:[#allocation110_spill] sm:$0xff] %v13970_v45  ;;  %v13979_v5 = vrot.slane %v10172_v44, %v16605_v11  ;;  %16638 = vst [vmem:[#allocation9_spill] sm:$0xff] %v13982_v34  ;;  %v16644_v27 = vld [vmem:[#allocation81_spill] sm:$0xff] }
 0xb54   :  { %16632 = vst [vmem:[#allocation107_spill] sm:$0xff] %v13943_v40  ;;  %10538 = vmatprep.subr.bf16.mxu0 %v10537_v2  ;;  %16635 = vst [vmem:[#allocation111_spill] sm:$0xff] %v13973_v49  ;;  %v5554_v22 = vmul.f32 %v13885_v63, %v16639_v57  ;;  %v13987_v53 = vrot.slane %v10173_v24, %v11223_v15  ;;  %v13990_v60 = vrot.slane %v10173_v24, %v16606_v55  ;;  %v16645_v23 = vld [vmem:[#allocation85_spill] sm:$0xff]  ;;  %v16646_v2 = vld [vmem:[#allocation86_spill] sm:$0xff] }
 0xb55   :  { %10540 = vmatpush1.bf16.msra.mxu0 %v10539_v14  ;;  %10558 = vmatprep.subr.bf16.mxu1 %v10557_v50  ;;  %16636 = vst [vmem:[#allocation94_spill] sm:$0xff] %v13976_v52  ;;  %16637 = vst [vmem:[#allocation6_spill] sm:$0xff] %v13979_v5  ;;  %v13993_v58 = vrot.slane %v10173_v24, %v16605_v11  ;;  %v5557_v20 = vmul.f32 %v13888_v56, %v16643_v48  ;;  %v16647_v14 = vld [vmem:[#allocation90_spill] sm:$0xff]  ;;  %v16649_v57 = vld [vmem:[#allocation93_spill] sm:$0xff] }
 0xb56   :  { %10560 = vmatpush1.bf16.msra.mxu1 %v10559_v47  ;;  %16640 = vst [vmem:[#allocation7_spill] sm:$0xff] %v13987_v53  ;;  %16641 = vst [vmem:[#allocation8_spill] sm:$0xff] %v13990_v60  ;;  %v5581_v8 = vmul.f32 %v13891_v37, %v16644_v27  ;;  %v5582_v33 = vmul.f32 %v13899_v4, %v16645_v23  ;;  %v5580_v44 = vmul.f32 %v13906_v41, %v16646_v2  ;;  %v16648_v47 = vld [vmem:[#allocation91_spill] sm:$0xff] }
 0xb57   :  { %16642 = vst [vmem:[#allocation126_spill] sm:$0xff] %v13993_v58  ;;  %v5583_v50 = vmul.f32 %v13909_v29, %v16647_v14  ;;  %v5555_v24 = vmul.f32 %v13912_v36, %v16648_v47  ;;  %v5556_v48 = vmul.f32 %v13915_v16, %v16649_v57  ;;  %v16650_v27 = vld [vmem:[#allocation95_spill] sm:$0xff]  ;;  %v5606_v2 = vmul.f32 %v13934_v6, %v16652_v10  ;;  %v16660_v36 = vld [vmem:[#allocation105_spill] sm:$0xff] }
 0xb58   :  { %10156 = vmatmul.mubr.msk.f32.vlgmr.msra.gmra.mrb[14].mxu0 %vm878_vm13, %v4815_v26  ;;  %v5607_v23 = vmul.f32 %v13918_v12, %v16650_v27  ;;  %v5609_v14 = vmul.f32 %v13937_v42, %v16653_v32  ;;  %v14025_v61 = vrot.slane %v10174_v3, %v11223_v15  ;;  %v14028_v47 = vrot.slane %v10174_v3, %v16604_v25  ;;  %v16658_v37 = vld [vmem:[#allocation103_spill] sm:$0xff] }
 0xb59   :  { %10157 = vmatmul.mubr.msk.f32.vlgmr.msra.gmra.mrb[14].mxu1 %vm878_vm13, %v4815_v26  ;;  %5449 = vmatprep.mubr.f32.mxu0 %v16284_v17  ;;  %v16651_v26 = vld [vmem:[#allocation99_spill] sm:$0xff]  ;;  %v14031_v57 = vrot.slane %v10174_v3, %v16606_v55  ;;  %v14034_v27 = vrot.slane %v10174_v3, %v16605_v11  ;;  %v5777_v10 = vrot.slane %v5581_v8, %v11223_v15 }
 0xb5a   :  { %5520 = vmatprep.mubr.f32.mxu1 %v16284_v17  ;;  %v5608_v39 = vmul.f32 %v13928_v28, %v16651_v26  ;;  %16654 = vst [vmem:[#allocation10_spill] sm:$0xff] %v14025_v61  ;;  %16655 = vst [vmem:[#allocation12_spill] sm:$0xff] %v14028_v47  ;;  %v5749_v26 = vrot.slane %v5554_v22, %v11223_v15  ;;  %v5761_v17 = vrot.slane %v5557_v20, %v11223_v15 }
 0xb5b   :  { %16656 = vst [vmem:[#allocation28_spill] sm:$0xff] %v14031_v57  ;;  %16657 = vst [vmem:[#allocation20_spill] sm:$0xff] %v14034_v27  ;;  %v5781_v32 = vrot.slane %v5582_v33, %v11223_v15  ;;  %v5773_v28 = vrot.slane %v5580_v44, %v11223_v15  ;;  %v5785_v42 = vrot.slane %v5583_v50, %v11223_v15 }
 0xb5c   :  { %v5753_v6 = vrot.slane %v5555_v24, %v11223_v15  ;;  %v5757_v12 = vrot.slane %v5556_v48, %v11223_v15  ;;  %v5805_v4 = vrot.slane %v5607_v23, %v11223_v15  ;;  %v5809_v3 = vrot.slane %v5608_v39, %v11223_v15  ;;  %v16659_v23 = vld [vmem:[#allocation104_spill] sm:$0xff] }
 0xb5d   :  { %v5801_v22 = vrot.slane %v5606_v2, %v11223_v15  ;;  %v5813_v20 = vrot.slane %v5609_v14, %v11223_v15  ;;  %v5633_v48 = vmul.f32 %v13940_v43, %v16658_v37  ;;  %v5632_v39 = vmul.f32 %v13943_v40, %v16659_v23  ;;  %v16661_v14 = vld [vmem:[#allocation106_spill] sm:$0xff]  ;;  %v16664_v37 = vld [vmem:[#allocation11_spill] sm:$0xff]  ;;  %v16665_v23 = vld [vmem:[#allocation112_spill] sm:$0xff] }
 0xb5e   :  { %v5634_v2 = vmul.f32 %v13949_v18, %v16660_v36  ;;  %v5660_v40 = vmul.f32 %v13967_v30, %v16665_v23 }
 0xb5f   :  { %v5744_v16 = vpop.permute.xlu1 %5743 }
 0xb60   :  { %v5762_v8 = vmul.f32 %v5749_v26, %v5744_v16  ;;  %v5763_v63 = vmul.f32 %v5753_v6, %v5744_v16  ;;  %v5764_v33 = vmul.f32 %v5757_v12, %v5744_v16  ;;  %v5765_v56 = vmul.f32 %v5761_v17, %v5744_v16  ;;  %v5768_v44 = vpop.permute.xlu0 %5767 }
 0xb61   :  { %v5786_v41 = vmul.f32 %v5773_v28, %v5768_v44  ;;  %v5787_v50 = vmul.f32 %v5777_v10, %v5768_v44  ;;  %v5788_v29 = vmul.f32 %v5781_v32, %v5768_v44  ;;  %v5789_v24 = vmul.f32 %v5785_v42, %v5768_v44  ;;  %v16662_v28 = vld [vmem:[#allocation47_spill] sm:$0xff]  ;;  %v16663_v42 = vld [vmem:[#allocation61_spill] sm:$0xff] }
 0xb62   :  { %v5635_v26 = vmul.f32 %v13952_v38, %v16661_v14  ;;  %v5658_v10 = vmul.f32 %v13955_v21, %v16662_v28  ;;  %v5661_v32 = vmul.f32 %v13961_v0, %v16663_v42  ;;  %v5659_v44 = vmul.f32 %v13964_v35, %v16664_v37 }
 0xb63   :  { %v5790_v6 = vadd.f32 %v5786_v41, %v5762_v8  ;;  %v5791_v12 = vadd.f32 %v5787_v50, %v5763_v63  ;;  %v5792_v17 = vadd.f32 %v5788_v29, %v5764_v33  ;;  %v5793_v16 = vadd.f32 %v5789_v24, %v5765_v56 }
 0xb64   :  { %v5796_v36 = vpop.permute.xlu1 %5795  ;;  %v5833_v63 = vrot.slane %v5633_v48, %v11223_v15  ;;  %v5829_v56 = vrot.slane %v5632_v39, %v11223_v15  ;;  %v5837_v29 = vrot.slane %v5634_v2, %v11223_v15  ;;  %v5841_v8 = vrot.slane %v5635_v26, %v11223_v15 }
 0xb65   :  { %v5814_v18 = vmul.f32 %v5801_v22, %v5796_v36  ;;  %v5815_v43 = vmul.f32 %v5805_v4, %v5796_v36  ;;  %v5816_v14 = vmul.f32 %v5809_v3, %v5796_v36  ;;  %v5817_v41 = vmul.f32 %v5813_v20, %v5796_v36  ;;  %v5852_v22 = vpop.permute.xlu0 %5851 }
 0xb66   :  { %v5869_v42 = vrot.slane %v5658_v10, %v11223_v15  ;;  %v5881_v37 = vrot.slane %v5661_v32, %v11223_v15  ;;  %v5873_v4 = vrot.slane %v5659_v44, %v11223_v15  ;;  %v5877_v3 = vrot.slane %v5660_v40, %v11223_v15  ;;  %v16667_v10 = vld [vmem:[#allocation113_spill] sm:$0xff]  ;;  %v16668_v32 = vld [vmem:[#allocation119_spill] sm:$0xff]  ;;  %v16669_v44 = vld [vmem:[#allocation120_spill] sm:$0xff] }
 0xb67   :  { %v5818_v33 = vadd.f32 %v5814_v18, %v5790_v6  ;;  %v5819_v50 = vadd.f32 %v5815_v43, %v5791_v12  ;;  %v5820_v24 = vadd.f32 %v5816_v14, %v5792_v17  ;;  %v5821_v28 = vadd.f32 %v5817_v41, %v5793_v16  ;;  %v16666_v17 = vld [vmem:[#allocation114_spill] sm:$0xff]  ;;  %v16670_v14 = vld [vmem:[#allocation121_spill] sm:$0xff] }
 0xb68   :  { %v5854_v20 = vmul.f32 %v5852_v22, %v16527_v7  ;;  %v5855_v48 = vmul.f32 %v5852_v22, %v16528_v31  ;;  %v5856_v39 = vmul.f32 %v5852_v22, %v16529_v9  ;;  %v5857_v18 = vmul.f32 %v5852_v22, %v16530_v13  ;;  %v16673_v22 = vld [vmem:[#allocation125_spill] sm:$0xff] }
 0xb69   :  { %v5824_v43 = vpop.permute.xlu1 %5823  ;;  %v5684_v16 = vmul.f32 %v13970_v45, %v16666_v17  ;;  %v5685_v40 = vmul.f32 %v13973_v49, %v16667_v10  ;;  %v5686_v7 = vmul.f32 %v13976_v52, %v16668_v32  ;;  %v5687_v31 = vmul.f32 %v13979_v5, %v16669_v44 }
 0xb6a   :  { %v5842_v2 = vmul.f32 %v5829_v56, %v5824_v43  ;;  %v5843_v26 = vmul.f32 %v5833_v63, %v5824_v43  ;;  %v5844_v6 = vmul.f32 %v5837_v29, %v5824_v43  ;;  %v5845_v12 = vmul.f32 %v5841_v8, %v5824_v43  ;;  %v16671_v63 = vld [vmem:[#allocation122_spill] sm:$0xff]  ;;  %v16672_v29 = vld [vmem:[#allocation124_spill] sm:$0xff] }
 0xb6b   :  { %v5710_v41 = vmul.f32 %v13987_v53, %v16670_v14  ;;  %v5711_v56 = vmul.f32 %v13982_v34, %v16671_v63  ;;  %v5712_v8 = vmul.f32 %v13990_v60, %v16672_v29  ;;  %v5713_v43 = vmul.f32 %v13993_v58, %v16673_v22 }
 0xb6c   :  { %v5846_v9 = vadd.f32 %v5842_v2, %v5818_v33  ;;  %v5847_v23 = vadd.f32 %v5843_v26, %v5819_v50  ;;  %v5848_v13 = vadd.f32 %v5844_v6, %v5820_v24  ;;  %v5849_v36 = vadd.f32 %v5845_v12, %v5821_v28 }
 0xb6d   :  { %v5897_v26 = vrot.slane %v5684_v16, %v11223_v15  ;;  %v5901_v6 = vrot.slane %v5685_v40, %v11223_v15  ;;  %v5905_v12 = vrot.slane %v5686_v7, %v11223_v15  ;;  %v5909_v14 = vrot.slane %v5687_v31, %v11223_v15 }
 0xb6e   :  { %v5864_v17 = vpop.permute.xlu1 %5863  ;;  %v5858_v10 = vadd.f32 %v5854_v20, %v5846_v9  ;;  %v5859_v32 = vadd.f32 %v5855_v48, %v5847_v23  ;;  %v5860_v44 = vadd.f32 %v5856_v39, %v5848_v13  ;;  %v5861_v33 = vadd.f32 %v5857_v18, %v5849_v36  ;;  %v16675_v18 = vld [vmem:[#allocation128_spill] sm:$0xff] }
 0xb6f   :  { %v5882_v50 = vmul.f32 %v5869_v42, %v5864_v17  ;;  %v5883_v24 = vmul.f32 %v5873_v4, %v5864_v17  ;;  %v5884_v28 = vmul.f32 %v5877_v3, %v5864_v17  ;;  %v5885_v2 = vmul.f32 %v5881_v37, %v5864_v17  ;;  %v5920_v4 = vpop.permute.xlu0 %5919  ;;  %v16674_v3 = vld [vmem:[#allocation127_spill] sm:$0xff] }
 0xb70   :  { %v5925_v20 = vrot.slane %v5710_v41, %v11223_v15  ;;  %v5929_v48 = vrot.slane %v5711_v56, %v11223_v15  ;;  %v5933_v42 = vrot.slane %v5712_v8, %v11223_v15  ;;  %v5937_v37 = vrot.slane %v5713_v43, %v11223_v15 }
 0xb71   :  { %v5886_v63 = vadd.f32 %v5882_v50, %v5858_v10  ;;  %v5887_v29 = vadd.f32 %v5883_v24, %v5859_v32  ;;  %v5888_v22 = vadd.f32 %v5884_v28, %v5860_v44  ;;  %v5889_v52 = vadd.f32 %v5885_v2, %v5861_v33 }
 0xb72   :  { %v5736_v39 = vmul.f32 %v14025_v61, %v16674_v3  ;;  %v5737_v16 = vmul.f32 %v14028_v47, %v16675_v18  ;;  %v5738_v40 = vmul.f32 %v14031_v57, %v12056_v62  ;;  %v5739_v7 = vmul.f32 %v14034_v27, %v12060_v54 }
 0xb73   :  { %v5892_v31 = vpop.permute.xlu1 %5891  ;;  %v5938_v41 = vmul.f32 %v5925_v20, %v5920_v4  ;;  %v5939_v56 = vmul.f32 %v5929_v48, %v5920_v4  ;;  %v5940_v8 = vmul.f32 %v5933_v42, %v5920_v4  ;;  %v5941_v43 = vmul.f32 %v5937_v37, %v5920_v4 }
 0xb74   :  { %v5910_v9 = vmul.f32 %v5897_v26, %v5892_v31  ;;  %v5911_v23 = vmul.f32 %v5901_v6, %v5892_v31  ;;  %v5912_v13 = vmul.f32 %v5905_v12, %v5892_v31  ;;  %v5913_v36 = vmul.f32 %v5909_v14, %v5892_v31 }
 0xb75   :  { %v5953_v33 = vrot.slane %v5736_v39, %v11223_v15  ;;  %v5957_v62 = vrot.slane %v5737_v16, %v11223_v15  ;;  %v5961_v50 = vrot.slane %v5738_v40, %v11223_v15  ;;  %v5965_v54 = vrot.slane %v5739_v7, %v11223_v15 }
 0xb76   :  { %v5914_v17 = vadd.f32 %v5910_v9, %v5886_v63  ;;  %v5915_v10 = vadd.f32 %v5911_v23, %v5887_v29  ;;  %v5916_v32 = vadd.f32 %v5912_v13, %v5888_v22  ;;  %v5917_v44 = vadd.f32 %v5913_v36, %v5889_v52 }
 0xb78   :  { %v5948_v24 = vpop.permute.xlu1 %5947  ;;  %v5942_v28 = vadd.f32 %v5938_v41, %v5914_v17  ;;  %v5943_v2 = vadd.f32 %v5939_v56, %v5915_v10  ;;  %v5944_v26 = vadd.f32 %v5940_v8, %v5916_v32  ;;  %v5945_v6 = vadd.f32 %v5941_v43, %v5917_v44 }
 0xb79   :  { %v5966_v12 = vmul.f32 %v5953_v33, %v5948_v24  ;;  %v5967_v14 = vmul.f32 %v5957_v62, %v5948_v24  ;;  %v5968_v20 = vmul.f32 %v5961_v50, %v5948_v24  ;;  %v5969_v63 = vmul.f32 %v5965_v54, %v5948_v24 }
 0xb7b   :  { %v5970_v29 = vadd.f32 %v5966_v12, %v5942_v28  ;;  %v5971_v22 = vadd.f32 %v5967_v14, %v5943_v2  ;;  %v5972_v52 = vadd.f32 %v5968_v20, %v5944_v26  ;;  %v5973_v48 = vadd.f32 %v5969_v63, %v5945_v6 }
 0xb7d   :  { %v5976_v42 = vpop.permute.xlu1 %5975 }
 0xb7e   :  { %v5978_v37 = vadd.f32 %v5976_v42, %v5970_v29  ;;  %v5979_v4 = vadd.f32 %v5976_v42, %v5971_v22  ;;  %v5980_v3 = vadd.f32 %v5976_v42, %v5972_v52  ;;  %v5981_v39 = vadd.f32 %v5976_v42, %v5973_v48  ;;  %v5013_v52 = vld [vmem:[%s16138_s2] ss:$8 sm:$0xf]  ;;  %v10158_v42 = vld [vmem:[%s16138_s2 + $0x1] ss:$8 sm:$0xf] }
 0xb7f   :  { %v5064_v57 = vrot.slane %v10158_v42, %v16606_v55  ;;  %v5056_v45 = vrot.slane %v10158_v42, %v11223_v15  ;;  %v5026_v60 = vrot.slane %v5013_v52, %v16606_v55 }
 0xb80   :  { %v14112_v18 = vmax.f32 %v5978_v37, 0.0  ;;  %v14114_v16 = vmax.f32 %v5979_v4, 0.0  ;;  %v14120_v40 = vmax.f32 %v5980_v3, 0.0  ;;  %v14122_v7 = vmax.f32 %v5981_v39, 0.0 }
 0xb81   :  { %v5022_v4 = vrot.slane %v5013_v52, %v16604_v25  ;;  %v5060_v3 = vrot.slane %v10158_v42, %v16604_v25 }
 0xb82   :  { %16676 = vst [vmem:[#allocation29_spill] sm:$0xff] %v14112_v18  ;;  %16677 = vst [vmem:[#allocation22_spill] sm:$0xff] %v14114_v16  ;;  %5988 = vrot.lane.b32.xlu1 %v14114_v16, %s10998_s7  ;;  %5986 = vrot.lane.b32.xlu0 %v14112_v18, %s10998_s7 }
 0xb83   :  { %16678 = vst [vmem:[#allocation16_spill] sm:$0xff] %v14120_v40  ;;  %16679 = vst [vmem:[#allocation18_spill] sm:$0xff] %v14122_v7 }
 0xb86   :  { %5992 = vrot.lane.b32.xlu1 %v14122_v7, %s10998_s7  ;;  %5990 = vrot.lane.b32.xlu0 %v14120_v40, %s10998_s7 }
 0xb8a   :  { %6004 = vrot.lane.b32.xlu1 %v14114_v16, %s10999_s8  ;;  %6002 = vrot.lane.b32.xlu0 %v14112_v18, %s10999_s8 }
 0xb8e   :  { %6008 = vrot.lane.b32.xlu1 %v14122_v7, %s10999_s8  ;;  %6006 = vrot.lane.b32.xlu0 %v14120_v40, %s10999_s8 }
 0xb92   :  { %6020 = vrot.lane.b32.xlu1 %v14114_v16, %s10997_s0  ;;  %6018 = vrot.lane.b32.xlu0 %v14112_v18, %s10997_s0 }
 0xb96   :  { %6024 = vrot.lane.b32.xlu1 %v14122_v7, %s10997_s0  ;;  %6022 = vrot.lane.b32.xlu0 %v14120_v40, %s10997_s0 }
 0xb9a   :  { %6036 = vrot.lane.b32.xlu1 %v14114_v16, %s11000_s9  ;;  %6034 = vrot.lane.b32.xlu0 %v14112_v18, %s11000_s9 }
 0xb9e   :  { %6040 = vrot.lane.b32.xlu1 %v14122_v7, %s11000_s9  ;;  %6038 = vrot.lane.b32.xlu0 %v14120_v40, %s11000_s9 }
 0xba2   :  { %6052 = vrot.lane.b32.xlu1 %v14114_v16, %s11002_s10  ;;  %6050 = vrot.lane.b32.xlu0 %v14112_v18, %s11002_s10 }
 0xba6   :  { %6056 = vrot.lane.b32.xlu1 %v14122_v7, %s11002_s10  ;;  %6054 = vrot.lane.b32.xlu0 %v14120_v40, %s11002_s10 }
 0xbaa   :  { %6068 = vrot.lane.b32.xlu1 %v14114_v16, %s11004_s11  ;;  %6066 = vrot.lane.b32.xlu0 %v14112_v18, %s11004_s11 }
 0xc2b   :  { %v4925_v31 = vpop.f32.mrb[14].mxu0 }
 0xc2c   :  { %v14165_v9 = vadd.f32 %v4925_v31, %v13250_v19  ;;  %v4927_v23 = vpop.f32.mrb[15].mxu0  ;;  %v4996_v13 = vpop.f32.mrb[14].mxu1 }
 0xc2d   :  { %v14168_v36 = vadd.f32 %v4927_v23, %v13254_v46  ;;  %v14171_v41 = vadd.f32 %v4996_v13, %v13256_v1  ;;  %v4998_v56 = vpop.f32.mrb[15].mxu1  ;;  %v14228_v19 = vpop.permute.xlu0 %5986  ;;  %v5018_v13 = vrot.slane %v5013_v52, %v11223_v15 }
 0xc2e   :  { %v14174_v8 = vadd.f32 %v4998_v56, %v13260_v51  ;;  %5001 = vrot.lane.b32.xlu0 %v14165_v9, %s10998_s7  ;;  %v14230_v46 = vpop.permute.xlu1 %5988  ;;  %v5030_v56 = vrot.slane %v5013_v52, %v16605_v11 }
 0xc2f   :  { %5003 = vrot.lane.b32.xlu1 %v14168_v36, %s10998_s7 }
 0xc31   :  { %v14236_v1 = vpop.permute.xlu0 %5990 }
 0xc32   :  { %5005 = vrot.lane.b32.xlu0 %v14171_v41, %s10998_s7  ;;  %v14240_v51 = vpop.permute.xlu1 %5992 }
 0xc33   :  { %5007 = vrot.lane.b32.xlu1 %v14174_v8, %s10998_s7 }
 0xc35   :  { %v14248_v43 = vpop.permute.xlu0 %6002 }
 0xc36   :  { %5039 = vrot.lane.b32.xlu0 %v14165_v9, %s10999_s8  ;;  %v14250_v17 = vpop.permute.xlu1 %6004 }
 0xc37   :  { %5041 = vrot.lane.b32.xlu1 %v14168_v36, %s10999_s8 }
 0xc39   :  { %v14256_v10 = vpop.permute.xlu0 %6006 }
 0xc3a   :  { %5043 = vrot.lane.b32.xlu0 %v14171_v41, %s10999_s8  ;;  %v14260_v32 = vpop.permute.xlu1 %6008 }
 0xc3b   :  { %5045 = vrot.lane.b32.xlu1 %v14174_v8, %s10999_s8 }
 0xc3d   :  { %v14268_v44 = vpop.permute.xlu0 %6018 }
 0xc3e   :  { %5077 = vrot.lane.b32.xlu0 %v14165_v9, %s10997_s0  ;;  %v14270_v33 = vpop.permute.xlu1 %6020 }
 0xc3f   :  { %5079 = vrot.lane.b32.xlu1 %v14168_v36, %s10997_s0 }
 0xc41   :  { %v14276_v62 = vpop.permute.xlu0 %6022 }
 0xc42   :  { %5081 = vrot.lane.b32.xlu0 %v14171_v41, %s10997_s0  ;;  %v14280_v50 = vpop.permute.xlu1 %6024 }
 0xc43   :  { %5083 = vrot.lane.b32.xlu1 %v14174_v8, %s10997_s0 }
 0xc45   :  { %v14284_v54 = vpop.permute.xlu0 %6034 }
 0xc46   :  { %5115 = vrot.lane.b32.xlu0 %v14165_v9, %s11000_s9  ;;  %v14286_v24 = vpop.permute.xlu1 %6036 }
 0xc47   :  { %5117 = vrot.lane.b32.xlu1 %v14168_v36, %s11000_s9 }
 0xc49   :  { %v14288_v28 = vpop.permute.xlu0 %6038 }
 0xc4a   :  { %5119 = vrot.lane.b32.xlu0 %v14171_v41, %s11000_s9  ;;  %v14290_v2 = vpop.permute.xlu1 %6040 }
 0xc4b   :  { %5121 = vrot.lane.b32.xlu1 %v14174_v8, %s11000_s9 }
 0xc4d   :  { %v14292_v26 = vpop.permute.xlu0 %6050 }
 0xc4e   :  { %5153 = vrot.lane.b32.xlu0 %v14165_v9, %s11002_s10  ;;  %v14294_v6 = vpop.permute.xlu1 %6052 }
 0xc4f   :  { %5155 = vrot.lane.b32.xlu1 %v14168_v36, %s11002_s10 }
 0xc51   :  { %v14296_v12 = vpop.permute.xlu0 %6054 }
 0xc52   :  { %5157 = vrot.lane.b32.xlu0 %v14171_v41, %s11002_s10  ;;  %v14298_v14 = vpop.permute.xlu1 %6056 }
 0xc53   :  { %5159 = vrot.lane.b32.xlu1 %v14174_v8, %s11002_s10 }
 0xc55   :  { %v14300_v20 = vpop.permute.xlu0 %6066 }
 0xc56   :  { %5191 = vrot.lane.b32.xlu0 %v14165_v9, %s11004_s11  ;;  %16680 = vst [vmem:[#allocation24_spill] sm:$0xff] %v14300_v20  ;;  %v14302_v63 = vpop.permute.xlu1 %6068 }
 0xc57   :  { %5193 = vrot.lane.b32.xlu1 %v14168_v36, %s11004_s11 }
 0xc5a   :  { %5195 = vrot.lane.b32.xlu0 %v14171_v41, %s11004_s11 }
 0xc5b   :  { %5197 = vrot.lane.b32.xlu1 %v14174_v8, %s11004_s11 }
 0xc5e   :  { %5229 = vrot.lane.b32.xlu0 %v14165_v9, %s11006_s12 }
 0xc5f   :  { %5231 = vrot.lane.b32.xlu1 %v14168_v36, %s11006_s12 }
 0xc62   :  { %5233 = vrot.lane.b32.xlu0 %v14171_v41, %s11006_s12 }
 0xc63   :  { %5235 = vrot.lane.b32.xlu1 %v14174_v8, %s11006_s12 }
 0xc66   :  { %5267 = vrot.lane.b32.xlu0 %v14165_v9, %s11008_s13 }
 0xc67   :  { %5269 = vrot.lane.b32.xlu1 %v14168_v36, %s11008_s13 }
 0xc6a   :  { %5271 = vrot.lane.b32.xlu0 %v14171_v41, %s11008_s13 }
 0xc6b   :  { %5273 = vrot.lane.b32.xlu1 %v14174_v8, %s11008_s13 }
 0xc6e   :  { %6070 = vrot.lane.b32.xlu0 %v14120_v40, %s11004_s11 }
 0xc6f   :  { %6072 = vrot.lane.b32.xlu1 %v14122_v7, %s11004_s11 }
 0xc72   :  { %6082 = vrot.lane.b32.xlu0 %v14112_v18, %s11006_s12 }
 0xc73   :  { %6084 = vrot.lane.b32.xlu1 %v14114_v16, %s11006_s12 }
 0xc76   :  { %6086 = vrot.lane.b32.xlu0 %v14120_v40, %s11006_s12 }
 0xc77   :  { %6088 = vrot.lane.b32.xlu1 %v14122_v7, %s11006_s12 }
 0xc7a   :  { %6098 = vrot.lane.b32.xlu0 %v14112_v18, %s11008_s13 }
 0xc7b   :  { %6100 = vrot.lane.b32.xlu1 %v14114_v16, %s11008_s13 }
 0xc7e   :  { %6102 = vrot.lane.b32.xlu0 %v14120_v40, %s11008_s13  ;;  %v5068_v40 = vrot.slane %v10158_v42, %v16605_v11 }
 0xc7f   :  { %6104 = vrot.lane.b32.xlu1 %v14122_v7, %s11008_s13 }
 0xca0   :  { %v5002_v29 = vpop.permute.xlu0 %5001 }
 0xca1   :  { %v5004_v22 = vpop.permute.xlu1 %5003 }
 0xca2   :  { %v5011_v39 = vsel %vm116_vm4, %v5002_v29, %v5004_v22 }
 0xca3   :  { %v5036_v47 = vmul.f32 %v5022_v4, %v5011_v39 }
 0xca4   :  { %v5006_v48 = vpop.permute.xlu0 %5005 }
 0xca5   :  { %v5008_v37 = vpop.permute.xlu1 %5007  ;;  %v5010_v49 = vsel %vm116_vm4, %v5004_v22, %v5006_v48 }
 0xca6   :  { %v5009_v18 = vsel %vm116_vm4, %v5006_v48, %v5008_v37  ;;  %v5012_v53 = vsel %vm116_vm4, %v5008_v37, %v5002_v29  ;;  %v5037_v37 = vmul.f32 %v5026_v60, %v5010_v49 }
 0xca7   :  { %v5035_v7 = vmul.f32 %v5018_v13, %v5012_v53  ;;  %v5038_v58 = vmul.f32 %v5030_v56, %v5009_v18  ;;  %v10160_v53 = vld [vmem:[%s16138_s2 + $0x3] ss:$8 sm:$0xf] }
 0xca8   :  { %v5040_v31 = vpop.permute.xlu0 %5039  ;;  %v5136_v60 = vrot.slane %v10160_v53, %v16604_v25  ;;  %v5132_v13 = vrot.slane %v10160_v53, %v11223_v15  ;;  %v5144_v56 = vrot.slane %v10160_v53, %v16605_v11 }
 0xca9   :  { %v5042_v23 = vpop.permute.xlu1 %5041 }
 0xcaa   :  { %v5049_v27 = vsel %vm155_vm5, %v5040_v31, %v5042_v23 }
 0xcab   :  { %v5074_v61 = vmul.f32 %v5060_v3, %v5049_v27 }
 0xcac   :  { %v5044_v5 = vpop.permute.xlu0 %5043 }
 0xcad   :  { %v5048_v4 = vsel %vm155_vm5, %v5042_v23, %v5044_v5  ;;  %v5046_v27 = vpop.permute.xlu1 %5045  ;;  %v10561_v3 = vpack.c.bf16 %v5074_v61, %v5036_v47  ;;  %v10159_v61 = vld [vmem:[%s16138_s2 + $0x2] ss:$8 sm:$0xf] }
 0xcae   :  { %v5075_v39 = vmul.f32 %v5064_v57, %v5048_v4  ;;  %v5047_v42 = vsel %vm155_vm5, %v5044_v5, %v5046_v27  ;;  %v5050_v52 = vsel %vm155_vm5, %v5046_v27, %v5040_v31  ;;  %v5098_v49 = vrot.slane %v10159_v61, %v16604_v25 }
 0xcaf   :  { %v5073_v34 = vmul.f32 %v5056_v45, %v5050_v52  ;;  %v5076_v29 = vmul.f32 %v5068_v40, %v5047_v42  ;;  %10562 = vmatprep.subr.bf16.mxu0 %v10561_v3  ;;  %v5094_v57 = vrot.slane %v10159_v61, %v11223_v15  ;;  %v5106_v18 = vrot.slane %v10159_v61, %v16605_v11 }
 0xcb0   :  { %v5078_v20 = vpop.permute.xlu0 %5077  ;;  %v10583_v23 = vpack.c.bf16 %v5075_v39, %v5037_v37  ;;  %v5140_v40 = vrot.slane %v10160_v53, %v16606_v55  ;;  %v5102_v4 = vrot.slane %v10159_v61, %v16606_v55 }
 0xcb1   :  { %v5080_v22 = vpop.permute.xlu1 %5079  ;;  %v10563_v48 = vpack.c.bf16 %v5073_v34, %v5035_v7  ;;  %v10581_v16 = vpack.c.bf16 %v5076_v29, %v5038_v58 }
 0xcb2   :  { %v5087_v34 = vsel %vm195_vm6, %v5078_v20, %v5080_v22 }
 0xcb3   :  { %10564 = vmatpush1.bf16.msra.mxu0 %v10563_v48  ;;  %10582 = vmatprep.subr.bf16.mxu1 %v10581_v16  ;;  %v5112_v7 = vmul.f32 %v5098_v49, %v5087_v34 }
 0xcb4   :  { %v5082_v5 = vpop.permute.xlu0 %5081  ;;  %10584 = vmatpush1.bf16.msra.mxu1 %v10583_v23 }
 0xcb5   :  { %v5084_v45 = vpop.permute.xlu1 %5083  ;;  %v5086_v42 = vsel %vm195_vm6, %v5080_v22, %v5082_v5 }
 0xcb6   :  { %v5085_v27 = vsel %vm195_vm6, %v5082_v5, %v5084_v45  ;;  %v5088_v3 = vsel %vm195_vm6, %v5084_v45, %v5078_v20  ;;  %v10161_v20 = vld [vmem:[%s16138_s2 + $0x5] ss:$8 sm:$0xf]  ;;  %v5113_v5 = vmul.f32 %v5102_v4, %v5086_v42 }
 0xcb7   :  { %v5111_v53 = vmul.f32 %v5094_v57, %v5088_v3  ;;  %v5114_v45 = vmul.f32 %v5106_v18, %v5085_v27  ;;  %v5170_v34 = vrot.slane %v10161_v20, %v11223_v15  ;;  %v5182_v57 = vrot.slane %v10161_v20, %v16605_v11 }
 0xcb8   :  { %v5116_v58 = vpop.permute.xlu0 %5115 }
 0xcb9   :  { %v5118_v47 = vpop.permute.xlu1 %5117 }
 0xcba   :  { %v5125_v16 = vsel %vm235_vm7, %v5116_v58, %v5118_v47 }
 0xcbb   :  { %v5150_v31 = vmul.f32 %v5136_v60, %v5125_v16 }
 0xcbc   :  { %v5120_v39 = vpop.permute.xlu0 %5119 }
 0xcbd   :  { %v5124_v52 = vsel %vm235_vm7, %v5118_v47, %v5120_v39  ;;  %v5122_v29 = vpop.permute.xlu1 %5121  ;;  %v10565_v37 = vpack.c.bf16 %v5150_v31, %v5112_v7 }
 0xcbe   :  { %v5151_v48 = vmul.f32 %v5140_v40, %v5124_v52  ;;  %v5123_v23 = vsel %vm235_vm7, %v5120_v39, %v5122_v29  ;;  %v5126_v61 = vsel %vm235_vm7, %v5122_v29, %v5116_v58  ;;  %v5174_v58 = vrot.slane %v10161_v20, %v16604_v25 }
 0xcbf   :  { %v5149_v49 = vmul.f32 %v5132_v13, %v5126_v61  ;;  %v5152_v22 = vmul.f32 %v5144_v56, %v5123_v23  ;;  %10566 = vmatprep.subr.bf16.mxu0 %v10565_v37  ;;  %v5178_v39 = vrot.slane %v10161_v20, %v16606_v55 }
 0xcc0   :  { %v5154_v60 = vpop.permute.xlu0 %5153  ;;  %v10587_v31 = vpack.c.bf16 %v5151_v48, %v5113_v5  ;;  %v5997_v5 = vsel %vm116_vm4, %v14240_v51, %v14228_v19 }
 0xcc1   :  { %v5156_v47 = vpop.permute.xlu1 %5155  ;;  %v10567_v16 = vpack.c.bf16 %v5149_v49, %v5111_v53  ;;  %v10585_v40 = vpack.c.bf16 %v5152_v22, %v5114_v45  ;;  %v5996_v49 = vsel %vm116_vm4, %v14228_v19, %v14230_v46 }
 0xcc2   :  { %v5163_v7 = vsel %vm275_vm8, %v5154_v60, %v5156_v47 }
 0xcc3   :  { %10568 = vmatpush1.bf16.msra.mxu0 %v10567_v16  ;;  %10586 = vmatprep.subr.bf16.mxu1 %v10585_v40  ;;  %v5187_v13 = vmul.f32 %v5170_v34, %v5163_v7  ;;  %v5994_v34 = vsel %vm116_vm4, %v14236_v1, %v14240_v51 }
 0xcc4   :  { %v5158_v18 = vpop.permute.xlu0 %5157  ;;  %10588 = vmatpush1.bf16.msra.mxu1 %v10587_v31 }
 0xcc5   :  { %v5162_v56 = vsel %vm275_vm8, %v5156_v47, %v5158_v18  ;;  %v5160_v4 = vpop.permute.xlu1 %5159  ;;  %v10571_v61 = vpack.c.bf16 %v5187_v13, %v14165_v9  ;;  %v10163_v9 = vld [vmem:[%s16138_s2 + $0x7] ss:$8 sm:$0xf] }
 0xcc6   :  { %v5188_v27 = vmul.f32 %v5174_v58, %v5162_v56  ;;  %v5161_v3 = vsel %vm275_vm8, %v5158_v18, %v5160_v4  ;;  %v5164_v42 = vsel %vm275_vm8, %v5160_v4, %v5154_v60  ;;  %v5246_v40 = vrot.slane %v10163_v9, %v11223_v15 }
 0xcc7   :  { %v5189_v52 = vmul.f32 %v5178_v39, %v5161_v3  ;;  %v5190_v29 = vmul.f32 %v5182_v57, %v5164_v42  ;;  %v5250_v39 = vrot.slane %v10163_v9, %v16604_v25  ;;  %v5254_v18 = vrot.slane %v10163_v9, %v16606_v55 }
 0xcc8   :  { %v5192_v37 = vpop.permute.xlu0 %5191  ;;  %v10569_v48 = vpack.c.bf16 %v5188_v27, %v14168_v36  ;;  %v10162_v36 = vld [vmem:[%s16138_s2 + $0x6] ss:$8 sm:$0xf]  ;;  %v5258_v13 = vrot.slane %v10163_v9, %v16605_v11  ;;  %v6012_v56 = vsel %vm155_vm5, %v14248_v43, %v14250_v17  ;;  %v6013_v4 = vsel %vm155_vm5, %v14260_v32, %v14248_v43 }
 0xcc9   :  { %v5194_v23 = vpop.permute.xlu1 %5193  ;;  %v10589_v20 = vpack.c.bf16 %v5190_v29, %v14174_v8  ;;  %v10591_v53 = vpack.c.bf16 %v5189_v52, %v14171_v41  ;;  %v16681_v41 = vld [vmem:[#allocation72_spill] sm:$0xff]  ;;  %v5208_v47 = vrot.slane %v10162_v36, %v11223_v15  ;;  %v5212_v16 = vrot.slane %v10162_v36, %v16604_v25 }
 0xcca   :  { %10570 = vmatprep.subr.bf16.mxu0 %v10569_v48  ;;  %v14394_v8 = vmul.f32 %v5996_v49, %v16681_v41  ;;  %v5201_v58 = vsel %vm315_vm9, %v5192_v37, %v5194_v23  ;;  %v5216_v31 = vrot.slane %v10162_v36, %v16606_v55  ;;  %v5220_v57 = vrot.slane %v10162_v36, %v16605_v11  ;;  %v16682_v41 = vld [vmem:[#allocation80_spill] sm:$0xff] }
 0xccb   :  { %10572 = vmatpush1.bf16.msra.mxu0 %v10571_v61  ;;  %10590 = vmatprep.subr.bf16.mxu1 %v10589_v20  ;;  %v6010_v52 = vsel %vm155_vm5, %v14256_v10, %v14260_v32  ;;  %v5225_v29 = vmul.f32 %v5208_v47, %v5201_v58  ;;  %v5995_v9 = vsel %vm116_vm4, %v14230_v46, %v14236_v1 }
 0xccc   :  { %v5196_v45 = vpop.permute.xlu0 %5195  ;;  %10592 = vmatpush1.bf16.msra.mxu1 %v10591_v53  ;;  %v14448_v47 = vmul.f32 %v6012_v56, %v16682_v41  ;;  %v6011_v46 = vsel %vm155_vm5, %v14250_v17, %v14256_v10  ;;  %v16685_v56 = vld [vmem:[#allocation118_spill] sm:$0xff]  ;;  %v6044_v41 = vsel %vm235_vm7, %v14284_v54, %v14286_v24 }
 0xccd   :  { %v5198_v22 = vpop.permute.xlu1 %5197  ;;  %v5200_v51 = vsel %vm315_vm9, %v5194_v23, %v5196_v45 }
 0xcce   :  { %v5199_v27 = vsel %vm315_vm9, %v5196_v45, %v5198_v22  ;;  %v5202_v3 = vsel %vm315_vm9, %v5198_v22, %v5192_v37  ;;  %v5226_v20 = vmul.f32 %v5212_v16, %v5200_v51  ;;  %v10164_v45 = vld [vmem:[%s16138_s2 + $0x20] ss:$8 sm:$0xf]  ;;  %v10601_v10 = vpack.c.bf16 %v14448_v47, %v14394_v8 }
 0xccf   :  { %v5227_v49 = vmul.f32 %v5216_v31, %v5199_v27  ;;  %v5228_v32 = vmul.f32 %v5220_v57, %v5202_v3  ;;  %v16683_v16 = vld [vmem:[#allocation84_spill] sm:$0xff]  ;;  %v5284_v58 = vrot.slane %v10164_v45, %v11223_v15  ;;  %v16684_v57 = vld [vmem:[#allocation101_spill] sm:$0xff]  ;;  %v6001_v27 = vmul.f32 %v5994_v34, %v16685_v56 }
 0xcd0   :  { %v5230_v60 = vpop.permute.xlu0 %5229  ;;  %v5292_v3 = vrot.slane %v10164_v45, %v16606_v55  ;;  %v14485_v8 = vld [vmem:[#allocation2 + $0x138] sm:$0xff] }
 0xcd1   :  { %v5232_v7 = vpop.permute.xlu1 %5231 }
 0xcd2   :  { %v5239_v19 = vsel %vm355_vm10, %v5230_v60, %v5232_v7 }
 0xcd3   :  { %v5263_v48 = vmul.f32 %v5246_v40, %v5239_v19  ;;  %v14451_v40 = vmul.f32 %v6010_v52, %v16683_v16 }
 0xcd4   :  { %v5234_v42 = vpop.permute.xlu0 %5233 }
 0xcd5   :  { %v5238_v23 = vsel %vm355_vm10, %v5232_v7, %v5234_v42  ;;  %v5236_v61 = vpop.permute.xlu1 %5235  ;;  %v10575_v31 = vpack.c.bf16 %v5263_v48, %v5225_v29  ;;  %v16687_v29 = vld [vmem:[#allocation123_spill] sm:$0xff] }
 0xcd6   :  { %v5264_v43 = vmul.f32 %v5250_v39, %v5238_v23  ;;  %v5237_v53 = vsel %vm355_vm10, %v5234_v42, %v5236_v61  ;;  %v5240_v37 = vsel %vm355_vm10, %v5236_v61, %v5230_v60  ;;  %v5296_v42 = vrot.slane %v10164_v45, %v16605_v11  ;;  %v16688_v23 = vld [vmem:[#allocation98_spill] sm:$0xff] }
 0xcd7   :  { %v5265_v22 = vmul.f32 %v5254_v18, %v5237_v53  ;;  %v5266_v36 = vmul.f32 %v5258_v13, %v5240_v37  ;;  %v14455_v18 = vmul.f32 %v6013_v4, %v16684_v57  ;;  %v5288_v13 = vrot.slane %v10164_v45, %v16604_v25  ;;  %v16686_v4 = vld [vmem:[#allocation117_spill] sm:$0xff]  ;;  %v14476_v53 = vld [vmem:[#allocation2 + $0x128] sm:$0xff]  ;;  %v16689_v57 = vld [vmem:[#allocation96_spill] sm:$0xff] }
 0xcd8   :  { %v5268_v60 = vpop.permute.xlu0 %5267  ;;  %v10573_v7 = vpack.c.bf16 %v5264_v43, %v5226_v20  ;;  %v5998_v52 = vmul.f32 %v5997_v5, %v16686_v4  ;;  %v14469_v48 = vmul.f32 %v5995_v9, %v16687_v29  ;;  %v6016_v61 = vmul.f32 %v6011_v46, %v16688_v23  ;;  %v16690_v46 = vld [vmem:[#allocation108_spill] sm:$0xff]  ;;  %v16693_v4 = vld [vmem:[#allocation109_spill] sm:$0xff] }
 0xcd9   :  { %v5270_v19 = vpop.permute.xlu1 %5269  ;;  %v10593_v39 = vpack.c.bf16 %v5266_v36, %v5228_v32  ;;  %v10595_v51 = vpack.c.bf16 %v5265_v22, %v5227_v49  ;;  %v10621_v37 = vpack.c.bf16 %v14451_v40, %v6001_v27  ;;  %v14483_v32 = vld [vmem:[#allocation2 + $0x120] sm:$0xff]  ;;  %v14487_v22 = vld [vmem:[#allocation2 + $0x130] sm:$0xff]  ;;  %v6028_v9 = vsel %vm195_vm6, %v14268_v44, %v14270_v33 }
 0xcda   :  { %v5277_v1 = vsel %vm395_vm11, %v5268_v60, %v5270_v19  ;;  %10574 = vmatprep.subr.bf16.mxu0 %v10573_v7  ;;  %v10603_v36 = vpack.c.bf16 %v14455_v18, %v5998_v52  ;;  %v6029_v40 = vsel %vm195_vm6, %v14280_v50, %v14268_v44  ;;  %v6042_v7 = vsel %vm235_vm7, %v14288_v28, %v14290_v2 }
 0xcdb   :  { %10576 = vmatpush1.bf16.msra.mxu0 %v10575_v31  ;;  %10594 = vmatprep.subr.bf16.mxu1 %v10593_v39  ;;  %v5301_v20 = vmul.f32 %v5284_v58, %v5277_v1  ;;  %v6043_v31 = vsel %vm235_vm7, %v14286_v24, %v14288_v28  ;;  %v6031_v18 = vmul.f32 %v6028_v9, %v16689_v57  ;;  %v16702_v57 = vld [vmem:[#allocation111_spill] sm:$0xff] }
 0xcdc   :  { %v5272_v17 = vpop.permute.xlu0 %5271  ;;  %10596 = vmatpush1.bf16.msra.mxu1 %v10595_v51  ;;  %v6047_v1 = vmul.f32 %v6044_v41, %v16690_v46  ;;  %v6059_v24 = vsel %vm275_vm8, %v14294_v6, %v14296_v12  ;;  %v6027_v28 = vsel %vm195_vm6, %v14270_v33, %v14276_v62  ;;  %v6049_v27 = vmul.f32 %v6042_v7, %v13952_v38 }
 0xcdd   :  { %v5276_v34 = vsel %vm395_vm11, %v5270_v19, %v5272_v17  ;;  %v5274_v43 = vpop.permute.xlu1 %5273  ;;  %v10579_v39 = vpack.c.bf16 %v14483_v32, %v5301_v20  ;;  %v6048_v52 = vmul.f32 %v6043_v31, %v16693_v4  ;;  %v6061_v29 = vsel %vm275_vm8, %v14298_v14, %v14292_v26 }
 0xcde   :  { %v5302_v5 = vmul.f32 %v5288_v13, %v5276_v34  ;;  %v5275_v45 = vsel %vm395_vm11, %v5272_v17, %v5274_v43  ;;  %v5278_v49 = vsel %vm395_vm11, %v5274_v43, %v5268_v60  ;;  %v6045_v60 = vsel %vm235_vm7, %v14290_v2, %v14284_v54  ;;  %v16691_v13 = vld [vmem:[#allocation107_spill] sm:$0xff]  ;;  %v16695_v43 = vld [vmem:[#allocation89_spill] sm:$0xff] }
 0xcdf   :  { %v5303_v47 = vmul.f32 %v5292_v3, %v5275_v45  ;;  %v5304_v16 = vmul.f32 %v5296_v42, %v5278_v49  ;;  %v6026_v2 = vsel %vm195_vm6, %v14276_v62, %v14280_v50  ;;  %v6046_v56 = vmul.f32 %v6045_v60, %v16691_v13  ;;  %v5341_v50 = vld [vmem:[%s16137_s1 + $0x50] sm:$0xff]  ;;  %v16694_v62 = vld [vmem:[#allocation97_spill] sm:$0xff] }
 0xce0   :  { %v14510_v58 = vpop.permute.xlu0 %6070  ;;  %v10577_v19 = vpack.c.bf16 %v14476_v53, %v5302_v5  ;;  %v16692_v3 = vld [vmem:[#allocation92_spill] sm:$0xff]  ;;  %v6033_v38 = vmul.f32 %v6026_v2, %v16694_v62  ;;  %v6060_v17 = vsel %vm275_vm8, %v14292_v26, %v14294_v6  ;;  %v6058_v23 = vsel %vm275_vm8, %v14296_v12, %v14298_v14 }
 0xce1   :  { %v14517_v44 = vpop.permute.xlu1 %6072  ;;  %v10597_v54 = vpack.c.bf16 %v14485_v8, %v5304_v16  ;;  %v10599_v51 = vpack.c.bf16 %v14487_v22, %v5303_v47  ;;  %v6030_v42 = vmul.f32 %v6029_v40, %v16692_v3  ;;  %v6063_v20 = vmul.f32 %v6059_v24, %v13964_v35  ;;  %v16699_v16 = vld [vmem:[#allocation9_spill] sm:$0xff]  ;;  %v16706_v3 = vld [vmem:[#allocation8_spill] sm:$0xff] }
 0xce2   :  { %10578 = vmatprep.subr.bf16.mxu0 %v10577_v19  ;;  %v6032_v5 = vmul.f32 %v6027_v28, %v16695_v43  ;;  %v10605_v45 = vpack.c.bf16 %v6047_v1, %v6031_v18  ;;  %v6065_v49 = vmul.f32 %v6061_v29, %v13961_v0  ;;  %v10625_v26 = vpack.c.bf16 %v6049_v27, %v6033_v38  ;;  %v16700_v19 = vld [vmem:[#allocation126_spill] sm:$0xff]  ;;  %v16704_v28 = vld [vmem:[#allocation7_spill] sm:$0xff]  ;;  %v16705_v27 = vld [vmem:[#allocation29_spill] sm:$0xff] }
 0xce3   :  { %10580 = vmatpush1.bf16.msra.mxu0 %v10579_v39  ;;  %10598 = vmatprep.subr.bf16.mxu1 %v10597_v54  ;;  %v10607_v6 = vpack.c.bf16 %v6046_v56, %v6030_v42  ;;  %v6062_v12 = vmul.f32 %v6060_v17, %v13955_v21  ;;  %v6064_v35 = vmul.f32 %v6058_v23, %v13967_v30  ;;  %v16697_v41 = vmov 0.0   ;;  %v16698_v21 = vld [vmem:[#allocation24_spill] sm:$0xff]  ;;  %v16701_v39 = vld [vmem:[#allocation18_spill] sm:$0xff] }
 0xce4   :  { %v6083_v33 = vpop.permute.xlu0 %6082  ;;  %10600 = vmatpush1.bf16.msra.mxu1 %v10599_v51  ;;  %10602 = vmatprep.subr.bf16.mxu0 %v10601_v10  ;;  %v10623_v10 = vpack.c.bf16 %v6016_v61, %v14469_v48  ;;  %v6075_v48 = vsel %vm315_vm9, %v14302_v63, %v14510_v58  ;;  %v6077_v30 = vsel %vm315_vm9, %v14517_v44, %v16698_v21  ;;  %v16703_v1 = vld [vmem:[#allocation6_spill] sm:$0xff] }
 0xce5   :  { %v6085_v34 = vpop.permute.xlu1 %6084  ;;  %10622 = vmatprep.subr.bf16.mxu1 %v10621_v37  ;;  %v10627_v37 = vpack.c.bf16 %v6048_v52, %v6032_v5  ;;  %v10629_v54 = vpack.c.bf16 %v6065_v49, %v16701_v39  ;;  %v6076_v51 = vsel %vm315_vm9, %v16698_v21, %v14302_v63  ;;  %v6079_v18 = vmul.f32 %v6075_v48, %v16702_v57  ;;  %v16707_v52 = vld [vmem:[#allocation16_spill] sm:$0xff]  ;;  %v16710_v23 = vld [vmem:[#allocation10_spill] sm:$0xff] }
 0xce6   :  { %10165 = vmatmul.mubr.msk.f32.vlgmr.msra.gmra.mrb[16].mxu0 %vm878_vm13, %v5341_v50  ;;  %v6092_v47 = vsel %vm355_vm10, %v6083_v33, %v6085_v34  ;;  %v6074_v46 = vsel %vm315_vm9, %v14510_v58, %v14517_v44  ;;  %v6081_v24 = vmul.f32 %v6077_v30, %v16703_v1  ;;  %v10631_v29 = vpack.c.bf16 %v6064_v35, %v16707_v52  ;;  %v16709_v44 = vld [vmem:[#allocation94_spill] sm:$0xff]  ;;  %v16714_v30 = vld [vmem:[#allocation115_spill] sm:$0xff] }
 0xce7   :  { %10166 = vmatmul.mubr.msk.f32.vlgmr.msra.gmra.mrb[16].mxu1 %vm878_vm13, %v5341_v50  ;;  %10604 = vmatpush1.bf16.msra.mxu0 %v10603_v36  ;;  %v16696_v36 = vld [vmem:[#allocation22_spill] sm:$0xff]  ;;  %v6094_v13 = vmul.f32 %v6092_v47, %v16704_v28  ;;  %v10611_v50 = vpack.c.bf16 %v6062_v12, %v16705_v27  ;;  %v6080_v38 = vmul.f32 %v6074_v46, %v16709_v44  ;;  %v16712_v12 = vld [vmem:[#allocation28_spill] sm:$0xff]  ;;  %v6195_v46 = vstv %s10167_s21 }
 0xce8   :  { %v6087_v14 = vpop.permute.xlu0 %6086  ;;  %10624 = vmatpush1.bf16.msra.mxu1 %v10623_v10  ;;  %10606 = vmatprep.subr.bf16.mxu0 %v10605_v45  ;;  %v10609_v9 = vpack.c.bf16 %v6063_v20, %v16696_v36  ;;  %v16711_v10 = vld [vmem:[#allocation12_spill] sm:$0xff] }
 0xce9   :  { %v6091_v0 = vsel %vm355_vm10, %v6085_v34, %v6087_v14  ;;  %v6089_v61 = vpop.permute.xlu1 %6088  ;;  %10626 = vmatprep.subr.bf16.mxu1 %v10625_v26  ;;  %6267 = vmatprep.mubr.f32.mxu0 %v16697_v41 }
 0xcea   :  { %v6095_v40 = vmul.f32 %v6091_v0, %v16699_v16  ;;  %v6093_v60 = vsel %vm355_vm10, %v6089_v61, %v6083_v33  ;;  %6338 = vmatprep.mubr.f32.mxu1 %v16697_v41  ;;  %v6090_v7 = vsel %vm355_vm10, %v6087_v14, %v6089_v61  ;;  %v16708_v33 = vld [vmem:[#allocation110_spill] sm:$0xff]  ;;  %v16713_v14 = vld [vmem:[#allocation20_spill] sm:$0xff] }
 0xceb   :  { %v6097_v31 = vmul.f32 %v6093_v60, %v16700_v19  ;;  %10608 = vmatpush1.bf16.msra.mxu0 %v10607_v6  ;;  %v6096_v63 = vmul.f32 %v6090_v7, %v16706_v3  ;;  %v6078_v62 = vmul.f32 %v6076_v51, %v16708_v33  ;;  %v16715_v60 = vld [vmem:[#allocation88_spill] sm:$0xff]  ;;  %v16716_v19 = vld [vmem:[#allocation30_spill] sm:$0xff] }
 0xcec   :  { %v6099_v2 = vpop.permute.xlu0 %6098  ;;  %10610 = vmatprep.subr.bf16.mxu0 %v10609_v9  ;;  %10628 = vmatpush1.bf16.msra.mxu1 %v10627_v37  ;;  %v10613_v4 = vpack.c.bf16 %v6095_v40, %v6079_v18  ;;  %v6150_v9 = vld [vmem:[%s16137_s1 + $0x70] sm:$0xff] }
 0xced   :  { %v6101_v56 = vpop.permute.xlu1 %6100  ;;  %10630 = vmatprep.subr.bf16.mxu1 %v10629_v54  ;;  %v10633_v58 = vpack.c.bf16 %v6097_v31, %v6081_v24  ;;  %v10615_v5 = vpack.c.bf16 %v6094_v13, %v6078_v62  ;;  %v10635_v6 = vpack.c.bf16 %v6096_v63, %v6080_v38  ;;  %v16717_v54 = vld [vmem:[#allocation116_spill] sm:$0xff] }
 0xcee   :  { %v6108_v42 = vsel %vm395_vm11, %v6099_v2, %v6101_v56  ;;  %v10177_v38 = vld [vmem:[%s16138_s2 + $0x1] ss:$8 sm:$0xf] }
 0xcef   :  { %10612 = vmatpush1.bf16.msra.mxu0 %v10611_v50  ;;  %v6110_v20 = vmul.f32 %v6108_v42, %v16710_v23 }
 0xcf0   :  { %v6103_v17 = vpop.permute.xlu0 %6102  ;;  %10614 = vmatprep.subr.bf16.mxu0 %v10613_v4  ;;  %10632 = vmatpush1.bf16.msra.mxu1 %v10631_v29 }
 0xcf1   :  { %v6107_v34 = vsel %vm395_vm11, %v6101_v56, %v6103_v17  ;;  %v6105_v43 = vpop.permute.xlu1 %6104  ;;  %10634 = vmatprep.subr.bf16.mxu1 %v10633_v58  ;;  %v10619_v0 = vpack.c.bf16 %v14483_v32, %v6110_v20  ;;  %v6357_v58 = vld [vmem:[%s16138_s2] ss:$8 sm:$0xf]  ;;  %v6404_v20 = vrot.slane %v10177_v38, %v16604_v25 }
 0xcf2   :  { %v6111_v45 = vmul.f32 %v6107_v34, %v16711_v10  ;;  %v6106_v49 = vsel %vm395_vm11, %v6103_v17, %v6105_v43  ;;  %v6109_v26 = vsel %vm395_vm11, %v6105_v43, %v6099_v2  ;;  %v6366_v23 = vrot.slane %v6357_v58, %v16604_v25 }
 0xcf3   :  { %v6112_v35 = vmul.f32 %v6106_v49, %v16712_v12  ;;  %v6113_v37 = vmul.f32 %v6109_v26, %v16713_v14  ;;  %10616 = vmatpush1.bf16.msra.mxu0 %v10615_v5  ;;  %v6362_v10 = vrot.slane %v6357_v58, %v11223_v15  ;;  %v6408_v26 = vrot.slane %v10177_v38, %v16606_v55 }
 0xcf4   :  { %10636 = vmatpush1.bf16.msra.mxu1 %v10635_v6  ;;  %v10617_v48 = vpack.c.bf16 %v14476_v53, %v6111_v45  ;;  %v6374_v45 = vrot.slane %v6357_v58, %v16605_v11  ;;  %v6412_v14 = vrot.slane %v10177_v38, %v16605_v11 }
 0xcf5   :  { %v10637_v61 = vpack.c.bf16 %v14485_v8, %v6113_v37  ;;  %v10639_v36 = vpack.c.bf16 %v14487_v22, %v6112_v35  ;;  %v6400_v35 = vrot.slane %v10177_v38, %v11223_v15  ;;  %v6370_v37 = vrot.slane %v6357_v58, %v16606_v55 }
 0xcf6   :  { %10618 = vmatprep.subr.bf16.mxu0 %v10617_v48 }
 0xcf7   :  { %10620 = vmatpush1.bf16.msra.mxu0 %v10619_v0  ;;  %10638 = vmatprep.subr.bf16.mxu1 %v10637_v61 }
 0xcf8   :  { %10640 = vmatpush1.bf16.msra.mxu1 %v10639_v36 }
 0xcfa   :  { %10175 = vmatmul.mubr.msk.f32.vlgmr.msra.gmra.mrb[18].mxu0 %vm878_vm13, %v6150_v9 }
 0xcfb   :  { %10176 = vmatmul.mubr.msk.f32.vlgmr.msra.gmra.mrb[18].mxu1 %vm878_vm13, %v6150_v9  ;;  %6793 = vmatprep.mubr.f32.mxu0 %v16697_v41 }
 0xcfc   :  { %6864 = vmatprep.mubr.f32.mxu1 %v16697_v41 }
 0xdb9   :  { %v5451_v21 = vpop.f32.mrb[16].mxu0 }
 0xdba   :  { %v14626_v47 = vsub.f32 %v5451_v21, %v16714_v30  ;;  %v5453_v16 = vpop.f32.mrb[17].mxu0  ;;  %v5522_v40 = vpop.f32.mrb[16].mxu1 }
 0xdbb   :  { %v14629_v7 = vsub.f32 %v5453_v16, %v16715_v60  ;;  %v14632_v31 = vsub.f32 %v5522_v40, %v16716_v19  ;;  %v5524_v39 = vpop.f32.mrb[17].mxu1 }
 0xdbc   :  { %v14635_v51 = vsub.f32 %v5524_v39, %v16717_v54  ;;  %v6191_v57 = vadd.f32 %v14626_v47, %v5451_v21 }
 0xdbd   :  { %v6192_v18 = vadd.f32 %v14629_v7, %v5453_v16  ;;  %v6193_v2 = vadd.f32 %v14632_v31, %v5522_v40 }
 0xdbe   :  { %v6194_v1 = vadd.f32 %v14635_v51, %v5524_v39  ;;  %v6196_v24 = vmul.f32 %v6195_v46, %v6191_v57 }
 0xdbf   :  { %v6197_v13 = vmul.f32 %v6195_v46, %v6192_v18  ;;  %v6198_v56 = vmul.f32 %v6195_v46, %v6193_v2 }
 0xdc0   :  { %v6199_v63 = vmul.f32 %v6195_v46, %v6194_v1 }
 0xdcd   :  { %v6269_v28 = vpop.f32.mrb[18].mxu0 }
 0xdce   :  { %v14641_v27 = vadd.f32 %v6269_v28, %v6196_v24  ;;  %v6271_v50 = vpop.f32.mrb[19].mxu0  ;;  %v6340_v3 = vpop.f32.mrb[18].mxu1 }
 0xdcf   :  { %v14643_v42 = vadd.f32 %v6271_v50, %v6197_v13  ;;  %v14645_v4 = vadd.f32 %v6340_v3, %v6198_v56  ;;  %v6342_v52 = vpop.f32.mrb[19].mxu1  ;;  %v10178_v13 = vld [vmem:[%s16138_s2 + $0x2] ss:$8 sm:$0xf] }
 0xdd0   :  { %v14647_v29 = vadd.f32 %v6342_v52, %v6199_v63  ;;  %6345 = vrot.lane.b32.xlu0 %v14641_v27, %s10998_s7  ;;  %v10179_v50 = vld [vmem:[%s16138_s2 + $0x3] ss:$8 sm:$0xf]  ;;  %v6442_v63 = vrot.slane %v10178_v13, %v16604_v25  ;;  %v6450_v38 = vrot.slane %v10178_v13, %v16605_v11 }
 0xdd1   :  { %6347 = vrot.lane.b32.xlu1 %v14643_v42, %s10998_s7  ;;  %v6480_v52 = vrot.slane %v10179_v50, %v16604_v25 }
 0xdd4   :  { %6349 = vrot.lane.b32.xlu0 %v14645_v4, %s10998_s7 }
 0xdd5   :  { %6351 = vrot.lane.b32.xlu1 %v14647_v29, %s10998_s7 }
 0xdd8   :  { %6383 = vrot.lane.b32.xlu0 %v14641_v27, %s10999_s8 }
 0xdd9   :  { %6385 = vrot.lane.b32.xlu1 %v14643_v42, %s10999_s8 }
 0xddc   :  { %6387 = vrot.lane.b32.xlu0 %v14645_v4, %s10999_s8 }
 0xddd   :  { %6389 = vrot.lane.b32.xlu1 %v14647_v29, %s10999_s8 }
 0xde0   :  { %6421 = vrot.lane.b32.xlu0 %v14641_v27, %s10997_s0 }
 0xde1   :  { %6423 = vrot.lane.b32.xlu1 %v14643_v42, %s10997_s0 }
 0xde4   :  { %6425 = vrot.lane.b32.xlu0 %v14645_v4, %s10997_s0 }
 0xde5   :  { %6427 = vrot.lane.b32.xlu1 %v14647_v29, %s10997_s0 }
 0xde8   :  { %6459 = vrot.lane.b32.xlu0 %v14641_v27, %s11000_s9 }
 0xde9   :  { %6461 = vrot.lane.b32.xlu1 %v14643_v42, %s11000_s9 }
 0xdec   :  { %6463 = vrot.lane.b32.xlu0 %v14645_v4, %s11000_s9 }
 0xded   :  { %6465 = vrot.lane.b32.xlu1 %v14647_v29, %s11000_s9 }
 0xdf0   :  { %6497 = vrot.lane.b32.xlu0 %v14641_v27, %s11002_s10 }
 0xdf1   :  { %6499 = vrot.lane.b32.xlu1 %v14643_v42, %s11002_s10 }
 0xdf4   :  { %6501 = vrot.lane.b32.xlu0 %v14645_v4, %s11002_s10 }
 0xdf5   :  { %6503 = vrot.lane.b32.xlu1 %v14647_v29, %s11002_s10 }
 0xdf8   :  { %6535 = vrot.lane.b32.xlu0 %v14641_v27, %s11004_s11 }
 0xdf9   :  { %6537 = vrot.lane.b32.xlu1 %v14643_v42, %s11004_s11 }
 0xdfc   :  { %6539 = vrot.lane.b32.xlu0 %v14645_v4, %s11004_s11 }
 0xdfd   :  { %6541 = vrot.lane.b32.xlu1 %v14647_v29, %s11004_s11 }
 0xe00   :  { %6573 = vrot.lane.b32.xlu0 %v14641_v27, %s11006_s12 }
 0xe01   :  { %6575 = vrot.lane.b32.xlu1 %v14643_v42, %s11006_s12 }
 0xe04   :  { %6577 = vrot.lane.b32.xlu0 %v14645_v4, %s11006_s12 }
 0xe05   :  { %6579 = vrot.lane.b32.xlu1 %v14647_v29, %s11006_s12 }
 0xe08   :  { %6611 = vrot.lane.b32.xlu0 %v14641_v27, %s11008_s13 }
 0xe09   :  { %6613 = vrot.lane.b32.xlu1 %v14643_v42, %s11008_s13 }
 0xe0c   :  { %6615 = vrot.lane.b32.xlu0 %v14645_v4, %s11008_s13 }
 0xe0d   :  { %6617 = vrot.lane.b32.xlu1 %v14647_v29, %s11008_s13 }
 0xe42   :  { %v6346_v33 = vpop.permute.xlu0 %6345 }
 0xe43   :  { %v6348_v62 = vpop.permute.xlu1 %6347 }
 0xe44   :  { %v6355_v34 = vsel %vm116_vm4, %v6346_v33, %v6348_v62 }
 0xe45   :  { %v6380_v6 = vmul.f32 %v6366_v23, %v6355_v34  ;;  %v6484_v23 = vrot.slane %v10179_v50, %v16606_v55 }
 0xe46   :  { %v6350_v44 = vpop.permute.xlu0 %6349 }
 0xe47   :  { %v6352_v17 = vpop.permute.xlu1 %6351  ;;  %v6354_v36 = vsel %vm116_vm4, %v6348_v62, %v6350_v44 }
 0xe48   :  { %v6353_v48 = vsel %vm116_vm4, %v6350_v44, %v6352_v17  ;;  %v6356_v0 = vsel %vm116_vm4, %v6352_v17, %v6346_v33  ;;  %v6381_v18 = vmul.f32 %v6370_v37, %v6354_v36  ;;  %v6438_v44 = vrot.slane %v10178_v13, %v11223_v15 }
 0xe49   :  { %v6379_v19 = vmul.f32 %v6362_v10, %v6356_v0  ;;  %v6382_v39 = vmul.f32 %v6374_v45, %v6353_v48  ;;  %v6446_v10 = vrot.slane %v10178_v13, %v16606_v55 }
 0xe4a   :  { %v6384_v43 = vpop.permute.xlu0 %6383 }
 0xe4b   :  { %v6386_v5 = vpop.permute.xlu1 %6385 }
 0xe4c   :  { %v6393_v49 = vsel %vm155_vm5, %v6384_v43, %v6386_v5 }
 0xe4d   :  { %v6418_v12 = vmul.f32 %v6404_v20, %v6393_v49 }
 0xe4e   :  { %v6388_v61 = vpop.permute.xlu0 %6387 }
 0xe4f   :  { %v6392_v9 = vsel %vm155_vm5, %v6386_v5, %v6388_v61  ;;  %v6390_v21 = vpop.permute.xlu1 %6389  ;;  %v10641_v30 = vpack.c.bf16 %v6418_v12, %v6380_v6  ;;  %v6488_v5 = vrot.slane %v10179_v50, %v16605_v11 }
 0xe50   :  { %v6419_v16 = vmul.f32 %v6408_v26, %v6392_v9  ;;  %v6391_v40 = vsel %vm155_vm5, %v6388_v61, %v6390_v21  ;;  %v6394_v60 = vsel %vm155_vm5, %v6390_v21, %v6384_v43  ;;  %v6476_v43 = vrot.slane %v10179_v50, %v11223_v15  ;;  %v10180_v61 = vld [vmem:[%s16138_s2 + $0x5] ss:$8 sm:$0xf] }
 0xe51   :  { %v6417_v54 = vmul.f32 %v6400_v35, %v6394_v60  ;;  %v6420_v57 = vmul.f32 %v6412_v14, %v6391_v40  ;;  %10642 = vmatprep.subr.bf16.mxu0 %v10641_v30  ;;  %v6514_v60 = vrot.slane %v10180_v61, %v11223_v15 }
 0xe52   :  { %v6422_v2 = vpop.permute.xlu0 %6421  ;;  %v10663_v28 = vpack.c.bf16 %v6419_v16, %v6381_v18  ;;  %v6518_v18 = vrot.slane %v10180_v61, %v16604_v25 }
 0xe53   :  { %v6424_v46 = vpop.permute.xlu1 %6423  ;;  %v10643_v1 = vpack.c.bf16 %v6417_v54, %v6379_v19  ;;  %v10661_v24 = vpack.c.bf16 %v6420_v57, %v6382_v39 }
 0xe54   :  { %v6431_v33 = vsel %vm195_vm6, %v6422_v2, %v6424_v46 }
 0xe55   :  { %10644 = vmatpush1.bf16.msra.mxu0 %v10643_v1  ;;  %10662 = vmatprep.subr.bf16.mxu1 %v10661_v24  ;;  %v6456_v20 = vmul.f32 %v6442_v63, %v6431_v33  ;;  %v6526_v1 = vrot.slane %v10180_v61, %v16605_v11 }
 0xe56   :  { %v6426_v56 = vpop.permute.xlu0 %6425  ;;  %10664 = vmatpush1.bf16.msra.mxu1 %v10663_v28 }
 0xe57   :  { %v6428_v3 = vpop.permute.xlu1 %6427  ;;  %v6430_v6 = vsel %vm195_vm6, %v6424_v46, %v6426_v56  ;;  %v6522_v46 = vrot.slane %v10180_v61, %v16606_v55 }
 0xe58   :  { %v6429_v45 = vsel %vm195_vm6, %v6426_v56, %v6428_v3  ;;  %v6432_v49 = vsel %vm195_vm6, %v6428_v3, %v6422_v2  ;;  %v6457_v16 = vmul.f32 %v6446_v10, %v6430_v6 }
 0xe59   :  { %v6455_v36 = vmul.f32 %v6438_v44, %v6432_v49  ;;  %v6458_v9 = vmul.f32 %v6450_v38, %v6429_v45 }
 0xe5a   :  { %v6460_v62 = vpop.permute.xlu0 %6459 }
 0xe5b   :  { %v6462_v58 = vpop.permute.xlu1 %6461 }
 0xe5c   :  { %v6469_v17 = vsel %vm235_vm7, %v6460_v62, %v6462_v58 }
 0xe5d   :  { %v6494_v34 = vmul.f32 %v6480_v52, %v6469_v17 }
 0xe5e   :  { %v6464_v26 = vpop.permute.xlu0 %6463 }
 0xe5f   :  { %v6468_v12 = vsel %vm235_vm7, %v6462_v58, %v6464_v26  ;;  %v6466_v35 = vpop.permute.xlu1 %6465  ;;  %v10645_v14 = vpack.c.bf16 %v6494_v34, %v6456_v20 }
 0xe60   :  { %v6495_v37 = vmul.f32 %v6484_v23, %v6468_v12  ;;  %v6467_v48 = vsel %vm235_vm7, %v6464_v26, %v6466_v35  ;;  %v6470_v0 = vsel %vm235_vm7, %v6466_v35, %v6460_v62 }
 0xe61   :  { %v6493_v21 = vmul.f32 %v6476_v43, %v6470_v0  ;;  %v6496_v30 = vmul.f32 %v6488_v5, %v6467_v48  ;;  %10646 = vmatprep.subr.bf16.mxu0 %v10645_v14  ;;  %v10181_v43 = vld [vmem:[%s16138_s2 + $0x6] ss:$8 sm:$0xf] }
 0xe62   :  { %v6498_v40 = vpop.permute.xlu0 %6497  ;;  %v10667_v2 = vpack.c.bf16 %v6495_v37, %v6457_v16  ;;  %v6560_v49 = vrot.slane %v10181_v43, %v16606_v55  ;;  %v6564_v35 = vrot.slane %v10181_v43, %v16605_v11 }
 0xe63   :  { %v6500_v19 = vpop.permute.xlu1 %6499  ;;  %v10647_v39 = vpack.c.bf16 %v6493_v21, %v6455_v36  ;;  %v10665_v54 = vpack.c.bf16 %v6496_v30, %v6458_v9 }
 0xe64   :  { %v6507_v57 = vsel %vm275_vm8, %v6498_v40, %v6500_v19 }
 0xe65   :  { %10648 = vmatpush1.bf16.msra.mxu0 %v10647_v39  ;;  %10666 = vmatprep.subr.bf16.mxu1 %v10665_v54  ;;  %v6531_v28 = vmul.f32 %v6514_v60, %v6507_v57  ;;  %v10183_v39 = vld [vmem:[%s16138_s2 + $0x20] ss:$8 sm:$0xf] }
 0xe66   :  { %v6502_v24 = vpop.permute.xlu0 %6501  ;;  %10668 = vmatpush1.bf16.msra.mxu1 %v10667_v2 }
 0xe67   :  { %v6506_v13 = vsel %vm275_vm8, %v6500_v19, %v6502_v24  ;;  %v6504_v56 = vpop.permute.xlu1 %6503  ;;  %v10651_v38 = vpack.c.bf16 %v6531_v28, %v14641_v27  ;;  %v6552_v27 = vrot.slane %v10181_v43, %v11223_v15 }
 0xe68   :  { %v6532_v50 = vmul.f32 %v6518_v18, %v6506_v13  ;;  %v6505_v3 = vsel %vm275_vm8, %v6502_v24, %v6504_v56  ;;  %v6508_v63 = vsel %vm275_vm8, %v6504_v56, %v6498_v40  ;;  %v6628_v24 = vrot.slane %v10183_v39, %v11223_v15 }
 0xe69   :  { %v6533_v52 = vmul.f32 %v6522_v46, %v6505_v3  ;;  %v6534_v33 = vmul.f32 %v6526_v1, %v6508_v63  ;;  %v6632_v63 = vrot.slane %v10183_v39, %v16604_v25 }
 0xe6a   :  { %v6536_v62 = vpop.permute.xlu0 %6535  ;;  %v10649_v58 = vpack.c.bf16 %v6532_v50, %v14643_v42  ;;  %v10182_v42 = vld [vmem:[%s16138_s2 + $0x7] ss:$8 sm:$0xf] }
 0xe6b   :  { %v6538_v44 = vpop.permute.xlu1 %6537  ;;  %v10669_v17 = vpack.c.bf16 %v6534_v33, %v14647_v29  ;;  %v10671_v23 = vpack.c.bf16 %v6533_v52, %v14645_v4  ;;  %v6556_v29 = vrot.slane %v10181_v43, %v16604_v25  ;;  %v6590_v4 = vrot.slane %v10182_v42, %v11223_v15 }
 0xe6c   :  { %10650 = vmatprep.subr.bf16.mxu0 %v10649_v58  ;;  %v6545_v45 = vsel %vm315_vm9, %v6536_v62, %v6538_v44  ;;  %v6594_v6 = vrot.slane %v10182_v42, %v16604_v25  ;;  %v6598_v14 = vrot.slane %v10182_v42, %v16606_v55  ;;  %v6602_v37 = vrot.slane %v10182_v42, %v16605_v11 }
 0xe6d   :  { %10652 = vmatpush1.bf16.msra.mxu0 %v10651_v38  ;;  %10670 = vmatprep.subr.bf16.mxu1 %v10669_v17  ;;  %v6569_v36 = vmul.f32 %v6552_v27, %v6545_v45  ;;  %v6636_v52 = vrot.slane %v10183_v39, %v16606_v55  ;;  %v6640_v33 = vrot.slane %v10183_v39, %v16605_v11 }
 0xe6e   :  { %v6540_v20 = vpop.permute.xlu0 %6539  ;;  %10672 = vmatpush1.bf16.msra.mxu1 %v10671_v23 }
 0xe6f   :  { %v6542_v34 = vpop.permute.xlu1 %6541  ;;  %v6544_v12 = vsel %vm315_vm9, %v6538_v44, %v6540_v20 }
 0xe70   :  { %v6543_v48 = vsel %vm315_vm9, %v6540_v20, %v6542_v34  ;;  %v6546_v0 = vsel %vm315_vm9, %v6542_v34, %v6536_v62  ;;  %v6570_v16 = vmul.f32 %v6556_v29, %v6544_v12 }
 0xe71   :  { %v6571_v54 = vmul.f32 %v6560_v49, %v6543_v48  ;;  %v6572_v57 = vmul.f32 %v6564_v35, %v6546_v0  ;;  %v6887_v35 = vld [vmem:[%s16138_s2] ss:$8 sm:$0xf] }
 0xe72   :  { %v6574_v5 = vpop.permute.xlu0 %6573  ;;  %v6896_v0 = vrot.slane %v6887_v35, %v16604_v25 }
 0xe73   :  { %v6576_v10 = vpop.permute.xlu1 %6575 }
 0xe74   :  { %v6583_v26 = vsel %vm355_vm10, %v6574_v5, %v6576_v10 }
 0xe75   :  { %v6607_v9 = vmul.f32 %v6590_v4, %v6583_v26  ;;  %v6685_v4 = vld [vmem:[%s16137_s1 + $0x58] sm:$0xff] }
 0xe76   :  { %v6578_v61 = vpop.permute.xlu0 %6577 }
 0xe77   :  { %v6582_v21 = vsel %vm355_vm10, %v6576_v10, %v6578_v61  ;;  %v6580_v30 = vpop.permute.xlu1 %6579  ;;  %v10655_v13 = vpack.c.bf16 %v6607_v9, %v6569_v36 }
 0xe78   :  { %v6608_v40 = vmul.f32 %v6594_v6, %v6582_v21  ;;  %v6581_v60 = vsel %vm355_vm10, %v6578_v61, %v6580_v30  ;;  %v6584_v19 = vsel %vm355_vm10, %v6580_v30, %v6574_v5  ;;  %v6892_v30 = vrot.slane %v6887_v35, %v11223_v15 }
 0xe79   :  { %v6609_v18 = vmul.f32 %v6598_v14, %v6581_v60  ;;  %v6610_v2 = vmul.f32 %v6602_v37, %v6584_v19  ;;  %v10186_v37 = vld [vmem:[%s16138_s2 + $0x1] ss:$8 sm:$0xf] }
 0xe7a   :  { %v6612_v46 = vpop.permute.xlu0 %6611  ;;  %v10653_v1 = vpack.c.bf16 %v6608_v40, %v6570_v16  ;;  %v6934_v61 = vrot.slane %v10186_v37, %v16604_v25  ;;  %v6904_v16 = vrot.slane %v6887_v35, %v16605_v11  ;;  %v6938_v60 = vrot.slane %v10186_v37, %v16606_v55 }
 0xe7b   :  { %v6614_v28 = vpop.permute.xlu1 %6613  ;;  %v10673_v56 = vpack.c.bf16 %v6610_v2, %v6572_v57  ;;  %v10675_v50 = vpack.c.bf16 %v6609_v18, %v6571_v54  ;;  %v6930_v54 = vrot.slane %v10186_v37, %v11223_v15  ;;  %v6942_v57 = vrot.slane %v10186_v37, %v16605_v11 }
 0xe7c   :  { %v6621_v3 = vsel %vm395_vm11, %v6612_v46, %v6614_v28  ;;  %10654 = vmatprep.subr.bf16.mxu0 %v10653_v1  ;;  %v6900_v18 = vrot.slane %v6887_v35, %v16606_v55 }
 0xe7d   :  { %10656 = vmatpush1.bf16.msra.mxu0 %v10655_v13  ;;  %10674 = vmatprep.subr.bf16.mxu1 %v10673_v56  ;;  %v6645_v58 = vmul.f32 %v6628_v24, %v6621_v3 }
 0xe7e   :  { %v6616_v62 = vpop.permute.xlu0 %6615  ;;  %10676 = vmatpush1.bf16.msra.mxu1 %v10675_v50 }
 0xe7f   :  { %v6620_v44 = vsel %vm395_vm11, %v6614_v28, %v6616_v62  ;;  %v6618_v38 = vpop.permute.xlu1 %6617  ;;  %v10659_v5 = vpack.c.bf16 %v14483_v32, %v6645_v58 }
 0xe80   :  { %v6646_v17 = vmul.f32 %v6632_v63, %v6620_v44  ;;  %v6619_v23 = vsel %vm395_vm11, %v6616_v62, %v6618_v38  ;;  %v6622_v20 = vsel %vm395_vm11, %v6618_v38, %v6612_v46 }
 0xe81   :  { %v6647_v34 = vmul.f32 %v6636_v52, %v6619_v23  ;;  %v6648_v43 = vmul.f32 %v6640_v33, %v6622_v20 }
 0xe82   :  { %v10657_v42 = vpack.c.bf16 %v14476_v53, %v6646_v17 }
 0xe83   :  { %v10677_v27 = vpack.c.bf16 %v14485_v8, %v6648_v43  ;;  %v10679_v29 = vpack.c.bf16 %v14487_v22, %v6647_v34  ;;  %v10187_v43 = vld [vmem:[%s16138_s2 + $0x2] ss:$8 sm:$0xf] }
 0xe84   :  { %10658 = vmatprep.subr.bf16.mxu0 %v10657_v42 }
 0xe85   :  { %10660 = vmatpush1.bf16.msra.mxu0 %v10659_v5  ;;  %10678 = vmatprep.subr.bf16.mxu1 %v10677_v27  ;;  %v10188_v5 = vld [vmem:[%s16138_s2 + $0x3] ss:$8 sm:$0xf] }
 0xe86   :  { %10680 = vmatpush1.bf16.msra.mxu1 %v10679_v29  ;;  %v6972_v29 = vrot.slane %v10187_v43, %v16604_v25  ;;  %v7014_v35 = vrot.slane %v10188_v5, %v16606_v55 }
 0xe88   :  { %10184 = vmatmul.mubr.msk.f32.vlgmr.msra.gmra.mrb[20].mxu0 %vm878_vm13, %v6685_v4 }
 0xe89   :  { %10185 = vmatmul.mubr.msk.f32.vlgmr.msra.gmra.mrb[20].mxu1 %vm878_vm13, %v6685_v4  ;;  %7323 = vmatprep.mubr.f32.mxu0 %v16697_v41  ;;  %v7010_v4 = vrot.slane %v10188_v5, %v16604_v25 }
 0xe8a   :  { %7394 = vmatprep.mubr.f32.mxu1 %v16697_v41 }
 0xf5b   :  { %v6795_v53 = vpop.f32.mrb[20].mxu0 }
 0xf5c   :  { %v14848_v32 = vmax.f32 %v6795_v53, 0.0  ;;  %v6797_v8 = vpop.f32.mrb[21].mxu0  ;;  %v6866_v22 = vpop.f32.mrb[20].mxu1 }
 0xf5d   :  { %v14850_v10 = vmax.f32 %v6797_v8, 0.0  ;;  %v6868_v45 = vpop.f32.mrb[21].mxu1  ;;  %v14852_v49 = vmax.f32 %v6866_v22, 0.0 }
 0xf5e   :  { %6875 = vrot.lane.b32.xlu0 %v14848_v32, %s10998_s7  ;;  %v14856_v26 = vmax.f32 %v6868_v45, 0.0  ;;  %v6968_v45 = vrot.slane %v10187_v43, %v11223_v15 }
 0xf5f   :  { %6877 = vrot.lane.b32.xlu1 %v14850_v10, %s10998_s7 }
 0xf62   :  { %6879 = vrot.lane.b32.xlu0 %v14852_v49, %s10998_s7 }
 0xf63   :  { %6881 = vrot.lane.b32.xlu1 %v14856_v26, %s10998_s7 }
 0xf66   :  { %6913 = vrot.lane.b32.xlu0 %v14848_v32, %s10999_s8 }
 0xf67   :  { %6915 = vrot.lane.b32.xlu1 %v14850_v10, %s10999_s8 }
 0xf6a   :  { %6917 = vrot.lane.b32.xlu0 %v14852_v49, %s10999_s8 }
 0xf6b   :  { %6919 = vrot.lane.b32.xlu1 %v14856_v26, %s10999_s8 }
 0xf6e   :  { %6951 = vrot.lane.b32.xlu0 %v14848_v32, %s10997_s0 }
 0xf6f   :  { %6953 = vrot.lane.b32.xlu1 %v14850_v10, %s10997_s0 }
 0xf72   :  { %6955 = vrot.lane.b32.xlu0 %v14852_v49, %s10997_s0 }
 0xf73   :  { %6957 = vrot.lane.b32.xlu1 %v14856_v26, %s10997_s0 }
 0xf76   :  { %6989 = vrot.lane.b32.xlu0 %v14848_v32, %s11000_s9 }
 0xf77   :  { %6991 = vrot.lane.b32.xlu1 %v14850_v10, %s11000_s9 }
 0xf7a   :  { %6993 = vrot.lane.b32.xlu0 %v14852_v49, %s11000_s9 }
 0xf7b   :  { %6995 = vrot.lane.b32.xlu1 %v14856_v26, %s11000_s9 }
 0xf7e   :  { %7027 = vrot.lane.b32.xlu0 %v14848_v32, %s11002_s10 }
 0xf7f   :  { %7029 = vrot.lane.b32.xlu1 %v14850_v10, %s11002_s10 }
 0xf82   :  { %7031 = vrot.lane.b32.xlu0 %v14852_v49, %s11002_s10 }
 0xf83   :  { %7033 = vrot.lane.b32.xlu1 %v14856_v26, %s11002_s10 }
 0xf86   :  { %7065 = vrot.lane.b32.xlu0 %v14848_v32, %s11004_s11 }
 0xf87   :  { %7067 = vrot.lane.b32.xlu1 %v14850_v10, %s11004_s11 }
 0xf8a   :  { %7069 = vrot.lane.b32.xlu0 %v14852_v49, %s11004_s11 }
 0xf8b   :  { %7071 = vrot.lane.b32.xlu1 %v14856_v26, %s11004_s11 }
 0xf8e   :  { %7103 = vrot.lane.b32.xlu0 %v14848_v32, %s11006_s12 }
 0xf8f   :  { %7105 = vrot.lane.b32.xlu1 %v14850_v10, %s11006_s12 }
 0xf92   :  { %7107 = vrot.lane.b32.xlu0 %v14852_v49, %s11006_s12 }
 0xf93   :  { %7109 = vrot.lane.b32.xlu1 %v14856_v26, %s11006_s12 }
 0xf96   :  { %7141 = vrot.lane.b32.xlu0 %v14848_v32, %s11008_s13 }
 0xf97   :  { %7143 = vrot.lane.b32.xlu1 %v14850_v10, %s11008_s13 }
 0xf9a   :  { %7145 = vrot.lane.b32.xlu0 %v14852_v49, %s11008_s13 }
 0xf9b   :  { %7147 = vrot.lane.b32.xlu1 %v14856_v26, %s11008_s13 }
 0xfd0   :  { %v6876_v6 = vpop.permute.xlu0 %6875 }
 0xfd1   :  { %v6878_v12 = vpop.permute.xlu1 %6877 }
 0xfd2   :  { %v6885_v36 = vsel %vm116_vm4, %v6876_v6, %v6878_v12 }
 0xfd3   :  { %v6910_v19 = vmul.f32 %v6896_v0, %v6885_v36  ;;  %v7018_v0 = vrot.slane %v10188_v5, %v16605_v11 }
 0xfd4   :  { %v6880_v14 = vpop.permute.xlu0 %6879 }
 0xfd5   :  { %v6882_v48 = vpop.permute.xlu1 %6881  ;;  %v6884_v24 = vsel %vm116_vm4, %v6878_v12, %v6880_v14 }
 0xfd6   :  { %v6883_v2 = vsel %vm116_vm4, %v6880_v14, %v6882_v48  ;;  %v6886_v46 = vsel %vm116_vm4, %v6882_v48, %v6876_v6  ;;  %v6911_v44 = vmul.f32 %v6900_v18, %v6884_v24  ;;  %v6980_v6 = vrot.slane %v10187_v43, %v16605_v11 }
 0xfd7   :  { %v6909_v52 = vmul.f32 %v6892_v30, %v6886_v46  ;;  %v6912_v33 = vmul.f32 %v6904_v16, %v6883_v2  ;;  %v7006_v48 = vrot.slane %v10188_v5, %v11223_v15 }
 0xfd8   :  { %v6914_v9 = vpop.permute.xlu0 %6913 }
 0xfd9   :  { %v6916_v21 = vpop.permute.xlu1 %6915 }
 0xfda   :  { %v6923_v40 = vsel %vm155_vm5, %v6914_v9, %v6916_v21 }
 0xfdb   :  { %v6948_v39 = vmul.f32 %v6934_v61, %v6923_v40  ;;  %v6976_v61 = vrot.slane %v10187_v43, %v16606_v55 }
 0xfdc   :  { %v6918_v1 = vpop.permute.xlu0 %6917 }
 0xfdd   :  { %v6922_v28 = vsel %vm155_vm5, %v6916_v21, %v6918_v1  ;;  %v6920_v13 = vpop.permute.xlu1 %6919  ;;  %v10681_v56 = vpack.c.bf16 %v6948_v39, %v6910_v19 }
 0xfde   :  { %v6949_v50 = vmul.f32 %v6938_v60, %v6922_v28  ;;  %v6921_v3 = vsel %vm155_vm5, %v6918_v1, %v6920_v13  ;;  %v6924_v63 = vsel %vm155_vm5, %v6920_v13, %v6914_v9 }
 0xfdf   :  { %v6947_v62 = vmul.f32 %v6930_v54, %v6924_v63  ;;  %v6950_v58 = vmul.f32 %v6942_v57, %v6921_v3  ;;  %10682 = vmatprep.subr.bf16.mxu0 %v10681_v56  ;;  %v10189_v57 = vld [vmem:[%s16138_s2 + $0x5] ss:$8 sm:$0xf] }
 0xfe0   :  { %v6952_v38 = vpop.permute.xlu0 %6951  ;;  %v10703_v34 = vpack.c.bf16 %v6949_v50, %v6911_v44  ;;  %v7044_v13 = vrot.slane %v10189_v57, %v11223_v15 }
 0xfe1   :  { %v6954_v17 = vpop.permute.xlu1 %6953  ;;  %v10683_v23 = vpack.c.bf16 %v6947_v62, %v6909_v52  ;;  %v10701_v20 = vpack.c.bf16 %v6950_v58, %v6912_v33  ;;  %v7048_v52 = vrot.slane %v10189_v57, %v16604_v25  ;;  %v7052_v62 = vrot.slane %v10189_v57, %v16606_v55 }
 0xfe2   :  { %v6961_v53 = vsel %vm195_vm6, %v6952_v38, %v6954_v17  ;;  %v7056_v58 = vrot.slane %v10189_v57, %v16605_v11 }
 0xfe3   :  { %10684 = vmatpush1.bf16.msra.mxu0 %v10683_v23  ;;  %10702 = vmatprep.subr.bf16.mxu1 %v10701_v20  ;;  %v6986_v14 = vmul.f32 %v6972_v29, %v6961_v53 }
 0xfe4   :  { %v6956_v42 = vpop.permute.xlu0 %6955  ;;  %10704 = vmatpush1.bf16.msra.mxu1 %v10703_v34 }
 0xfe5   :  { %v6958_v27 = vpop.permute.xlu1 %6957  ;;  %v6960_v30 = vsel %vm195_vm6, %v6954_v17, %v6956_v42 }
 0xfe6   :  { %v6959_v36 = vsel %vm195_vm6, %v6956_v42, %v6958_v27  ;;  %v6962_v9 = vsel %vm195_vm6, %v6958_v27, %v6952_v38  ;;  %v6987_v24 = vmul.f32 %v6976_v61, %v6960_v30 }
 0xfe7   :  { %v6985_v18 = vmul.f32 %v6968_v45, %v6962_v9  ;;  %v6988_v2 = vmul.f32 %v6980_v6, %v6959_v36 }
 0xfe8   :  { %v6990_v8 = vpop.permute.xlu0 %6989 }
 0xfe9   :  { %v6992_v22 = vpop.permute.xlu1 %6991 }
 0xfea   :  { %v6999_v12 = vsel %vm235_vm7, %v6990_v8, %v6992_v22 }
 0xfeb   :  { %v7024_v37 = vmul.f32 %v7010_v4, %v6999_v12  ;;  %v10190_v12 = vld [vmem:[%s16138_s2 + $0x6] ss:$8 sm:$0xf] }
 0xfec   :  { %v6994_v21 = vpop.permute.xlu0 %6993  ;;  %v7094_v9 = vrot.slane %v10190_v12, %v16605_v11 }
 0xfed   :  { %v6998_v16 = vsel %vm235_vm7, %v6992_v22, %v6994_v21  ;;  %v6996_v40 = vpop.permute.xlu1 %6995  ;;  %v10685_v60 = vpack.c.bf16 %v7024_v37, %v6986_v14 }
 0xfee   :  { %v7025_v19 = vmul.f32 %v7014_v35, %v6998_v16  ;;  %v6997_v39 = vsel %vm235_vm7, %v6994_v21, %v6996_v40  ;;  %v7000_v54 = vsel %vm235_vm7, %v6996_v40, %v6990_v8 }
 0xfef   :  { %v7023_v46 = vmul.f32 %v7006_v48, %v7000_v54  ;;  %v7026_v1 = vmul.f32 %v7018_v0, %v6997_v39  ;;  %10686 = vmatprep.subr.bf16.mxu0 %v10685_v60  ;;  %v7090_v48 = vrot.slane %v10190_v12, %v16606_v55 }
 0xff0   :  { %v7028_v28 = vpop.permute.xlu0 %7027  ;;  %v10707_v33 = vpack.c.bf16 %v7025_v19, %v6987_v24  ;;  %v10192_v24 = vld [vmem:[%s16138_s2 + $0x20] ss:$8 sm:$0xf] }
 0xff1   :  { %v7030_v56 = vpop.permute.xlu1 %7029  ;;  %v10687_v50 = vpack.c.bf16 %v7023_v46, %v6985_v18  ;;  %v10705_v3 = vpack.c.bf16 %v7026_v1, %v6988_v2 }
 0xff2   :  { %v7037_v63 = vsel %vm275_vm8, %v7028_v28, %v7030_v56 }
 0xff3   :  { %10688 = vmatpush1.bf16.msra.mxu0 %v10687_v50  ;;  %10706 = vmatprep.subr.bf16.mxu1 %v10705_v3  ;;  %v7061_v38 = vmul.f32 %v7044_v13, %v7037_v63 }
 0xff4   :  { %v7032_v44 = vpop.permute.xlu0 %7031  ;;  %10708 = vmatpush1.bf16.msra.mxu1 %v10707_v33 }
 0xff5   :  { %v7036_v17 = vsel %vm275_vm8, %v7030_v56, %v7032_v44  ;;  %v7034_v23 = vpop.permute.xlu1 %7033  ;;  %v10691_v53 = vpack.c.bf16 %v7061_v38, %v14848_v32  ;;  %v7082_v32 = vrot.slane %v10190_v12, %v11223_v15 }
 0xff6   :  { %v7062_v20 = vmul.f32 %v7048_v52, %v7036_v17  ;;  %v7035_v34 = vsel %vm275_vm8, %v7032_v44, %v7034_v23  ;;  %v7038_v43 = vsel %vm275_vm8, %v7034_v23, %v7028_v28  ;;  %v7158_v52 = vrot.slane %v10192_v24, %v11223_v15 }
 0xff7   :  { %v7063_v42 = vmul.f32 %v7052_v62, %v7035_v34  ;;  %v7064_v5 = vmul.f32 %v7056_v58, %v7038_v43  ;;  %v7162_v17 = vrot.slane %v10192_v24, %v16604_v25  ;;  %v7166_v23 = vrot.slane %v10192_v24, %v16606_v55 }
 0xff8   :  { %v7066_v27 = vpop.permute.xlu0 %7065  ;;  %v10689_v29 = vpack.c.bf16 %v7062_v20, %v14850_v10  ;;  %v10191_v10 = vld [vmem:[%s16138_s2 + $0x7] ss:$8 sm:$0xf]  ;;  %v7170_v20 = vrot.slane %v10192_v24, %v16605_v11 }
 0xff9   :  { %v7068_v4 = vpop.permute.xlu1 %7067  ;;  %v10709_v8 = vpack.c.bf16 %v7064_v5, %v14856_v26  ;;  %v10711_v22 = vpack.c.bf16 %v7063_v42, %v14852_v49  ;;  %v7086_v26 = vrot.slane %v10190_v12, %v16604_v25  ;;  %v7120_v49 = vrot.slane %v10191_v10, %v11223_v15 }
 0xffa   :  { %10690 = vmatprep.subr.bf16.mxu0 %v10689_v29  ;;  %v7075_v37 = vsel %vm315_vm9, %v7066_v27, %v7068_v4  ;;  %v7124_v61 = vrot.slane %v10191_v10, %v16604_v25  ;;  %v7128_v21 = vrot.slane %v10191_v10, %v16606_v55  ;;  %v7132_v30 = vrot.slane %v10191_v10, %v16605_v11 }
 0xffb   :  { %10692 = vmatpush1.bf16.msra.mxu0 %v10691_v53  ;;  %10710 = vmatprep.subr.bf16.mxu1 %v10709_v8  ;;  %v7099_v19 = vmul.f32 %v7082_v32, %v7075_v37  ;;  %v15046_v8 = vld [vmem:[#allocation2 + $0x120] sm:$0xff] }
 0xffc   :  { %v7070_v45 = vpop.permute.xlu0 %7069  ;;  %10712 = vmatpush1.bf16.msra.mxu1 %v10711_v22  ;;  %v15048_v22 = vld [vmem:[#allocation2 + $0x138] sm:$0xff] }
 0xffd   :  { %v7072_v6 = vpop.permute.xlu1 %7071  ;;  %v7074_v36 = vsel %vm315_vm9, %v7068_v4, %v7070_v45 }
 0xffe   :  { %v7073_v16 = vsel %vm315_vm9, %v7070_v45, %v7072_v6  ;;  %v7076_v40 = vsel %vm315_vm9, %v7072_v6, %v7066_v27  ;;  %v7100_v18 = vmul.f32 %v7086_v26, %v7074_v36  ;;  %v15040_v27 = vld [vmem:[#allocation2 + $0x128] sm:$0xff]  ;;  %v15050_v45 = vld [vmem:[#allocation2 + $0x130] sm:$0xff] }
 0xfff   :  { %v7101_v28 = vmul.f32 %v7090_v48, %v7073_v16  ;;  %v7102_v13 = vmul.f32 %v7094_v9, %v7076_v40 }
0x1000   :  { %v7104_v35 = vpop.permute.xlu0 %7103 }
0x1001   :  { %v7106_v14 = vpop.permute.xlu1 %7105 }
0x1002   :  { %v7113_v0 = vsel %vm355_vm10, %v7104_v35, %v7106_v14 }
0x1003   :  { %v7137_v39 = vmul.f32 %v7120_v49, %v7113_v0  ;;  %v7215_v49 = vld [vmem:[%s16137_s1 + $0x60] sm:$0xff] }
0x1004   :  { %v7108_v60 = vpop.permute.xlu0 %7107 }
0x1005   :  { %v7112_v54 = vsel %vm355_vm10, %v7106_v14, %v7108_v60  ;;  %v7110_v57 = vpop.permute.xlu1 %7109  ;;  %v10695_v62 = vpack.c.bf16 %v7137_v39, %v7099_v19 }
0x1006   :  { %v7138_v2 = vmul.f32 %v7124_v61, %v7112_v54  ;;  %v7111_v46 = vsel %vm355_vm10, %v7108_v60, %v7110_v57  ;;  %v7114_v1 = vsel %vm355_vm10, %v7110_v57, %v7104_v35 }
0x1007   :  { %v7139_v56 = vmul.f32 %v7128_v21, %v7111_v46  ;;  %v7140_v50 = vmul.f32 %v7132_v30, %v7114_v1  ;;  %v10195_v30 = vld [vmem:[%s16138_s2 + $0x1] ss:$8 sm:$0xf] }
0x1008   :  { %v7142_v3 = vpop.permute.xlu0 %7141  ;;  %v10693_v63 = vpack.c.bf16 %v7138_v2, %v7100_v18  ;;  %v7464_v60 = vrot.slane %v10195_v30, %v16604_v25  ;;  %v7468_v46 = vrot.slane %v10195_v30, %v16606_v55 }
0x1009   :  { %v7144_v33 = vpop.permute.xlu1 %7143  ;;  %v10713_v58 = vpack.c.bf16 %v7140_v50, %v7102_v13  ;;  %v10715_v44 = vpack.c.bf16 %v7139_v56, %v7101_v28  ;;  %v7460_v28 = vrot.slane %v10195_v30, %v11223_v15  ;;  %v7472_v13 = vrot.slane %v10195_v30, %v16605_v11 }
0x100a   :  { %v7151_v38 = vsel %vm395_vm11, %v7142_v3, %v7144_v33  ;;  %10694 = vmatprep.subr.bf16.mxu0 %v10693_v63 }
0x100b   :  { %10696 = vmatpush1.bf16.msra.mxu0 %v10695_v62  ;;  %10714 = vmatprep.subr.bf16.mxu1 %v10713_v58  ;;  %v7175_v43 = vmul.f32 %v7158_v52, %v7151_v38 }
0x100c   :  { %v7146_v34 = vpop.permute.xlu0 %7145  ;;  %10716 = vmatpush1.bf16.msra.mxu1 %v10715_v44 }
0x100d   :  { %v7150_v42 = vsel %vm395_vm11, %v7144_v33, %v7146_v34  ;;  %v7148_v5 = vpop.permute.xlu1 %7147  ;;  %v10699_v35 = vpack.c.bf16 %v15046_v8, %v7175_v43 }
0x100e   :  { %v7176_v29 = vmul.f32 %v7162_v17, %v7150_v42  ;;  %v7149_v4 = vsel %vm395_vm11, %v7146_v34, %v7148_v5  ;;  %v7152_v53 = vsel %vm395_vm11, %v7148_v5, %v7142_v3 }
0x100f   :  { %v7177_v6 = vmul.f32 %v7166_v23, %v7149_v4  ;;  %v7178_v12 = vmul.f32 %v7170_v20, %v7152_v53 }
0x1010   :  { %v10697_v10 = vpack.c.bf16 %v15040_v27, %v7176_v29 }
0x1011   :  { %v10717_v32 = vpack.c.bf16 %v15048_v22, %v7178_v12  ;;  %v10719_v26 = vpack.c.bf16 %v15050_v45, %v7177_v6  ;;  %v10196_v12 = vld [vmem:[%s16138_s2 + $0x2] ss:$8 sm:$0xf] }
0x1012   :  { %10698 = vmatprep.subr.bf16.mxu0 %v10697_v10 }
0x1013   :  { %10700 = vmatpush1.bf16.msra.mxu0 %v10699_v35  ;;  %10718 = vmatprep.subr.bf16.mxu1 %v10717_v32  ;;  %v10197_v35 = vld [vmem:[%s16138_s2 + $0x3] ss:$8 sm:$0xf] }
0x1014   :  { %10720 = vmatpush1.bf16.msra.mxu1 %v10719_v26  ;;  %v7502_v26 = vrot.slane %v10196_v12, %v16604_v25 }
0x1016   :  { %10193 = vmatmul.mubr.msk.f32.vlgmr.msra.gmra.mrb[22].mxu0 %vm878_vm13, %v7215_v49 }
0x1017   :  { %10194 = vmatmul.mubr.msk.f32.vlgmr.msra.gmra.mrb[22].mxu1 %vm878_vm13, %v7215_v49  ;;  %7853 = vmatprep.mubr.f32.mxu0 %v16697_v41  ;;  %v7540_v49 = vrot.slane %v10197_v35, %v16604_v25 }
0x1018   :  { %7924 = vmatprep.mubr.f32.mxu1 %v16697_v41 }
0x10e9   :  { %v7325_v14 = vpop.f32.mrb[22].mxu0 }
0x10ea   :  { %v15064_v37 = vsub.f32 %v7325_v14, %v14626_v47  ;;  %v7327_v48 = vpop.f32.mrb[23].mxu0  ;;  %v7396_v0 = vpop.f32.mrb[22].mxu1 }
0x10eb   :  { %v15067_v61 = vsub.f32 %v7327_v48, %v14629_v7  ;;  %v7398_v36 = vpop.f32.mrb[23].mxu1  ;;  %v15074_v9 = vsub.f32 %v7396_v0, %v14632_v31  ;;  %v7417_v31 = vld [vmem:[%s16138_s2] ss:$8 sm:$0xf] }
0x10ec   :  { %7405 = vrot.lane.b32.xlu0 %v15064_v37, %s10998_s7  ;;  %v15077_v21 = vsub.f32 %v7398_v36, %v14635_v51  ;;  %v7426_v40 = vrot.slane %v7417_v31, %v16604_v25  ;;  %v7422_v57 = vrot.slane %v7417_v31, %v11223_v15  ;;  %v7434_v18 = vrot.slane %v7417_v31, %v16605_v11 }
0x10ed   :  { %7407 = vrot.lane.b32.xlu1 %v15067_v61, %s10998_s7  ;;  %v7430_v56 = vrot.slane %v7417_v31, %v16606_v55  ;;  %v7498_v36 = vrot.slane %v10196_v12, %v11223_v15  ;;  %v7544_v31 = vrot.slane %v10197_v35, %v16606_v55 }
0x10f0   :  { %7409 = vrot.lane.b32.xlu0 %v15074_v9, %s10998_s7 }
0x10f1   :  { %7411 = vrot.lane.b32.xlu1 %v15077_v21, %s10998_s7 }
0x10f4   :  { %7443 = vrot.lane.b32.xlu0 %v15064_v37, %s10999_s8 }
0x10f5   :  { %7445 = vrot.lane.b32.xlu1 %v15067_v61, %s10999_s8 }
0x10f8   :  { %7447 = vrot.lane.b32.xlu0 %v15074_v9, %s10999_s8 }
0x10f9   :  { %7449 = vrot.lane.b32.xlu1 %v15077_v21, %s10999_s8 }
0x10fc   :  { %7481 = vrot.lane.b32.xlu0 %v15064_v37, %s10997_s0 }
0x10fd   :  { %7483 = vrot.lane.b32.xlu1 %v15067_v61, %s10997_s0 }
0x1100   :  { %7485 = vrot.lane.b32.xlu0 %v15074_v9, %s10997_s0 }
0x1101   :  { %7487 = vrot.lane.b32.xlu1 %v15077_v21, %s10997_s0 }
0x1104   :  { %7519 = vrot.lane.b32.xlu0 %v15064_v37, %s11000_s9 }
0x1105   :  { %7521 = vrot.lane.b32.xlu1 %v15067_v61, %s11000_s9 }
0x1108   :  { %7523 = vrot.lane.b32.xlu0 %v15074_v9, %s11000_s9 }
0x1109   :  { %7525 = vrot.lane.b32.xlu1 %v15077_v21, %s11000_s9 }
0x110c   :  { %7557 = vrot.lane.b32.xlu0 %v15064_v37, %s11002_s10 }
0x110d   :  { %7559 = vrot.lane.b32.xlu1 %v15067_v61, %s11002_s10 }
0x1110   :  { %7561 = vrot.lane.b32.xlu0 %v15074_v9, %s11002_s10 }
0x1111   :  { %7563 = vrot.lane.b32.xlu1 %v15077_v21, %s11002_s10 }
0x1114   :  { %7595 = vrot.lane.b32.xlu0 %v15064_v37, %s11004_s11 }
0x1115   :  { %7597 = vrot.lane.b32.xlu1 %v15067_v61, %s11004_s11 }
0x1118   :  { %7599 = vrot.lane.b32.xlu0 %v15074_v9, %s11004_s11 }
0x1119   :  { %7601 = vrot.lane.b32.xlu1 %v15077_v21, %s11004_s11 }
0x111c   :  { %7633 = vrot.lane.b32.xlu0 %v15064_v37, %s11006_s12 }
0x111d   :  { %7635 = vrot.lane.b32.xlu1 %v15067_v61, %s11006_s12 }
0x1120   :  { %7637 = vrot.lane.b32.xlu0 %v15074_v9, %s11006_s12 }
0x1121   :  { %7639 = vrot.lane.b32.xlu1 %v15077_v21, %s11006_s12 }
0x1124   :  { %7671 = vrot.lane.b32.xlu0 %v15064_v37, %s11008_s13 }
0x1125   :  { %7673 = vrot.lane.b32.xlu1 %v15067_v61, %s11008_s13 }
0x1128   :  { %7675 = vrot.lane.b32.xlu0 %v15074_v9, %s11008_s13 }
0x1129   :  { %7677 = vrot.lane.b32.xlu1 %v15077_v21, %s11008_s13 }
0x115e   :  { %v7406_v47 = vpop.permute.xlu0 %7405 }
0x115f   :  { %v7408_v7 = vpop.permute.xlu1 %7407 }
0x1160   :  { %v7415_v19 = vsel %vm116_vm4, %v7406_v47, %v7408_v7 }
0x1161   :  { %v7440_v1 = vmul.f32 %v7426_v40, %v7415_v19  ;;  %v7548_v40 = vrot.slane %v10197_v35, %v16605_v11 }
0x1162   :  { %v7410_v51 = vpop.permute.xlu0 %7409 }
0x1163   :  { %v7412_v16 = vpop.permute.xlu1 %7411  ;;  %v7414_v52 = vsel %vm116_vm4, %v7408_v7, %v7410_v51 }
0x1164   :  { %v7413_v50 = vsel %vm116_vm4, %v7410_v51, %v7412_v16  ;;  %v7416_v3 = vsel %vm116_vm4, %v7412_v16, %v7406_v47  ;;  %v7441_v42 = vmul.f32 %v7430_v56, %v7414_v52  ;;  %v7510_v47 = vrot.slane %v10196_v12, %v16605_v11 }
0x1165   :  { %v7439_v23 = vmul.f32 %v7422_v57, %v7416_v3  ;;  %v7442_v20 = vmul.f32 %v7434_v18, %v7413_v50  ;;  %v7536_v16 = vrot.slane %v10197_v35, %v11223_v15 }
0x1166   :  { %v7444_v39 = vpop.permute.xlu0 %7443 }
0x1167   :  { %v7446_v54 = vpop.permute.xlu1 %7445 }
0x1168   :  { %v7453_v2 = vsel %vm155_vm5, %v7444_v39, %v7446_v54 }
0x1169   :  { %v7478_v24 = vmul.f32 %v7464_v60, %v7453_v2  ;;  %v7506_v60 = vrot.slane %v10196_v12, %v16606_v55 }
0x116a   :  { %v7448_v63 = vpop.permute.xlu0 %7447 }
0x116b   :  { %v7452_v33 = vsel %vm155_vm5, %v7446_v54, %v7448_v63  ;;  %v7450_v62 = vpop.permute.xlu1 %7449  ;;  %v10721_v58 = vpack.c.bf16 %v7478_v24, %v7440_v1 }
0x116c   :  { %v7479_v44 = vmul.f32 %v7468_v46, %v7452_v33  ;;  %v7451_v38 = vsel %vm155_vm5, %v7448_v63, %v7450_v62  ;;  %v7454_v17 = vsel %vm155_vm5, %v7450_v62, %v7444_v39 }
0x116d   :  { %v7477_v34 = vmul.f32 %v7460_v28, %v7454_v17  ;;  %v7480_v43 = vmul.f32 %v7472_v13, %v7451_v38  ;;  %10722 = vmatprep.subr.bf16.mxu0 %v10721_v58  ;;  %v10198_v13 = vld [vmem:[%s16138_s2 + $0x5] ss:$8 sm:$0xf] }
0x116e   :  { %v7482_v5 = vpop.permute.xlu0 %7481  ;;  %v10743_v6 = vpack.c.bf16 %v7479_v44, %v7441_v42  ;;  %v7574_v62 = vrot.slane %v10198_v13, %v11223_v15 }
0x116f   :  { %v7484_v29 = vpop.permute.xlu1 %7483  ;;  %v10723_v4 = vpack.c.bf16 %v7477_v34, %v7439_v23  ;;  %v10741_v53 = vpack.c.bf16 %v7480_v43, %v7442_v20  ;;  %v7578_v23 = vrot.slane %v10198_v13, %v16604_v25  ;;  %v7582_v34 = vrot.slane %v10198_v13, %v16606_v55 }
0x1170   :  { %v7491_v14 = vsel %vm195_vm6, %v7482_v5, %v7484_v29  ;;  %v7586_v43 = vrot.slane %v10198_v13, %v16605_v11 }
0x1171   :  { %10724 = vmatpush1.bf16.msra.mxu0 %v10723_v4  ;;  %10742 = vmatprep.subr.bf16.mxu1 %v10741_v53  ;;  %v7516_v51 = vmul.f32 %v7502_v26, %v7491_v14 }
0x1172   :  { %v7486_v10 = vpop.permute.xlu0 %7485  ;;  %10744 = vmatpush1.bf16.msra.mxu1 %v10743_v6 }
0x1173   :  { %v7488_v32 = vpop.permute.xlu1 %7487  ;;  %v7490_v57 = vsel %vm195_vm6, %v7484_v29, %v7486_v10 }
0x1174   :  { %v7489_v19 = vsel %vm195_vm6, %v7486_v10, %v7488_v32  ;;  %v7492_v39 = vsel %vm195_vm6, %v7488_v32, %v7482_v5  ;;  %v7517_v52 = vmul.f32 %v7506_v60, %v7490_v57 }
0x1175   :  { %v7515_v56 = vmul.f32 %v7498_v36, %v7492_v39  ;;  %v7518_v50 = vmul.f32 %v7510_v47, %v7489_v19 }
0x1176   :  { %v7520_v48 = vpop.permute.xlu0 %7519 }
0x1177   :  { %v7522_v0 = vpop.permute.xlu1 %7521 }
0x1178   :  { %v7529_v7 = vsel %vm235_vm7, %v7520_v48, %v7522_v0 }
0x1179   :  { %v7554_v30 = vmul.f32 %v7540_v49, %v7529_v7  ;;  %v10199_v7 = vld [vmem:[%s16138_s2 + $0x6] ss:$8 sm:$0xf] }
0x117a   :  { %v7524_v54 = vpop.permute.xlu0 %7523  ;;  %v7624_v39 = vrot.slane %v10199_v7, %v16605_v11 }
0x117b   :  { %v7528_v18 = vsel %vm235_vm7, %v7522_v0, %v7524_v54  ;;  %v7526_v2 = vpop.permute.xlu1 %7525  ;;  %v10725_v46 = vpack.c.bf16 %v7554_v30, %v7516_v51 }
0x117c   :  { %v7555_v1 = vmul.f32 %v7544_v31, %v7528_v18  ;;  %v7527_v24 = vsel %vm235_vm7, %v7524_v54, %v7526_v2  ;;  %v7530_v28 = vsel %vm235_vm7, %v7526_v2, %v7520_v48 }
0x117d   :  { %v7553_v3 = vmul.f32 %v7536_v16, %v7530_v28  ;;  %v7556_v63 = vmul.f32 %v7548_v40, %v7527_v24  ;;  %10726 = vmatprep.subr.bf16.mxu0 %v10725_v46  ;;  %v7620_v16 = vrot.slane %v10199_v7, %v16606_v55 }
0x117e   :  { %v7558_v33 = vpop.permute.xlu0 %7557  ;;  %v10747_v20 = vpack.c.bf16 %v7555_v1, %v7517_v52  ;;  %v10201_v52 = vld [vmem:[%s16138_s2 + $0x20] ss:$8 sm:$0xf] }
0x117f   :  { %v7560_v58 = vpop.permute.xlu1 %7559  ;;  %v10727_v44 = vpack.c.bf16 %v7553_v3, %v7515_v56  ;;  %v10745_v38 = vpack.c.bf16 %v7556_v63, %v7518_v50 }
0x1180   :  { %v7567_v17 = vsel %vm275_vm8, %v7558_v33, %v7560_v58 }
0x1181   :  { %10728 = vmatpush1.bf16.msra.mxu0 %v10727_v44  ;;  %10746 = vmatprep.subr.bf16.mxu1 %v10745_v38  ;;  %v7591_v5 = vmul.f32 %v7574_v62, %v7567_v17 }
0x1182   :  { %v7562_v42 = vpop.permute.xlu0 %7561  ;;  %10748 = vmatpush1.bf16.msra.mxu1 %v10747_v20 }
0x1183   :  { %v7566_v29 = vsel %vm275_vm8, %v7560_v58, %v7562_v42  ;;  %v7564_v4 = vpop.permute.xlu1 %7563  ;;  %v10731_v14 = vpack.c.bf16 %v7591_v5, %v15064_v37  ;;  %v7612_v37 = vrot.slane %v10199_v7, %v11223_v15 }
0x1184   :  { %v7592_v53 = vmul.f32 %v7578_v23, %v7566_v29  ;;  %v7565_v6 = vsel %vm275_vm8, %v7562_v42, %v7564_v4  ;;  %v7568_v12 = vsel %vm275_vm8, %v7564_v4, %v7558_v33  ;;  %v7688_v23 = vrot.slane %v10201_v52, %v11223_v15 }
0x1185   :  { %v7593_v10 = vmul.f32 %v7582_v34, %v7565_v6  ;;  %v7594_v35 = vmul.f32 %v7586_v43, %v7568_v12  ;;  %v7692_v29 = vrot.slane %v10201_v52, %v16604_v25  ;;  %v7696_v4 = vrot.slane %v10201_v52, %v16606_v55 }
0x1186   :  { %v7596_v32 = vpop.permute.xlu0 %7595  ;;  %v10729_v26 = vpack.c.bf16 %v7592_v53, %v15067_v61  ;;  %v10200_v61 = vld [vmem:[%s16138_s2 + $0x7] ss:$8 sm:$0xf]  ;;  %v7700_v53 = vrot.slane %v10201_v52, %v16605_v11 }
0x1187   :  { %v7598_v49 = vpop.permute.xlu1 %7597  ;;  %v10749_v48 = vpack.c.bf16 %v7594_v35, %v15077_v21  ;;  %v10751_v0 = vpack.c.bf16 %v7593_v10, %v15074_v9  ;;  %v7616_v21 = vrot.slane %v10199_v7, %v16604_v25  ;;  %v7650_v9 = vrot.slane %v10200_v61, %v11223_v15 }
0x1188   :  { %10730 = vmatprep.subr.bf16.mxu0 %v10729_v26  ;;  %v7605_v30 = vsel %vm315_vm9, %v7596_v32, %v7598_v49  ;;  %v7654_v60 = vrot.slane %v10200_v61, %v16604_v25  ;;  %v7658_v54 = vrot.slane %v10200_v61, %v16606_v55  ;;  %v7662_v57 = vrot.slane %v10200_v61, %v16605_v11  ;;  %v7745_v61 = vld [vmem:[%s16137_s1 + $0x78] sm:$0xff] }
0x1189   :  { %10732 = vmatpush1.bf16.msra.mxu0 %v10731_v14  ;;  %10750 = vmatprep.subr.bf16.mxu1 %v10749_v48  ;;  %v7629_v1 = vmul.f32 %v7612_v37, %v7605_v30 }
0x118a   :  { %v7600_v36 = vpop.permute.xlu0 %7599  ;;  %10752 = vmatpush1.bf16.msra.mxu1 %v10751_v0 }
0x118b   :  { %v7602_v47 = vpop.permute.xlu1 %7601  ;;  %v7604_v19 = vsel %vm315_vm9, %v7598_v49, %v7600_v36 }
0x118c   :  { %v7603_v18 = vsel %vm315_vm9, %v7600_v36, %v7602_v47  ;;  %v7606_v2 = vsel %vm315_vm9, %v7602_v47, %v7596_v32  ;;  %v7630_v56 = vmul.f32 %v7616_v21, %v7604_v19  ;;  %v7943_v21 = vld [vmem:[%s16138_s2] ss:$8 sm:$0xf] }
0x118d   :  { %v7631_v33 = vmul.f32 %v7620_v16, %v7603_v18  ;;  %v7632_v62 = vmul.f32 %v7624_v39, %v7606_v2  ;;  %v7952_v16 = vrot.slane %v7943_v21, %v16604_v25 }
0x118e   :  { %v7634_v31 = vpop.permute.xlu0 %7633 }
0x118f   :  { %v7636_v51 = vpop.permute.xlu1 %7635 }
0x1190   :  { %v7643_v40 = vsel %vm355_vm10, %v7634_v31, %v7636_v51 }
0x1191   :  { %v7667_v24 = vmul.f32 %v7650_v9, %v7643_v40 }
0x1192   :  { %v7638_v46 = vpop.permute.xlu0 %7637 }
0x1193   :  { %v7642_v28 = vsel %vm355_vm10, %v7636_v51, %v7638_v46  ;;  %v7640_v13 = vpop.permute.xlu1 %7639  ;;  %v10735_v34 = vpack.c.bf16 %v7667_v24, %v7629_v1  ;;  %v10204_v51 = vld [vmem:[%s16138_s2 + $0x1] ss:$8 sm:$0xf] }
0x1194   :  { %v7668_v50 = vmul.f32 %v7654_v60, %v7642_v28  ;;  %v7641_v3 = vsel %vm355_vm10, %v7638_v46, %v7640_v13  ;;  %v7644_v63 = vsel %vm355_vm10, %v7640_v13, %v7634_v31  ;;  %v7990_v40 = vrot.slane %v10204_v51, %v16604_v25 }
0x1195   :  { %v7669_v58 = vmul.f32 %v7658_v54, %v7641_v3  ;;  %v7670_v44 = vmul.f32 %v7662_v57, %v7644_v63  ;;  %v7948_v54 = vrot.slane %v7943_v21, %v11223_v15  ;;  %v7960_v57 = vrot.slane %v7943_v21, %v16605_v11 }
0x1196   :  { %v7672_v38 = vpop.permute.xlu0 %7671  ;;  %v10733_v17 = vpack.c.bf16 %v7668_v50, %v7630_v56  ;;  %v7994_v2 = vrot.slane %v10204_v51, %v16606_v55  ;;  %v7986_v24 = vrot.slane %v10204_v51, %v11223_v15  ;;  %v7998_v28 = vrot.slane %v10204_v51, %v16605_v11 }
0x1197   :  { %v7674_v20 = vpop.permute.xlu1 %7673  ;;  %v10753_v43 = vpack.c.bf16 %v7670_v44, %v7632_v62  ;;  %v10755_v42 = vpack.c.bf16 %v7669_v58, %v7631_v33  ;;  %v7956_v13 = vrot.slane %v7943_v21, %v16606_v55 }
0x1198   :  { %v7681_v5 = vsel %vm395_vm11, %v7672_v38, %v7674_v20  ;;  %10734 = vmatprep.subr.bf16.mxu0 %v10733_v17 }
0x1199   :  { %10736 = vmatpush1.bf16.msra.mxu0 %v10735_v34  ;;  %10754 = vmatprep.subr.bf16.mxu1 %v10753_v43  ;;  %v7705_v12 = vmul.f32 %v7688_v23, %v7681_v5 }
0x119a   :  { %v7676_v6 = vpop.permute.xlu0 %7675  ;;  %10756 = vmatpush1.bf16.msra.mxu1 %v10755_v42 }
0x119b   :  { %v7680_v10 = vsel %vm395_vm11, %v7674_v20, %v7676_v6  ;;  %v7678_v35 = vpop.permute.xlu1 %7677  ;;  %v10739_v36 = vpack.c.bf16 %v15046_v8, %v7705_v12 }
0x119c   :  { %v7706_v32 = vmul.f32 %v7692_v29, %v7680_v10  ;;  %v7679_v26 = vsel %vm395_vm11, %v7676_v6, %v7678_v35  ;;  %v7682_v49 = vsel %vm395_vm11, %v7678_v35, %v7672_v38  ;;  %v10205_v6 = vld [vmem:[%s16138_s2 + $0x2] ss:$8 sm:$0xf]  ;;  %v10206_v10 = vld [vmem:[%s16138_s2 + $0x3] ss:$8 sm:$0xf] }
0x119d   :  { %v7707_v14 = vmul.f32 %v7696_v4, %v7679_v26  ;;  %v7708_v48 = vmul.f32 %v7700_v53, %v7682_v49  ;;  %v8066_v26 = vrot.slane %v10206_v10, %v16604_v25  ;;  %v8074_v21 = vrot.slane %v10206_v10, %v16605_v11 }
0x119e   :  { %v10737_v0 = vpack.c.bf16 %v15040_v27, %v7706_v32  ;;  %v8028_v32 = vrot.slane %v10205_v6, %v16604_v25 }
0x119f   :  { %v10757_v47 = vpack.c.bf16 %v15048_v22, %v7708_v48  ;;  %v10759_v7 = vpack.c.bf16 %v15050_v45, %v7707_v14 }
0x11a0   :  { %10738 = vmatprep.subr.bf16.mxu0 %v10737_v0  ;;  %v8024_v0 = vrot.slane %v10205_v6, %v11223_v15 }
0x11a1   :  { %10740 = vmatpush1.bf16.msra.mxu0 %v10739_v36  ;;  %10758 = vmatprep.subr.bf16.mxu1 %v10757_v47  ;;  %v8036_v36 = vrot.slane %v10205_v6, %v16605_v11 }
0x11a2   :  { %10760 = vmatpush1.bf16.msra.mxu1 %v10759_v7  ;;  %v8070_v7 = vrot.slane %v10206_v10, %v16606_v55 }
0x11a4   :  { %10202 = vmatmul.mubr.msk.f32.vlgmr.msra.gmra.mrb[24].mxu0 %vm878_vm13, %v7745_v61 }
0x11a5   :  { %10203 = vmatmul.mubr.msk.f32.vlgmr.msra.gmra.mrb[24].mxu1 %vm878_vm13, %v7745_v61  ;;  %8379 = vmatprep.mubr.f32.mxu0 %v16697_v41 }
0x11a6   :  { %8450 = vmatprep.mubr.f32.mxu1 %v16697_v41 }
0x1277   :  { %v15274_v27 = vpop.f32.mrb[24].mxu0 }
0x1278   :  { %7931 = vrot.lane.b32.xlu0 %v15274_v27, %s10998_s7  ;;  %v15278_v8 = vpop.f32.mrb[25].mxu0  ;;  %v15280_v22 = vpop.f32.mrb[24].mxu1 }
0x1279   :  { %7933 = vrot.lane.b32.xlu1 %v15278_v8, %s10998_s7  ;;  %v15284_v45 = vpop.f32.mrb[25].mxu1 }
0x127c   :  { %7935 = vrot.lane.b32.xlu0 %v15280_v22, %s10998_s7 }
0x127d   :  { %7937 = vrot.lane.b32.xlu1 %v15284_v45, %s10998_s7 }
0x1280   :  { %7969 = vrot.lane.b32.xlu0 %v15274_v27, %s10999_s8 }
0x1281   :  { %7971 = vrot.lane.b32.xlu1 %v15278_v8, %s10999_s8 }
0x1284   :  { %7973 = vrot.lane.b32.xlu0 %v15280_v22, %s10999_s8 }
0x1285   :  { %7975 = vrot.lane.b32.xlu1 %v15284_v45, %s10999_s8 }
0x1288   :  { %8007 = vrot.lane.b32.xlu0 %v15274_v27, %s10997_s0 }
0x1289   :  { %8009 = vrot.lane.b32.xlu1 %v15278_v8, %s10997_s0 }
0x128c   :  { %8011 = vrot.lane.b32.xlu0 %v15280_v22, %s10997_s0 }
0x128d   :  { %8013 = vrot.lane.b32.xlu1 %v15284_v45, %s10997_s0 }
0x1290   :  { %8045 = vrot.lane.b32.xlu0 %v15274_v27, %s11000_s9 }
0x1291   :  { %8047 = vrot.lane.b32.xlu1 %v15278_v8, %s11000_s9 }
0x1294   :  { %8049 = vrot.lane.b32.xlu0 %v15280_v22, %s11000_s9 }
0x1295   :  { %8051 = vrot.lane.b32.xlu1 %v15284_v45, %s11000_s9 }
0x1298   :  { %8083 = vrot.lane.b32.xlu0 %v15274_v27, %s11002_s10 }
0x1299   :  { %8085 = vrot.lane.b32.xlu1 %v15278_v8, %s11002_s10 }
0x129c   :  { %8087 = vrot.lane.b32.xlu0 %v15280_v22, %s11002_s10 }
0x129d   :  { %8089 = vrot.lane.b32.xlu1 %v15284_v45, %s11002_s10 }
0x12a0   :  { %8121 = vrot.lane.b32.xlu0 %v15274_v27, %s11004_s11 }
0x12a1   :  { %8123 = vrot.lane.b32.xlu1 %v15278_v8, %s11004_s11 }
0x12a4   :  { %8125 = vrot.lane.b32.xlu0 %v15280_v22, %s11004_s11 }
0x12a5   :  { %8127 = vrot.lane.b32.xlu1 %v15284_v45, %s11004_s11 }
0x12a8   :  { %8159 = vrot.lane.b32.xlu0 %v15274_v27, %s11006_s12 }
0x12a9   :  { %8161 = vrot.lane.b32.xlu1 %v15278_v8, %s11006_s12 }
0x12ac   :  { %8163 = vrot.lane.b32.xlu0 %v15280_v22, %s11006_s12 }
0x12ad   :  { %8165 = vrot.lane.b32.xlu1 %v15284_v45, %s11006_s12 }
0x12b0   :  { %8197 = vrot.lane.b32.xlu0 %v15274_v27, %s11008_s13 }
0x12b1   :  { %8199 = vrot.lane.b32.xlu1 %v15278_v8, %s11008_s13 }
0x12b4   :  { %8201 = vrot.lane.b32.xlu0 %v15280_v22, %s11008_s13 }
0x12b5   :  { %8203 = vrot.lane.b32.xlu1 %v15284_v45, %s11008_s13 }
0x12ea   :  { %v7932_v31 = vpop.permute.xlu0 %7931 }
0x12eb   :  { %v7934_v37 = vpop.permute.xlu1 %7933 }
0x12ec   :  { %v7941_v60 = vsel %vm116_vm4, %v7932_v31, %v7934_v37 }
0x12ed   :  { %v7966_v46 = vmul.f32 %v7952_v16, %v7941_v60 }
0x12ee   :  { %v7936_v9 = vpop.permute.xlu0 %7935 }
0x12ef   :  { %v7938_v30 = vpop.permute.xlu1 %7937  ;;  %v7940_v63 = vsel %vm116_vm4, %v7934_v37, %v7936_v9  ;;  %v8062_v37 = vrot.slane %v10206_v10, %v11223_v15 }
0x12f0   :  { %v7939_v56 = vsel %vm116_vm4, %v7936_v9, %v7938_v30  ;;  %v7942_v50 = vsel %vm116_vm4, %v7938_v30, %v7932_v31  ;;  %v7967_v43 = vmul.f32 %v7956_v13, %v7940_v63  ;;  %v8032_v9 = vrot.slane %v10205_v6, %v16606_v55 }
0x12f1   :  { %v7965_v17 = vmul.f32 %v7948_v54, %v7942_v50  ;;  %v7968_v23 = vmul.f32 %v7960_v57, %v7939_v56 }
0x12f2   :  { %v7970_v19 = vpop.permute.xlu0 %7969 }
0x12f3   :  { %v7972_v39 = vpop.permute.xlu1 %7971 }
0x12f4   :  { %v7979_v18 = vsel %vm155_vm5, %v7970_v19, %v7972_v39 }
0x12f5   :  { %v8004_v1 = vmul.f32 %v7990_v40, %v7979_v18 }
0x12f6   :  { %v7974_v3 = vpop.permute.xlu0 %7973 }
0x12f7   :  { %v7978_v52 = vsel %vm155_vm5, %v7972_v39, %v7974_v3  ;;  %v7976_v33 = vpop.permute.xlu1 %7975  ;;  %v10761_v62 = vpack.c.bf16 %v8004_v1, %v7966_v46 }
0x12f8   :  { %v8005_v58 = vmul.f32 %v7994_v2, %v7978_v52  ;;  %v7977_v44 = vsel %vm155_vm5, %v7974_v3, %v7976_v33  ;;  %v7980_v38 = vsel %vm155_vm5, %v7976_v33, %v7970_v19  ;;  %v10207_v2 = vld [vmem:[%s16138_s2 + $0x5] ss:$8 sm:$0xf] }
0x12f9   :  { %v8003_v20 = vmul.f32 %v7986_v24, %v7980_v38  ;;  %v8006_v34 = vmul.f32 %v7998_v28, %v7977_v44  ;;  %10762 = vmatprep.subr.bf16.mxu0 %v10761_v62  ;;  %v8100_v50 = vrot.slane %v10207_v2, %v11223_v15  ;;  %v8104_v62 = vrot.slane %v10207_v2, %v16604_v25 }
0x12fa   :  { %v8008_v42 = vpop.permute.xlu0 %8007  ;;  %v10783_v53 = vpack.c.bf16 %v8005_v58, %v7967_v43  ;;  %v8108_v44 = vrot.slane %v10207_v2, %v16606_v55  ;;  %v8112_v38 = vrot.slane %v10207_v2, %v16605_v11 }
0x12fb   :  { %v8010_v5 = vpop.permute.xlu1 %8009  ;;  %v10763_v29 = vpack.c.bf16 %v8003_v20, %v7965_v17  ;;  %v10781_v4 = vpack.c.bf16 %v8006_v34, %v7968_v23 }
0x12fc   :  { %v8017_v49 = vsel %vm195_vm6, %v8008_v42, %v8010_v5 }
0x12fd   :  { %10764 = vmatpush1.bf16.msra.mxu0 %v10763_v29  ;;  %10782 = vmatprep.subr.bf16.mxu1 %v10781_v4  ;;  %v8042_v61 = vmul.f32 %v8028_v32, %v8017_v49 }
0x12fe   :  { %v8012_v12 = vpop.permute.xlu0 %8011  ;;  %10784 = vmatpush1.bf16.msra.mxu1 %v10783_v53 }
0x12ff   :  { %v8014_v35 = vpop.permute.xlu1 %8013  ;;  %v8016_v40 = vsel %vm195_vm6, %v8010_v5, %v8012_v12 }
0x1300   :  { %v8015_v51 = vsel %vm195_vm6, %v8012_v12, %v8014_v35  ;;  %v8018_v30 = vsel %vm195_vm6, %v8014_v35, %v8008_v42  ;;  %v8043_v13 = vmul.f32 %v8032_v9, %v8016_v40 }
0x1301   :  { %v8041_v46 = vmul.f32 %v8024_v0, %v8018_v30  ;;  %v8044_v1 = vmul.f32 %v8036_v36, %v8015_v51 }
0x1302   :  { %v8046_v14 = vpop.permute.xlu0 %8045 }
0x1303   :  { %v8048_v48 = vpop.permute.xlu1 %8047 }
0x1304   :  { %v8055_v47 = vsel %vm235_vm7, %v8046_v14, %v8048_v48 }
0x1305   :  { %v8080_v31 = vmul.f32 %v8066_v26, %v8055_v47 }
0x1306   :  { %v8050_v16 = vpop.permute.xlu0 %8049 }
0x1307   :  { %v8054_v60 = vsel %vm235_vm7, %v8048_v48, %v8050_v16  ;;  %v8052_v19 = vpop.permute.xlu1 %8051  ;;  %v10765_v39 = vpack.c.bf16 %v8080_v31, %v8042_v61  ;;  %v10209_v48 = vld [vmem:[%s16138_s2 + $0x7] ss:$8 sm:$0xf] }
0x1308   :  { %v8081_v54 = vmul.f32 %v8070_v7, %v8054_v60  ;;  %v8053_v57 = vsel %vm235_vm7, %v8050_v16, %v8052_v19  ;;  %v8056_v18 = vsel %vm235_vm7, %v8052_v19, %v8046_v14  ;;  %v10208_v14 = vld [vmem:[%s16138_s2 + $0x6] ss:$8 sm:$0xf]  ;;  %v8176_v7 = vrot.slane %v10209_v48, %v11223_v15 }
0x1309   :  { %v8079_v24 = vmul.f32 %v8062_v37, %v8056_v18  ;;  %v8082_v28 = vmul.f32 %v8074_v21, %v8053_v57  ;;  %10766 = vmatprep.subr.bf16.mxu0 %v10765_v39  ;;  %v8138_v36 = vrot.slane %v10208_v14, %v11223_v15  ;;  %v8142_v47 = vrot.slane %v10208_v14, %v16604_v25 }
0x130a   :  { %v8084_v56 = vpop.permute.xlu0 %8083  ;;  %v10787_v58 = vpack.c.bf16 %v8081_v54, %v8043_v13  ;;  %v8146_v37 = vrot.slane %v10208_v14, %v16606_v55  ;;  %v8180_v9 = vrot.slane %v10209_v48, %v16604_v25  ;;  %v8150_v30 = vrot.slane %v10208_v14, %v16605_v11  ;;  %v10210_v13 = vld [vmem:[%s16138_s2 + $0x20] ss:$8 sm:$0xf] }
0x130b   :  { %v8086_v3 = vpop.permute.xlu1 %8085  ;;  %v10767_v63 = vpack.c.bf16 %v8079_v24, %v8041_v46  ;;  %v10785_v52 = vpack.c.bf16 %v8082_v28, %v8044_v1  ;;  %v8184_v16 = vrot.slane %v10209_v48, %v16606_v55  ;;  %v8188_v40 = vrot.slane %v10209_v48, %v16605_v11 }
0x130c   :  { %v8093_v33 = vsel %vm275_vm8, %v8084_v56, %v8086_v3 }
0x130d   :  { %10768 = vmatpush1.bf16.msra.mxu0 %v10767_v63  ;;  %10786 = vmatprep.subr.bf16.mxu1 %v10785_v52  ;;  %v8117_v23 = vmul.f32 %v8100_v50, %v8093_v33 }
0x130e   :  { %v8088_v17 = vpop.permute.xlu0 %8087  ;;  %10788 = vmatpush1.bf16.msra.mxu1 %v10787_v58 }
0x130f   :  { %v8092_v20 = vsel %vm275_vm8, %v8086_v3, %v8088_v17  ;;  %v8090_v34 = vpop.permute.xlu1 %8089  ;;  %v10771_v10 = vpack.c.bf16 %v8117_v23, %v15274_v27 }
0x1310   :  { %v8118_v43 = vmul.f32 %v8104_v62, %v8092_v20  ;;  %v8091_v42 = vsel %vm275_vm8, %v8088_v17, %v8090_v34  ;;  %v8094_v5 = vsel %vm275_vm8, %v8090_v34, %v8084_v56  ;;  %v8214_v62 = vrot.slane %v10210_v13, %v11223_v15 }
0x1311   :  { %v8119_v29 = vmul.f32 %v8108_v44, %v8091_v42  ;;  %v8120_v4 = vmul.f32 %v8112_v38, %v8094_v5  ;;  %v8218_v20 = vrot.slane %v10210_v13, %v16604_v25  ;;  %v8222_v34 = vrot.slane %v10210_v13, %v16606_v55 }
0x1312   :  { %v8122_v53 = vpop.permute.xlu0 %8121  ;;  %v10769_v6 = vpack.c.bf16 %v8118_v43, %v15278_v8  ;;  %v8226_v43 = vrot.slane %v10210_v13, %v16605_v11 }
0x1313   :  { %v8124_v12 = vpop.permute.xlu1 %8123  ;;  %v10789_v35 = vpack.c.bf16 %v8120_v4, %v15284_v45  ;;  %v10791_v32 = vpack.c.bf16 %v8119_v29, %v15280_v22 }
0x1314   :  { %10770 = vmatprep.subr.bf16.mxu0 %v10769_v6  ;;  %v8131_v31 = vsel %vm315_vm9, %v8122_v53, %v8124_v12 }
0x1315   :  { %10772 = vmatpush1.bf16.msra.mxu0 %v10771_v10  ;;  %10790 = vmatprep.subr.bf16.mxu1 %v10789_v35  ;;  %v8155_v54 = vmul.f32 %v8138_v36, %v8131_v31  ;;  %v15472_v35 = vld [vmem:[#allocation2 + $0x120] sm:$0xff] }
0x1316   :  { %v8126_v26 = vpop.permute.xlu0 %8125  ;;  %10792 = vmatpush1.bf16.msra.mxu1 %v10791_v32  ;;  %v15474_v32 = vld [vmem:[#allocation2 + $0x138] sm:$0xff] }
0x1317   :  { %v8128_v49 = vpop.permute.xlu1 %8127  ;;  %v8130_v51 = vsel %vm315_vm9, %v8124_v12, %v8126_v26 }
0x1318   :  { %v8129_v60 = vsel %vm315_vm9, %v8126_v26, %v8128_v49  ;;  %v8132_v19 = vsel %vm315_vm9, %v8128_v49, %v8122_v53  ;;  %v8156_v46 = vmul.f32 %v8142_v47, %v8130_v51  ;;  %v15466_v53 = vld [vmem:[#allocation2 + $0x128] sm:$0xff]  ;;  %v15476_v26 = vld [vmem:[#allocation2 + $0x130] sm:$0xff] }
0x1319   :  { %v8157_v56 = vmul.f32 %v8146_v37, %v8129_v60  ;;  %v8158_v50 = vmul.f32 %v8150_v30, %v8132_v19  ;;  %v8473_v19 = vld [vmem:[%s16138_s2] ss:$8 sm:$0xf] }
0x131a   :  { %v8160_v0 = vpop.permute.xlu0 %8159  ;;  %v8490_v13 = vrot.slane %v8473_v19, %v16605_v11 }
0x131b   :  { %v8162_v61 = vpop.permute.xlu1 %8161 }
0x131c   :  { %v8169_v21 = vsel %vm355_vm10, %v8160_v0, %v8162_v61 }
0x131d   :  { %v8193_v57 = vmul.f32 %v8176_v7, %v8169_v21  ;;  %v8271_v7 = vld [vmem:[%s16137_s1 + $0x80] sm:$0xff] }
0x131e   :  { %v8164_v39 = vpop.permute.xlu0 %8163 }
0x131f   :  { %v8168_v18 = vsel %vm355_vm10, %v8162_v61, %v8164_v39  ;;  %v8166_v2 = vpop.permute.xlu1 %8165  ;;  %v10775_v44 = vpack.c.bf16 %v8193_v57, %v8155_v54  ;;  %v10213_v54 = vld [vmem:[%s16138_s2 + $0x1] ss:$8 sm:$0xf] }
0x1320   :  { %v8194_v1 = vmul.f32 %v8180_v9, %v8168_v18  ;;  %v8167_v24 = vsel %vm355_vm10, %v8164_v39, %v8166_v2  ;;  %v8170_v28 = vsel %vm355_vm10, %v8166_v2, %v8160_v0  ;;  %v8482_v18 = vrot.slane %v8473_v19, %v16604_v25 }
0x1321   :  { %v8195_v3 = vmul.f32 %v8184_v16, %v8167_v24  ;;  %v8196_v63 = vmul.f32 %v8188_v40, %v8170_v28  ;;  %v8520_v2 = vrot.slane %v10213_v54, %v16604_v25  ;;  %v8478_v28 = vrot.slane %v8473_v19, %v11223_v15 }
0x1322   :  { %v8198_v52 = vpop.permute.xlu0 %8197  ;;  %v10773_v33 = vpack.c.bf16 %v8194_v1, %v8156_v46 }
0x1323   :  { %v8200_v58 = vpop.permute.xlu1 %8199  ;;  %v10793_v38 = vpack.c.bf16 %v8196_v63, %v8158_v50  ;;  %v10795_v17 = vpack.c.bf16 %v8195_v3, %v8157_v56  ;;  %v8524_v50 = vrot.slane %v10213_v54, %v16606_v55 }
0x1324   :  { %v8207_v23 = vsel %vm395_vm11, %v8198_v52, %v8200_v58  ;;  %10774 = vmatprep.subr.bf16.mxu0 %v10773_v33  ;;  %v8528_v33 = vrot.slane %v10213_v54, %v16605_v11 }
0x1325   :  { %10776 = vmatpush1.bf16.msra.mxu0 %v10775_v44  ;;  %10794 = vmatprep.subr.bf16.mxu1 %v10793_v38  ;;  %v8231_v5 = vmul.f32 %v8214_v62, %v8207_v23  ;;  %v8486_v62 = vrot.slane %v8473_v19, %v16606_v55 }
0x1326   :  { %v8202_v42 = vpop.permute.xlu0 %8201  ;;  %10796 = vmatpush1.bf16.msra.mxu1 %v10795_v17 }
0x1327   :  { %v8206_v29 = vsel %vm395_vm11, %v8200_v58, %v8202_v42  ;;  %v8204_v4 = vpop.permute.xlu1 %8203  ;;  %v10779_v0 = vpack.c.bf16 %v15472_v35, %v8231_v5 }
0x1328   :  { %v8232_v6 = vmul.f32 %v8218_v20, %v8206_v29  ;;  %v8205_v12 = vsel %vm395_vm11, %v8202_v42, %v8204_v4  ;;  %v8208_v10 = vsel %vm395_vm11, %v8204_v4, %v8198_v52  ;;  %v8516_v52 = vrot.slane %v10213_v54, %v11223_v15 }
0x1329   :  { %v8233_v49 = vmul.f32 %v8222_v34, %v8205_v12  ;;  %v8234_v14 = vmul.f32 %v8226_v43, %v8208_v10 }
0x132a   :  { %v10777_v48 = vpack.c.bf16 %v15466_v53, %v8232_v6 }
0x132b   :  { %v10797_v36 = vpack.c.bf16 %v15474_v32, %v8234_v14  ;;  %v10799_v47 = vpack.c.bf16 %v15476_v26, %v8233_v49 }
0x132c   :  { %10778 = vmatprep.subr.bf16.mxu0 %v10777_v48 }
0x132d   :  { %10780 = vmatpush1.bf16.msra.mxu0 %v10779_v0  ;;  %10798 = vmatprep.subr.bf16.mxu1 %v10797_v36 }
0x132e   :  { %10800 = vmatpush1.bf16.msra.mxu1 %v10799_v47  ;;  %v10214_v47 = vld [vmem:[%s16138_s2 + $0x2] ss:$8 sm:$0xf] }
0x132f   :  { %v8566_v54 = vrot.slane %v10214_v47, %v16605_v11 }
0x1330   :  { %10211 = vmatmul.mubr.msk.f32.vlgmr.msra.gmra.mrb[26].mxu0 %vm878_vm13, %v8271_v7 }
0x1331   :  { %10212 = vmatmul.mubr.msk.f32.vlgmr.msra.gmra.mrb[26].mxu1 %vm878_vm13, %v8271_v7  ;;  %8909 = vmatprep.mubr.f32.mxu0 %v16697_v41 }
0x1332   :  { %8980 = vmatprep.mubr.f32.mxu1 %v16697_v41 }
0x1403   :  { %v8381_v61 = vpop.f32.mrb[26].mxu0 }
0x1404   :  { %v15489_v31 = vmax.f32 %v8381_v61, 0.0  ;;  %v8383_v37 = vpop.f32.mrb[27].mxu0  ;;  %v8452_v21 = vpop.f32.mrb[26].mxu1  ;;  %v10215_v61 = vld [vmem:[%s16138_s2 + $0x3] ss:$8 sm:$0xf] }
0x1405   :  { %v15491_v9 = vmax.f32 %v8383_v37, 0.0  ;;  %v8454_v51 = vpop.f32.mrb[27].mxu1  ;;  %v15493_v30 = vmax.f32 %v8452_v21, 0.0  ;;  %v8558_v21 = vrot.slane %v10214_v47, %v16604_v25 }
0x1406   :  { %8461 = vrot.lane.b32.xlu0 %v15489_v31, %s10998_s7  ;;  %v15497_v16 = vmax.f32 %v8454_v51, 0.0  ;;  %v8596_v51 = vrot.slane %v10215_v61, %v16604_v25 }
0x1407   :  { %8463 = vrot.lane.b32.xlu1 %v15491_v9, %s10998_s7 }
0x140a   :  { %8465 = vrot.lane.b32.xlu0 %v15493_v30, %s10998_s7 }
0x140b   :  { %8467 = vrot.lane.b32.xlu1 %v15497_v16, %s10998_s7 }
0x140e   :  { %8499 = vrot.lane.b32.xlu0 %v15489_v31, %s10999_s8 }
0x140f   :  { %8501 = vrot.lane.b32.xlu1 %v15491_v9, %s10999_s8 }
0x1412   :  { %8503 = vrot.lane.b32.xlu0 %v15493_v30, %s10999_s8 }
0x1413   :  { %8505 = vrot.lane.b32.xlu1 %v15497_v16, %s10999_s8 }
0x1416   :  { %8537 = vrot.lane.b32.xlu0 %v15489_v31, %s10997_s0 }
0x1417   :  { %8539 = vrot.lane.b32.xlu1 %v15491_v9, %s10997_s0 }
0x141a   :  { %8541 = vrot.lane.b32.xlu0 %v15493_v30, %s10997_s0 }
0x141b   :  { %8543 = vrot.lane.b32.xlu1 %v15497_v16, %s10997_s0 }
0x141e   :  { %8575 = vrot.lane.b32.xlu0 %v15489_v31, %s11000_s9 }
0x141f   :  { %8577 = vrot.lane.b32.xlu1 %v15491_v9, %s11000_s9 }
0x1422   :  { %8579 = vrot.lane.b32.xlu0 %v15493_v30, %s11000_s9 }
0x1423   :  { %8581 = vrot.lane.b32.xlu1 %v15497_v16, %s11000_s9 }
0x1426   :  { %8613 = vrot.lane.b32.xlu0 %v15489_v31, %s11002_s10 }
0x1427   :  { %8615 = vrot.lane.b32.xlu1 %v15491_v9, %s11002_s10 }
0x142a   :  { %8617 = vrot.lane.b32.xlu0 %v15493_v30, %s11002_s10 }
0x142b   :  { %8619 = vrot.lane.b32.xlu1 %v15497_v16, %s11002_s10 }
0x142e   :  { %8651 = vrot.lane.b32.xlu0 %v15489_v31, %s11004_s11 }
0x142f   :  { %8653 = vrot.lane.b32.xlu1 %v15491_v9, %s11004_s11 }
0x1432   :  { %8655 = vrot.lane.b32.xlu0 %v15493_v30, %s11004_s11 }
0x1433   :  { %8657 = vrot.lane.b32.xlu1 %v15497_v16, %s11004_s11 }
0x1436   :  { %8689 = vrot.lane.b32.xlu0 %v15489_v31, %s11006_s12 }
0x1437   :  { %8691 = vrot.lane.b32.xlu1 %v15491_v9, %s11006_s12 }
0x143a   :  { %8693 = vrot.lane.b32.xlu0 %v15493_v30, %s11006_s12 }
0x143b   :  { %8695 = vrot.lane.b32.xlu1 %v15497_v16, %s11006_s12 }
0x143e   :  { %8727 = vrot.lane.b32.xlu0 %v15489_v31, %s11008_s13 }
0x143f   :  { %8729 = vrot.lane.b32.xlu1 %v15491_v9, %s11008_s13 }
0x1442   :  { %8731 = vrot.lane.b32.xlu0 %v15493_v30, %s11008_s13 }
0x1443   :  { %8733 = vrot.lane.b32.xlu1 %v15497_v16, %s11008_s13 }
0x1478   :  { %v8462_v40 = vpop.permute.xlu0 %8461 }
0x1479   :  { %v8464_v60 = vpop.permute.xlu1 %8463 }
0x147a   :  { %v8471_v46 = vsel %vm116_vm4, %v8462_v40, %v8464_v60 }
0x147b   :  { %v8496_v3 = vmul.f32 %v8482_v18, %v8471_v46  ;;  %v8600_v18 = vrot.slane %v10215_v61, %v16606_v55 }
0x147c   :  { %v8466_v39 = vpop.permute.xlu0 %8465 }
0x147d   :  { %v8468_v57 = vpop.permute.xlu1 %8467  ;;  %v8470_v17 = vsel %vm116_vm4, %v8464_v60, %v8466_v39 }
0x147e   :  { %v8469_v58 = vsel %vm116_vm4, %v8466_v39, %v8468_v57  ;;  %v8472_v44 = vsel %vm116_vm4, %v8468_v57, %v8462_v40  ;;  %v8497_v10 = vmul.f32 %v8486_v62, %v8470_v17  ;;  %v8554_v39 = vrot.slane %v10214_v47, %v11223_v15 }
0x147f   :  { %v8495_v29 = vmul.f32 %v8478_v28, %v8472_v44  ;;  %v8498_v4 = vmul.f32 %v8490_v13, %v8469_v58  ;;  %v8562_v28 = vrot.slane %v10214_v47, %v16606_v55 }
0x1480   :  { %v8500_v1 = vpop.permute.xlu0 %8499 }
0x1481   :  { %v8502_v24 = vpop.permute.xlu1 %8501 }
0x1482   :  { %v8509_v56 = vsel %vm155_vm5, %v8500_v1, %v8502_v24 }
0x1483   :  { %v8534_v63 = vmul.f32 %v8520_v2, %v8509_v56 }
0x1484   :  { %v8504_v38 = vpop.permute.xlu0 %8503 }
0x1485   :  { %v8508_v23 = vsel %vm155_vm5, %v8502_v24, %v8504_v38  ;;  %v8506_v20 = vpop.permute.xlu1 %8505  ;;  %v10801_v34 = vpack.c.bf16 %v8534_v63, %v8496_v3  ;;  %v8604_v24 = vrot.slane %v10215_v61, %v16605_v11 }
0x1486   :  { %v8535_v43 = vmul.f32 %v8524_v50, %v8508_v23  ;;  %v8507_v42 = vsel %vm155_vm5, %v8504_v38, %v8506_v20  ;;  %v8510_v5 = vsel %vm155_vm5, %v8506_v20, %v8500_v1  ;;  %v8592_v1 = vrot.slane %v10215_v61, %v11223_v15  ;;  %v10216_v38 = vld [vmem:[%s16138_s2 + $0x5] ss:$8 sm:$0xf] }
0x1487   :  { %v8533_v6 = vmul.f32 %v8516_v52, %v8510_v5  ;;  %v8536_v12 = vmul.f32 %v8528_v33, %v8507_v42  ;;  %10802 = vmatprep.subr.bf16.mxu0 %v10801_v34  ;;  %v8630_v5 = vrot.slane %v10216_v38, %v11223_v15 }
0x1488   :  { %v8538_v49 = vpop.permute.xlu0 %8537  ;;  %v10823_v36 = vpack.c.bf16 %v8535_v43, %v8497_v10  ;;  %v8634_v10 = vrot.slane %v10216_v38, %v16604_v25 }
0x1489   :  { %v8540_v14 = vpop.permute.xlu1 %8539  ;;  %v10803_v48 = vpack.c.bf16 %v8533_v6, %v8495_v29  ;;  %v10821_v0 = vpack.c.bf16 %v8536_v12, %v8498_v4 }
0x148a   :  { %v8547_v40 = vsel %vm195_vm6, %v8538_v49, %v8540_v14 }
0x148b   :  { %10804 = vmatpush1.bf16.msra.mxu0 %v10803_v48  ;;  %10822 = vmatprep.subr.bf16.mxu1 %v10821_v0  ;;  %v8572_v2 = vmul.f32 %v8558_v21, %v8547_v40  ;;  %v8642_v48 = vrot.slane %v10216_v38, %v16605_v11 }
0x148c   :  { %v8542_v7 = vpop.permute.xlu0 %8541  ;;  %10824 = vmatpush1.bf16.msra.mxu1 %v10823_v36 }
0x148d   :  { %v8544_v37 = vpop.permute.xlu1 %8543  ;;  %v8546_v3 = vsel %vm195_vm6, %v8540_v14, %v8542_v7  ;;  %v8638_v14 = vrot.slane %v10216_v38, %v16606_v55 }
0x148e   :  { %v8545_v13 = vsel %vm195_vm6, %v8542_v7, %v8544_v37  ;;  %v8548_v56 = vsel %vm195_vm6, %v8544_v37, %v8538_v49  ;;  %v8573_v43 = vmul.f32 %v8562_v28, %v8546_v3 }
0x148f   :  { %v8571_v17 = vmul.f32 %v8554_v39, %v8548_v56  ;;  %v8574_v23 = vmul.f32 %v8566_v54, %v8545_v13 }
0x1490   :  { %v8576_v60 = vpop.permute.xlu0 %8575 }
0x1491   :  { %v8578_v19 = vpop.permute.xlu1 %8577 }
0x1492   :  { %v8585_v57 = vsel %vm235_vm7, %v8576_v60, %v8578_v19 }
0x1493   :  { %v8610_v46 = vmul.f32 %v8596_v51, %v8585_v57 }
0x1494   :  { %v8580_v50 = vpop.permute.xlu0 %8579 }
0x1495   :  { %v8584_v63 = vsel %vm235_vm7, %v8578_v19, %v8580_v50  ;;  %v8582_v52 = vpop.permute.xlu1 %8581  ;;  %v10805_v33 = vpack.c.bf16 %v8610_v46, %v8572_v2 }
0x1496   :  { %v8611_v62 = vmul.f32 %v8600_v18, %v8584_v63  ;;  %v8583_v58 = vsel %vm235_vm7, %v8580_v50, %v8582_v52  ;;  %v8586_v44 = vsel %vm235_vm7, %v8582_v52, %v8576_v60 }
0x1497   :  { %v8609_v20 = vmul.f32 %v8592_v1, %v8586_v44  ;;  %v8612_v34 = vmul.f32 %v8604_v24, %v8583_v58  ;;  %10806 = vmatprep.subr.bf16.mxu0 %v10805_v33  ;;  %v10217_v1 = vld [vmem:[%s16138_s2 + $0x6] ss:$8 sm:$0xf] }
0x1498   :  { %v8614_v42 = vpop.permute.xlu0 %8613  ;;  %v10827_v49 = vpack.c.bf16 %v8611_v62, %v8573_v43  ;;  %v8676_v56 = vrot.slane %v10217_v1, %v16606_v55  ;;  %v8680_v52 = vrot.slane %v10217_v1, %v16605_v11 }
0x1499   :  { %v8616_v29 = vpop.permute.xlu1 %8615  ;;  %v10807_v4 = vpack.c.bf16 %v8609_v20, %v8571_v17  ;;  %v10825_v6 = vpack.c.bf16 %v8612_v34, %v8574_v23 }
0x149a   :  { %v8623_v12 = vsel %vm275_vm8, %v8614_v42, %v8616_v29 }
0x149b   :  { %10808 = vmatpush1.bf16.msra.mxu0 %v10807_v4  ;;  %10826 = vmatprep.subr.bf16.mxu1 %v10825_v6  ;;  %v8647_v36 = vmul.f32 %v8630_v5, %v8623_v12  ;;  %v10219_v4 = vld [vmem:[%s16138_s2 + $0x20] ss:$8 sm:$0xf] }
0x149c   :  { %v8618_v0 = vpop.permute.xlu0 %8617  ;;  %10828 = vmatpush1.bf16.msra.mxu1 %v10827_v49 }
0x149d   :  { %v8622_v47 = vsel %vm275_vm8, %v8616_v29, %v8618_v0  ;;  %v8620_v7 = vpop.permute.xlu1 %8619  ;;  %v10811_v54 = vpack.c.bf16 %v8647_v36, %v15489_v31  ;;  %v8668_v31 = vrot.slane %v10217_v1, %v11223_v15 }
0x149e   :  { %v8648_v61 = vmul.f32 %v8634_v10, %v8622_v47  ;;  %v8621_v37 = vsel %vm275_vm8, %v8618_v0, %v8620_v7  ;;  %v8624_v21 = vsel %vm275_vm8, %v8620_v7, %v8614_v42  ;;  %v8744_v0 = vrot.slane %v10219_v4, %v11223_v15 }
0x149f   :  { %v8649_v51 = vmul.f32 %v8638_v14, %v8621_v37  ;;  %v8650_v40 = vmul.f32 %v8642_v48, %v8624_v21  ;;  %v8748_v21 = vrot.slane %v10219_v4, %v16604_v25 }
0x14a0   :  { %v8652_v60 = vpop.permute.xlu0 %8651  ;;  %v10809_v19 = vpack.c.bf16 %v8648_v61, %v15491_v9  ;;  %v10218_v9 = vld [vmem:[%s16138_s2 + $0x7] ss:$8 sm:$0xf] }
0x14a1   :  { %v8654_v39 = vpop.permute.xlu1 %8653  ;;  %v10829_v57 = vpack.c.bf16 %v8650_v40, %v15497_v16  ;;  %v10831_v18 = vpack.c.bf16 %v8649_v51, %v15493_v30  ;;  %v8672_v16 = vrot.slane %v10217_v1, %v16604_v25  ;;  %v8706_v30 = vrot.slane %v10218_v9, %v11223_v15 }
0x14a2   :  { %10810 = vmatprep.subr.bf16.mxu0 %v10809_v19  ;;  %v8661_v13 = vsel %vm315_vm9, %v8652_v60, %v8654_v39  ;;  %v8710_v3 = vrot.slane %v10218_v9, %v16604_v25  ;;  %v8714_v33 = vrot.slane %v10218_v9, %v16606_v55  ;;  %v8718_v62 = vrot.slane %v10218_v9, %v16605_v11 }
0x14a3   :  { %10812 = vmatpush1.bf16.msra.mxu0 %v10811_v54  ;;  %10830 = vmatprep.subr.bf16.mxu1 %v10829_v57  ;;  %v8685_v17 = vmul.f32 %v8668_v31, %v8661_v13  ;;  %v8752_v51 = vrot.slane %v10219_v4, %v16606_v55  ;;  %v8756_v40 = vrot.slane %v10219_v4, %v16605_v11 }
0x14a4   :  { %v8656_v2 = vpop.permute.xlu0 %8655  ;;  %10832 = vmatpush1.bf16.msra.mxu1 %v10831_v18 }
0x14a5   :  { %v8658_v46 = vpop.permute.xlu1 %8657  ;;  %v8660_v63 = vsel %vm315_vm9, %v8654_v39, %v8656_v2 }
0x14a6   :  { %v8659_v58 = vsel %vm315_vm9, %v8656_v2, %v8658_v46  ;;  %v8662_v44 = vsel %vm315_vm9, %v8658_v46, %v8652_v60  ;;  %v8686_v43 = vmul.f32 %v8672_v16, %v8660_v63 }
0x14a7   :  { %v8687_v6 = vmul.f32 %v8676_v56, %v8659_v58  ;;  %v8688_v12 = vmul.f32 %v8680_v52, %v8662_v44  ;;  %v9003_v52 = vld [vmem:[%s16138_s2] ss:$8 sm:$0xf] }
0x14a8   :  { %v8690_v24 = vpop.permute.xlu0 %8689  ;;  %v9012_v44 = vrot.slane %v9003_v52, %v16604_v25 }
0x14a9   :  { %v8692_v28 = vpop.permute.xlu1 %8691 }
0x14aa   :  { %v8699_v50 = vsel %vm355_vm10, %v8690_v24, %v8692_v28 }
0x14ab   :  { %v8723_v23 = vmul.f32 %v8706_v30, %v8699_v50  ;;  %v8801_v30 = vld [vmem:[%s16137_s1 + $0x88] sm:$0xff] }
0x14ac   :  { %v8694_v38 = vpop.permute.xlu0 %8693 }
0x14ad   :  { %v8698_v20 = vsel %vm355_vm10, %v8692_v28, %v8694_v38  ;;  %v8696_v34 = vpop.permute.xlu1 %8695  ;;  %v10815_v47 = vpack.c.bf16 %v8723_v23, %v8685_v17 }
0x14ae   :  { %v8724_v42 = vmul.f32 %v8710_v3, %v8698_v20  ;;  %v8697_v5 = vsel %vm355_vm10, %v8694_v38, %v8696_v34  ;;  %v8700_v29 = vsel %vm355_vm10, %v8696_v34, %v8690_v24  ;;  %v9008_v34 = vrot.slane %v9003_v52, %v11223_v15 }
0x14af   :  { %v8725_v10 = vmul.f32 %v8714_v33, %v8697_v5  ;;  %v8726_v49 = vmul.f32 %v8718_v62, %v8700_v29  ;;  %v10222_v62 = vld [vmem:[%s16138_s2 + $0x1] ss:$8 sm:$0xf] }
0x14b0   :  { %v8728_v14 = vpop.permute.xlu0 %8727  ;;  %v10813_v48 = vpack.c.bf16 %v8724_v42, %v8686_v43  ;;  %v9050_v38 = vrot.slane %v10222_v62, %v16604_v25  ;;  %v9020_v43 = vrot.slane %v9003_v52, %v16605_v11  ;;  %v9054_v5 = vrot.slane %v10222_v62, %v16606_v55 }
0x14b1   :  { %v8730_v36 = vpop.permute.xlu1 %8729  ;;  %v10833_v7 = vpack.c.bf16 %v8726_v49, %v8688_v12  ;;  %v10835_v61 = vpack.c.bf16 %v8725_v10, %v8687_v6  ;;  %v9046_v6 = vrot.slane %v10222_v62, %v11223_v15  ;;  %v9058_v12 = vrot.slane %v10222_v62, %v16605_v11 }
0x14b2   :  { %v8737_v37 = vsel %vm395_vm11, %v8728_v14, %v8730_v36  ;;  %10814 = vmatprep.subr.bf16.mxu0 %v10813_v48  ;;  %v9016_v10 = vrot.slane %v9003_v52, %v16606_v55 }
0x14b3   :  { %10816 = vmatpush1.bf16.msra.mxu0 %v10815_v47  ;;  %10834 = vmatprep.subr.bf16.mxu1 %v10833_v7  ;;  %v8761_v19 = vmul.f32 %v8744_v0, %v8737_v37 }
0x14b4   :  { %v8732_v60 = vpop.permute.xlu0 %8731  ;;  %10836 = vmatpush1.bf16.msra.mxu1 %v10835_v61 }
0x14b5   :  { %v8736_v39 = vsel %vm395_vm11, %v8730_v36, %v8732_v60  ;;  %v8734_v54 = vpop.permute.xlu1 %8733  ;;  %v10819_v24 = vpack.c.bf16 %v15472_v35, %v8761_v19 }
0x14b6   :  { %v8762_v57 = vmul.f32 %v8748_v21, %v8736_v39  ;;  %v8735_v18 = vsel %vm395_vm11, %v8732_v60, %v8734_v54  ;;  %v8738_v2 = vsel %vm395_vm11, %v8734_v54, %v8728_v14 }
0x14b7   :  { %v8763_v46 = vmul.f32 %v8752_v51, %v8735_v18  ;;  %v8764_v1 = vmul.f32 %v8756_v40, %v8738_v2 }
0x14b8   :  { %v10817_v9 = vpack.c.bf16 %v15466_v53, %v8762_v57 }
0x14b9   :  { %v10837_v31 = vpack.c.bf16 %v15474_v32, %v8764_v1  ;;  %v10839_v16 = vpack.c.bf16 %v15476_v26, %v8763_v46  ;;  %v10223_v1 = vld [vmem:[%s16138_s2 + $0x2] ss:$8 sm:$0xf] }
0x14ba   :  { %10818 = vmatprep.subr.bf16.mxu0 %v10817_v9 }
0x14bb   :  { %10820 = vmatpush1.bf16.msra.mxu0 %v10819_v24  ;;  %10838 = vmatprep.subr.bf16.mxu1 %v10837_v31  ;;  %v10224_v24 = vld [vmem:[%s16138_s2 + $0x3] ss:$8 sm:$0xf] }
0x14bc   :  { %10840 = vmatpush1.bf16.msra.mxu1 %v10839_v16  ;;  %v9088_v16 = vrot.slane %v10223_v1, %v16604_v25  ;;  %v9130_v52 = vrot.slane %v10224_v24, %v16606_v55 }
0x14be   :  { %10220 = vmatmul.mubr.msk.f32.vlgmr.msra.gmra.mrb[28].mxu0 %vm878_vm13, %v8801_v30 }
0x14bf   :  { %10221 = vmatmul.mubr.msk.f32.vlgmr.msra.gmra.mrb[28].mxu1 %vm878_vm13, %v8801_v30  ;;  %9439 = vmatprep.mubr.f32.mxu0 %v16697_v41  ;;  %v9126_v30 = vrot.slane %v10224_v24, %v16604_v25 }
0x14c0   :  { %9510 = vmatprep.mubr.f32.mxu1 %v16697_v41 }
0x1591   :  { %v8911_v53 = vpop.f32.mrb[28].mxu0 }
0x1592   :  { %v15697_v35 = vadd.f32 %v8911_v53, %v15274_v27  ;;  %v8913_v32 = vpop.f32.mrb[29].mxu0  ;;  %v8982_v26 = vpop.f32.mrb[28].mxu1 }
0x1593   :  { %v15700_v28 = vadd.f32 %v8913_v32, %v15278_v8  ;;  %v15703_v13 = vadd.f32 %v8982_v26, %v15280_v22  ;;  %v8984_v56 = vpop.f32.mrb[29].mxu1 }
0x1594   :  { %v15706_v50 = vadd.f32 %v8984_v56, %v15284_v45  ;;  %8991 = vrot.lane.b32.xlu0 %v15697_v35, %s10998_s7  ;;  %v9084_v56 = vrot.slane %v10223_v1, %v11223_v15 }
0x1595   :  { %8993 = vrot.lane.b32.xlu1 %v15700_v28, %s10998_s7 }
0x1598   :  { %8995 = vrot.lane.b32.xlu0 %v15703_v13, %s10998_s7 }
0x1599   :  { %8997 = vrot.lane.b32.xlu1 %v15706_v50, %s10998_s7 }
0x159c   :  { %9029 = vrot.lane.b32.xlu0 %v15697_v35, %s10999_s8 }
0x159d   :  { %9031 = vrot.lane.b32.xlu1 %v15700_v28, %s10999_s8 }
0x15a0   :  { %9033 = vrot.lane.b32.xlu0 %v15703_v13, %s10999_s8 }
0x15a1   :  { %9035 = vrot.lane.b32.xlu1 %v15706_v50, %s10999_s8 }
0x15a4   :  { %9067 = vrot.lane.b32.xlu0 %v15697_v35, %s10997_s0 }
0x15a5   :  { %9069 = vrot.lane.b32.xlu1 %v15700_v28, %s10997_s0 }
0x15a8   :  { %9071 = vrot.lane.b32.xlu0 %v15703_v13, %s10997_s0 }
0x15a9   :  { %9073 = vrot.lane.b32.xlu1 %v15706_v50, %s10997_s0 }
0x15ac   :  { %9105 = vrot.lane.b32.xlu0 %v15697_v35, %s11000_s9 }
0x15ad   :  { %9107 = vrot.lane.b32.xlu1 %v15700_v28, %s11000_s9 }
0x15b0   :  { %9109 = vrot.lane.b32.xlu0 %v15703_v13, %s11000_s9 }
0x15b1   :  { %9111 = vrot.lane.b32.xlu1 %v15706_v50, %s11000_s9 }
0x15b4   :  { %9143 = vrot.lane.b32.xlu0 %v15697_v35, %s11002_s10 }
0x15b5   :  { %9145 = vrot.lane.b32.xlu1 %v15700_v28, %s11002_s10 }
0x15b8   :  { %9147 = vrot.lane.b32.xlu0 %v15703_v13, %s11002_s10 }
0x15b9   :  { %9149 = vrot.lane.b32.xlu1 %v15706_v50, %s11002_s10 }
0x15bc   :  { %9181 = vrot.lane.b32.xlu0 %v15697_v35, %s11004_s11 }
0x15bd   :  { %9183 = vrot.lane.b32.xlu1 %v15700_v28, %s11004_s11 }
0x15c0   :  { %9185 = vrot.lane.b32.xlu0 %v15703_v13, %s11004_s11 }
0x15c1   :  { %9187 = vrot.lane.b32.xlu1 %v15706_v50, %s11004_s11 }
0x15c4   :  { %9219 = vrot.lane.b32.xlu0 %v15697_v35, %s11006_s12 }
0x15c5   :  { %9221 = vrot.lane.b32.xlu1 %v15700_v28, %s11006_s12 }
0x15c8   :  { %9223 = vrot.lane.b32.xlu0 %v15703_v13, %s11006_s12 }
0x15c9   :  { %9225 = vrot.lane.b32.xlu1 %v15706_v50, %s11006_s12 }
0x15cc   :  { %9257 = vrot.lane.b32.xlu0 %v15697_v35, %s11008_s13 }
0x15cd   :  { %9259 = vrot.lane.b32.xlu1 %v15700_v28, %s11008_s13 }
0x15d0   :  { %9261 = vrot.lane.b32.xlu0 %v15703_v13, %s11008_s13 }
0x15d1   :  { %9263 = vrot.lane.b32.xlu1 %v15706_v50, %s11008_s13 }
0x1606   :  { %v8992_v3 = vpop.permute.xlu0 %8991 }
0x1607   :  { %v8994_v63 = vpop.permute.xlu1 %8993 }
0x1608   :  { %v9001_v17 = vsel %vm116_vm4, %v8992_v3, %v8994_v63 }
0x1609   :  { %v9026_v29 = vmul.f32 %v9012_v44, %v9001_v17  ;;  %v9134_v44 = vrot.slane %v10224_v24, %v16605_v11 }
0x160a   :  { %v8996_v33 = vpop.permute.xlu0 %8995 }
0x160b   :  { %v8998_v58 = vpop.permute.xlu1 %8997  ;;  %v9000_v0 = vsel %vm116_vm4, %v8994_v63, %v8996_v33 }
0x160c   :  { %v8999_v49 = vsel %vm116_vm4, %v8996_v33, %v8998_v58  ;;  %v9002_v14 = vsel %vm116_vm4, %v8998_v58, %v8992_v3  ;;  %v9027_v39 = vmul.f32 %v9016_v10, %v9000_v0  ;;  %v9096_v3 = vrot.slane %v10223_v1, %v16605_v11 }
0x160d   :  { %v9025_v51 = vmul.f32 %v9008_v34, %v9002_v14  ;;  %v9028_v40 = vmul.f32 %v9020_v43, %v8999_v49  ;;  %v9122_v58 = vrot.slane %v10224_v24, %v11223_v15 }
0x160e   :  { %v9030_v23 = vpop.permute.xlu0 %9029 }
0x160f   :  { %v9032_v20 = vpop.permute.xlu1 %9031 }
0x1610   :  { %v9039_v42 = vsel %vm155_vm5, %v9030_v23, %v9032_v20 }
0x1611   :  { %v9064_v4 = vmul.f32 %v9050_v38, %v9039_v42  ;;  %v9092_v38 = vrot.slane %v10223_v1, %v16606_v55 }
0x1612   :  { %v9034_v48 = vpop.permute.xlu0 %9033 }
0x1613   :  { %v9038_v36 = vsel %vm155_vm5, %v9032_v20, %v9034_v48  ;;  %v9036_v47 = vpop.permute.xlu1 %9035  ;;  %v10841_v7 = vpack.c.bf16 %v9064_v4, %v9026_v29 }
0x1614   :  { %v9065_v61 = vmul.f32 %v9054_v5, %v9038_v36  ;;  %v9037_v37 = vsel %vm155_vm5, %v9034_v48, %v9036_v47  ;;  %v9040_v21 = vsel %vm155_vm5, %v9036_v47, %v9030_v23 }
0x1615   :  { %v9063_v60 = vmul.f32 %v9046_v6, %v9040_v21  ;;  %v9066_v19 = vmul.f32 %v9058_v12, %v9037_v37  ;;  %10842 = vmatprep.subr.bf16.mxu0 %v10841_v7  ;;  %v10225_v12 = vld [vmem:[%s16138_s2 + $0x5] ss:$8 sm:$0xf] }
0x1616   :  { %v9068_v54 = vpop.permute.xlu0 %9067  ;;  %v10863_v46 = vpack.c.bf16 %v9065_v61, %v9027_v39  ;;  %v9160_v47 = vrot.slane %v10225_v12, %v11223_v15 }
0x1617   :  { %v9070_v57 = vpop.permute.xlu1 %9069  ;;  %v10843_v18 = vpack.c.bf16 %v9063_v60, %v9025_v51  ;;  %v10861_v2 = vpack.c.bf16 %v9066_v19, %v9028_v40  ;;  %v9164_v51 = vrot.slane %v10225_v12, %v16604_v25  ;;  %v9168_v60 = vrot.slane %v10225_v12, %v16606_v55 }
0x1618   :  { %v9077_v53 = vsel %vm195_vm6, %v9068_v54, %v9070_v57  ;;  %v9172_v19 = vrot.slane %v10225_v12, %v16605_v11 }
0x1619   :  { %10844 = vmatpush1.bf16.msra.mxu0 %v10843_v18  ;;  %10862 = vmatprep.subr.bf16.mxu1 %v10861_v2  ;;  %v9102_v33 = vmul.f32 %v9088_v16, %v9077_v53 }
0x161a   :  { %v9072_v9 = vpop.permute.xlu0 %9071  ;;  %10864 = vmatpush1.bf16.msra.mxu1 %v10863_v46 }
0x161b   :  { %v9074_v31 = vpop.permute.xlu1 %9073  ;;  %v9076_v34 = vsel %vm195_vm6, %v9070_v57, %v9072_v9 }
0x161c   :  { %v9075_v17 = vsel %vm195_vm6, %v9072_v9, %v9074_v31  ;;  %v9078_v23 = vsel %vm195_vm6, %v9074_v31, %v9068_v54  ;;  %v9103_v0 = vmul.f32 %v9092_v38, %v9076_v34 }
0x161d   :  { %v9101_v10 = vmul.f32 %v9084_v56, %v9078_v23  ;;  %v9104_v49 = vmul.f32 %v9096_v3, %v9075_v17 }
0x161e   :  { %v9106_v32 = vpop.permute.xlu0 %9105 }
0x161f   :  { %v9108_v26 = vpop.permute.xlu1 %9107 }
0x1620   :  { %v9115_v63 = vsel %vm235_vm7, %v9106_v32, %v9108_v26 }
0x1621   :  { %v9140_v62 = vmul.f32 %v9126_v30, %v9115_v63  ;;  %v10226_v63 = vld [vmem:[%s16138_s2 + $0x6] ss:$8 sm:$0xf] }
0x1622   :  { %v9110_v20 = vpop.permute.xlu0 %9109  ;;  %v9210_v23 = vrot.slane %v10226_v63, %v16605_v11 }
0x1623   :  { %v9114_v43 = vsel %vm235_vm7, %v9108_v26, %v9110_v20  ;;  %v9112_v42 = vpop.permute.xlu1 %9111  ;;  %v10845_v5 = vpack.c.bf16 %v9140_v62, %v9102_v33 }
0x1624   :  { %v9141_v29 = vmul.f32 %v9130_v52, %v9114_v43  ;;  %v9113_v4 = vsel %vm235_vm7, %v9110_v20, %v9112_v42  ;;  %v9116_v6 = vsel %vm235_vm7, %v9112_v42, %v9106_v32 }
0x1625   :  { %v9139_v14 = vmul.f32 %v9122_v58, %v9116_v6  ;;  %v9142_v48 = vmul.f32 %v9134_v44, %v9113_v4  ;;  %10846 = vmatprep.subr.bf16.mxu0 %v10845_v5  ;;  %v9206_v58 = vrot.slane %v10226_v63, %v16606_v55 }
0x1626   :  { %v9144_v36 = vpop.permute.xlu0 %9143  ;;  %v10867_v40 = vpack.c.bf16 %v9141_v29, %v9103_v0  ;;  %v10228_v0 = vld [vmem:[%s16138_s2 + $0x20] ss:$8 sm:$0xf] }
0x1627   :  { %v9146_v7 = vpop.permute.xlu1 %9145  ;;  %v10847_v61 = vpack.c.bf16 %v9139_v14, %v9101_v10  ;;  %v10865_v37 = vpack.c.bf16 %v9142_v48, %v9104_v49 }
0x1628   :  { %v9153_v21 = vsel %vm275_vm8, %v9144_v36, %v9146_v7 }
0x1629   :  { %10848 = vmatpush1.bf16.msra.mxu0 %v10847_v61  ;;  %10866 = vmatprep.subr.bf16.mxu1 %v10865_v37  ;;  %v9177_v54 = vmul.f32 %v9160_v47, %v9153_v21 }
0x162a   :  { %v9148_v39 = vpop.permute.xlu0 %9147  ;;  %10868 = vmatpush1.bf16.msra.mxu1 %v10867_v40 }
0x162b   :  { %v9152_v57 = vsel %vm275_vm8, %v9146_v7, %v9148_v39  ;;  %v9150_v18 = vpop.permute.xlu1 %9149  ;;  %v10851_v53 = vpack.c.bf16 %v9177_v54, %v15697_v35  ;;  %v9198_v35 = vrot.slane %v10226_v63, %v11223_v15 }
0x162c   :  { %v9178_v2 = vmul.f32 %v9164_v51, %v9152_v57  ;;  %v9151_v46 = vsel %vm275_vm8, %v9148_v39, %v9150_v18  ;;  %v9154_v1 = vsel %vm275_vm8, %v9150_v18, %v9144_v36  ;;  %v9274_v51 = vrot.slane %v10228_v0, %v11223_v15 }
0x162d   :  { %v9179_v9 = vmul.f32 %v9168_v60, %v9151_v46  ;;  %v9180_v24 = vmul.f32 %v9172_v19, %v9154_v1  ;;  %v9278_v57 = vrot.slane %v10228_v0, %v16604_v25  ;;  %v9282_v18 = vrot.slane %v10228_v0, %v16606_v55 }
0x162e   :  { %v9182_v31 = vpop.permute.xlu0 %9181  ;;  %v10849_v16 = vpack.c.bf16 %v9178_v2, %v15700_v28  ;;  %v10227_v28 = vld [vmem:[%s16138_s2 + $0x7] ss:$8 sm:$0xf]  ;;  %v9286_v2 = vrot.slane %v10228_v0, %v16605_v11 }
0x162f   :  { %v9184_v30 = vpop.permute.xlu1 %9183  ;;  %v10869_v32 = vpack.c.bf16 %v9180_v24, %v15706_v50  ;;  %v10871_v26 = vpack.c.bf16 %v9179_v9, %v15703_v13  ;;  %v9202_v50 = vrot.slane %v10226_v63, %v16604_v25  ;;  %v9236_v13 = vrot.slane %v10227_v28, %v11223_v15 }
0x1630   :  { %10850 = vmatprep.subr.bf16.mxu0 %v10849_v16  ;;  %v9191_v62 = vsel %vm315_vm9, %v9182_v31, %v9184_v30  ;;  %v9240_v38 = vrot.slane %v10227_v28, %v16604_v25  ;;  %v9244_v20 = vrot.slane %v10227_v28, %v16606_v55  ;;  %v9248_v34 = vrot.slane %v10227_v28, %v16605_v11 }
0x1631   :  { %10852 = vmatpush1.bf16.msra.mxu0 %v10851_v53  ;;  %10870 = vmatprep.subr.bf16.mxu1 %v10869_v32  ;;  %v9215_v29 = vmul.f32 %v9198_v35, %v9191_v62  ;;  %v15898_v32 = vld [vmem:[#allocation2 + $0x120] sm:$0xff] }
0x1632   :  { %v9186_v56 = vpop.permute.xlu0 %9185  ;;  %10872 = vmatpush1.bf16.msra.mxu1 %v10871_v26  ;;  %v15900_v26 = vld [vmem:[#allocation2 + $0x138] sm:$0xff] }
0x1633   :  { %v9188_v3 = vpop.permute.xlu1 %9187  ;;  %v9190_v17 = vsel %vm315_vm9, %v9184_v30, %v9186_v56 }
0x1634   :  { %v9189_v43 = vsel %vm315_vm9, %v9186_v56, %v9188_v3  ;;  %v9192_v42 = vsel %vm315_vm9, %v9188_v3, %v9182_v31  ;;  %v9216_v10 = vmul.f32 %v9202_v50, %v9190_v17  ;;  %v15892_v31 = vld [vmem:[#allocation2 + $0x128] sm:$0xff]  ;;  %v15902_v56 = vld [vmem:[#allocation2 + $0x130] sm:$0xff] }
0x1635   :  { %v9217_v36 = vmul.f32 %v9206_v58, %v9189_v43  ;;  %v9218_v47 = vmul.f32 %v9210_v23, %v9192_v42 }
0x1636   :  { %v9220_v52 = vpop.permute.xlu0 %9219 }
0x1637   :  { %v9222_v33 = vpop.permute.xlu1 %9221 }
0x1638   :  { %v9229_v44 = vsel %vm355_vm10, %v9220_v52, %v9222_v33 }
0x1639   :  { %v9253_v4 = vmul.f32 %v9236_v13, %v9229_v44  ;;  %v9331_v13 = vld [vmem:[%s16137_s1 + $0x90] sm:$0xff] }
0x163a   :  { %v9224_v5 = vpop.permute.xlu0 %9223 }
0x163b   :  { %v9228_v6 = vsel %vm355_vm10, %v9222_v33, %v9224_v5  ;;  %v9226_v12 = vpop.permute.xlu1 %9225  ;;  %v10855_v60 = vpack.c.bf16 %v9253_v4, %v9215_v29  ;;  %v10231_v4 = vld [vmem:[%s16138_s2 + $0x1] ss:$8 sm:$0xf] }
0x163c   :  { %v9254_v49 = vmul.f32 %v9240_v38, %v9228_v6  ;;  %v9227_v14 = vsel %vm355_vm10, %v9224_v5, %v9226_v12  ;;  %v9230_v48 = vsel %vm355_vm10, %v9226_v12, %v9220_v52 }
0x163d   :  { %v9255_v7 = vmul.f32 %v9244_v20, %v9227_v14  ;;  %v9256_v61 = vmul.f32 %v9248_v34, %v9230_v48 }
0x163e   :  { %v9258_v37 = vpop.permute.xlu0 %9257  ;;  %v10853_v21 = vpack.c.bf16 %v9254_v49, %v9216_v10 }
0x163f   :  { %v9260_v40 = vpop.permute.xlu1 %9259  ;;  %v10873_v19 = vpack.c.bf16 %v9256_v61, %v9218_v47  ;;  %v10875_v39 = vpack.c.bf16 %v9255_v7, %v9217_v36  ;;  %v9576_v36 = vrot.slane %v10231_v4, %v16604_v25 }
0x1640   :  { %v9267_v54 = vsel %vm395_vm11, %v9258_v37, %v9260_v40  ;;  %10854 = vmatprep.subr.bf16.mxu0 %v10853_v21 }
0x1641   :  { %10856 = vmatpush1.bf16.msra.mxu0 %v10855_v60  ;;  %10874 = vmatprep.subr.bf16.mxu1 %v10873_v19  ;;  %v9291_v1 = vmul.f32 %v9274_v51, %v9267_v54  ;;  %v9572_v51 = vrot.slane %v10231_v4, %v11223_v15  ;;  %v10232_v19 = vld [vmem:[%s16138_s2 + $0x2] ss:$8 sm:$0xf] }
0x1642   :  { %v9262_v46 = vpop.permute.xlu0 %9261  ;;  %10876 = vmatpush1.bf16.msra.mxu1 %v10875_v39 }
0x1643   :  { %v9266_v9 = vsel %vm395_vm11, %v9260_v40, %v9262_v46  ;;  %v9264_v24 = vpop.permute.xlu1 %9263  ;;  %v10859_v52 = vpack.c.bf16 %v15898_v32, %v9291_v1  ;;  %v9584_v40 = vrot.slane %v10231_v4, %v16605_v11 }
0x1644   :  { %v9292_v16 = vmul.f32 %v9278_v57, %v9266_v9  ;;  %v9265_v30 = vsel %vm395_vm11, %v9262_v46, %v9264_v24  ;;  %v9268_v53 = vsel %vm395_vm11, %v9264_v24, %v9258_v37  ;;  %v9580_v37 = vrot.slane %v10231_v4, %v16606_v55 }
0x1645   :  { %v9293_v3 = vmul.f32 %v9282_v18, %v9265_v30  ;;  %v9294_v63 = vmul.f32 %v9286_v2, %v9268_v53  ;;  %v9614_v24 = vrot.slane %v10232_v19, %v16604_v25 }
0x1646   :  { %v10857_v28 = vpack.c.bf16 %v15892_v31, %v9292_v16 }
0x1647   :  { %v10877_v35 = vpack.c.bf16 %v15900_v26, %v9294_v63  ;;  %v10879_v50 = vpack.c.bf16 %v15902_v56, %v9293_v3 }
0x1648   :  { %10858 = vmatprep.subr.bf16.mxu0 %v10857_v28  ;;  %v9618_v28 = vrot.slane %v10232_v19, %v16606_v55 }
0x1649   :  { %10860 = vmatpush1.bf16.msra.mxu0 %v10859_v52  ;;  %10878 = vmatprep.subr.bf16.mxu1 %v10877_v35 }
0x164a   :  { %10880 = vmatpush1.bf16.msra.mxu1 %v10879_v50  ;;  %v9610_v50 = vrot.slane %v10232_v19, %v11223_v15 }
0x164c   :  { %10229 = vmatmul.mubr.msk.f32.vlgmr.msra.gmra.mrb[30].mxu0 %vm878_vm13, %v9331_v13 }
0x164d   :  { %10230 = vmatmul.mubr.msk.f32.vlgmr.msra.gmra.mrb[30].mxu1 %vm878_vm13, %v9331_v13  ;;  %9965 = vmatprep.mubr.f32.mxu0 %v16697_v41  ;;  %v9622_v13 = vrot.slane %v10232_v19, %v16605_v11 }
0x164e   :  { %10036 = vmatprep.mubr.f32.mxu1 %v16697_v41  ;;  %v9529_v41 = vld [vmem:[%s16138_s2] ss:$8 sm:$0xf] }
0x164f   :  { %v9542_v34 = vrot.slane %v9529_v41, %v16606_v55  ;;  %v9534_v42 = vrot.slane %v9529_v41, %v11223_v15  ;;  %v9546_v5 = vrot.slane %v9529_v41, %v16605_v11 }
0x171f   :  { %v9441_v33 = vpop.f32.mrb[30].mxu0 }
0x1720   :  { %v15916_v62 = vadd.f32 %v9441_v33, %v15274_v27  ;;  %v9443_v58 = vpop.f32.mrb[31].mxu0  ;;  %v9512_v44 = vpop.f32.mrb[30].mxu1  ;;  %v9538_v27 = vrot.slane %v9529_v41, %v16604_v25 }
0x1721   :  { %v15919_v38 = vadd.f32 %v9443_v58, %v15278_v8  ;;  %v15922_v17 = vadd.f32 %v9512_v44, %v15280_v22  ;;  %v9514_v23 = vpop.f32.mrb[31].mxu1  ;;  %v10233_v58 = vld [vmem:[%s16138_s2 + $0x3] ss:$8 sm:$0xf] }
0x1722   :  { %v15925_v20 = vadd.f32 %v9514_v23, %v15284_v45  ;;  %9517 = vrot.lane.b32.xlu0 %v15916_v62, %s10998_s7 }
0x1723   :  { %9519 = vrot.lane.b32.xlu1 %v15919_v38, %s10998_s7 }
0x1726   :  { %9521 = vrot.lane.b32.xlu0 %v15922_v17, %s10998_s7 }
0x1727   :  { %9523 = vrot.lane.b32.xlu1 %v15925_v20, %s10998_s7 }
0x172a   :  { %9555 = vrot.lane.b32.xlu0 %v15916_v62, %s10999_s8 }
0x172b   :  { %9557 = vrot.lane.b32.xlu1 %v15919_v38, %s10999_s8 }
0x172e   :  { %9559 = vrot.lane.b32.xlu0 %v15922_v17, %s10999_s8 }
0x172f   :  { %9561 = vrot.lane.b32.xlu1 %v15925_v20, %s10999_s8 }
0x1732   :  { %9593 = vrot.lane.b32.xlu0 %v15916_v62, %s10997_s0 }
0x1733   :  { %9595 = vrot.lane.b32.xlu1 %v15919_v38, %s10997_s0 }
0x1736   :  { %9597 = vrot.lane.b32.xlu0 %v15922_v17, %s10997_s0 }
0x1737   :  { %9599 = vrot.lane.b32.xlu1 %v15925_v20, %s10997_s0 }
0x173a   :  { %9631 = vrot.lane.b32.xlu0 %v15916_v62, %s11000_s9 }
0x173b   :  { %9633 = vrot.lane.b32.xlu1 %v15919_v38, %s11000_s9 }
0x173e   :  { %9635 = vrot.lane.b32.xlu0 %v15922_v17, %s11000_s9 }
0x173f   :  { %9637 = vrot.lane.b32.xlu1 %v15925_v20, %s11000_s9 }
0x1742   :  { %9669 = vrot.lane.b32.xlu0 %v15916_v62, %s11002_s10 }
0x1743   :  { %9671 = vrot.lane.b32.xlu1 %v15919_v38, %s11002_s10 }
0x1746   :  { %9673 = vrot.lane.b32.xlu0 %v15922_v17, %s11002_s10 }
0x1747   :  { %9675 = vrot.lane.b32.xlu1 %v15925_v20, %s11002_s10 }
0x174a   :  { %9707 = vrot.lane.b32.xlu0 %v15916_v62, %s11004_s11 }
0x174b   :  { %9709 = vrot.lane.b32.xlu1 %v15919_v38, %s11004_s11 }
0x174e   :  { %9711 = vrot.lane.b32.xlu0 %v15922_v17, %s11004_s11 }
0x174f   :  { %9713 = vrot.lane.b32.xlu1 %v15925_v20, %s11004_s11 }
0x1752   :  { %9745 = vrot.lane.b32.xlu0 %v15916_v62, %s11006_s12 }
0x1753   :  { %9747 = vrot.lane.b32.xlu1 %v15919_v38, %s11006_s12 }
0x1756   :  { %9749 = vrot.lane.b32.xlu0 %v15922_v17, %s11006_s12 }
0x1757   :  { %9751 = vrot.lane.b32.xlu1 %v15925_v20, %s11006_s12 }
0x175a   :  { %9783 = vrot.lane.b32.xlu0 %v15916_v62, %s11008_s13 }
0x175b   :  { %9785 = vrot.lane.b32.xlu1 %v15919_v38, %s11008_s13 }
0x175e   :  { %9787 = vrot.lane.b32.xlu0 %v15922_v17, %s11008_s13 }
0x175f   :  { %9789 = vrot.lane.b32.xlu1 %v15925_v20, %s11008_s13 }
0x1794   :  { %v9518_v8 = vpop.permute.xlu0 %9517 }
0x1795   :  { %v9520_v22 = vpop.permute.xlu1 %9519 }
0x1796   :  { %v9527_v45 = vsel %vm116_vm4, %v9518_v8, %v9520_v22 }
0x1797   :  { %v9552_v43 = vmul.f32 %v9538_v27, %v9527_v45 }
0x1798   :  { %v9522_v29 = vpop.permute.xlu0 %9521 }
0x1799   :  { %v9526_v6 = vsel %vm116_vm4, %v9520_v22, %v9522_v29  ;;  %v9524_v12 = vpop.permute.xlu1 %9523 }
0x179a   :  { %v9553_v10 = vmul.f32 %v9542_v34, %v9526_v6  ;;  %v9525_v49 = vsel %vm116_vm4, %v9522_v29, %v9524_v12  ;;  %v9528_v14 = vsel %vm116_vm4, %v9524_v12, %v9518_v8  ;;  %v9652_v34 = vrot.slane %v10233_v58, %v16604_v25 }
0x179b   :  { %v9551_v48 = vmul.f32 %v9534_v42, %v9528_v14  ;;  %v9554_v0 = vmul.f32 %v9546_v5, %v9525_v49  ;;  %v9656_v29 = vrot.slane %v10233_v58, %v16606_v55  ;;  %v9648_v6 = vrot.slane %v10233_v58, %v11223_v15  ;;  %v10234_v49 = vld [vmem:[%s16138_s2 + $0x5] ss:$8 sm:$0xf] }
0x179c   :  { %v9556_v47 = vpop.permute.xlu0 %9555  ;;  %v9660_v12 = vrot.slane %v10233_v58, %v16605_v11 }
0x179d   :  { %v9558_v7 = vpop.permute.xlu1 %9557 }
0x179e   :  { %v9565_v61 = vsel %vm155_vm5, %v9556_v47, %v9558_v7 }
0x179f   :  { %v9590_v21 = vmul.f32 %v9576_v36, %v9565_v61 }
0x17a0   :  { %v9560_v60 = vpop.permute.xlu0 %9559 }
0x17a1   :  { %v9564_v39 = vsel %vm155_vm5, %v9558_v7, %v9560_v60  ;;  %v9562_v54 = vpop.permute.xlu1 %9561  ;;  %v10881_v57 = vpack.c.bf16 %v9590_v21, %v9552_v43  ;;  %v9686_v21 = vrot.slane %v10234_v49, %v11223_v15 }
0x17a2   :  { %v9591_v18 = vmul.f32 %v9580_v37, %v9564_v39  ;;  %v9563_v2 = vsel %vm155_vm5, %v9560_v60, %v9562_v54  ;;  %v9566_v46 = vsel %vm155_vm5, %v9562_v54, %v9556_v47  ;;  %v9690_v54 = vrot.slane %v10234_v49, %v16604_v25 }
0x17a3   :  { %v9589_v1 = vmul.f32 %v9572_v51, %v9566_v46  ;;  %v9592_v9 = vmul.f32 %v9584_v40, %v9563_v2  ;;  %10882 = vmatprep.subr.bf16.mxu0 %v10881_v57  ;;  %v9694_v2 = vrot.slane %v10234_v49, %v16606_v55  ;;  %v9698_v46 = vrot.slane %v10234_v49, %v16605_v11 }
0x17a4   :  { %v9594_v16 = vpop.permute.xlu0 %9593  ;;  %v10903_v52 = vpack.c.bf16 %v9591_v18, %v9553_v10 }
0x17a5   :  { %v9596_v30 = vpop.permute.xlu1 %9595  ;;  %v10883_v53 = vpack.c.bf16 %v9589_v1, %v9551_v48  ;;  %v10901_v3 = vpack.c.bf16 %v9592_v9, %v9554_v0  ;;  %v10235_v9 = vld [vmem:[%s16138_s2 + $0x6] ss:$8 sm:$0xf] }
0x17a6   :  { %v9603_v63 = vsel %vm195_vm6, %v9594_v16, %v9596_v30 }
0x17a7   :  { %v9628_v35 = vmul.f32 %v9614_v24, %v9603_v63  ;;  %10884 = vmatpush1.bf16.msra.mxu0 %v10883_v53  ;;  %10902 = vmatprep.subr.bf16.mxu1 %v10901_v3 }
0x17a8   :  { %v9598_v33 = vpop.permute.xlu0 %9597  ;;  %10904 = vmatpush1.bf16.msra.mxu1 %v10903_v52  ;;  %v9724_v52 = vrot.slane %v10235_v9, %v11223_v15 }
0x17a9   :  { %v9602_v44 = vsel %vm195_vm6, %v9596_v30, %v9598_v33  ;;  %v9600_v23 = vpop.permute.xlu1 %9599 }
0x17aa   :  { %v9629_v41 = vmul.f32 %v9618_v28, %v9602_v44  ;;  %v9601_v27 = vsel %vm195_vm6, %v9598_v33, %v9600_v23  ;;  %v9604_v8 = vsel %vm195_vm6, %v9600_v23, %v9594_v16 }
0x17ab   :  { %v9627_v22 = vmul.f32 %v9610_v50, %v9604_v8  ;;  %v9630_v45 = vmul.f32 %v9622_v13, %v9601_v27  ;;  %v9732_v8 = vrot.slane %v10235_v9, %v16606_v55 }
0x17ac   :  { %v9632_v43 = vpop.permute.xlu0 %9631 }
0x17ad   :  { %v9634_v42 = vpop.permute.xlu1 %9633 }
0x17ae   :  { %v9641_v5 = vsel %vm235_vm7, %v9632_v43, %v9634_v42 }
0x17af   :  { %v9666_v4 = vmul.f32 %v9652_v34, %v9641_v5 }
0x17b0   :  { %v9636_v10 = vpop.permute.xlu0 %9635 }
0x17b1   :  { %v9640_v14 = vsel %vm235_vm7, %v9634_v42, %v9636_v10  ;;  %v9638_v48 = vpop.permute.xlu1 %9637  ;;  %v10885_v0 = vpack.c.bf16 %v9666_v4, %v9628_v35 }
0x17b2   :  { %v9667_v36 = vmul.f32 %v9656_v29, %v9640_v14  ;;  %v9639_v47 = vsel %vm235_vm7, %v9636_v10, %v9638_v48  ;;  %v9642_v7 = vsel %vm235_vm7, %v9638_v48, %v9632_v43 }
0x17b3   :  { %v9665_v61 = vmul.f32 %v9648_v6, %v9642_v7  ;;  %v9668_v37 = vmul.f32 %v9660_v12, %v9639_v47  ;;  %10886 = vmatprep.subr.bf16.mxu0 %v10885_v0 }
0x17b4   :  { %v9670_v51 = vpop.permute.xlu0 %9669  ;;  %v10907_v57 = vpack.c.bf16 %v9667_v36, %v9629_v41  ;;  %v9728_v41 = vrot.slane %v10235_v9, %v16604_v25  ;;  %v10237_v36 = vld [vmem:[%s16138_s2 + $0x20] ss:$8 sm:$0xf] }
0x17b5   :  { %v9672_v40 = vpop.permute.xlu1 %9671  ;;  %v10887_v60 = vpack.c.bf16 %v9665_v61, %v9627_v22  ;;  %v10905_v19 = vpack.c.bf16 %v9668_v37, %v9630_v45  ;;  %v9736_v22 = vrot.slane %v10235_v9, %v16605_v11 }
0x17b6   :  { %v9679_v39 = vsel %vm275_vm8, %v9670_v51, %v9672_v40 }
0x17b7   :  { %v9703_v18 = vmul.f32 %v9686_v21, %v9679_v39  ;;  %10888 = vmatpush1.bf16.msra.mxu0 %v10887_v60  ;;  %10906 = vmatprep.subr.bf16.mxu1 %v10905_v19  ;;  %v9800_v60 = vrot.slane %v10237_v36, %v11223_v15 }
0x17b8   :  { %v9674_v1 = vpop.permute.xlu0 %9673  ;;  %10908 = vmatpush1.bf16.msra.mxu1 %v10907_v57 }
0x17b9   :  { %v9678_v24 = vsel %vm275_vm8, %v9672_v40, %v9674_v1  ;;  %v9676_v16 = vpop.permute.xlu1 %9675  ;;  %v10891_v33 = vpack.c.bf16 %v9703_v18, %v15916_v62  ;;  %v10236_v62 = vld [vmem:[%s16138_s2 + $0x7] ss:$8 sm:$0xf] }
0x17ba   :  { %v9704_v30 = vmul.f32 %v9690_v54, %v9678_v24  ;;  %v9677_v53 = vsel %vm275_vm8, %v9674_v1, %v9676_v16  ;;  %v9680_v3 = vsel %vm275_vm8, %v9676_v16, %v9670_v51  ;;  %v9762_v29 = vrot.slane %v10236_v62, %v11223_v15 }
0x17bb   :  { %v9705_v63 = vmul.f32 %v9694_v2, %v9677_v53  ;;  %v9706_v28 = vmul.f32 %v9698_v46, %v9680_v3  ;;  %v9766_v10 = vrot.slane %v10236_v62, %v16604_v25  ;;  %v9770_v14 = vrot.slane %v10236_v62, %v16606_v55 }
0x17bc   :  { %v9708_v35 = vpop.permute.xlu0 %9707  ;;  %v10889_v50 = vpack.c.bf16 %v9704_v30, %v15919_v38  ;;  %v9774_v48 = vrot.slane %v10236_v62, %v16605_v11  ;;  %v9804_v1 = vrot.slane %v10237_v36, %v16604_v25  ;;  %v9808_v24 = vrot.slane %v10237_v36, %v16606_v55 }
0x17bd   :  { %v9710_v13 = vpop.permute.xlu1 %9709  ;;  %v10909_v58 = vpack.c.bf16 %v9706_v28, %v15925_v20  ;;  %v10911_v44 = vpack.c.bf16 %v9705_v63, %v15922_v17  ;;  %v9812_v16 = vrot.slane %v10237_v36, %v16605_v11 }
0x17be   :  { %v9717_v23 = vsel %vm315_vm9, %v9708_v35, %v9710_v13  ;;  %10890 = vmatprep.subr.bf16.mxu0 %v10889_v50 }
0x17bf   :  { %v9741_v27 = vmul.f32 %v9724_v52, %v9717_v23  ;;  %10892 = vmatpush1.bf16.msra.mxu0 %v10891_v33  ;;  %10910 = vmatprep.subr.bf16.mxu1 %v10909_v58 }
0x17c0   :  { %v9712_v38 = vpop.permute.xlu0 %9711  ;;  %10912 = vmatpush1.bf16.msra.mxu1 %v10911_v44 }
0x17c1   :  { %v9716_v17 = vsel %vm315_vm9, %v9710_v13, %v9712_v38  ;;  %v9714_v20 = vpop.permute.xlu1 %9713  ;;  %v9857_v13 = vld [vmem:[%s16137_s1 + $0x98] sm:$0xff] }
0x17c2   :  { %v9742_v45 = vmul.f32 %v9728_v41, %v9716_v17  ;;  %v9715_v34 = vsel %vm315_vm9, %v9712_v38, %v9714_v20  ;;  %v9718_v43 = vsel %vm315_vm9, %v9714_v20, %v9708_v35 }
0x17c3   :  { %v9743_v42 = vmul.f32 %v9732_v8, %v9715_v34  ;;  %v9744_v5 = vmul.f32 %v9736_v22, %v9718_v43 }
0x17c4   :  { %v9746_v4 = vpop.permute.xlu0 %9745 }
0x17c5   :  { %v9748_v6 = vpop.permute.xlu1 %9747 }
0x17c6   :  { %v9755_v12 = vsel %vm355_vm10, %v9746_v4, %v9748_v6 }
0x17c7   :  { %v9779_v49 = vmul.f32 %v9762_v29, %v9755_v12 }
0x17c8   :  { %v9750_v0 = vpop.permute.xlu0 %9749 }
0x17c9   :  { %v9754_v47 = vsel %vm355_vm10, %v9748_v6, %v9750_v0  ;;  %v9752_v7 = vpop.permute.xlu1 %9751  ;;  %v10895_v57 = vpack.c.bf16 %v9779_v49, %v9741_v27 }
0x17ca   :  { %v9780_v61 = vmul.f32 %v9766_v10, %v9754_v47  ;;  %v9753_v37 = vsel %vm355_vm10, %v9750_v0, %v9752_v7  ;;  %v9756_v21 = vsel %vm355_vm10, %v9752_v7, %v9746_v4 }
0x17cb   :  { %v9781_v51 = vmul.f32 %v9770_v14, %v9753_v37  ;;  %v9782_v40 = vmul.f32 %v9774_v48, %v9756_v21 }
0x17cc   :  { %v9784_v19 = vpop.permute.xlu0 %9783  ;;  %v10893_v39 = vpack.c.bf16 %v9780_v61, %v9742_v45 }
0x17cd   :  { %v9786_v54 = vpop.permute.xlu1 %9785  ;;  %v10913_v18 = vpack.c.bf16 %v9782_v40, %v9744_v5  ;;  %v10915_v2 = vpack.c.bf16 %v9781_v51, %v9743_v42 }
0x17ce   :  { %v9793_v46 = vsel %vm395_vm11, %v9784_v19, %v9786_v54  ;;  %10894 = vmatprep.subr.bf16.mxu0 %v10893_v39 }
0x17cf   :  { %v9817_v9 = vmul.f32 %v9800_v60, %v9793_v46  ;;  %10896 = vmatpush1.bf16.msra.mxu0 %v10895_v57  ;;  %10914 = vmatprep.subr.bf16.mxu1 %v10913_v18 }
0x17d0   :  { %v9788_v15 = vpop.permute.xlu0 %9787  ;;  %10916 = vmatpush1.bf16.msra.mxu1 %v10915_v2 }
0x17d1   :  { %v9792_v30 = vsel %vm395_vm11, %v9786_v54, %v9788_v15  ;;  %v9790_v53 = vpop.permute.xlu1 %9789  ;;  %v10899_v11 = vpack.c.bf16 %v15898_v32, %v9817_v9 }
0x17d2   :  { %v9818_v3 = vmul.f32 %v9804_v1, %v9792_v30  ;;  %v9791_v63 = vsel %vm395_vm11, %v9788_v15, %v9790_v53  ;;  %v9794_v25 = vsel %vm395_vm11, %v9790_v53, %v9784_v19 }
0x17d3   :  { %v9819_v28 = vmul.f32 %v9808_v24, %v9791_v63  ;;  %v9820_v52 = vmul.f32 %v9812_v16, %v9794_v25 }
0x17d4   :  { %v10897_v55 = vpack.c.bf16 %v15892_v31, %v9818_v3 }
0x17d5   :  { %v10917_v35 = vpack.c.bf16 %v15900_v26, %v9820_v52  ;;  %v10919_v50 = vpack.c.bf16 %v15902_v56, %v9819_v28 }
0x17d6   :  { %10898 = vmatprep.subr.bf16.mxu0 %v10897_v55 }
0x17d7   :  { %10900 = vmatpush1.bf16.msra.mxu0 %v10899_v11  ;;  %10918 = vmatprep.subr.bf16.mxu1 %v10917_v35 }
0x17d8   :  { %10920 = vmatpush1.bf16.msra.mxu1 %v10919_v50 }
0x17da   :  { %10238 = vmatmul.mubr.msk.f32.vlgmr.msra.gmra.mrb[32].mxu0 %vm878_vm13, %v9857_v13 }
0x17db   :  { %10239 = vmatmul.mubr.msk.f32.vlgmr.msra.gmra.mrb[32].mxu1 %vm878_vm13, %v9857_v13 }
0x18ad   :  { %v9967_v59 = vpop.f32.mrb[32].mxu0 }
0x18ae   :  { %10043 = vst [vmem:[%s16140_s4] sm:$0xff] %v9967_v59  ;;  %v9969_v31 = vpop.f32.mrb[33].mxu0  ;;  %v10038_v32 = vpop.f32.mrb[32].mxu1 }
0x18af   :  { %10044 = vst [vmem:[%s16140_s4 + $0x8] sm:$0xff] %v9969_v31  ;;  %10045 = vst [vmem:[%s16140_s4 + $0x10] sm:$0xff] %v10038_v32  ;;  %v10040_v26 = vpop.f32.mrb[33].mxu1 }
0x18b0   :  { %10046 = vst [vmem:[%s16140_s4 + $0x18] sm:$0xff] %v10040_v26 }
0x18b1   :  { %10083 = vsyncpa [#allocation4], 1 }

</bundles_post_ra>
